<compile_context>
chip_gen: v5e
topology: v5e:2x2
jax: 0.10.0
libtpu: 0.0.40
codegen_flags: <defaults>
</compile_context>

<pallas_src>
import jax
import jax.numpy as jnp
from jax.experimental import pallas as pl
from jax.experimental.pallas import tpu as pltpu

# ----- model hyperparameters (mirror the PyTorch module globals) -----
INPUT_SIZE = 28 * 28          # 784, fixed by x.view(-1, 28*28)
BEST_DEPTH = 3
BEST_WIDTH = 512
HIDDEN_SIZES = [BEST_WIDTH] * BEST_DEPTH
RANKS = [64] * BEST_DEPTH     # low-rank factorization ranks
NUM_CLASSES = 10

# ----- TPU-friendly padded dimensions -----
INPUT_PAD = 896               # pad 784 -> 7*128: lane-dense x tile and A1 rows
RANK_PAD = 128                # pad rank 64 -> 128 (lane-dense, same MXU pass count)
OUT_PAD = 128                 # pad classifier 10 -> 128 (unmasked lane-dense stores)
TB = 256                      # batch tile: MXU M dim on v6e/v7x, multiple of 128 on v5e


def compressed_mlp_kernel(x_ref,
                          a1_ref, b1_ref, c1_ref,
                          a2_ref, b2_ref, c2_ref,
                          a3_ref, b3_ref, c3_ref,
                          wf_ref, bf_ref,
                          o_ref):
    """Fused forward on one batch tile: 3 x [(h@A)@B + bias, ReLU] + final linear.

    x_ref is bf16 (TB, INPUT_PAD); weights bf16; biases f32; output f32.
    Every matmul accumulates in f32 on the MXU (preferred_element_type).
    """
    h = x_ref[...]                                      # bf16 (TB, 896)
    layer_refs = ((a1_ref, b1_ref, c1_ref),
                  (a2_ref, b2_ref, c2_ref),
                  (a3_ref, b3_ref, c3_ref))
    for a_r, b_r, c_r in layer_refs:                    # static Python unroll (3 layers)
        # A: in -> rank (no bias).  bf16 x bf16 -> f32 accumulation.
        z = jnp.dot(h, a_r[...], preferred_element_type=jnp.float32)
        # B: rank -> hidden.  Re-narrow intermediate to bf16 for the MXU.
        z = jnp.dot(z.astype(jnp.bfloat16), b_r[...],
                    preferred_element_type=jnp.float32)
        z = z + c_r[...]                                # bias (1, hidden) broadcast, f32
        h = jnp.maximum(z, 0.0).astype(jnp.bfloat16)    # ReLU, bf16 for next matmul
    out = jnp.dot(h, wf_ref[...], preferred_element_type=jnp.float32) + bf_ref[...]
    o_ref[...] = out.astype(o_ref.dtype)                # f32 lane-dense (TB, 128) store


def init_params(key):
    """Deterministic f32 parameter init (uniform, roughly matching nn.Linear scale)."""
    params = []
    last = INPUT_SIZE
    for hidden, rank in zip(HIDDEN_SIZES, RANKS):
        key, k1, k2, k3 = jax.random.split(key, 4)
        lim_a = 1.0 / jnp.sqrt(last)
        lim_b = 1.0 / jnp.sqrt(rank)
        A = jax.random.uniform(k1, (last, rank), jnp.float32, -lim_a, lim_a)    # (in, rank)
        B = jax.random.uniform(k2, (rank, hidden), jnp.float32, -lim_b, lim_b)  # (rank, hidden)
        bB = jax.random.uniform(k3, (1, hidden), jnp.float32, -lim_b, lim_b)    # bias of B
        params.append((A, B, bB))
        last = hidden
    key, k1, k2 = jax.random.split(key, 3)
    lim_f = 1.0 / jnp.sqrt(last)
    Wf = jax.random.uniform(k1, (last, NUM_CLASSES), jnp.float32, -lim_f, lim_f)
    bf = jax.random.uniform(k2, (1, NUM_CLASSES), jnp.float32, -lim_f, lim_f)
    return params, (Wf, bf)


def prepare_padded_params(params, final):
    """Cast weights to bf16 and zero-pad: input -> INPUT_PAD (layer 1 rows only),
    rank -> RANK_PAD, classes -> OUT_PAD.

    Zero padding does not change the math: padded x columns meet zero-padded A1
    rows; padded A columns produce zero rank activations which meet zero-padded
    B rows; padded classifier columns are sliced off in the wrapper.
    """
    padded = []
    for idx, (A, Bm, c) in enumerate(params):
        in_rows = INPUT_PAD if idx == 0 else A.shape[0]
        A_p = jnp.zeros((in_rows, RANK_PAD), jnp.bfloat16)
        A_p = A_p.at[:A.shape[0], :A.shape[1]].set(A.astype(jnp.bfloat16))
        B_p = jnp.zeros((RANK_PAD, Bm.shape[1]), jnp.bfloat16)
        B_p = B_p.at[:Bm.shape[0], :].set(Bm.astype(jnp.bfloat16))
        padded.append((A_p, B_p, c.astype(jnp.float32)))
    Wf, bf = final
    Wf_p = jnp.zeros((Wf.shape[0], OUT_PAD), jnp.bfloat16)
    Wf_p = Wf_p.at[:, :NUM_CLASSES].set(Wf.astype(jnp.bfloat16))
    bf_p = jnp.zeros((1, OUT_PAD), jnp.float32)
    bf_p = bf_p.at[:, :NUM_CLASSES].set(bf.astype(jnp.float32))
    return padded, (Wf_p, bf_p)


def compressed_mlp_forward(x, padded_params, padded_final, *, tb=TB):
    """x: any shape flattening to (B, 784) — mirrors x.view(-1, 28*28)."""
    x = x.reshape(-1, INPUT_SIZE)
    B = x.shape[0]
    # Pad batch up to a multiple of the tile (MXU M-aligned) and features to
    # INPUT_PAD.  Padded rows produce garbage that is sliced off below; padded
    # feature columns are zero and meet zero-padded A1 rows.
    B_pad = max(tb, pl.cdiv(B, tb) * tb)
    x_p = jnp.zeros((B_pad, INPUT_PAD), jnp.bfloat16)
    x_p = x_p.at[:B, :INPUT_SIZE].set(x.astype(jnp.bfloat16))

    (A1, B1, c1), (A2, B2, c2), (A3, B3, c3) = padded_params
    Wf, bf = padded_final
    weight_args = (A1, B1, c1, A2, B2, c2, A3, B3, c3, Wf, bf)

    def resident_spec(arr):
        # Whole-array block with a constant block index: stays VMEM-resident
        # across all batch-grid steps (no per-step re-fetch).
        return pl.BlockSpec(arr.shape, lambda i: (0,) * arr.ndim)

    grid = (B_pad // tb,)
    out = pl.pallas_call(
        compressed_mlp_kernel,
        out_shape=jax.ShapeDtypeStruct((B_pad, OUT_PAD), jnp.float32),
        grid=grid,
        in_specs=[pl.BlockSpec((tb, INPUT_PAD), lambda i: (i, 0))]   # x tile moves with i
                 + [resident_spec(a) for a in weight_args],
        out_specs=pl.BlockSpec((tb, OUT_PAD), lambda i: (i, 0)),
        compiler_params=pltpu.CompilerParams(
            dimension_semantics=("parallel",),   # shard batch tiles across TCs on v7x
        ),
    )(x_p, *weight_args)
    return out[:B, :NUM_CLASSES]


def reference_forward(x, params, final):
    """Pure-JAX reference mirroring the kernel's bf16-operand / f32-accum numerics."""
    h = x.reshape(-1, INPUT_SIZE).astype(jnp.bfloat16)
    for A, Bm, c in params:
        z = jnp.dot(h, A.astype(jnp.bfloat16), preferred_element_type=jnp.float32)
        z = jnp.dot(z.astype(jnp.bfloat16), Bm.astype(jnp.bfloat16),
                    preferred_element_type=jnp.float32)
        z = z + c
        h = jnp.maximum(z, 0.0).astype(jnp.bfloat16)
    Wf, bf = final
    return jnp.dot(h, Wf.astype(jnp.bfloat16), preferred_element_type=jnp.float32) + bf


if __name__ == "__main__":
    key = jax.random.PRNGKey(0)
    key, pkey, xkey = jax.random.split(key, 3)
    params, final = init_params(pkey)
    padded_params, padded_final = prepare_padded_params(params, final)

    # Example input: MNIST-like NCHW images, batch=2 -> flattened to (2, 784).
    x = jax.random.normal(xkey, (2, 1, 28, 28), dtype=jnp.float32)

    out = compressed_mlp_forward(x, padded_params, padded_final)
    out = jax.block_until_ready(out)

    ref = reference_forward(x, params, final)
    assert out.shape == (2, NUM_CLASSES)
    assert jnp.allclose(out, ref, atol=5e-2, rtol=5e-2), "mismatch vs reference"

    print("KERNEL_OK")
</pallas_src>

<mosaic_0001>
module attributes {stable_mosaic.version = 11 : i64} {
  func.func @compressed_mlp_kernel(%arg0: i32, %arg1: memref<256x896xbf16, #tpu.memory_space<vmem>>, %arg2: memref<896x128xbf16, #tpu.memory_space<vmem>>, %arg3: memref<128x512xbf16, #tpu.memory_space<vmem>>, %arg4: memref<1x512xf32, #tpu.memory_space<vmem>>, %arg5: memref<512x128xbf16, #tpu.memory_space<vmem>>, %arg6: memref<128x512xbf16, #tpu.memory_space<vmem>>, %arg7: memref<1x512xf32, #tpu.memory_space<vmem>>, %arg8: memref<512x128xbf16, #tpu.memory_space<vmem>>, %arg9: memref<128x512xbf16, #tpu.memory_space<vmem>>, %arg10: memref<1x512xf32, #tpu.memory_space<vmem>>, %arg11: memref<512x128xbf16, #tpu.memory_space<vmem>>, %arg12: memref<1x128xf32, #tpu.memory_space<vmem>>, %arg13: memref<256x128xf32, #tpu.memory_space<vmem>>) attributes {dimension_semantics = [#tpu.dimension_semantics<parallel>], iteration_bounds = array<i64: 1>, scalar_prefetch = 0 : i64, scratch_operands = 0 : i64, tpu.core_type = #tpu.core_type<tc>, window_params = [{transform_indices = @transform_0, window_bounds = array<i64: 256, 896>}, {pipeline_mode = #tpu.pipeline_mode<synchronous>, transform_indices = @transform_1, window_bounds = array<i64: 896, 128>}, {pipeline_mode = #tpu.pipeline_mode<synchronous>, transform_indices = @transform_2, window_bounds = array<i64: 128, 512>}, {pipeline_mode = #tpu.pipeline_mode<synchronous>, transform_indices = @transform_3, window_bounds = array<i64: 1, 512>}, {pipeline_mode = #tpu.pipeline_mode<synchronous>, transform_indices = @transform_4, window_bounds = array<i64: 512, 128>}, {pipeline_mode = #tpu.pipeline_mode<synchronous>, transform_indices = @transform_5, window_bounds = array<i64: 128, 512>}, {pipeline_mode = #tpu.pipeline_mode<synchronous>, transform_indices = @transform_6, window_bounds = array<i64: 1, 512>}, {pipeline_mode = #tpu.pipeline_mode<synchronous>, transform_indices = @transform_7, window_bounds = array<i64: 512, 128>}, {pipeline_mode = #tpu.pipeline_mode<synchronous>, transform_indices = @transform_8, window_bounds = array<i64: 128, 512>}, {pipeline_mode = #tpu.pipeline_mode<synchronous>, transform_indices = @transform_9, window_bounds = array<i64: 1, 512>}, {pipeline_mode = #tpu.pipeline_mode<synchronous>, transform_indices = @transform_10, window_bounds = array<i64: 512, 128>}, {pipeline_mode = #tpu.pipeline_mode<synchronous>, transform_indices = @transform_11, window_bounds = array<i64: 1, 128>}, {transform_indices = @transform_12, window_bounds = array<i64: 256, 128>}]} {
    %c0 = arith.constant 0 : index
    %c0_0 = arith.constant 0 : index
    %0 = vector.load %arg1[%c0, %c0_0] : memref<256x896xbf16, #tpu.memory_space<vmem>>, vector<256x896xbf16>
    %c0_1 = arith.constant 0 : index
    %c0_2 = arith.constant 0 : index
    %1 = vector.load %arg2[%c0_1, %c0_2] : memref<896x128xbf16, #tpu.memory_space<vmem>>, vector<896x128xbf16>
    %cst = arith.constant dense<0.000000e+00> : vector<256x128xf32>
    %2 = tpu.matmul %0, %1, %cst {dimension_numbers = #tpu.dot_dimension_numbers<[1], [0], [0], [1], [0, 0, 1, 1], [], []>} : vector<256x896xbf16>, vector<896x128xbf16>, vector<256x128xf32> -> vector<256x128xf32>
    %3 = arith.truncf %2 : vector<256x128xf32> to vector<256x128xbf16>
    %c0_3 = arith.constant 0 : index
    %c0_4 = arith.constant 0 : index
    %4 = vector.load %arg3[%c0_3, %c0_4] : memref<128x512xbf16, #tpu.memory_space<vmem>>, vector<128x512xbf16>
    %cst_5 = arith.constant dense<0.000000e+00> : vector<256x512xf32>
    %5 = tpu.matmul %3, %4, %cst_5 {dimension_numbers = #tpu.dot_dimension_numbers<[1], [0], [0], [1], [0, 0, 1, 1], [], []>} : vector<256x128xbf16>, vector<128x512xbf16>, vector<256x512xf32> -> vector<256x512xf32>
    %c0_6 = arith.constant 0 : index
    %c0_7 = arith.constant 0 : index
    %6 = vector.load %arg4[%c0_6, %c0_7] : memref<1x512xf32, #tpu.memory_space<vmem>>, vector<1x512xf32>
    %7 = vector.broadcast %6 : vector<1x512xf32> to vector<256x512xf32>
    %8 = arith.addf %5, %7 : vector<256x512xf32>
    %cst_8 = arith.constant 0.000000e+00 : f32
    %9 = vector.broadcast %cst_8 : f32 to vector<256x512xf32>
    %10 = arith.maximumf %8, %9 : vector<256x512xf32>
    %11 = arith.truncf %10 : vector<256x512xf32> to vector<256x512xbf16>
    %c0_9 = arith.constant 0 : index
    %c0_10 = arith.constant 0 : index
    %12 = vector.load %arg5[%c0_9, %c0_10] : memref<512x128xbf16, #tpu.memory_space<vmem>>, vector<512x128xbf16>
    %cst_11 = arith.constant dense<0.000000e+00> : vector<256x128xf32>
    %13 = tpu.matmul %11, %12, %cst_11 {dimension_numbers = #tpu.dot_dimension_numbers<[1], [0], [0], [1], [0, 0, 1, 1], [], []>} : vector<256x512xbf16>, vector<512x128xbf16>, vector<256x128xf32> -> vector<256x128xf32>
    %14 = arith.truncf %13 : vector<256x128xf32> to vector<256x128xbf16>
    %c0_12 = arith.constant 0 : index
    %c0_13 = arith.constant 0 : index
    %15 = vector.load %arg6[%c0_12, %c0_13] : memref<128x512xbf16, #tpu.memory_space<vmem>>, vector<128x512xbf16>
    %cst_14 = arith.constant dense<0.000000e+00> : vector<256x512xf32>
    %16 = tpu.matmul %14, %15, %cst_14 {dimension_numbers = #tpu.dot_dimension_numbers<[1], [0], [0], [1], [0, 0, 1, 1], [], []>} : vector<256x128xbf16>, vector<128x512xbf16>, vector<256x512xf32> -> vector<256x512xf32>
    %c0_15 = arith.constant 0 : index
    %c0_16 = arith.constant 0 : index
    %17 = vector.load %arg7[%c0_15, %c0_16] : memref<1x512xf32, #tpu.memory_space<vmem>>, vector<1x512xf32>
    %18 = vector.broadcast %17 : vector<1x512xf32> to vector<256x512xf32>
    %19 = arith.addf %16, %18 : vector<256x512xf32>
    %cst_17 = arith.constant 0.000000e+00 : f32
    %20 = vector.broadcast %cst_17 : f32 to vector<256x512xf32>
    %21 = arith.maximumf %19, %20 : vector<256x512xf32>
    %22 = arith.truncf %21 : vector<256x512xf32> to vector<256x512xbf16>
    %c0_18 = arith.constant 0 : index
    %c0_19 = arith.constant 0 : index
    %23 = vector.load %arg8[%c0_18, %c0_19] : memref<512x128xbf16, #tpu.memory_space<vmem>>, vector<512x128xbf16>
    %cst_20 = arith.constant dense<0.000000e+00> : vector<256x128xf32>
    %24 = tpu.matmul %22, %23, %cst_20 {dimension_numbers = #tpu.dot_dimension_numbers<[1], [0], [0], [1], [0, 0, 1, 1], [], []>} : vector<256x512xbf16>, vector<512x128xbf16>, vector<256x128xf32> -> vector<256x128xf32>
    %25 = arith.truncf %24 : vector<256x128xf32> to vector<256x128xbf16>
    %c0_21 = arith.constant 0 : index
    %c0_22 = arith.constant 0 : index
    %26 = vector.load %arg9[%c0_21, %c0_22] : memref<128x512xbf16, #tpu.memory_space<vmem>>, vector<128x512xbf16>
    %cst_23 = arith.constant dense<0.000000e+00> : vector<256x512xf32>
    %27 = tpu.matmul %25, %26, %cst_23 {dimension_numbers = #tpu.dot_dimension_numbers<[1], [0], [0], [1], [0, 0, 1, 1], [], []>} : vector<256x128xbf16>, vector<128x512xbf16>, vector<256x512xf32> -> vector<256x512xf32>
    %c0_24 = arith.constant 0 : index
    %c0_25 = arith.constant 0 : index
    %28 = vector.load %arg10[%c0_24, %c0_25] : memref<1x512xf32, #tpu.memory_space<vmem>>, vector<1x512xf32>
    %29 = vector.broadcast %28 : vector<1x512xf32> to vector<256x512xf32>
    %30 = arith.addf %27, %29 : vector<256x512xf32>
    %cst_26 = arith.constant 0.000000e+00 : f32
    %31 = vector.broadcast %cst_26 : f32 to vector<256x512xf32>
    %32 = arith.maximumf %30, %31 : vector<256x512xf32>
    %33 = arith.truncf %32 : vector<256x512xf32> to vector<256x512xbf16>
    %c0_27 = arith.constant 0 : index
    %c0_28 = arith.constant 0 : index
    %34 = vector.load %arg11[%c0_27, %c0_28] : memref<512x128xbf16, #tpu.memory_space<vmem>>, vector<512x128xbf16>
    %cst_29 = arith.constant dense<0.000000e+00> : vector<256x128xf32>
    %35 = tpu.matmul %33, %34, %cst_29 {dimension_numbers = #tpu.dot_dimension_numbers<[1], [0], [0], [1], [0, 0, 1, 1], [], []>} : vector<256x512xbf16>, vector<512x128xbf16>, vector<256x128xf32> -> vector<256x128xf32>
    %c0_30 = arith.constant 0 : index
    %c0_31 = arith.constant 0 : index
    %36 = vector.load %arg12[%c0_30, %c0_31] : memref<1x128xf32, #tpu.memory_space<vmem>>, vector<1x128xf32>
    %37 = vector.broadcast %36 : vector<1x128xf32> to vector<256x128xf32>
    %38 = arith.addf %35, %37 : vector<256x128xf32>
    %c0_32 = arith.constant 0 : index
    %c0_33 = arith.constant 0 : index
    %39 = vector.load %arg13[%c0_32, %c0_33] : memref<256x128xf32, #tpu.memory_space<vmem>>, vector<256x128xf32>
    tpu.vector_store %arg13[%c0_32, %c0_33], %38 {strides = array<i32>} : memref<256x128xf32, #tpu.memory_space<vmem>>, vector<256x128xf32>,
    return
  }
  func.func @transform_0(%arg0: i32) -> (i32, i32) {
    %c0_i32 = arith.constant 0 : i32
    %c0_i32_0 = arith.constant 0 : i32
    return %arg0, %c0_i32 : i32, i32
  }
  func.func @transform_1(%arg0: i32) -> (i32, i32) {
    %c0_i32 = arith.constant 0 : i32
    %c0_i32_0 = arith.constant 0 : i32
    %c0_i32_1 = arith.constant 0 : i32
    return %c0_i32, %c0_i32_0 : i32, i32
  }
  func.func @transform_2(%arg0: i32) -> (i32, i32) {
    %c0_i32 = arith.constant 0 : i32
    %c0_i32_0 = arith.constant 0 : i32
    %c0_i32_1 = arith.constant 0 : i32
    return %c0_i32, %c0_i32_0 : i32, i32
  }
  func.func @transform_3(%arg0: i32) -> (i32, i32) {
    %c0_i32 = arith.constant 0 : i32
    %c0_i32_0 = arith.constant 0 : i32
    %c0_i32_1 = arith.constant 0 : i32
    return %c0_i32, %c0_i32_0 : i32, i32
  }
  func.func @transform_4(%arg0: i32) -> (i32, i32) {
    %c0_i32 = arith.constant 0 : i32
    %c0_i32_0 = arith.constant 0 : i32
    %c0_i32_1 = arith.constant 0 : i32
    return %c0_i32, %c0_i32_0 : i32, i32
  }
  func.func @transform_5(%arg0: i32) -> (i32, i32) {
    %c0_i32 = arith.constant 0 : i32
    %c0_i32_0 = arith.constant 0 : i32
    %c0_i32_1 = arith.constant 0 : i32
    return %c0_i32, %c0_i32_0 : i32, i32
  }
  func.func @transform_6(%arg0: i32) -> (i32, i32) {
    %c0_i32 = arith.constant 0 : i32
    %c0_i32_0 = arith.constant 0 : i32
    %c0_i32_1 = arith.constant 0 : i32
    return %c0_i32, %c0_i32_0 : i32, i32
  }
  func.func @transform_7(%arg0: i32) -> (i32, i32) {
    %c0_i32 = arith.constant 0 : i32
    %c0_i32_0 = arith.constant 0 : i32
    %c0_i32_1 = arith.constant 0 : i32
    return %c0_i32, %c0_i32_0 : i32, i32
  }
  func.func @transform_8(%arg0: i32) -> (i32, i32) {
    %c0_i32 = arith.constant 0 : i32
    %c0_i32_0 = arith.constant 0 : i32
    %c0_i32_1 = arith.constant 0 : i32
    return %c0_i32, %c0_i32_0 : i32, i32
  }
  func.func @transform_9(%arg0: i32) -> (i32, i32) {
    %c0_i32 = arith.constant 0 : i32
    %c0_i32_0 = arith.constant 0 : i32
    %c0_i32_1 = arith.constant 0 : i32
    return %c0_i32, %c0_i32_0 : i32, i32
  }
  func.func @transform_10(%arg0: i32) -> (i32, i32) {
    %c0_i32 = arith.constant 0 : i32
    %c0_i32_0 = arith.constant 0 : i32
    %c0_i32_1 = arith.constant 0 : i32
    return %c0_i32, %c0_i32_0 : i32, i32
  }
  func.func @transform_11(%arg0: i32) -> (i32, i32) {
    %c0_i32 = arith.constant 0 : i32
    %c0_i32_0 = arith.constant 0 : i32
    %c0_i32_1 = arith.constant 0 : i32
    return %c0_i32, %c0_i32_0 : i32, i32
  }
  func.func @transform_12(%arg0: i32) -> (i32, i32) {
    %c0_i32 = arith.constant 0 : i32
    %c0_i32_0 = arith.constant 0 : i32
    return %arg0, %c0_i32 : i32, i32
  }
}

</mosaic_0001>

<bundles_post_ra>
// kernel: tpu_custom_call.1
= control target key start
LH: loop header
LB: loop body
LE: loop exit
PB: predicated region body
PF: predicated region fallthrough
CT: control target
= control target key end

     0   :  { %17 = vsyncpa [#allocation3], 0  ;;  %s9891_s0 = inlined_call_operand.hbm [shape: bf16[256,896], index: 0, kind: input, shape index: {}]   ;;  %s9892_s1 = inlined_call_operand.hbm [shape: bf16[896,128], index: 1, kind: input, shape index: {}]   ;;  %s9893_s2 = inlined_call_operand.hbm [shape: bf16[128,512], index: 2, kind: input, shape index: {}]   ;;  %s9894_s3 = inlined_call_operand.hbm [shape: f32[1,512], index: 3, kind: input, shape index: {}]   ;;  %s9895_s4 = inlined_call_operand.hbm [shape: bf16[512,128], index: 4, kind: input, shape index: {}]   ;;  %s9896_s5 = inlined_call_operand.hbm [shape: bf16[128,512], index: 5, kind: input, shape index: {}]   ;;  %s9897_s6 = inlined_call_operand.vmem [shape: f32[1,512], index: 6, kind: input, shape index: {}]   ;;  %s9898_s7 = inlined_call_operand.hbm [shape: bf16[512,128], index: 7, kind: input, shape index: {}]   ;;  %s9899_s8 = inlined_call_operand.hbm [shape: bf16[128,512], index: 8, kind: input, shape index: {}]   ;;  %s9900_s9 = inlined_call_operand.vmem [shape: f32[1,512], index: 9, kind: input, shape index: {}]   ;;  %s9901_s10 = inlined_call_operand.hbm [shape: bf16[512,128], index: 10, kind: input, shape index: {}]   ;;  %s9902_s11 = inlined_call_operand.vmem [shape: f32[1,128], index: 11, kind: input, shape index: {}]   ;;  %s9903_s12 = inlined_call_operand.hbm [shape: f32[256,128], index: 12, kind: output, shape index: {}]  }
   0x1   :  { %18 = vsyncpa [#allocation6], 0 }
   0x2   :  { %19 = vsyncpa [#allocation9], 0 }
   0x3   :  { %20 = vsyncpa [#allocation12], 0 }
   0x4   :  { %21 = vsyncpa [#allocation15], 0  ;;  %s40_s23 = sshll.u32 %s9892_s1, 4  ;;  %s41_s23 = int_to_ptr.hbm [resolvable:$true] %s40_s23 }
   0x5   :  { %22 = vsyncpa [#allocation4], 0  ;;  %s8243_s24 = smov [#allocation5]   ;;  %s67_s28 = sshll.u32 %s9894_s3, 4  ;;  %s68_s28 = int_to_ptr.hbm [resolvable:$true] %s67_s28 }
   0x6   :  { %s42_s25 = sshll.u32 %s8243_s24, 4  ;;  %s8244_s29 = smov 64   ;;  %s43_s25 = int_to_ptr.vmem [resolvable:$true] %s42_s25 }
   0x7   :  { %s8245_s30 = smov 4   ;;  %s8246_s13 = smov [#allocation8]  }
   0x8   :  { %48 = dma.hbm_to_vmem [thread:$0]  %s41_s23, 7168, %s43_s25, [#allocation6], %s8244_s29, %s8244_s29, %s8245_s30  }
   0x9   :  { %s69_s14 = sshll.u32 %s8246_s13, 4  ;;  %s90_s16 = sshll.u32 %s9896_s5, 4  ;;  %s70_s14 = int_to_ptr.vmem [resolvable:$true] %s69_s14  ;;  %s91_s16 = int_to_ptr.hbm [resolvable:$true] %s90_s16 }
   0xa   :  { %72 = dma.hbm_to_vmem [thread:$0]  %s68_s28, 64, %s70_s14, [#allocation9]  }
   0xb   :  { %s8247_s17 = smov [#allocation11]   ;;  %s118_s20 = sshll.u32 %s9899_s8, 4  ;;  %s119_s20 = int_to_ptr.hbm [resolvable:$true] %s118_s20 }
   0xc   :  { %s92_s18 = sshll.u32 %s8247_s17, 4  ;;  %s8248_s21 = smov 256   ;;  %s93_s18 = int_to_ptr.vmem [resolvable:$true] %s92_s18 }
   0xd   :  { %s8249_s22 = smov 16   ;;  %s8250_s23 = smov [#allocation14]  }
   0xe   :  { %98 = dma.hbm_to_vmem [thread:$0]  %s91_s16, 4096, %s93_s18, [#allocation12], %s8248_s21, %s8248_s21, %s8249_s22  }
   0xf   :  { %s120_s24 = sshll.u32 %s8250_s23, 4  ;;  %s27_s27 = sshll.u32 %s9891_s0, 4  ;;  %s121_s24 = int_to_ptr.vmem [resolvable:$true] %s120_s24  ;;  %s28_s27 = int_to_ptr.hbm [resolvable:$true] %s27_s27 }
  0x10   :  { %126 = dma.hbm_to_vmem [thread:$0]  %s119_s20, 4096, %s121_s24, [#allocation15], %s8248_s21, %s8248_s21, %s8249_s22  }
  0x11   :  { %s8251_s5 = smov [#allocation2]   ;;  %s53_s8 = sshll.u32 %s9893_s2, 4  ;;  %s54_s8 = int_to_ptr.hbm [resolvable:$true] %s53_s8 }
  0x12   :  { %s29_s28 = sshll.u32 %s8251_s5, 4  ;;  %s8252_s1 = smov 448   ;;  %s30_s28 = int_to_ptr.vmem [resolvable:$true] %s29_s28 }
  0x13   :  { %s8253_s15 = smov 28   ;;  %s8254_s16 = smov [#allocation7]  }
  0x14   :  { %35 = dma.hbm_to_vmem [thread:$0]  %s28_s27, 14336, %s30_s28, [#allocation3], %s8252_s1, %s8252_s1, %s8253_s15  }
  0x15   :  { %s55_s17 = sshll.u32 %s8254_s16, 4  ;;  %s77_s0 = sshll.u32 %s9895_s4, 4  ;;  %s56_s17 = int_to_ptr.vmem [resolvable:$true] %s55_s17  ;;  %s78_s0 = int_to_ptr.hbm [resolvable:$true] %s77_s0 }
  0x16   :  { %61 = dma.hbm_to_vmem [thread:$0]  %s54_s8, 4096, %s56_s17, [#allocation6], %s8248_s21, %s8248_s21, %s8249_s22  }
  0x17   :  { %s105_s23 = sshll.u32 %s9898_s7, 4  ;;  %s8255_s24 = smov [#allocation10]   ;;  %s106_s23 = int_to_ptr.hbm [resolvable:$true] %s105_s23 }
  0x18   :  { %s79_s25 = sshll.u32 %s8255_s24, 4  ;;  %s8256_s2 = smov [#allocation13]   ;;  %s80_s25 = int_to_ptr.vmem [resolvable:$true] %s79_s25 }
  0x19   :  { %85 = dma.hbm_to_vmem [thread:$0]  %s78_s0, 4096, %s80_s25, [#allocation9], %s8244_s29, %s8244_s29, %s8245_s30  }
  0x1a   :  { %s107_s26 = sshll.u32 %s8256_s2, 4  ;;  %s133_s4 = sshll.u32 %s9901_s10, 4  ;;  %s108_s26 = int_to_ptr.vmem [resolvable:$true] %s107_s26  ;;  %s134_s4 = int_to_ptr.hbm [resolvable:$true] %s133_s4 }
  0x1b   :  { %113 = dma.hbm_to_vmem [thread:$0]  %s106_s23, 4096, %s108_s26, [#allocation12], %s8244_s29, %s8244_s29, %s8245_s30  }
  0x1c   :  { %s8257_s7 = smov [#allocation16]  }
  0x1d   :  { %s135_s21 = sshll.u32 %s8257_s7, 4  ;;  %s136_s21 = int_to_ptr.vmem [resolvable:$true] %s135_s21 }
  0x1e   :  { %141 = dma.hbm_to_vmem [thread:$0]  %s134_s4, 4096, %s136_s21, [#allocation15], %s8244_s29, %s8244_s29, %s8245_s30  }
  0x1f   :  { %8231 = dma.done.wait [#allocation3], 14336  }
  0x20   :  { %8232 = vsyncadd [#allocation3], 4294952960 }
  0x21   :  { %8233 = dma.done.wait [#allocation6], 11264  }
  0x22   :  { %8234 = vsyncadd [#allocation6], 4294956032 }
  0x23   :  { %8235 = dma.done.wait [#allocation9], 4160  }
  0x24   :  { %8236 = vsyncadd [#allocation9], 4294963136 }
  0x25   :  { %8237 = dma.done.wait [#allocation12], 8192  }
  0x26   :  { %8238 = vsyncadd [#allocation12], 4294959104 }
  0x27   :  { %8239 = dma.done.wait [#allocation15], 8192  }
  0x28   :  { %8240 = vsyncadd [#allocation15], 4294959104  ;;  %v7707_v0 = vld [vmem:[#allocation5 + $0x38] sm:$0xff]  ;;  %v7706_v3 = vld [vmem:[#allocation5 + $0x30] sm:$0xff]  ;;  %s6131_s8 = sshll.u32 %s9903_s12, 4  ;;  %s8259_s1 = smov 128   ;;  %s6132_s8 = int_to_ptr.hbm [resolvable:$true] %s6131_s8 }
  0x29   :  { %v8365_v1 = vld [vmem:[#allocation5 + $0x78] sm:$0xff]  ;;  %1332 = vmatpush.bf16.msra.mxu0 %v7707_v0  ;;  %7948 = vmatpush.bf16.msra.mxu3 %v7707_v0  ;;  %v8371_v4 = vld [vmem:[#allocation5 + $0x70] sm:$0xff]  ;;  %v7705_v6 = vld [vmem:[#allocation5 + $0x28] sm:$0xff]  ;;  %s8260_s15 = smov 8  }
  0x2a   :  { %v8367_v2 = vld [vmem:[#allocation5 + $0xb8] sm:$0xff]  ;;  %1421 = vmatpush.bf16.msra.mxu1 %v8365_v1  ;;  %v8373_v5 = vld [vmem:[#allocation5 + $0xb0] sm:$0xff]  ;;  %v8377_v7 = vld [vmem:[#allocation5 + $0x68] sm:$0xff] }
  0x2b   :  { %1510 = vmatpush.bf16.msra.mxu2 %v8367_v2  ;;  %v8379_v8 = vld [vmem:[#allocation5 + $0xa8] sm:$0xff]  ;;  %v7704_v9 = vld [vmem:[#allocation5 + $0x20] sm:$0xff]  ;;  %v7703_v12 = vld [vmem:[#allocation5 + $0x18] sm:$0xff] }
  0x2c   :  { %v8383_v10 = vld [vmem:[#allocation5 + $0x60] sm:$0xff]  ;;  %v8389_v13 = vld [vmem:[#allocation5 + $0x58] sm:$0xff]  ;;  %v7702_v15 = vld [vmem:[#allocation5 + $0x10] sm:$0xff] }
  0x2d   :  { %1333 = vmatpush.bf16.msra.mxu0 %v7706_v3  ;;  %7949 = vmatpush.bf16.msra.mxu3 %v7706_v3  ;;  %v8385_v11 = vld [vmem:[#allocation5 + $0xa0] sm:$0xff]  ;;  %v8391_v14 = vld [vmem:[#allocation5 + $0x98] sm:$0xff]  ;;  %v8395_v16 = vld [vmem:[#allocation5 + $0x50] sm:$0xff] }
  0x2e   :  { %1422 = vmatpush.bf16.msra.mxu1 %v8371_v4  ;;  %v8397_v17 = vld [vmem:[#allocation5 + $0x90] sm:$0xff]  ;;  %v7701_v18 = vld [vmem:[#allocation5 + $0x8] sm:$0xff]  ;;  %v7700_v21 = vld [vmem:[#allocation5] sm:$0xff] }
  0x2f   :  { %1511 = vmatpush.bf16.msra.mxu2 %v8373_v5  ;;  %v8401_v19 = vld [vmem:[#allocation5 + $0x48] sm:$0xff]  ;;  %v8405_v22 = vld [vmem:[#allocation5 + $0x40] sm:$0xff]  ;;  %v7591_v25 = vld [vmem:[#allocation2 + $0x18] sm:$0xf0] }
  0x30   :  { %v8403_v20 = vld [vmem:[#allocation5 + $0x88] sm:$0xff]  ;;  %v8407_v23 = vld [vmem:[#allocation5 + $0x80] sm:$0xff]  ;;  %v7675_v27 = vld [vmem:[#allocation2 + $0x2b8] sm:$0xf0] }
  0x31   :  { %1334 = vmatpush.bf16.msra.mxu0 %v7705_v6  ;;  %7950 = vmatpush.bf16.msra.mxu3 %v7705_v6  ;;  %v6150_v24 = vld [vmem:[#allocation2] sm:$0xf]  ;;  %v7588_v28 = vld [vmem:[#allocation2 + $0x4] sm:$0xf]  ;;  %v6158_v30 = vld [vmem:[#allocation2 + $0x8] sm:$0xf] }
  0x32   :  { %1423 = vmatpush.bf16.msra.mxu1 %v8377_v7  ;;  %v6486_v26 = vld [vmem:[#allocation2 + $0x2a0] sm:$0xf]  ;;  %v7592_v31 = vld [vmem:[#allocation2 + $0x20] sm:$0xf0]  ;;  %v7755_v32 = vld [vmem:[#allocation5 + $0x1b8] sm:$0xff]  ;;  %v6151_v33 = vor.u32 %v7591_v25, %v6150_v24 }
  0x33   :  { %1512 = vmatpush.bf16.msra.mxu2 %v8379_v8  ;;  %v6152_v29 = vld [vmem:[#allocation2 + $0x1c] sm:$0xf0]  ;;  %v6487_v34 = vor.u32 %v7675_v27, %v6486_v26  ;;  %v6159_v36 = vor.u32 %v7592_v31, %v6158_v30  ;;  %v7739_v37 = vld [vmem:[#allocation5 + $0x138] sm:$0xff]  ;;  %v7754_v39 = vld [vmem:[#allocation5 + $0x1b0] sm:$0xff] }
  0x34   :  { %v6155_v35 = vor.u32 %v7588_v28, %v6152_v29  ;;  %v7747_v38 = vld [vmem:[#allocation5 + $0x178] sm:$0xff]  ;;  %v7738_v40 = vld [vmem:[#allocation5 + $0x130] sm:$0xff]  ;;  %v6186_v48 = vld [vmem:[#allocation2 + $0x40] sm:$0xf] }
  0x35   :  { %1335 = vmatpush.bf16.msra.mxu0 %v7704_v9  ;;  %7951 = vmatpush.bf16.msra.mxu3 %v7704_v9  ;;  %v7746_v41 = vld [vmem:[#allocation5 + $0x170] sm:$0xff]  ;;  %v6178_v42 = vld [vmem:[#allocation2 + $0x38] sm:$0xf]  ;;  %v7595_v46 = vld [vmem:[#allocation2 + $0x3c] sm:$0xf] }
  0x36   :  { %1424 = vmatpush.bf16.msra.mxu1 %v8383_v10  ;;  %v7598_v43 = vld [vmem:[#allocation2 + $0x50] sm:$0xf0]  ;;  %v6514_v44 = vld [vmem:[#allocation2 + $0x2d8] sm:$0xf]  ;;  %v7599_v49 = vld [vmem:[#allocation2 + $0x58] sm:$0xf0] }
  0x37   :  { %1513 = vmatpush.bf16.msra.mxu2 %v8385_v11  ;;  %v7682_v45 = vld [vmem:[#allocation2 + $0x2f0] sm:$0xf0]  ;;  %v6180_v47 = vld [vmem:[#allocation2 + $0x54] sm:$0xf0]  ;;  %v6179_v50 = vor.u32 %v7598_v43, %v6178_v42  ;;  %v6187_v53 = vor.u32 %v7599_v49, %v6186_v48  ;;  %v7753_v54 = vld [vmem:[#allocation5 + $0x1a8] sm:$0xff] }
  0x38   :  { %v6515_v51 = vor.u32 %v7682_v45, %v6514_v44  ;;  %v6183_v52 = vor.u32 %v7595_v46, %v6180_v47  ;;  %v7737_v55 = vld [vmem:[#allocation5 + $0x128] sm:$0xff]  ;;  %v6206_v57 = vld [vmem:[#allocation2 + $0x70] sm:$0xf]  ;;  %v7602_v61 = vld [vmem:[#allocation2 + $0x74] sm:$0xf] }
  0x39   :  { %1336 = vmatpush.bf16.msra.mxu0 %v7703_v12  ;;  %7952 = vmatpush.bf16.msra.mxu3 %v7703_v12  ;;  %v7745_v56 = vld [vmem:[#allocation5 + $0x168] sm:$0xff]  ;;  %v6542_v59 = vld [vmem:[#allocation2 + $0x310] sm:$0xf]  ;;  %v6214_v63 = vld [vmem:[#allocation2 + $0x78] sm:$0xf] }
  0x3a   :  { %1425 = vmatpush.bf16.msra.mxu1 %v8389_v13  ;;  %v7605_v58 = vld [vmem:[#allocation2 + $0x88] sm:$0xf0]  ;;  %v6208_v62 = vld [vmem:[#allocation2 + $0x8c] sm:$0xf0]  ;;  %v7606_v0 = vld [vmem:[#allocation2 + $0x90] sm:$0xf0] }
  0x3b   :  { %1514 = vmatpush.bf16.msra.mxu2 %v8391_v14  ;;  %v7689_v60 = vld [vmem:[#allocation2 + $0x328] sm:$0xf0]  ;;  %v6215_v6 = vor.u32 %v7606_v0, %v6214_v63  ;;  %v6234_v9 = vld [vmem:[#allocation2 + $0xa8] sm:$0xf]  ;;  %v6262_v25 = vld [vmem:[#allocation2 + $0xe0] sm:$0xf] }
  0x3c   :  { %v6543_v3 = vor.u32 %v7689_v60, %v6542_v59  ;;  %v6570_v12 = vld [vmem:[#allocation2 + $0x348] sm:$0xf]  ;;  %v7616_v26 = vld [vmem:[#allocation2 + $0xe4] sm:$0xf]  ;;  %v6488_v28 = vld [vmem:[#allocation2 + $0x2bc] sm:$0xf0] }
  0x3d   :  { %1337 = vmatpush.bf16.msra.mxu0 %v7702_v15  ;;  %7953 = vmatpush.bf16.msra.mxu3 %v7702_v15  ;;  %v7609_v15 = vld [vmem:[#allocation2 + $0xac] sm:$0xf]  ;;  %v7672_v27 = vld [vmem:[#allocation2 + $0x2a4] sm:$0xf]  ;;  %v6264_v29 = vld [vmem:[#allocation2 + $0xfc] sm:$0xf0] }
  0x3e   :  { %1426 = vmatpush.bf16.msra.mxu1 %v8395_v16  ;;  %v6270_v30 = vld [vmem:[#allocation2 + $0xe8] sm:$0xf]  ;;  %v7627_v42 = vld [vmem:[#allocation2 + $0x138] sm:$0xf0]  ;;  %v6318_v47 = vld [vmem:[#allocation2 + $0x150] sm:$0xf] }
  0x3f   :  { %1515 = vmatpush.bf16.msra.mxu2 %v8397_v17  ;;  %v7633_v48 = vld [vmem:[#allocation2 + $0x168] sm:$0xf0]  ;;  %v7630_v49 = vld [vmem:[#allocation2 + $0x154] sm:$0xf]  ;;  %v7731_v60 = vld [vmem:[#allocation5 + $0xf8] sm:$0xff] }
  0x40   :  { %v7750_v59 = vld [vmem:[#allocation5 + $0x190] sm:$0xff]  ;;  %v6346_v0 = vld [vmem:[#allocation2 + $0x188] sm:$0xf] }
  0x41   :  { %1338 = vmatpush.bf16.msra.mxu0 %v7701_v18  ;;  %7954 = vmatpush.bf16.msra.mxu3 %v7701_v18  ;;  %v6242_v18 = vld [vmem:[#allocation2 + $0xb0] sm:$0xf] }
  0x42   :  { %1427 = vmatpush.bf16.msra.mxu1 %v8401_v19  ;;  %v7730_v63 = vld [vmem:[#allocation5 + $0xf0] sm:$0xff] }
  0x43   :  { %1516 = vmatpush.bf16.msra.mxu2 %v8403_v20 }
  0x45   :  { %1339 = vmatpush.bf16.msra.mxu0 %v7700_v21  ;;  %7955 = vmatpush.bf16.msra.mxu3 %v7700_v21 }
  0x46   :  { %1428 = vmatpush.bf16.msra.mxu1 %v8405_v22 }
  0x47   :  { %1517 = vmatpush.bf16.msra.mxu2 %v8407_v23 }
  0x48   :  { %1340 = vmatmul.bf16.vlgmr.msra.gmra.mxu0 %v6151_v33  ;;  %1400 = vmatmul.bf16.vlgmr.msra.gmra.mxu3 %v6487_v34  ;;  %v6267_v33 = vor.u32 %v7616_v26, %v6264_v29  ;;  %v6376_v26 = vld [vmem:[#allocation2 + $0x1dc] sm:$0xf0] }
  0x49   :  { %7956 = vmatpush.bf16.msrb.mxu3 %v8365_v1  ;;  %1429 = vmatmul.bf16.vlgmr.msra.gmra.mxu1 %v6155_v35  ;;  %v6207_v1 = vor.u32 %v7605_v58, %v6206_v57  ;;  %v7743_v35 = vld [vmem:[#allocation5 + $0x158] sm:$0xff] }
  0x4a   :  { %1518 = vmatmul.bf16.vlgmr.msra.gmra.mxu2 %v6159_v36  ;;  %1688 = vmatpush.bf16.msrb.mxu0 %v7739_v37  ;;  %v6290_v36 = vld [vmem:[#allocation2 + $0x118] sm:$0xf]  ;;  %v7626_v37 = vld [vmem:[#allocation2 + $0x130] sm:$0xf0] }
  0x4b   :  { %1866 = vmatpush.bf16.msrb.mxu2 %v7755_v32  ;;  %1777 = vmatpush.bf16.msrb.mxu1 %v7747_v38  ;;  %v6491_v32 = vor.u32 %v7672_v27, %v6488_v28  ;;  %v7623_v38 = vld [vmem:[#allocation2 + $0x11c] sm:$0xf]  ;;  %v6291_v43 = vor.u32 %v7626_v37, %v6290_v36  ;;  %v6382_v27 = vld [vmem:[#allocation2 + $0x1c8] sm:$0xf]  ;;  %v7648_v28 = vld [vmem:[#allocation2 + $0x1e0] sm:$0xf0] }
  0x4d   :  { %7957 = vmatpush.bf16.msrb.mxu3 %v8371_v4  ;;  %v6211_v4 = vor.u32 %v7602_v61, %v6208_v62  ;;  %v7734_v61 = vld [vmem:[#allocation5 + $0x110] sm:$0xff] }
  0x4e   :  { %1689 = vmatpush.bf16.msrb.mxu0 %v7738_v40  ;;  %v6516_v40 = vld [vmem:[#allocation2 + $0x2f4] sm:$0xf0]  ;;  %v7742_v62 = vld [vmem:[#allocation5 + $0x150] sm:$0xff] }
  0x4f   :  { %1867 = vmatpush.bf16.msrb.mxu2 %v7754_v39  ;;  %1778 = vmatpush.bf16.msrb.mxu1 %v7746_v41  ;;  %v7679_v39 = vld [vmem:[#allocation2 + $0x2dc] sm:$0xf]  ;;  %v6298_v41 = vld [vmem:[#allocation2 + $0x120] sm:$0xf] }
  0x50   :  { %v6519_v44 = vor.u32 %v7679_v39, %v6516_v40  ;;  %v6299_v46 = vor.u32 %v7627_v42, %v6298_v41  ;;  %v7726_v40 = vld [vmem:[#allocation5 + $0xd0] sm:$0xff]  ;;  %v7651_v42 = vld [vmem:[#allocation2 + $0x1fc] sm:$0xf] }
  0x51   :  { %7958 = vmatpush.bf16.msrb.mxu3 %v8377_v7  ;;  %v7752_v7 = vld [vmem:[#allocation5 + $0x1a0] sm:$0xff]  ;;  %v7654_v41 = vld [vmem:[#allocation2 + $0x210] sm:$0xf0] }
  0x52   :  { %1690 = vmatpush.bf16.msrb.mxu0 %v7737_v55  ;;  %v6319_v55 = vor.u32 %v7633_v48, %v6318_v47  ;;  %v7655_v47 = vld [vmem:[#allocation2 + $0x218] sm:$0xf0] }
  0x53   :  { %1868 = vmatpush.bf16.msrb.mxu2 %v7753_v54  ;;  %1779 = vmatpush.bf16.msrb.mxu1 %v7745_v56  ;;  %v7634_v54 = vld [vmem:[#allocation2 + $0x170] sm:$0xf0] }
  0x55   :  { %7959 = vmatpush.bf16.msrb.mxu3 %v8383_v10  ;;  %v7612_v10 = vld [vmem:[#allocation2 + $0xc0] sm:$0xf0] }
  0x57   :  { %1869 = vmatpush.bf16.msrb.mxu2 %v7752_v7  ;;  %v6348_v7 = vld [vmem:[#allocation2 + $0x1a4] sm:$0xf0] }
  0x58   :  { %1345 = vmatmul.bf16.gmra.mxu0 %v6179_v50  ;;  %1405 = vmatmul.bf16.gmra.mxu3 %v6515_v51  ;;  %v7686_v50 = vld [vmem:[#allocation2 + $0x314] sm:$0xf]  ;;  %v6544_v51 = vld [vmem:[#allocation2 + $0x32c] sm:$0xf0] }
  0x59   :  { %7960 = vmatpush.bf16.msrb.mxu3 %v8389_v13  ;;  %1434 = vmatmul.bf16.gmra.mxu1 %v6183_v52  ;;  %v7696_v13 = vld [vmem:[#allocation2 + $0x360] sm:$0xf0]  ;;  %v6320_v52 = vld [vmem:[#allocation2 + $0x16c] sm:$0xf0]  ;;  %v6547_v56 = vor.u32 %v7686_v50, %v6544_v51 }
  0x5a   :  { %1523 = vmatmul.bf16.gmra.mxu2 %v6187_v53  ;;  %v6571_v21 = vor.u32 %v7696_v13, %v6570_v12  ;;  %v6326_v53 = vld [vmem:[#allocation2 + $0x158] sm:$0xf]  ;;  %v6323_v57 = vor.u32 %v7630_v49, %v6320_v52 }
  0x5b   :  { %v6327_v58 = vor.u32 %v7634_v54, %v6326_v53 }
  0x5d   :  { %7961 = vmatpush.bf16.msrb.mxu3 %v8395_v16  ;;  %v6236_v16 = vld [vmem:[#allocation2 + $0xc4] sm:$0xf0] }
  0x61   :  { %7962 = vmatpush.bf16.msrb.mxu3 %v8401_v19  ;;  %v6235_v19 = vor.u32 %v7612_v10, %v6234_v9  ;;  %v6354_v9 = vld [vmem:[#allocation2 + $0x190] sm:$0xf]  ;;  %v7641_v10 = vld [vmem:[#allocation2 + $0x1a8] sm:$0xf0] }
  0x65   :  { %7963 = vmatpush.bf16.msrb.mxu3 %v8405_v22  ;;  %v6239_v22 = vor.u32 %v7609_v15, %v6236_v16  ;;  %v6355_v16 = vor.u32 %v7641_v10, %v6354_v9  ;;  %v7661_v9 = vld [vmem:[#allocation2 + $0x248] sm:$0xf0]  ;;  %v7658_v10 = vld [vmem:[#allocation2 + $0x234] sm:$0xf] }
  0x68   :  { %1350 = vmatmul.bf16.gmra.mxu0 %v6207_v1  ;;  %1410 = vmatmul.bf16.gmra.mxu3 %v6543_v3  ;;  %v7640_v1 = vld [vmem:[#allocation2 + $0x1a0] sm:$0xf0]  ;;  %v7637_v3 = vld [vmem:[#allocation2 + $0x18c] sm:$0xf] }
  0x69   :  { %7964 = vmatpush.bf16.msra.mxu3 %v8367_v2  ;;  %1439 = vmatmul.bf16.gmra.mxu1 %v6211_v4  ;;  %v7613_v2 = vld [vmem:[#allocation2 + $0xc8] sm:$0xf0]  ;;  %v6347_v12 = vor.u32 %v7640_v1, %v6346_v0  ;;  %v6351_v15 = vor.u32 %v7637_v3, %v6348_v7  ;;  %v6430_v7 = vld [vmem:[#allocation2 + $0x230] sm:$0xf] }
  0x6a   :  { %1528 = vmatmul.bf16.gmra.mxu2 %v6215_v6  ;;  %v6243_v24 = vor.u32 %v7613_v2, %v6242_v18  ;;  %v7693_v4 = vld [vmem:[#allocation2 + $0x34c] sm:$0xf]  ;;  %v6572_v6 = vld [vmem:[#allocation2 + $0x364] sm:$0xf0] }
  0x6b   :  { %v6575_v13 = vor.u32 %v7693_v4, %v6572_v6  ;;  %v7729_v18 = vld [vmem:[#allocation5 + $0xe8] sm:$0xff]  ;;  %v7724_v6 = vld [vmem:[#allocation5 + $0xc0] sm:$0xff] }
  0x6c   :  { %v7749_v2 = vld [vmem:[#allocation5 + $0x188] sm:$0xff] }
  0x6d   :  { %7965 = vmatpush.bf16.msra.mxu3 %v8373_v5  ;;  %v7736_v5 = vld [vmem:[#allocation5 + $0x120] sm:$0xff] }
  0x6e   :  { %1691 = vmatpush.bf16.msrb.mxu0 %v7736_v5  ;;  %v7741_v5 = vld [vmem:[#allocation5 + $0x148] sm:$0xff] }
  0x71   :  { %7966 = vmatpush.bf16.msra.mxu3 %v8379_v8  ;;  %v7744_v8 = vld [vmem:[#allocation5 + $0x160] sm:$0xff] }
  0x72   :  { %1780 = vmatpush.bf16.msrb.mxu1 %v7744_v8  ;;  %v7644_v8 = vld [vmem:[#allocation2 + $0x1c4] sm:$0xf] }
  0x75   :  { %7967 = vmatpush.bf16.msra.mxu3 %v8385_v11  ;;  %v7619_v11 = vld [vmem:[#allocation2 + $0xf8] sm:$0xf0] }
  0x76   :  { %v6263_v31 = vor.u32 %v7619_v11, %v6262_v25  ;;  %1781 = vmatpush.bf16.msrb.mxu1 %v7743_v35  ;;  %v6494_v25 = vld [vmem:[#allocation2 + $0x2a8] sm:$0xf]  ;;  %v7676_v11 = vld [vmem:[#allocation2 + $0x2c0] sm:$0xf0] }
  0x78   :  { %1355 = vmatmul.bf16.gmra.mxu0 %v6235_v19  ;;  %1415 = vmatmul.bf16.gmra.mxu3 %v6571_v21  ;;  %v7728_v19 = vld [vmem:[#allocation5 + $0xe0] sm:$0xff]  ;;  %v7733_v21 = vld [vmem:[#allocation5 + $0x108] sm:$0xff] }
  0x79   :  { %7968 = vmatpush.bf16.msra.mxu3 %v8391_v14  ;;  %1444 = vmatmul.bf16.gmra.mxu1 %v6239_v22  ;;  %v7620_v14 = vld [vmem:[#allocation2 + $0x100] sm:$0xf0]  ;;  %v6374_v22 = vld [vmem:[#allocation2 + $0x1c0] sm:$0xf] }
  0x7a   :  { %1533 = vmatmul.bf16.gmra.mxu2 %v6243_v24  ;;  %v6271_v34 = vor.u32 %v7620_v14, %v6270_v30  ;;  %1782 = vmatpush.bf16.msrb.mxu1 %v7742_v62  ;;  %v7647_v24 = vld [vmem:[#allocation2 + $0x1d8] sm:$0xf0]  ;;  %v6495_v30 = vor.u32 %v7676_v11, %v6494_v25 }
  0x7b   :  { %v6375_v29 = vor.u32 %v7647_v24, %v6374_v22 }
  0x7d   :  { %7969 = vmatpush.bf16.msra.mxu3 %v8397_v17  ;;  %v7751_v17 = vld [vmem:[#allocation5 + $0x198] sm:$0xff] }
  0x7e   :  { %1870 = vmatpush.bf16.msrb.mxu2 %v7751_v17  ;;  %1783 = vmatpush.bf16.msrb.mxu1 %v7741_v5  ;;  %v7727_v17 = vld [vmem:[#allocation5 + $0xd8] sm:$0xff] }
  0x81   :  { %7970 = vmatpush.bf16.msra.mxu3 %v8403_v20  ;;  %v7735_v20 = vld [vmem:[#allocation5 + $0x118] sm:$0xff] }
  0x82   :  { %1692 = vmatpush.bf16.msrb.mxu0 %v7735_v20  ;;  %1871 = vmatpush.bf16.msrb.mxu2 %v7750_v59  ;;  %v7725_v59 = vld [vmem:[#allocation5 + $0xc8] sm:$0xff] }
  0x85   :  { %7971 = vmatpush.bf16.msra.mxu3 %v8407_v23  ;;  %v6292_v23 = vld [vmem:[#allocation2 + $0x134] sm:$0xf0] }
  0x86   :  { %v6295_v45 = vor.u32 %v7623_v38, %v6292_v23  ;;  %1693 = vmatpush.bf16.msrb.mxu0 %v7734_v61  ;;  %1872 = vmatpush.bf16.msrb.mxu2 %v7749_v2  ;;  %v6402_v23 = vld [vmem:[#allocation2 + $0x1f8] sm:$0xf]  ;;  %v7740_v61 = vld [vmem:[#allocation5 + $0x140] sm:$0xff] }
  0x87   :  { %v6403_v50 = vor.u32 %v7654_v41, %v6402_v23  ;;  %1784 = vmatpush.bf16.msrb.mxu1 %v7740_v61  ;;  %v6936_v23 = vld [vmem:[#allocation7 + $0xf0] sm:$0xf0]  ;;  %v6942_v41 = vld [vmem:[#allocation7 + $0xe8] sm:$0xf] }
  0x88   :  { %1360 = vmatmul.bf16.gmra.mxu0 %v6263_v31  ;;  %1489 = vmatmul.bf16.vlgmr.msrb.gmra.mxu3 %v6491_v32  ;;  %v6379_v31 = vor.u32 %v7644_v8, %v6376_v26  ;;  %v6383_v32 = vor.u32 %v7648_v28, %v6382_v27  ;;  %v6934_v27 = vld [vmem:[#allocation7 + $0xe0] sm:$0xf]  ;;  %v7786_v28 = vld [vmem:[#allocation7 + $0xec] sm:$0xf0] }
  0x89   :  { %1449 = vmatmul.bf16.gmra.mxu1 %v6267_v33  ;;  %1599 = vmatpush.bf16.msrb.mxu3 %v7731_v60  ;;  %v7732_v60 = vld [vmem:[#allocation5 + $0x100] sm:$0xff] }
  0x8a   :  { %1538 = vmatmul.bf16.gmra.mxu2 %v6271_v34  ;;  %1694 = vmatpush.bf16.msrb.mxu0 %v7733_v21  ;;  %v6431_v21 = vor.u32 %v7661_v9, %v6430_v7 }
  0x8d   :  { %1600 = vmatpush.bf16.msrb.mxu3 %v7730_v63 }
  0x8e   :  { %1695 = vmatpush.bf16.msrb.mxu0 %v7732_v60 }
  0x91   :  { %1601 = vmatpush.bf16.msrb.mxu3 %v7729_v18  ;;  %v7662_v18 = vld [vmem:[#allocation2 + $0x250] sm:$0xf0] }
  0x95   :  { %1602 = vmatpush.bf16.msrb.mxu3 %v7728_v19 }
  0x98   :  { %1365 = vmatmul.bf16.gmra.mxu0 %v6291_v43  ;;  %1494 = vmatmul.bf16.gmra.mxu3 %v6519_v44  ;;  %v6522_v43 = vld [vmem:[#allocation2 + $0x2e0] sm:$0xf]  ;;  %v7683_v44 = vld [vmem:[#allocation2 + $0x2f8] sm:$0xf0] }
  0x99   :  { %1454 = vmatmul.bf16.gmra.mxu1 %v6295_v45  ;;  %1603 = vmatpush.bf16.msrb.mxu3 %v7727_v17  ;;  %v6404_v45 = vld [vmem:[#allocation2 + $0x214] sm:$0xf0]  ;;  %v6523_v51 = vor.u32 %v7683_v44, %v6522_v43  ;;  %v6458_v17 = vld [vmem:[#allocation2 + $0x268] sm:$0xf]  ;;  %v7665_v43 = vld [vmem:[#allocation2 + $0x26c] sm:$0xf] }
  0x9a   :  { %1543 = vmatmul.bf16.gmra.mxu2 %v6299_v46  ;;  %v6410_v46 = vld [vmem:[#allocation2 + $0x200] sm:$0xf]  ;;  %v6407_v54 = vor.u32 %v7651_v42, %v6404_v45  ;;  %v7787_v42 = vld [vmem:[#allocation7 + $0xf4] sm:$0xf0]  ;;  %v6578_v44 = vld [vmem:[#allocation2 + $0x350] sm:$0xf] }
  0x9b   :  { %v7697_v45 = vld [vmem:[#allocation2 + $0x368] sm:$0xf0] }
  0x9d   :  { %1604 = vmatpush.bf16.msrb.mxu3 %v7726_v40 }
  0xa1   :  { %1605 = vmatpush.bf16.msrb.mxu3 %v7725_v59 }
  0xa5   :  { %1606 = vmatpush.bf16.msrb.mxu3 %v7724_v6 }
  0xa8   :  { %1370 = vmatmul.bf16.gmra.mxu0 %v6319_v55  ;;  %1499 = vmatmul.bf16.gmra.mxu3 %v6547_v56  ;;  %v6411_v55 = vor.u32 %v7655_v47, %v6410_v46  ;;  %v6943_v47 = vor.u32 %v7787_v42, %v6942_v41  ;;  %v7596_v41 = vld [vmem:[#allocation2 + $0x44] sm:$0xf]  ;;  %v6188_v42 = vld [vmem:[#allocation2 + $0x5c] sm:$0xf0] }
  0xa9   :  { %1459 = vmatmul.bf16.gmra.mxu1 %v6323_v57 }
  0xaa   :  { %1548 = vmatmul.bf16.gmra.mxu2 %v6327_v58  ;;  %v7748_v58 = vld [vmem:[#allocation5 + $0x180] sm:$0xff]  ;;  %2351 = vmatpush.bf16.msra.mxu1 %v6943_v47  ;;  %v6920_v47 = vld [vmem:[#allocation7 + $0xd0] sm:$0xf0] }
  0xab   :  { %1873 = vmatpush.bf16.msrb.mxu2 %v7748_v58 }
  0xb8   :  { %1375 = vmatmul.bf16.gmra.mxu0 %v6347_v12  ;;  %1504 = vmatmul.bf16.gmra.mxu3 %v6575_v13  ;;  %v6550_v12 = vld [vmem:[#allocation2 + $0x318] sm:$0xf]  ;;  %v7690_v13 = vld [vmem:[#allocation2 + $0x330] sm:$0xf0] }
  0xb9   :  { %1464 = vmatmul.bf16.gmra.mxu1 %v6351_v15  ;;  %v6432_v15 = vld [vmem:[#allocation2 + $0x24c] sm:$0xf0]  ;;  %v6551_v22 = vor.u32 %v7690_v13, %v6550_v12  ;;  %v6160_v12 = vld [vmem:[#allocation2 + $0x24] sm:$0xf0] }
  0xba   :  { %1553 = vmatmul.bf16.gmra.mxu2 %v6355_v16  ;;  %v6438_v16 = vld [vmem:[#allocation2 + $0x238] sm:$0xf]  ;;  %v6435_v8 = vor.u32 %v7658_v10, %v6432_v15  ;;  %v7589_v10 = vld [vmem:[#allocation2 + $0xc] sm:$0xf]  ;;  %v6166_v13 = vld [vmem:[#allocation2 + $0x10] sm:$0xf] }
  0xbb   :  { %v6439_v25 = vor.u32 %v7662_v18, %v6438_v16  ;;  %v7593_v15 = vld [vmem:[#allocation2 + $0x28] sm:$0xf0]  ;;  %v7590_v16 = vld [vmem:[#allocation2 + $0x14] sm:$0xf]  ;;  %v6168_v18 = vld [vmem:[#allocation2 + $0x2c] sm:$0xf0] }
  0xc5   :  { %v1341_v14 = vpop.f32.mrf.mxu0 }
  0xc6   :  { %v1430_v33 = vpop.f32.mrf.mxu1 }
  0xc7   :  { %v1431_v34 = vadd.f32 %v1430_v33, %v1341_v14 }
  0xc8   :  { %1380 = vmatmul.bf16.gmra.mxu0 %v6375_v29  ;;  %1578 = vmatmul.bf16.vlgmr.msra.gmra.mxu3 %v6495_v30  ;;  %v6935_v29 = vor.u32 %v7786_v28, %v6934_v27  ;;  %v6171_v27 = vor.u32 %v7590_v16, %v6168_v18 }
  0xc9   :  { %1469 = vmatmul.bf16.gmra.mxu1 %v6379_v31 }
  0xca   :  { %1558 = vmatmul.bf16.gmra.mxu2 %v6383_v32  ;;  %2173 = vmatpush.bf16.msra.mxu3 %v6935_v29 }
  0xcb   :  { %v8429_v20 = vpop.f32.mrf.mxu3 }
  0xcd   :  { %v1519_v35 = vpop.f32.mrf.mxu2  ;;  %v1343_v37 = vpop.f32.mrf.mxu0 }
  0xce   :  { %v8431_v36 = vadd.f32 %v1519_v35, %v1431_v34  ;;  %v1432_v38 = vpop.f32.mrf.mxu1  ;;  %v7668_v35 = vld [vmem:[#allocation2 + $0x280] sm:$0xf0] }
  0xcf   :  { %v1433_v39 = vadd.f32 %v1432_v38, %v1343_v37  ;;  %v7785_v37 = vld [vmem:[#allocation7 + $0xec] sm:$0xf]  ;;  %v6944_v38 = vld [vmem:[#allocation7 + $0xf8] sm:$0xf0] }
  0xd0   :  { %v6947_v40 = vor.u32 %v7785_v37, %v6944_v38 }
  0xd2   :  { %2440 = vmatpush.bf16.msra.mxu2 %v6947_v40 }
  0xd3   :  { %v8433_v48 = vpop.f32.mrf.mxu3 }
  0xd5   :  { %v1521_v49 = vpop.f32.mrf.mxu2  ;;  %v1346_v53 = vpop.f32.mrf.mxu0 }
  0xd6   :  { %v8435_v52 = vadd.f32 %v1521_v49, %v1433_v39  ;;  %v1435_v56 = vpop.f32.mrf.mxu1  ;;  %v7784_v39 = vld [vmem:[#allocation7 + $0xe4] sm:$0xf]  ;;  %v6460_v49 = vld [vmem:[#allocation2 + $0x284] sm:$0xf0] }
  0xd7   :  { %v1436_v57 = vadd.f32 %v1435_v56, %v1346_v53  ;;  %v6939_v46 = vor.u32 %v7784_v39, %v6936_v23  ;;  %v6579_v56 = vor.u32 %v7697_v45, %v6578_v44  ;;  %v6463_v59 = vor.u32 %v7665_v43, %v6460_v49  ;;  %v7781_v43 = vld [vmem:[#allocation7 + $0xcc] sm:$0xf]  ;;  %v6928_v44 = vld [vmem:[#allocation7 + $0xd8] sm:$0xf0]  ;;  %v7780_v45 = vld [vmem:[#allocation7 + $0xc4] sm:$0xf] }
  0xd8   :  { %1385 = vmatmul.bf16.gmra.mxu0 %v6403_v50  ;;  %1583 = vmatmul.bf16.gmra.mxu3 %v6523_v51  ;;  %v6466_v50 = vld [vmem:[#allocation2 + $0x270] sm:$0xf]  ;;  %v7669_v51 = vld [vmem:[#allocation2 + $0x288] sm:$0xf0]  ;;  %v6926_v49 = vld [vmem:[#allocation7 + $0xc8] sm:$0xf] }
  0xd9   :  { %1474 = vmatmul.bf16.gmra.mxu1 %v6407_v54  ;;  %2262 = vmatpush.bf16.msra.mxu0 %v6939_v46  ;;  %v6467_v60 = vor.u32 %v7669_v51, %v6466_v50  ;;  %v6931_v46 = vor.u32 %v7781_v43, %v6928_v44  ;;  %v7783_v50 = vld [vmem:[#allocation7 + $0xd4] sm:$0xf0]  ;;  %v6194_v51 = vld [vmem:[#allocation2 + $0x48] sm:$0xf] }
  0xda   :  { %1563 = vmatmul.bf16.gmra.mxu2 %v6411_v55  ;;  %v6459_v55 = vor.u32 %v7668_v35, %v6458_v17 }
  0xdb   :  { %v8437_v62 = vpop.f32.mrf.mxu3  ;;  %2441 = vmatpush.bf16.msra.mxu2 %v6931_v46  ;;  %v6902_v46 = vld [vmem:[#allocation7 + $0xa0] sm:$0xf] }
  0xdd   :  { %v1524_v63 = vpop.f32.mrf.mxu2  ;;  %v1348_v1 = vpop.f32.mrf.mxu0 }
  0xde   :  { %v8439_v0 = vadd.f32 %v1524_v63, %v1436_v57  ;;  %v1437_v3 = vpop.f32.mrf.mxu1 }
  0xdf   :  { %v1438_v4 = vadd.f32 %v1437_v3, %v1348_v1 }
  0xe3   :  { %v8441_v2 = vpop.f32.mrf.mxu3 }
  0xe5   :  { %v1526_v19 = vpop.f32.mrf.mxu2  ;;  %v1351_v5 = vpop.f32.mrf.mxu0 }
  0xe6   :  { %v8443_v24 = vadd.f32 %v1526_v19, %v1438_v4  ;;  %v1440_v11 = vpop.f32.mrf.mxu1  ;;  %v6174_v19 = vld [vmem:[#allocation2 + $0x18] sm:$0xf] }
  0xe7   :  { %v1441_v26 = vadd.f32 %v1440_v11, %v1351_v5 }
  0xe8   :  { %1390 = vmatmul.bf16.gmra.mxu0 %v6431_v21  ;;  %1588 = vmatmul.bf16.gmra.mxu3 %v6551_v22  ;;  %v7594_v21 = vld [vmem:[#allocation2 + $0x30] sm:$0xf0] }
  0xe9   :  { %1479 = vmatmul.bf16.gmra.mxu1 %v6435_v8  ;;  %v6163_v8 = vor.u32 %v7589_v10, %v6160_v12  ;;  %v6175_v28 = vor.u32 %v7594_v21, %v6174_v19 }
  0xea   :  { %1568 = vmatmul.bf16.gmra.mxu2 %v6439_v25  ;;  %v6167_v25 = vor.u32 %v7593_v15, %v6166_v13 }
  0xeb   :  { %v8445_v30 = vpop.f32.mrf.mxu3 }
  0xed   :  { %v1529_v14 = vpop.f32.mrf.mxu2  ;;  %v1353_v32 = vpop.f32.mrf.mxu0 }
  0xee   :  { %v8447_v31 = vadd.f32 %v1529_v14, %v1441_v26  ;;  %v1442_v33 = vpop.f32.mrf.mxu1 }
  0xef   :  { %v1443_v34 = vadd.f32 %v1442_v33, %v1353_v32  ;;  %v6918_v32 = vld [vmem:[#allocation7 + $0xc0] sm:$0xf]  ;;  %v7782_v33 = vld [vmem:[#allocation7 + $0xcc] sm:$0xf0] }
  0xf3   :  { %v8449_v53 = vpop.f32.mrf.mxu3 }
  0xf5   :  { %v1531_v54 = vpop.f32.mrf.mxu2  ;;  %v1356_v58 = vpop.f32.mrf.mxu0 }
  0xf6   :  { %v8451_v57 = vadd.f32 %v1531_v54, %v1443_v34  ;;  %v1445_v61 = vpop.f32.mrf.mxu1  ;;  %v6919_v34 = vor.u32 %v7782_v33, %v6918_v32  ;;  %v7600_v54 = vld [vmem:[#allocation2 + $0x60] sm:$0xf0]  ;;  %v6224_v32 = vld [vmem:[#allocation2 + $0x9c] sm:$0xf0]  ;;  %v6230_v33 = vld [vmem:[#allocation2 + $0x88] sm:$0xf] }
  0xf7   :  { %v1446_v63 = vadd.f32 %v1445_v61, %v1356_v58  ;;  %v6196_v58 = vld [vmem:[#allocation2 + $0x64] sm:$0xf0] }
  0xf8   :  { %1395 = vmatmul.bf16.gmra.mxu0 %v6459_v55  ;;  %1593 = vmatmul.bf16.gmra.mxu3 %v6579_v56  ;;  %v6923_v55 = vor.u32 %v7780_v45, %v6920_v47  ;;  %v6927_v56 = vor.u32 %v7783_v50, %v6926_v49  ;;  %v7778_v47 = vld [vmem:[#allocation7 + $0xac] sm:$0xf0] }
  0xf9   :  { %1484 = vmatmul.bf16.gmra.mxu1 %v6463_v59  ;;  %2174 = vmatpush.bf16.msra.mxu3 %v6919_v34  ;;  %v6202_v59 = vld [vmem:[#allocation2 + $0x50] sm:$0xf]  ;;  %v7608_v34 = vld [vmem:[#allocation2 + $0xa0] sm:$0xf0]  ;;  %v6903_v49 = vor.u32 %v7778_v47, %v6902_v46  ;;  %v6272_v46 = vld [vmem:[#allocation2 + $0x104] sm:$0xf0] }
  0xfa   :  { %1573 = vmatmul.bf16.gmra.mxu2 %v6467_v60  ;;  %v7601_v60 = vld [vmem:[#allocation2 + $0x68] sm:$0xf0]  ;;  %2263 = vmatpush.bf16.msra.mxu0 %v6923_v55  ;;  %v6231_v43 = vor.u32 %v7608_v34, %v6230_v33  ;;  %v6278_v47 = vld [vmem:[#allocation2 + $0xf0] sm:$0xf] }
  0xfb   :  { %v8453_v1 = vpop.f32.mrf.mxu3  ;;  %2352 = vmatpush.bf16.msra.mxu1 %v6927_v56  ;;  %v6203_v13 = vor.u32 %v7601_v60, %v6202_v59  ;;  %v6244_v59 = vld [vmem:[#allocation2 + $0xcc] sm:$0xf0]  ;;  %v7777_v60 = vld [vmem:[#allocation7 + $0xac] sm:$0xf] }
  0xfd   :  { %v1534_v3 = vpop.f32.mrf.mxu2  ;;  %v1358_v6 = vpop.f32.mrf.mxu0  ;;  %2175 = vmatpush.bf16.msra.mxu3 %v6903_v49  ;;  %v7621_v49 = vld [vmem:[#allocation2 + $0x108] sm:$0xf0] }
  0xfe   :  { %v8455_v4 = vadd.f32 %v1534_v3, %v1446_v63  ;;  %v1447_v7 = vpop.f32.mrf.mxu1 }
  0xff   :  { %v1448_v9 = vadd.f32 %v1447_v7, %v1358_v6  ;;  %v6191_v6 = vor.u32 %v7596_v41, %v6188_v42  ;;  %v6195_v7 = vor.u32 %v7600_v54, %v6194_v51 }
 0x103   :  { %v8457_v22 = vpop.f32.mrf.mxu3 }
 0x105   :  { %v1536_v5 = vpop.f32.mrf.mxu2  ;;  %v1361_v26 = vpop.f32.mrf.mxu0 }
 0x106   :  { %v8459_v11 = vadd.f32 %v1536_v5, %v1448_v9  ;;  %v1450_v29 = vpop.f32.mrf.mxu1 }
 0x107   :  { %v1451_v14 = vadd.f32 %v1450_v29, %v1361_v26  ;;  %v7603_v26 = vld [vmem:[#allocation2 + $0x7c] sm:$0xf] }
 0x108   :  { %1607 = vmatmul.bf16.vlgmr.msrb.gmra.mxu3 %v6163_v8  ;;  %1696 = vmatmul.bf16.vlgmr.msrb.gmra.mxu0 %v6167_v25  ;;  %v7607_v29 = vld [vmem:[#allocation2 + $0x98] sm:$0xf0] }
 0x109   :  { %1785 = vmatmul.bf16.vlgmr.msrb.gmra.mxu1 %v6171_v27  ;;  %v6216_v27 = vld [vmem:[#allocation2 + $0x94] sm:$0xf0] }
 0x10a   :  { %1874 = vmatmul.bf16.vlgmr.msrb.gmra.mxu2 %v6175_v28  ;;  %v6222_v28 = vld [vmem:[#allocation2 + $0x80] sm:$0xf] }
 0x10b   :  { %v1490_v17 = vpop.f32.mrf.mxu3 }
 0x10c   :  { %v8462_v35 = vadd.f32 %v1490_v17, %v8429_v20  ;;  %v7597_v20 = vld [vmem:[#allocation2 + $0x4c] sm:$0xf] }
 0x10d   :  { %v1539_v37 = vpop.f32.mrf.mxu2  ;;  %v1363_v39 = vpop.f32.mrf.mxu0  ;;  %v6199_v12 = vor.u32 %v7597_v20, %v6196_v58  ;;  %v7610_v58 = vld [vmem:[#allocation2 + $0xb4] sm:$0xf] }
 0x10e   :  { %v8464_v38 = vadd.f32 %v1539_v37, %v1451_v14  ;;  %v1452_v40 = vpop.f32.mrf.mxu1  ;;  %v7604_v14 = vld [vmem:[#allocation2 + $0x84] sm:$0xf] }
 0x10f   :  { %v1453_v23 = vadd.f32 %v1452_v40, %v1363_v39  ;;  %v6219_v39 = vor.u32 %v7603_v26, %v6216_v27  ;;  %v6223_v40 = vor.u32 %v7607_v29, %v6222_v28  ;;  %v6227_v42 = vor.u32 %v7604_v14, %v6224_v32 }
 0x110   :  { %v6247_v28 = vor.u32 %v7610_v58, %v6244_v59 }
 0x113   :  { %v1492_v61 = vpop.f32.mrf.mxu3 }
 0x114   :  { %v8467_v63 = vadd.f32 %v1492_v61, %v8433_v48  ;;  %v6912_v61 = vld [vmem:[#allocation7 + $0xb8] sm:$0xf0] }
 0x115   :  { %v1541_v3 = vpop.f32.mrf.mxu2  ;;  %v1366_v10 = vpop.f32.mrf.mxu0 }
 0x116   :  { %v8469_v9 = vadd.f32 %v1541_v3, %v1453_v23  ;;  %v1455_v15 = vpop.f32.mrf.mxu1  ;;  %v7776_v3 = vld [vmem:[#allocation7 + $0xa4] sm:$0xf] }
 0x117   :  { %v1456_v16 = vadd.f32 %v1455_v15, %v1366_v10  ;;  %v6910_v10 = vld [vmem:[#allocation7 + $0xa8] sm:$0xf]  ;;  %v7614_v15 = vld [vmem:[#allocation2 + $0xd0] sm:$0xf0] }
 0x118   :  { %1612 = vmatmul.bf16.gmra.mxu3 %v6191_v6  ;;  %1701 = vmatmul.bf16.gmra.mxu0 %v6195_v7  ;;  %v6915_v6 = vor.u32 %v7777_v60, %v6912_v61  ;;  %v6904_v7 = vld [vmem:[#allocation7 + $0xb0] sm:$0xf0]  ;;  %v6279_v60 = vor.u32 %v7621_v49, %v6278_v47  ;;  %v7629_v47 = vld [vmem:[#allocation2 + $0x148] sm:$0xf0] }
 0x119   :  { %1790 = vmatmul.bf16.gmra.mxu1 %v6199_v12  ;;  %v7779_v12 = vld [vmem:[#allocation7 + $0xb4] sm:$0xf0] }
 0x11a   :  { %1879 = vmatmul.bf16.gmra.mxu2 %v6203_v13  ;;  %v6250_v13 = vld [vmem:[#allocation2 + $0xb8] sm:$0xf] }
 0x11b   :  { %v1495_v18 = vpop.f32.mrf.mxu3  ;;  %2442 = vmatpush.bf16.msra.mxu2 %v6915_v6  ;;  %v6251_v29 = vor.u32 %v7614_v15, %v6250_v13  ;;  %v6886_v13 = vld [vmem:[#allocation7 + $0x80] sm:$0xf]  ;;  %v7774_v15 = vld [vmem:[#allocation7 + $0x8c] sm:$0xf0] }
 0x11c   :  { %v8472_v19 = vadd.f32 %v1495_v18, %v8437_v62  ;;  %v6911_v18 = vor.u32 %v7779_v12, %v6910_v10 }
 0x11d   :  { %v1544_v48 = vpop.f32.mrf.mxu2  ;;  %v1368_v5 = vpop.f32.mrf.mxu0 }
 0x11e   :  { %v8474_v21 = vadd.f32 %v1544_v48, %v1456_v16  ;;  %v1457_v8 = vpop.f32.mrf.mxu1  ;;  %v6907_v16 = vor.u32 %v7776_v3, %v6904_v7  ;;  %v6252_v48 = vld [vmem:[#allocation2 + $0xd4] sm:$0xf0]  ;;  %2353 = vmatpush.bf16.msra.mxu1 %v6911_v18 }
 0x11f   :  { %v1458_v25 = vadd.f32 %v1457_v8, %v1368_v5  ;;  %v6258_v5 = vld [vmem:[#allocation2 + $0xc0] sm:$0xf]  ;;  %v7615_v8 = vld [vmem:[#allocation2 + $0xd8] sm:$0xf0] }
 0x120   :  { %2264 = vmatpush.bf16.msra.mxu0 %v6907_v16  ;;  %v6259_v34 = vor.u32 %v7615_v8, %v6258_v5 }
 0x123   :  { %v1497_v17 = vpop.f32.mrf.mxu3 }
 0x124   :  { %v8477_v37 = vadd.f32 %v1497_v17, %v8441_v2 }
 0x125   :  { %v1546_v62 = vpop.f32.mrf.mxu2  ;;  %v1371_v41 = vpop.f32.mrf.mxu0 }
 0x126   :  { %v8479_v23 = vadd.f32 %v1546_v62, %v1458_v25  ;;  %v1460_v44 = vpop.f32.mrf.mxu1 }
 0x127   :  { %v1461_v45 = vadd.f32 %v1460_v44, %v1371_v41 }
 0x128   :  { %1617 = vmatmul.bf16.gmra.mxu3 %v6219_v39  ;;  %1706 = vmatmul.bf16.gmra.mxu0 %v6223_v40 }
 0x129   :  { %1795 = vmatmul.bf16.gmra.mxu1 %v6227_v42 }
 0x12a   :  { %1884 = vmatmul.bf16.gmra.mxu2 %v6231_v43 }
 0x12b   :  { %v1500_v50 = vpop.f32.mrf.mxu3 }
 0x12c   :  { %v8482_v2 = vadd.f32 %v1500_v50, %v8445_v30  ;;  %v7611_v30 = vld [vmem:[#allocation2 + $0xbc] sm:$0xf]  ;;  %v7618_v50 = vld [vmem:[#allocation2 + $0xf4] sm:$0xf] }
 0x12d   :  { %v1549_v51 = vpop.f32.mrf.mxu2  ;;  %v1373_v20 = vpop.f32.mrf.mxu0  ;;  %v6255_v33 = vor.u32 %v7611_v30, %v6252_v48  ;;  %v6887_v30 = vor.u32 %v7774_v15, %v6886_v13 }
 0x12e   :  { %v8484_v54 = vadd.f32 %v1549_v51, %v1461_v45  ;;  %v1462_v55 = vpop.f32.mrf.mxu1  ;;  %v7617_v45 = vld [vmem:[#allocation2 + $0xec] sm:$0xf]  ;;  %v6280_v51 = vld [vmem:[#allocation2 + $0x10c] sm:$0xf0] }
 0x12f   :  { %v1463_v56 = vadd.f32 %v1462_v55, %v1373_v20  ;;  %v6286_v20 = vld [vmem:[#allocation2 + $0xf8] sm:$0xf]  ;;  %v7622_v55 = vld [vmem:[#allocation2 + $0x110] sm:$0xf0]  ;;  %v6275_v59 = vor.u32 %v7617_v45, %v6272_v46  ;;  %v6283_v6 = vor.u32 %v7618_v50, %v6280_v51  ;;  %2176 = vmatpush.bf16.msra.mxu3 %v6887_v30  ;;  %v6308_v45 = vld [vmem:[#allocation2 + $0x144] sm:$0xf0] }
 0x130   :  { %v6287_v7 = vor.u32 %v7622_v55, %v6286_v20  ;;  %v6314_v46 = vld [vmem:[#allocation2 + $0x130] sm:$0xf] }
 0x133   :  { %v1502_v25 = vpop.f32.mrf.mxu3 }
 0x134   :  { %v8487_v26 = vadd.f32 %v1502_v25, %v8449_v53 }
 0x135   :  { %v1551_v27 = vpop.f32.mrf.mxu2  ;;  %v1376_v32 = vpop.f32.mrf.mxu0 }
 0x136   :  { %v8489_v14 = vadd.f32 %v1551_v27, %v1463_v56  ;;  %v1465_v17 = vpop.f32.mrf.mxu1  ;;  %v7624_v27 = vld [vmem:[#allocation2 + $0x124] sm:$0xf] }
 0x137   :  { %v1466_v62 = vadd.f32 %v1465_v17, %v1376_v32  ;;  %v6896_v32 = vld [vmem:[#allocation7 + $0x98] sm:$0xf0]  ;;  %v6888_v17 = vld [vmem:[#allocation7 + $0x90] sm:$0xf0] }
 0x138   :  { %1622 = vmatmul.bf16.gmra.mxu3 %v6247_v28  ;;  %1711 = vmatmul.bf16.gmra.mxu0 %v6251_v29  ;;  %v6300_v28 = vld [vmem:[#allocation2 + $0x13c] sm:$0xf0]  ;;  %v7773_v29 = vld [vmem:[#allocation7 + $0x8c] sm:$0xf] }
 0x139   :  { %1800 = vmatmul.bf16.gmra.mxu1 %v6255_v33  ;;  %v7772_v33 = vld [vmem:[#allocation7 + $0x84] sm:$0xf]  ;;  %v6303_v20 = vor.u32 %v7624_v27, %v6300_v28  ;;  %v6336_v27 = vld [vmem:[#allocation2 + $0x17c] sm:$0xf0]  ;;  %v6342_v28 = vld [vmem:[#allocation2 + $0x168] sm:$0xf] }
 0x13a   :  { %1889 = vmatmul.bf16.gmra.mxu2 %v6259_v34  ;;  %v6899_v34 = vor.u32 %v7773_v29, %v6896_v32  ;;  %v7636_v29 = vld [vmem:[#allocation2 + $0x180] sm:$0xf0] }
 0x13b   :  { %v1505_v39 = vpop.f32.mrf.mxu3 }
 0x13c   :  { %v8492_v40 = vadd.f32 %v1505_v39, %v8453_v1  ;;  %v7775_v39 = vld [vmem:[#allocation7 + $0x94] sm:$0xf0]  ;;  %2443 = vmatpush.bf16.msra.mxu2 %v6899_v34 }
 0x13d   :  { %v1554_v53 = vpop.f32.mrf.mxu2  ;;  %v1378_v42 = vpop.f32.mrf.mxu0 }
 0x13e   :  { %v8494_v41 = vadd.f32 %v1554_v53, %v1466_v62  ;;  %v1467_v43 = vpop.f32.mrf.mxu1  ;;  %v6894_v62 = vld [vmem:[#allocation7 + $0x88] sm:$0xf] }
 0x13f   :  { %v1468_v44 = vadd.f32 %v1467_v43, %v1378_v42  ;;  %v6306_v53 = vld [vmem:[#allocation2 + $0x128] sm:$0xf]  ;;  %v7628_v42 = vld [vmem:[#allocation2 + $0x140] sm:$0xf0]  ;;  %v7625_v43 = vld [vmem:[#allocation2 + $0x12c] sm:$0xf] }
 0x140   :  { %v6307_v55 = vor.u32 %v7628_v42, %v6306_v53  ;;  %v6343_v42 = vor.u32 %v7636_v29, %v6342_v28  ;;  %v7771_v28 = vld [vmem:[#allocation7 + $0x74] sm:$0xf0] }
 0x143   :  { %v1507_v56 = vpop.f32.mrf.mxu3 }
 0x144   :  { %v8497_v58 = vadd.f32 %v1507_v56, %v8457_v22 }
 0x145   :  { %v1556_v1 = vpop.f32.mrf.mxu2  ;;  %v1381_v3 = vpop.f32.mrf.mxu0 }
 0x146   :  { %v8499_v61 = vadd.f32 %v1556_v1, %v1468_v44  ;;  %v1470_v10 = vpop.f32.mrf.mxu1  ;;  %v6895_v44 = vor.u32 %v7775_v39, %v6894_v62 }
 0x147   :  { %v1471_v12 = vadd.f32 %v1470_v10, %v1381_v3 }
 0x148   :  { %1627 = vmatmul.bf16.gmra.mxu3 %v6275_v59  ;;  %1716 = vmatmul.bf16.gmra.mxu0 %v6279_v60  ;;  %v6311_v59 = vor.u32 %v7625_v43, %v6308_v45  ;;  %v6315_v60 = vor.u32 %v7629_v47, %v6314_v46  ;;  %v7770_v45 = vld [vmem:[#allocation7 + $0x6c] sm:$0xf0] }
 0x149   :  { %1805 = vmatmul.bf16.gmra.mxu1 %v6283_v6 }
 0x14a   :  { %1894 = vmatmul.bf16.gmra.mxu2 %v6287_v7  ;;  %2354 = vmatpush.bf16.msra.mxu1 %v6895_v44  ;;  %v6870_v44 = vld [vmem:[#allocation7 + $0x60] sm:$0xf] }
 0x14b   :  { %v1579_v16 = vpop.f32.mrf.mxu3  ;;  %v6871_v46 = vor.u32 %v7770_v45, %v6870_v44 }
 0x14c   :  { %v8502_v18 = vadd.f32 %v1579_v16, %v8462_v35  ;;  %v6891_v35 = vor.u32 %v7772_v33, %v6888_v17  ;;  %v7631_v16 = vld [vmem:[#allocation2 + $0x15c] sm:$0xf] }
 0x14d   :  { %v1559_v22 = vpop.f32.mrf.mxu2  ;;  %v1383_v5 = vpop.f32.mrf.mxu0  ;;  %2177 = vmatpush.bf16.msra.mxu3 %v6871_v46 }
 0x14e   :  { %v8504_v48 = vadd.f32 %v1559_v22, %v1471_v12  ;;  %v1472_v8 = vpop.f32.mrf.mxu1  ;;  %2265 = vmatpush.bf16.msra.mxu0 %v6891_v35  ;;  %v6328_v22 = vld [vmem:[#allocation2 + $0x174] sm:$0xf0] }
 0x14f   :  { %v1473_v25 = vadd.f32 %v1472_v8, %v1383_v5  ;;  %v6334_v5 = vld [vmem:[#allocation2 + $0x160] sm:$0xf]  ;;  %v7635_v8 = vld [vmem:[#allocation2 + $0x178] sm:$0xf0] }
 0x150   :  { %v6335_v17 = vor.u32 %v7635_v8, %v6334_v5 }
 0x153   :  { %v1581_v49 = vpop.f32.mrf.mxu3 }
 0x154   :  { %v8507_v51 = vadd.f32 %v1581_v49, %v8467_v63 }
 0x155   :  { %v1561_v50 = vpop.f32.mrf.mxu2  ;;  %v1386_v1 = vpop.f32.mrf.mxu0 }
 0x156   :  { %v8509_v56 = vadd.f32 %v1561_v50, %v1473_v25  ;;  %v1475_v3 = vpop.f32.mrf.mxu1  ;;  %v7632_v25 = vld [vmem:[#allocation2 + $0x164] sm:$0xf] }
 0x157   :  { %v1476_v6 = vadd.f32 %v1475_v3, %v1386_v1  ;;  %v6339_v53 = vor.u32 %v7632_v25, %v6336_v27  ;;  %v6362_v3 = vld [vmem:[#allocation2 + $0x198] sm:$0xf]  ;;  %v6872_v25 = vld [vmem:[#allocation7 + $0x70] sm:$0xf0]  ;;  %v6878_v27 = vld [vmem:[#allocation7 + $0x68] sm:$0xf] }
 0x158   :  { %1632 = vmatmul.bf16.gmra.mxu3 %v6303_v20  ;;  %1721 = vmatmul.bf16.gmra.mxu0 %v6307_v55 }
 0x159   :  { %1810 = vmatmul.bf16.gmra.mxu1 %v6311_v59  ;;  %v7638_v59 = vld [vmem:[#allocation2 + $0x194] sm:$0xf] }
 0x15a   :  { %1899 = vmatmul.bf16.gmra.mxu2 %v6315_v60  ;;  %v6356_v60 = vld [vmem:[#allocation2 + $0x1ac] sm:$0xf0] }
 0x15b   :  { %v1584_v7 = vpop.f32.mrf.mxu3 }
 0x15c   :  { %v8512_v12 = vadd.f32 %v1584_v7, %v8472_v19  ;;  %v6331_v19 = vor.u32 %v7631_v16, %v6328_v22  ;;  %v7639_v7 = vld [vmem:[#allocation2 + $0x19c] sm:$0xf]  ;;  %v7768_v22 = vld [vmem:[#allocation7 + $0x64] sm:$0xf] }
 0x15d   :  { %v1564_v10 = vpop.f32.mrf.mxu2  ;;  %v1388_v13 = vpop.f32.mrf.mxu0  ;;  %v6880_v16 = vld [vmem:[#allocation7 + $0x78] sm:$0xf0] }
 0x15e   :  { %v8514_v63 = vadd.f32 %v1564_v10, %v1476_v6  ;;  %v1477_v15 = vpop.f32.mrf.mxu1  ;;  %v7642_v6 = vld [vmem:[#allocation2 + $0x1b0] sm:$0xf0]  ;;  %v6364_v10 = vld [vmem:[#allocation2 + $0x1b4] sm:$0xf0] }
 0x15f   :  { %v1478_v30 = vadd.f32 %v1477_v15, %v1388_v13  ;;  %v6370_v13 = vld [vmem:[#allocation2 + $0x1a0] sm:$0xf]  ;;  %v7643_v15 = vld [vmem:[#allocation2 + $0x1b8] sm:$0xf0] }
 0x163   :  { %v1586_v32 = vpop.f32.mrf.mxu3 }
 0x164   :  { %v8517_v34 = vadd.f32 %v1586_v32, %v8477_v37 }
 0x165   :  { %v1566_v33 = vpop.f32.mrf.mxu2  ;;  %v1391_v39 = vpop.f32.mrf.mxu0 }
 0x166   :  { %v8519_v62 = vadd.f32 %v1566_v33, %v1478_v30  ;;  %v1480_v43 = vpop.f32.mrf.mxu1  ;;  %v7769_v30 = vld [vmem:[#allocation7 + $0x6c] sm:$0xf]  ;;  %v6363_v33 = vor.u32 %v7642_v6, %v6362_v3  ;;  %v7646_v6 = vld [vmem:[#allocation2 + $0x1d4] sm:$0xf] }
 0x167   :  { %v1481_v35 = vadd.f32 %v1480_v43, %v1391_v39  ;;  %v6883_v8 = vor.u32 %v7769_v30, %v6880_v16  ;;  %v6371_v43 = vor.u32 %v7643_v15, %v6370_v13  ;;  %v7649_v3 = vld [vmem:[#allocation2 + $0x1e8] sm:$0xf0]  ;;  %v7650_v13 = vld [vmem:[#allocation2 + $0x1f0] sm:$0xf0] }
 0x168   :  { %1637 = vmatmul.bf16.gmra.mxu3 %v6331_v19  ;;  %1726 = vmatmul.bf16.gmra.mxu0 %v6335_v17  ;;  %v6875_v19 = vor.u32 %v7768_v22, %v6872_v25  ;;  %v6879_v17 = vor.u32 %v7771_v28, %v6878_v27 }
 0x169   :  { %1815 = vmatmul.bf16.gmra.mxu1 %v6339_v53  ;;  %2444 = vmatpush.bf16.msra.mxu2 %v6883_v8 }
 0x16a   :  { %1904 = vmatmul.bf16.gmra.mxu2 %v6343_v42  ;;  %v6367_v42 = vor.u32 %v7639_v7, %v6364_v10  ;;  %2266 = vmatpush.bf16.msra.mxu0 %v6875_v19  ;;  %v6392_v7 = vld [vmem:[#allocation2 + $0x1ec] sm:$0xf0]  ;;  %v6398_v10 = vld [vmem:[#allocation2 + $0x1d8] sm:$0xf]  ;;  %v6854_v19 = vld [vmem:[#allocation7 + $0x40] sm:$0xf] }
 0x16b   :  { %v1589_v47 = vpop.f32.mrf.mxu3  ;;  %2355 = vmatpush.bf16.msra.mxu1 %v6879_v17  ;;  %v6395_v8 = vor.u32 %v7646_v6, %v6392_v7  ;;  %v6399_v25 = vor.u32 %v7650_v13, %v6398_v10  ;;  %v7766_v17 = vld [vmem:[#allocation7 + $0x4c] sm:$0xf0]  ;;  %v7764_v6 = vld [vmem:[#allocation7 + $0x44] sm:$0xf] }
 0x16c   :  { %v8522_v37 = vadd.f32 %v1589_v47, %v8482_v2  ;;  %v6359_v2 = vor.u32 %v7638_v59, %v6356_v60  ;;  %v6384_v59 = vld [vmem:[#allocation2 + $0x1e4] sm:$0xf0]  ;;  %v6390_v60 = vld [vmem:[#allocation2 + $0x1d0] sm:$0xf] }
 0x16d   :  { %v1569_v49 = vpop.f32.mrf.mxu2  ;;  %v1393_v20 = vpop.f32.mrf.mxu0  ;;  %v6391_v22 = vor.u32 %v7649_v3, %v6390_v60  ;;  %v7765_v3 = vld [vmem:[#allocation7 + $0x4c] sm:$0xf] }
 0x16e   :  { %v8524_v50 = vadd.f32 %v1569_v49, %v1481_v35  ;;  %v1482_v55 = vpop.f32.mrf.mxu1 }
 0x16f   :  { %v1483_v1 = vadd.f32 %v1482_v55, %v1393_v20 }
 0x173   :  { %v1591_v5 = vpop.f32.mrf.mxu3 }
 0x174   :  { %v8527_v32 = vadd.f32 %v1591_v5, %v8487_v26 }
 0x175   :  { %v1571_v29 = vpop.f32.mrf.mxu2  ;;  %v1396_v53 = vpop.f32.mrf.mxu0 }
 0x176   :  { %v8529_v39 = vadd.f32 %v1571_v29, %v1483_v1  ;;  %v1485_v35 = vpop.f32.mrf.mxu1  ;;  %v7645_v1 = vld [vmem:[#allocation2 + $0x1cc] sm:$0xf] }
 0x177   :  { %v1486_v44 = vadd.f32 %v1485_v35, %v1396_v53  ;;  %v6855_v53 = vor.u32 %v7766_v17, %v6854_v19  ;;  %v7652_v35 = vld [vmem:[#allocation2 + $0x204] sm:$0xf] }
 0x178   :  { %1642 = vmatmul.bf16.gmra.mxu3 %v6359_v2  ;;  %1731 = vmatmul.bf16.gmra.mxu0 %v6363_v33 }
 0x179   :  { %1820 = vmatmul.bf16.gmra.mxu1 %v6367_v42  ;;  %2178 = vmatpush.bf16.msra.mxu3 %v6855_v53 }
 0x17a   :  { %1909 = vmatmul.bf16.gmra.mxu2 %v6371_v43 }
 0x17b   :  { %v1594_v45 = vpop.f32.mrf.mxu3 }
 0x17c   :  { %v8532_v46 = vadd.f32 %v1594_v45, %v8492_v40  ;;  %v6387_v40 = vor.u32 %v7645_v1, %v6384_v59  ;;  %v6426_v1 = vld [vmem:[#allocation2 + $0x210] sm:$0xf]  ;;  %v7657_v59 = vld [vmem:[#allocation2 + $0x228] sm:$0xf0] }
 0x17d   :  { %v1574_v26 = vpop.f32.mrf.mxu2  ;;  %v1398_v49 = vpop.f32.mrf.mxu0  ;;  %v6427_v19 = vor.u32 %v7657_v59, %v6426_v1  ;;  %v6440_v1 = vld [vmem:[#allocation2 + $0x254] sm:$0xf0]  ;;  %v6446_v59 = vld [vmem:[#allocation2 + $0x240] sm:$0xf] }
 0x17e   :  { %v8534_v47 = vadd.f32 %v1574_v26, %v1486_v44  ;;  %v1487_v20 = vpop.f32.mrf.mxu1  ;;  %v6412_v44 = vld [vmem:[#allocation2 + $0x21c] sm:$0xf0]  ;;  %v6418_v26 = vld [vmem:[#allocation2 + $0x208] sm:$0xf] }
 0x17f   :  { %v1488_v55 = vadd.f32 %v1487_v20, %v1398_v49  ;;  %v7656_v49 = vld [vmem:[#allocation2 + $0x220] sm:$0xf0]  ;;  %v7653_v20 = vld [vmem:[#allocation2 + $0x20c] sm:$0xf]  ;;  %v6415_v10 = vor.u32 %v7652_v35, %v6412_v44 }
 0x183   :  { %v1596_v15 = vpop.f32.mrf.mxu3 }
 0x184   :  { %v8537_v16 = vadd.f32 %v1596_v15, %v8497_v58  ;;  %v6856_v15 = vld [vmem:[#allocation7 + $0x50] sm:$0xf0] }
 0x185   :  { %v1576_v30 = vpop.f32.mrf.mxu2  ;;  %v1697_v2 = vpop.f32.mrf.mxu0 }
 0x186   :  { %v8539_v5 = vadd.f32 %v1576_v30, %v1488_v55  ;;  %v1786_v27 = vpop.f32.mrf.mxu1  ;;  %v6420_v55 = vld [vmem:[#allocation2 + $0x224] sm:$0xf0] }
 0x187   :  { %v6862_v30 = vld [vmem:[#allocation7 + $0x48] sm:$0xf] }
 0x188   :  { %1647 = vmatmul.bf16.gmra.mxu3 %v6387_v40  ;;  %1736 = vmatmul.bf16.gmra.mxu0 %v6391_v22  ;;  %v7767_v40 = vld [vmem:[#allocation7 + $0x54] sm:$0xf0] }
 0x189   :  { %1825 = vmatmul.bf16.gmra.mxu1 %v6395_v8  ;;  %v6419_v8 = vor.u32 %v7656_v49, %v6418_v26 }
 0x18a   :  { %1914 = vmatmul.bf16.gmra.mxu2 %v6399_v25  ;;  %v6859_v25 = vor.u32 %v7764_v6, %v6856_v15  ;;  %v6448_v6 = vld [vmem:[#allocation2 + $0x25c] sm:$0xf0] }
 0x18b   :  { %v1608_v28 = vpop.f32.mrf.mxu3 }
 0x18c   :  { %v1609_v29 = vadd.f32 %v1608_v28, %v8431_v36  ;;  %v6864_v36 = vld [vmem:[#allocation7 + $0x58] sm:$0xf0]  ;;  %2267 = vmatpush.bf16.msra.mxu0 %v6859_v25 }
 0x18d   :  { %v1875_v33 = vpop.f32.mrf.mxu2  ;;  %v1699_v58 = vpop.f32.mrf.mxu0  ;;  %v6867_v13 = vor.u32 %v7765_v3, %v6864_v36  ;;  %v7663_v3 = vld [vmem:[#allocation2 + $0x258] sm:$0xf0] }
 0x18e   :  { %v1698_v42 = vadd.f32 %v1697_v2, %v1609_v29  ;;  %v1788_v43 = vpop.f32.mrf.mxu1  ;;  %v6423_v29 = vor.u32 %v7653_v20, %v6420_v55 }
 0x18f   :  { %2445 = vmatpush.bf16.msra.mxu2 %v6867_v13 }
 0x190   :  { %v1787_v45 = vadd.f32 %v1786_v27, %v1698_v42  ;;  %v6863_v27 = vor.u32 %v7767_v40, %v6862_v30 }
 0x192   :  { %v1876_v60 = vadd.f32 %v1875_v33, %v1787_v45  ;;  %2356 = vmatpush.bf16.msra.mxu1 %v6863_v27 }
 0x193   :  { %v1610_v7 = vpop.f32.mrf.mxu3 }
 0x194   :  { %v1611_v22 = vadd.f32 %v1610_v7, %v8435_v52  ;;  %v6454_v7 = vld [vmem:[#allocation2 + $0x248] sm:$0xf] }
 0x195   :  { %v1877_v2 = vpop.f32.mrf.mxu2  ;;  %v1702_v28 = vpop.f32.mrf.mxu0 }
 0x196   :  { %v1700_v33 = vadd.f32 %v1699_v58, %v1611_v22  ;;  %v1791_v17 = vpop.f32.mrf.mxu1  ;;  %v7659_v58 = vld [vmem:[#allocation2 + $0x23c] sm:$0xf] }
 0x197   :  { %v6443_v30 = vor.u32 %v7659_v58, %v6440_v1  ;;  %v7670_v58 = vld [vmem:[#allocation2 + $0x290] sm:$0xf0]  ;;  %v7667_v1 = vld [vmem:[#allocation2 + $0x27c] sm:$0xf] }
 0x198   :  { %v1789_v53 = vadd.f32 %v1788_v43, %v1700_v33  ;;  %1652 = vmatmul.bf16.gmra.mxu3 %v6415_v10  ;;  %1741 = vmatmul.bf16.gmra.mxu0 %v6419_v8  ;;  %v7660_v43 = vld [vmem:[#allocation2 + $0x244] sm:$0xf] }
 0x199   :  { %1830 = vmatmul.bf16.gmra.mxu1 %v6423_v29  ;;  %v7664_v10 = vld [vmem:[#allocation2 + $0x260] sm:$0xf0]  ;;  %v6451_v22 = vor.u32 %v7660_v43, %v6448_v6  ;;  %v7671_v43 = vld [vmem:[#allocation2 + $0x298] sm:$0xf0]  ;;  %v7761_v6 = vld [vmem:[#allocation7 + $0x2c] sm:$0xf] }
 0x19a   :  { %1919 = vmatmul.bf16.gmra.mxu2 %v6427_v19  ;;  %v1878_v42 = vadd.f32 %v1877_v2, %v1789_v53  ;;  %v6455_v2 = vor.u32 %v7664_v10, %v6454_v7  ;;  %v7762_v53 = vld [vmem:[#allocation7 + $0x2c] sm:$0xf0]  ;;  %v7760_v7 = vld [vmem:[#allocation7 + $0x24] sm:$0xf] }
 0x19b   :  { %v1613_v35 = vpop.f32.mrf.mxu3 }
 0x19c   :  { %v8543_v52 = vpack.c.bf16 %v1878_v42, %v1876_v60  ;;  %v1614_v44 = vadd.f32 %v1613_v35, %v8439_v0  ;;  %v6447_v0 = vor.u32 %v7663_v3, %v6446_v59  ;;  %v6476_v59 = vld [vmem:[#allocation2 + $0x294] sm:$0xf0]  ;;  %v6482_v3 = vld [vmem:[#allocation2 + $0x280] sm:$0xf] }
 0x19d   :  { %v1880_v45 = vpop.f32.mrf.mxu2  ;;  %v1704_v26 = vpop.f32.mrf.mxu0 }
 0x19e   :  { %v1703_v49 = vadd.f32 %v1702_v28, %v1614_v44  ;;  %v1793_v20 = vpop.f32.mrf.mxu1 }
 0x1a0   :  { %v1792_v55 = vadd.f32 %v1791_v17, %v1703_v49  ;;  %v6838_v17 = vld [vmem:[#allocation7 + $0x20] sm:$0xf]  ;;  %v6468_v49 = vld [vmem:[#allocation2 + $0x28c] sm:$0xf0] }
 0x1a1   :  { %v6839_v35 = vor.u32 %v7762_v53, %v6838_v17 }
 0x1a2   :  { %v1881_v36 = vadd.f32 %v1880_v45, %v1792_v55  ;;  %v6474_v55 = vld [vmem:[#allocation2 + $0x278] sm:$0xf] }
 0x1a3   :  { %v1615_v13 = vpop.f32.mrf.mxu3  ;;  %2179 = vmatpush.bf16.msra.mxu3 %v6839_v35 }
 0x1a4   :  { %v1616_v60 = vadd.f32 %v1615_v13, %v8443_v24 }
 0x1a5   :  { %v1882_v15 = vpop.f32.mrf.mxu2  ;;  %v1707_v40 = vpop.f32.mrf.mxu0 }
 0x1a6   :  { %v1705_v8 = vadd.f32 %v1704_v26, %v1616_v60  ;;  %v1796_v25 = vpop.f32.mrf.mxu1  ;;  %v7666_v26 = vld [vmem:[#allocation2 + $0x274] sm:$0xf] }
 0x1a7   :  { %v6471_v13 = vor.u32 %v7666_v26, %v6468_v49 }
 0x1a8   :  { %v1794_v27 = vadd.f32 %v1793_v20, %v1705_v8  ;;  %1657 = vmatmul.bf16.gmra.mxu3 %v6443_v30  ;;  %1746 = vmatmul.bf16.gmra.mxu0 %v6447_v0  ;;  %v6846_v30 = vld [vmem:[#allocation7 + $0x28] sm:$0xf]  ;;  %v7763_v0 = vld [vmem:[#allocation7 + $0x34] sm:$0xf0] }
 0x1a9   :  { %1835 = vmatmul.bf16.gmra.mxu1 %v6451_v22 }
 0x1aa   :  { %1924 = vmatmul.bf16.gmra.mxu2 %v6455_v2  ;;  %v1883_v28 = vadd.f32 %v1882_v15, %v1794_v27  ;;  %v6840_v15 = vld [vmem:[#allocation7 + $0x30] sm:$0xf0]  ;;  %v6475_v2 = vor.u32 %v7670_v58, %v6474_v55 }
 0x1ab   :  { %v1618_v29 = vpop.f32.mrf.mxu3  ;;  %v6843_v8 = vor.u32 %v7760_v7, %v6840_v15  ;;  %v7678_v7 = vld [vmem:[#allocation2 + $0x2d0] sm:$0xf0] }
 0x1ac   :  { %v8547_v19 = vpack.c.bf16 %v1883_v28, %v1881_v36  ;;  %v1619_v33 = vadd.f32 %v1618_v29, %v8447_v31  ;;  %v6848_v31 = vld [vmem:[#allocation7 + $0x38] sm:$0xf0]  ;;  %v6479_v28 = vor.u32 %v7667_v1, %v6476_v59  ;;  %v6483_v29 = vor.u32 %v7671_v43, %v6482_v3  ;;  %v6496_v1 = vld [vmem:[#allocation2 + $0x2c4] sm:$0xf0]  ;;  %v6502_v59 = vld [vmem:[#allocation2 + $0x2b0] sm:$0xf] }
 0x1ad   :  { %v1885_v24 = vpop.f32.mrf.mxu2  ;;  %v1709_v42 = vpop.f32.mrf.mxu0  ;;  %v6851_v60 = vor.u32 %v7761_v6, %v6848_v31  ;;  %2268 = vmatpush.bf16.msra.mxu0 %v6843_v8  ;;  %v7677_v3 = vld [vmem:[#allocation2 + $0x2c8] sm:$0xf0]  ;;  %v6504_v6 = vld [vmem:[#allocation2 + $0x2cc] sm:$0xf0]  ;;  %v6510_v31 = vld [vmem:[#allocation2 + $0x2b8] sm:$0xf] }
 0x1ae   :  { %v1708_v44 = vadd.f32 %v1707_v40, %v1619_v33  ;;  %v1798_v45 = vpop.f32.mrf.mxu1 }
 0x1af   :  { %2446 = vmatpush.bf16.msra.mxu2 %v6851_v60 }
 0x1b0   :  { %v1797_v20 = vadd.f32 %v1796_v25, %v1708_v44  ;;  %v6847_v25 = vor.u32 %v7763_v0, %v6846_v30  ;;  %v6511_v0 = vor.u32 %v7678_v7, %v6510_v31 }
 0x1b2   :  { %v1886_v36 = vadd.f32 %v1885_v24, %v1797_v20  ;;  %2357 = vmatpush.bf16.msra.mxu1 %v6847_v25 }
 0x1b3   :  { %v1620_v10 = vpop.f32.mrf.mxu3 }
 0x1b4   :  { %v1621_v40 = vadd.f32 %v1620_v10, %v8451_v57 }
 0x1b5   :  { %v1887_v22 = vpop.f32.mrf.mxu2  ;;  %v1712_v27 = vpop.f32.mrf.mxu0 }
 0x1b6   :  { %v1710_v33 = vadd.f32 %v1709_v42, %v1621_v40  ;;  %v1801_v24 = vpop.f32.mrf.mxu1  ;;  %v7673_v42 = vld [vmem:[#allocation2 + $0x2ac] sm:$0xf] }
 0x1b7   :  { %v6499_v60 = vor.u32 %v7673_v42, %v6496_v1  ;;  %v6532_v42 = vld [vmem:[#allocation2 + $0x304] sm:$0xf0]  ;;  %v6538_v1 = vld [vmem:[#allocation2 + $0x2f0] sm:$0xf] }
 0x1b8   :  { %v1799_v17 = vadd.f32 %v1798_v45, %v1710_v33  ;;  %1662 = vmatmul.bf16.gmra.mxu3 %v6471_v13  ;;  %1751 = vmatmul.bf16.gmra.mxu0 %v6475_v2  ;;  %v7674_v45 = vld [vmem:[#allocation2 + $0x2b4] sm:$0xf]  ;;  %v7758_v33 = vld [vmem:[#allocation7 + $0xc] sm:$0xf0] }
 0x1b9   :  { %1840 = vmatmul.bf16.gmra.mxu1 %v6479_v28  ;;  %v6507_v30 = vor.u32 %v7674_v45, %v6504_v6  ;;  %v7757_v45 = vld [vmem:[#allocation7 + $0xc] sm:$0xf] }
 0x1ba   :  { %1929 = vmatmul.bf16.gmra.mxu2 %v6483_v29  ;;  %v1888_v53 = vadd.f32 %v1887_v22, %v1799_v17  ;;  %v6822_v29 = vld [vmem:[#allocation7] sm:$0xf] }
 0x1bb   :  { %v1623_v35 = vpop.f32.mrf.mxu3  ;;  %v6823_v17 = vor.u32 %v7758_v33, %v6822_v29 }
 0x1bc   :  { %v8551_v57 = vpack.c.bf16 %v1888_v53, %v1886_v36  ;;  %v1624_v44 = vadd.f32 %v1623_v35, %v8455_v4  ;;  %v6503_v4 = vor.u32 %v7677_v3, %v6502_v59  ;;  %v7685_v59 = vld [vmem:[#allocation2 + $0x308] sm:$0xf0] }
 0x1bd   :  { %v1890_v26 = vpop.f32.mrf.mxu2  ;;  %v1714_v49 = vpop.f32.mrf.mxu0  ;;  %2180 = vmatpush.bf16.msra.mxu3 %v6823_v17 }
 0x1be   :  { %v1713_v20 = vadd.f32 %v1712_v27, %v1624_v44  ;;  %v1803_v55 = vpop.f32.mrf.mxu1  ;;  %v7680_v44 = vld [vmem:[#allocation2 + $0x2e4] sm:$0xf] }
 0x1c0   :  { %v1802_v58 = vadd.f32 %v1801_v24, %v1713_v20  ;;  %v6530_v20 = vld [vmem:[#allocation2 + $0x2e8] sm:$0xf] }
 0x1c2   :  { %v1891_v43 = vadd.f32 %v1890_v26, %v1802_v58  ;;  %v6524_v26 = vld [vmem:[#allocation2 + $0x2fc] sm:$0xf0]  ;;  %v7681_v58 = vld [vmem:[#allocation2 + $0x2ec] sm:$0xf] }
 0x1c3   :  { %v1625_v10 = vpop.f32.mrf.mxu3  ;;  %v6527_v31 = vor.u32 %v7680_v44, %v6524_v26 }
 0x1c4   :  { %v1626_v36 = vadd.f32 %v1625_v10, %v8459_v11  ;;  %v6824_v10 = vld [vmem:[#allocation7 + $0x10] sm:$0xf0] }
 0x1c5   :  { %v1892_v13 = vpop.f32.mrf.mxu2  ;;  %v1717_v15 = vpop.f32.mrf.mxu0 }
 0x1c6   :  { %v1715_v40 = vadd.f32 %v1714_v49, %v1626_v36  ;;  %v1806_v22 = vpop.f32.mrf.mxu1  ;;  %v6830_v36 = vld [vmem:[#allocation7 + $0x8] sm:$0xf] }
 0x1c8   :  { %v1804_v2 = vadd.f32 %v1803_v55, %v1715_v40  ;;  %1667 = vmatmul.bf16.gmra.mxu3 %v6499_v60  ;;  %1756 = vmatmul.bf16.gmra.mxu0 %v6503_v4  ;;  %v7684_v55 = vld [vmem:[#allocation2 + $0x300] sm:$0xf0] }
 0x1c9   :  { %1845 = vmatmul.bf16.gmra.mxu1 %v6507_v30 }
 0x1ca   :  { %1934 = vmatmul.bf16.gmra.mxu2 %v6511_v0  ;;  %v1893_v8 = vadd.f32 %v1892_v13, %v1804_v2  ;;  %v7759_v13 = vld [vmem:[#allocation7 + $0x14] sm:$0xf0]  ;;  %v6539_v2 = vor.u32 %v7685_v59, %v6538_v1  ;;  %v6560_v1 = vld [vmem:[#allocation2 + $0x33c] sm:$0xf0]  ;;  %v6566_v59 = vld [vmem:[#allocation2 + $0x328] sm:$0xf] }
 0x1cb   :  { %v1628_v25 = vpop.f32.mrf.mxu3  ;;  %v6831_v0 = vor.u32 %v7759_v13, %v6830_v36 }
 0x1cc   :  { %v8555_v27 = vpack.c.bf16 %v1893_v8, %v1891_v43  ;;  %v1629_v28 = vadd.f32 %v1628_v25, %v8464_v38  ;;  %v6832_v38 = vld [vmem:[#allocation7 + $0x18] sm:$0xf0]  ;;  %v7756_v43 = vld [vmem:[#allocation7 + $0x4] sm:$0xf] }
 0x1cd   :  { %v1895_v11 = vpop.f32.mrf.mxu2  ;;  %v1719_v24 = vpop.f32.mrf.mxu0  ;;  %v6835_v7 = vor.u32 %v7757_v45, %v6832_v38  ;;  %v6827_v30 = vor.u32 %v7756_v43, %v6824_v10  ;;  %2358 = vmatpush.bf16.msra.mxu1 %v6831_v0  ;;  %v7692_v45 = vld [vmem:[#allocation2 + $0x340] sm:$0xf0] }
 0x1ce   :  { %v1718_v53 = vadd.f32 %v1717_v15, %v1629_v28  ;;  %v1808_v35 = vpop.f32.mrf.mxu1  ;;  %v6531_v15 = vor.u32 %v7684_v55, %v6530_v20  ;;  %v6552_v20 = vld [vmem:[#allocation2 + $0x334] sm:$0xf0]  ;;  %v6558_v55 = vld [vmem:[#allocation2 + $0x320] sm:$0xf]  ;;  %v6567_v10 = vor.u32 %v7692_v45, %v6566_v59 }
 0x1cf   :  { %2447 = vmatpush.bf16.msra.mxu2 %v6835_v7  ;;  %2269 = vmatpush.bf16.msra.mxu0 %v6827_v30 }
 0x1d0   :  { %v1807_v49 = vadd.f32 %v1806_v22, %v1718_v53  ;;  %v6535_v22 = vor.u32 %v7681_v58, %v6532_v42  ;;  %v7691_v58 = vld [vmem:[#allocation2 + $0x338] sm:$0xf0] }
 0x1d2   :  { %v1896_v3 = vadd.f32 %v1895_v11, %v1807_v49 }
 0x1d3   :  { %v1630_v6 = vpop.f32.mrf.mxu3 }
 0x1d4   :  { %v1631_v60 = vadd.f32 %v1630_v6, %v8469_v9 }
 0x1d5   :  { %v1897_v4 = vpop.f32.mrf.mxu2  ;;  %v1722_v40 = vpop.f32.mrf.mxu0 }
 0x1d6   :  { %v1720_v8 = vadd.f32 %v1719_v24, %v1631_v60  ;;  %v1811_v25 = vpop.f32.mrf.mxu1  ;;  %v7687_v24 = vld [vmem:[#allocation2 + $0x31c] sm:$0xf] }
 0x1d7   :  { %v6555_v6 = vor.u32 %v7687_v24, %v6552_v20  ;;  %v7819_v24 = vld [vmem:[#allocation10 + $0xf8] sm:$0xff] }
 0x1d8   :  { %v1809_v28 = vadd.f32 %v1808_v35, %v1720_v8  ;;  %1672 = vmatmul.bf16.gmra.mxu3 %v6527_v31  ;;  %1761 = vmatmul.bf16.gmra.mxu0 %v6531_v15  ;;  %v7688_v35 = vld [vmem:[#allocation2 + $0x324] sm:$0xf]  ;;  %v7803_v20 = vld [vmem:[#allocation10 + $0x78] sm:$0xff] }
 0x1d9   :  { %1850 = vmatmul.bf16.gmra.mxu1 %v6535_v22  ;;  %v6563_v7 = vor.u32 %v7688_v35, %v6560_v1  ;;  %3244 = vmatpush.bf16.msrb.mxu2 %v7819_v24  ;;  %v7818_v24 = vld [vmem:[#allocation10 + $0xf0] sm:$0xff] }
 0x1da   :  { %1939 = vmatmul.bf16.gmra.mxu2 %v6539_v2  ;;  %v1898_v11 = vadd.f32 %v1897_v4, %v1809_v28  ;;  %v6580_v28 = vld [vmem:[#allocation2 + $0x36c] sm:$0xf0]  ;;  %3066 = vmatpush.bf16.msrb.mxu0 %v7803_v20  ;;  %v7802_v20 = vld [vmem:[#allocation10 + $0x70] sm:$0xff] }
 0x1db   :  { %v1633_v29 = vpop.f32.mrf.mxu3 }
 0x1dc   :  { %v8559_v9 = vpack.c.bf16 %v1898_v11, %v1896_v3  ;;  %v1634_v33 = vadd.f32 %v1633_v29, %v8474_v21  ;;  %v6559_v21 = vor.u32 %v7691_v58, %v6558_v55  ;;  %v6586_v29 = vld [vmem:[#allocation2 + $0x358] sm:$0xf]  ;;  %v7811_v55 = vld [vmem:[#allocation10 + $0xb8] sm:$0xff] }
 0x1dd   :  { %v1900_v17 = vpop.f32.mrf.mxu2  ;;  %v1724_v53 = vpop.f32.mrf.mxu0  ;;  %3155 = vmatpush.bf16.msrb.mxu1 %v7811_v55  ;;  %v7810_v55 = vld [vmem:[#allocation10 + $0xb0] sm:$0xff]  ;;  %3245 = vmatpush.bf16.msrb.mxu2 %v7818_v24 }
 0x1de   :  { %v1723_v44 = vadd.f32 %v1722_v40, %v1634_v33  ;;  %v1813_v26 = vpop.f32.mrf.mxu1  ;;  %v7795_v40 = vld [vmem:[#allocation10 + $0x38] sm:$0xff]  ;;  %v7698_v33 = vld [vmem:[#allocation2 + $0x370] sm:$0xf0]  ;;  %3067 = vmatpush.bf16.msrb.mxu0 %v7802_v20 }
 0x1df   :  { %2977 = vmatpush.bf16.msrb.mxu3 %v7795_v40  ;;  %v6587_v1 = vor.u32 %v7698_v33, %v6586_v29  ;;  %v7794_v33 = vld [vmem:[#allocation10 + $0x30] sm:$0xff] }
 0x1e0   :  { %v1812_v49 = vadd.f32 %v1811_v25, %v1723_v44  ;;  %v7694_v25 = vld [vmem:[#allocation2 + $0x354] sm:$0xf]  ;;  %v6594_v44 = vld [vmem:[#allocation2 + $0x360] sm:$0xf] }
 0x1e1   :  { %3156 = vmatpush.bf16.msrb.mxu1 %v7810_v55 }
 0x1e2   :  { %v1901_v42 = vadd.f32 %v1900_v17, %v1812_v49  ;;  %v7695_v17 = vld [vmem:[#allocation2 + $0x35c] sm:$0xf] }
 0x1e3   :  { %v1635_v38 = vpop.f32.mrf.mxu3  ;;  %2978 = vmatpush.bf16.msrb.mxu3 %v7794_v33  ;;  %v7809_v33 = vld [vmem:[#allocation10 + $0xa8] sm:$0xff] }
 0x1e4   :  { %v1636_v3 = vadd.f32 %v1635_v38, %v8479_v23 }
 0x1e5   :  { %v1902_v43 = vpop.f32.mrf.mxu2  ;;  %v1727_v31 = vpop.f32.mrf.mxu0  ;;  %3157 = vmatpush.bf16.msrb.mxu1 %v7809_v33 }
 0x1e6   :  { %v1725_v36 = vadd.f32 %v1724_v53, %v1636_v3  ;;  %v1816_v13 = vpop.f32.mrf.mxu1  ;;  %v6588_v53 = vld [vmem:[#allocation2 + $0x374] sm:$0xf0] }
 0x1e7   :  { %v6591_v45 = vor.u32 %v7695_v17, %v6588_v53 }
 0x1e8   :  { %v1814_v60 = vadd.f32 %v1813_v26, %v1725_v36  ;;  %1677 = vmatmul.bf16.gmra.mxu3 %v6555_v6  ;;  %1766 = vmatmul.bf16.gmra.mxu0 %v6559_v21  ;;  %v7699_v26 = vld [vmem:[#allocation2 + $0x378] sm:$0xf0] }
 0x1e9   :  { %1855 = vmatmul.bf16.gmra.mxu1 %v6563_v7  ;;  %v6595_v38 = vor.u32 %v7699_v26, %v6594_v44 }
 0x1ea   :  { %1944 = vmatmul.bf16.gmra.mxu2 %v6567_v10  ;;  %v1903_v4 = vadd.f32 %v1902_v43, %v1814_v60 }
 0x1eb   :  { %v1638_v15 = vpop.f32.mrf.mxu3 }
 0x1ec   :  { %v8563_v30 = vpack.c.bf16 %v1903_v4, %v1901_v42  ;;  %v1639_v0 = vadd.f32 %v1638_v15, %v8484_v54  ;;  %v6583_v42 = vor.u32 %v7694_v25, %v6580_v28 }
 0x1ed   :  { %v1905_v23 = vpop.f32.mrf.mxu2  ;;  %v1729_v22 = vpop.f32.mrf.mxu0 }
 0x1ee   :  { %v1728_v2 = vadd.f32 %v1727_v31, %v1639_v0  ;;  %v1818_v8 = vpop.f32.mrf.mxu1 }
 0x1f0   :  { %v1817_v11 = vadd.f32 %v1816_v13, %v1728_v2 }
 0x1f2   :  { %v1906_v49 = vadd.f32 %v1905_v23, %v1817_v11 }
 0x1f3   :  { %v1640_v54 = vpop.f32.mrf.mxu3 }
 0x1f4   :  { %v1641_v58 = vadd.f32 %v1640_v54, %v8489_v14 }
 0x1f5   :  { %v1907_v35 = vpop.f32.mrf.mxu2  ;;  %v1732_v59 = vpop.f32.mrf.mxu0 }
 0x1f6   :  { %v1730_v3 = vadd.f32 %v1729_v22, %v1641_v58  ;;  %v1821_v43 = vpop.f32.mrf.mxu1 }
 0x1f8   :  { %v1819_v6 = vadd.f32 %v1818_v8, %v1730_v3  ;;  %1682 = vmatmul.bf16.gmra.mxu3 %v6583_v42  ;;  %1771 = vmatmul.bf16.gmra.mxu0 %v6587_v1 }
 0x1f9   :  { %1860 = vmatmul.bf16.gmra.mxu1 %v6591_v45 }
 0x1fa   :  { %1949 = vmatmul.bf16.gmra.mxu2 %v6595_v38  ;;  %v1908_v21 = vadd.f32 %v1907_v35, %v1819_v6 }
 0x1fb   :  { %v1643_v31 = vpop.f32.mrf.mxu3 }
 0x1fc   :  { %v8567_v7 = vpack.c.bf16 %v1908_v21, %v1906_v49  ;;  %v1644_v14 = vadd.f32 %v1643_v31, %v8494_v41 }
 0x1fd   :  { %v1910_v10 = vpop.f32.mrf.mxu2  ;;  %v1734_v36 = vpop.f32.mrf.mxu0 }
 0x1fe   :  { %v1733_v13 = vadd.f32 %v1732_v59, %v1644_v14  ;;  %v1823_v60 = vpop.f32.mrf.mxu1 }
 0x200   :  { %v1822_v4 = vadd.f32 %v1821_v43, %v1733_v13 }
 0x202   :  { %v1911_v15 = vadd.f32 %v1910_v10, %v1822_v4 }
 0x203   :  { %v1645_v0 = vpop.f32.mrf.mxu3 }
 0x204   :  { %v1646_v23 = vadd.f32 %v1645_v0, %v8499_v61 }
 0x205   :  { %v1912_v40 = vpop.f32.mrf.mxu2  ;;  %v1737_v22 = vpop.f32.mrf.mxu0 }
 0x206   :  { %v1735_v2 = vadd.f32 %v1734_v36, %v1646_v23  ;;  %v1826_v8 = vpop.f32.mrf.mxu1 }
 0x208   :  { %v1824_v25 = vadd.f32 %v1823_v60, %v1735_v2  ;;  %2181 = vmatmul.bf16.vlgmr.msra.gmra.mxu3 %v8543_v52  ;;  %2270 = vmatmul.bf16.vlgmr.msra.gmra.mxu0 %v8543_v52 }
 0x209   :  { %2359 = vmatmul.bf16.vlgmr.msra.gmra.mxu1 %v8543_v52 }
 0x20a   :  { %2448 = vmatmul.bf16.vlgmr.msra.gmra.mxu2 %v8543_v52  ;;  %v1913_v41 = vadd.f32 %v1912_v40, %v1824_v25 }
 0x20b   :  { %v1648_v28 = vpop.f32.mrf.mxu3 }
 0x20c   :  { %v8575_v11 = vpack.c.bf16 %v1913_v41, %v1911_v15  ;;  %v1649_v29 = vadd.f32 %v1648_v28, %v8504_v48 }
 0x20d   :  { %v1915_v61 = vpop.f32.mrf.mxu2  ;;  %v1739_v17 = vpop.f32.mrf.mxu0 }
 0x20e   :  { %v1738_v53 = vadd.f32 %v1737_v22, %v1649_v29  ;;  %v1828_v44 = vpop.f32.mrf.mxu1  ;;  %v7793_v22 = vld [vmem:[#allocation10 + $0x28] sm:$0xff] }
 0x20f   :  { %2979 = vmatpush.bf16.msrb.mxu3 %v7793_v22  ;;  %v7817_v29 = vld [vmem:[#allocation10 + $0xe8] sm:$0xff] }
 0x210   :  { %v1827_v26 = vadd.f32 %v1826_v8, %v1738_v53  ;;  %3246 = vmatpush.bf16.msrb.mxu2 %v7817_v29 }
 0x212   :  { %v1916_v49 = vadd.f32 %v1915_v61, %v1827_v26  ;;  %v7801_v61 = vld [vmem:[#allocation10 + $0x68] sm:$0xff] }
 0x213   :  { %v1650_v54 = vpop.f32.mrf.mxu3  ;;  %3068 = vmatpush.bf16.msrb.mxu0 %v7801_v61 }
 0x214   :  { %v1651_v52 = vadd.f32 %v1650_v54, %v8509_v56 }
 0x215   :  { %v1917_v58 = vpop.f32.mrf.mxu2  ;;  %v1742_v35 = vpop.f32.mrf.mxu0 }
 0x216   :  { %v1740_v48 = vadd.f32 %v1739_v17, %v1651_v52  ;;  %v1831_v42 = vpop.f32.mrf.mxu1 }
 0x218   :  { %v1829_v1 = vadd.f32 %v1828_v44, %v1740_v48  ;;  %2186 = vmatmul.bf16.gmra.mxu3 %v8547_v19  ;;  %2275 = vmatmul.bf16.gmra.mxu0 %v8547_v19 }
 0x219   :  { %2364 = vmatmul.bf16.gmra.mxu1 %v8547_v19 }
 0x21a   :  { %2453 = vmatmul.bf16.gmra.mxu2 %v8547_v19  ;;  %v1918_v59 = vadd.f32 %v1917_v58, %v1829_v1 }
 0x21b   :  { %v1653_v45 = vpop.f32.mrf.mxu3 }
 0x21c   :  { %v8583_v38 = vpack.c.bf16 %v1918_v59, %v1916_v49  ;;  %v1654_v56 = vadd.f32 %v1653_v45, %v8514_v63 }
 0x21d   :  { %v1920_v3 = vpop.f32.mrf.mxu2  ;;  %v1744_v43 = vpop.f32.mrf.mxu0 }
 0x21e   :  { %v1743_v6 = vadd.f32 %v1742_v35, %v1654_v56  ;;  %v1833_v21 = vpop.f32.mrf.mxu1 }
 0x220   :  { %v1832_v31 = vadd.f32 %v1831_v42, %v1743_v6 }
 0x222   :  { %v1921_v14 = vadd.f32 %v1920_v3, %v1832_v31 }
 0x223   :  { %v1655_v10 = vpop.f32.mrf.mxu3 }
 0x224   :  { %v1656_v36 = vadd.f32 %v1655_v10, %v8519_v62 }
 0x225   :  { %v1922_v13 = vpop.f32.mrf.mxu2  ;;  %v1747_v60 = vpop.f32.mrf.mxu0 }
 0x226   :  { %v1745_v4 = vadd.f32 %v1744_v43, %v1656_v36  ;;  %v1836_v15 = vpop.f32.mrf.mxu1 }
 0x228   :  { %v1834_v19 = vadd.f32 %v1833_v21, %v1745_v4  ;;  %2191 = vmatmul.bf16.gmra.mxu3 %v8551_v57  ;;  %2280 = vmatmul.bf16.gmra.mxu0 %v8551_v57 }
 0x229   :  { %2369 = vmatmul.bf16.gmra.mxu1 %v8551_v57 }
 0x22a   :  { %2458 = vmatmul.bf16.gmra.mxu2 %v8551_v57  ;;  %v1923_v63 = vadd.f32 %v1922_v13, %v1834_v19  ;;  %v7800_v19 = vld [vmem:[#allocation10 + $0x60] sm:$0xff] }
 0x22b   :  { %v1658_v0 = vpop.f32.mrf.mxu3  ;;  %3069 = vmatpush.bf16.msrb.mxu0 %v7800_v19 }
 0x22c   :  { %v8591_v23 = vpack.c.bf16 %v1923_v63, %v1921_v14  ;;  %v1659_v40 = vadd.f32 %v1658_v0, %v8524_v50  ;;  %v7792_v14 = vld [vmem:[#allocation10 + $0x20] sm:$0xff] }
 0x22d   :  { %v1925_v62 = vpop.f32.mrf.mxu2  ;;  %v1749_v2 = vpop.f32.mrf.mxu0  ;;  %2980 = vmatpush.bf16.msrb.mxu3 %v7792_v14  ;;  %v7808_v63 = vld [vmem:[#allocation10 + $0xa0] sm:$0xff] }
 0x22e   :  { %v1748_v8 = vadd.f32 %v1747_v60, %v1659_v40  ;;  %v1838_v25 = vpop.f32.mrf.mxu1  ;;  %3158 = vmatpush.bf16.msrb.mxu1 %v7808_v63 }
 0x230   :  { %v1837_v41 = vadd.f32 %v1836_v15, %v1748_v8  ;;  %v7816_v15 = vld [vmem:[#allocation10 + $0xe0] sm:$0xff] }
 0x231   :  { %3247 = vmatpush.bf16.msrb.mxu2 %v7816_v15 }
 0x232   :  { %v1926_v28 = vadd.f32 %v1925_v62, %v1837_v41 }
 0x233   :  { %v1660_v17 = vpop.f32.mrf.mxu3 }
 0x234   :  { %v1661_v57 = vadd.f32 %v1660_v17, %v8529_v39 }
 0x235   :  { %v1927_v53 = vpop.f32.mrf.mxu2  ;;  %v1752_v44 = vpop.f32.mrf.mxu0 }
 0x236   :  { %v1750_v50 = vadd.f32 %v1749_v2, %v1661_v57  ;;  %v1841_v26 = vpop.f32.mrf.mxu1 }
 0x238   :  { %v1839_v49 = vadd.f32 %v1838_v25, %v1750_v50  ;;  %2196 = vmatmul.bf16.gmra.mxu3 %v8555_v27  ;;  %2285 = vmatmul.bf16.gmra.mxu0 %v8555_v27 }
 0x239   :  { %2374 = vmatmul.bf16.gmra.mxu1 %v8555_v27 }
 0x23a   :  { %2463 = vmatmul.bf16.gmra.mxu2 %v8555_v27  ;;  %v1928_v24 = vadd.f32 %v1927_v53, %v1839_v49 }
 0x23b   :  { %v1663_v20 = vpop.f32.mrf.mxu3 }
 0x23c   :  { %v8599_v55 = vpack.c.bf16 %v1928_v24, %v1926_v28  ;;  %v1664_v39 = vadd.f32 %v1663_v20, %v8534_v47 }
 0x23d   :  { %v1930_v54 = vpop.f32.mrf.mxu2  ;;  %v1754_v52 = vpop.f32.mrf.mxu0 }
 0x23e   :  { %v1753_v58 = vadd.f32 %v1752_v44, %v1664_v39  ;;  %v1843_v35 = vpop.f32.mrf.mxu1 }
 0x240   :  { %v1842_v48 = vadd.f32 %v1841_v26, %v1753_v58 }
 0x242   :  { %v1931_v42 = vadd.f32 %v1930_v54, %v1842_v48 }
 0x243   :  { %v1665_v1 = vpop.f32.mrf.mxu3 }
 0x244   :  { %v1666_v59 = vadd.f32 %v1665_v1, %v8539_v5 }
 0x245   :  { %v1932_v45 = vpop.f32.mrf.mxu2  ;;  %v1757_v56 = vpop.f32.mrf.mxu0 }
 0x246   :  { %v1755_v3 = vadd.f32 %v1754_v52, %v1666_v59  ;;  %v1846_v43 = vpop.f32.mrf.mxu1  ;;  %v7791_v52 = vld [vmem:[#allocation10 + $0x18] sm:$0xff] }
 0x247   :  { %2981 = vmatpush.bf16.msrb.mxu3 %v7791_v52 }
 0x248   :  { %v1844_v27 = vadd.f32 %v1843_v35, %v1755_v3  ;;  %2201 = vmatmul.bf16.gmra.mxu3 %v8559_v9  ;;  %2290 = vmatmul.bf16.gmra.mxu0 %v8559_v9  ;;  %v7807_v3 = vld [vmem:[#allocation10 + $0x98] sm:$0xff] }
 0x249   :  { %2379 = vmatmul.bf16.gmra.mxu1 %v8559_v9 }
 0x24a   :  { %2468 = vmatmul.bf16.gmra.mxu2 %v8559_v9  ;;  %v1933_v47 = vadd.f32 %v1932_v45, %v1844_v27  ;;  %v7815_v45 = vld [vmem:[#allocation10 + $0xd8] sm:$0xff]  ;;  %3159 = vmatpush.bf16.msrb.mxu1 %v7807_v3 }
 0x24b   :  { %v1668_v6 = vpop.f32.mrf.mxu3  ;;  %3248 = vmatpush.bf16.msrb.mxu2 %v7815_v45 }
 0x24c   :  { %v8607_v21 = vpack.c.bf16 %v1933_v47, %v1931_v42  ;;  %v1669_v31 = vadd.f32 %v1668_v6, %v8502_v18 }
 0x24d   :  { %v1935_v5 = vpop.f32.mrf.mxu2  ;;  %v1759_v10 = vpop.f32.mrf.mxu0 }
 0x24e   :  { %v1758_v36 = vadd.f32 %v1757_v56, %v1669_v31  ;;  %v1848_v13 = vpop.f32.mrf.mxu1  ;;  %v7799_v56 = vld [vmem:[#allocation10 + $0x58] sm:$0xff] }
 0x24f   :  { %3070 = vmatpush.bf16.msrb.mxu0 %v7799_v56 }
 0x250   :  { %v1847_v60 = vadd.f32 %v1846_v43, %v1758_v36 }
 0x252   :  { %v1936_v4 = vadd.f32 %v1935_v5, %v1847_v60 }
 0x253   :  { %v1670_v0 = vpop.f32.mrf.mxu3 }
 0x254   :  { %v1671_v9 = vadd.f32 %v1670_v0, %v8507_v51 }
 0x255   :  { %v1937_v40 = vpop.f32.mrf.mxu2  ;;  %v1762_v62 = vpop.f32.mrf.mxu0 }
 0x256   :  { %v1760_v18 = vadd.f32 %v1759_v10, %v1671_v9  ;;  %v1851_v22 = vpop.f32.mrf.mxu1  ;;  %v2003_v9 = vld [vmem:[#allocation8] sm:$0xf] }
 0x258   :  { %v1849_v2 = vadd.f32 %v1848_v13, %v1760_v18  ;;  %2206 = vmatmul.bf16.gmra.mxu3 %v8563_v30  ;;  %2295 = vmatmul.bf16.gmra.mxu0 %v8563_v30 }
 0x259   :  { %2384 = vmatmul.bf16.gmra.mxu1 %v8563_v30 }
 0x25a   :  { %2473 = vmatmul.bf16.gmra.mxu2 %v8563_v30  ;;  %v1938_v8 = vadd.f32 %v1937_v40, %v1849_v2  ;;  %v7790_v2 = vld [vmem:[#allocation10 + $0x10] sm:$0xff] }
 0x25b   :  { %v1673_v25 = vpop.f32.mrf.mxu3  ;;  %2982 = vmatpush.bf16.msrb.mxu3 %v7790_v2 }
 0x25c   :  { %v8615_v41 = vpack.c.bf16 %v1938_v8, %v1936_v4  ;;  %v1674_v51 = vadd.f32 %v1673_v25, %v8512_v12 }
 0x25d   :  { %v1940_v28 = vpop.f32.mrf.mxu2  ;;  %v1764_v29 = vpop.f32.mrf.mxu0 }
 0x25e   :  { %v1763_v61 = vadd.f32 %v1762_v62, %v1674_v51  ;;  %v1853_v33 = vpop.f32.mrf.mxu1 }
 0x260   :  { %v1852_v17 = vadd.f32 %v1851_v22, %v1763_v61  ;;  %v8635_v22 = vperm.slane %v2003_v9, 1 }
 0x262   :  { %v1941_v57 = vadd.f32 %v1940_v28, %v1852_v17 }
 0x263   :  { %v1675_v53 = vpop.f32.mrf.mxu3 }
 0x264   :  { %v1676_v44 = vadd.f32 %v1675_v53, %v8517_v34  ;;  %v8650_v53 = vperm.slane %v2003_v9, 3 }
 0x265   :  { %v1942_v50 = vpop.f32.mrf.mxu2  ;;  %v1767_v26 = vpop.f32.mrf.mxu0 }
 0x266   :  { %v1765_v49 = vadd.f32 %v1764_v29, %v1676_v44  ;;  %v1856_v24 = vpop.f32.mrf.mxu1 }
 0x268   :  { %v1854_v30 = vadd.f32 %v1853_v33, %v1765_v49  ;;  %2211 = vmatmul.bf16.gmra.mxu3 %v8567_v7  ;;  %2300 = vmatmul.bf16.gmra.mxu0 %v8567_v7  ;;  %v8647_v33 = vperm.slane %v2003_v9, 0 }
 0x269   :  { %2389 = vmatmul.bf16.gmra.mxu1 %v8567_v7 }
 0x26a   :  { %2478 = vmatmul.bf16.gmra.mxu2 %v8567_v7  ;;  %v1943_v12 = vadd.f32 %v1942_v50, %v1854_v30  ;;  %v7798_v30 = vld [vmem:[#allocation10 + $0x50] sm:$0xff] }
 0x26b   :  { %v1678_v20 = vpop.f32.mrf.mxu3  ;;  %3071 = vmatpush.bf16.msrb.mxu0 %v7798_v30 }
 0x26c   :  { %v8623_v39 = vpack.c.bf16 %v1943_v12, %v1941_v57  ;;  %v1679_v54 = vadd.f32 %v1678_v20, %v8522_v37  ;;  %v7806_v12 = vld [vmem:[#allocation10 + $0x90] sm:$0xff] }
 0x26d   :  { %v1945_v34 = vpop.f32.mrf.mxu2  ;;  %v1769_v58 = vpop.f32.mrf.mxu0  ;;  %3160 = vmatpush.bf16.msrb.mxu1 %v7806_v12 }
 0x26e   :  { %v1768_v35 = vadd.f32 %v1767_v26, %v1679_v54  ;;  %v1858_v48 = vpop.f32.mrf.mxu1 }
 0x270   :  { %v1857_v42 = vadd.f32 %v1856_v24, %v1768_v35  ;;  %v7814_v24 = vld [vmem:[#allocation10 + $0xd0] sm:$0xff] }
 0x271   :  { %3249 = vmatpush.bf16.msrb.mxu2 %v7814_v24 }
 0x272   :  { %v1946_v1 = vadd.f32 %v1945_v34, %v1857_v42 }
 0x273   :  { %v1680_v59 = vpop.f32.mrf.mxu3 }
 0x274   :  { %v1681_v7 = vadd.f32 %v1680_v59, %v8527_v32 }
 0x275   :  { %v1947_v43 = vpop.f32.mrf.mxu2  ;;  %v1772_v27 = vpop.f32.mrf.mxu0 }
 0x276   :  { %v1770_v47 = vadd.f32 %v1769_v58, %v1681_v7  ;;  %v1861_v37 = vpop.f32.mrf.mxu1 }
 0x278   :  { %v1859_v6 = vadd.f32 %v1858_v48, %v1770_v47  ;;  %2216 = vmatmul.bf16.gmra.mxu3 %v8575_v11  ;;  %2305 = vmatmul.bf16.gmra.mxu0 %v8575_v11 }
 0x279   :  { %2394 = vmatmul.bf16.gmra.mxu1 %v8575_v11 }
 0x27a   :  { %2483 = vmatmul.bf16.gmra.mxu2 %v8575_v11  ;;  %v1948_v31 = vadd.f32 %v1947_v43, %v1859_v6 }
 0x27b   :  { %v1683_v5 = vpop.f32.mrf.mxu3 }
 0x27c   :  { %v8631_v14 = vpack.c.bf16 %v1948_v31, %v1946_v1  ;;  %v1684_v32 = vadd.f32 %v1683_v5, %v8532_v46  ;;  %v8639_v46 = vperm.slane %v2003_v9, 2 }
 0x27d   :  { %v1950_v10 = vpop.f32.mrf.mxu2  ;;  %v1774_v36 = vpop.f32.mrf.mxu0 }
 0x27e   :  { %v1773_v13 = vadd.f32 %v1772_v27, %v1684_v32  ;;  %v1863_v60 = vpop.f32.mrf.mxu1 }
 0x280   :  { %v1862_v4 = vadd.f32 %v1861_v37, %v1773_v13 }
 0x282   :  { %v1951_v15 = vadd.f32 %v1950_v10, %v1862_v4 }
 0x283   :  { %v1685_v19 = vpop.f32.mrf.mxu3 }
 0x284   :  { %v1686_v63 = vadd.f32 %v1685_v19, %v8537_v16 }
 0x285   :  { %v1952_v0 = vpop.f32.mrf.mxu2  ;;  %v2271_v40 = vpop.f32.mrf.mxu0 }
 0x286   :  { %v1775_v62 = vadd.f32 %v1774_v36, %v1686_v63  ;;  %v2360_v11 = vpop.f32.mrf.mxu1  ;;  %v2272_v51 = vadd.f32 %v2271_v40, %v8635_v22 }
 0x287   :  { %v2361_v29 = vadd.f32 %v2360_v11, %v8639_v46 }
 0x288   :  { %v1864_v18 = vadd.f32 %v1863_v60, %v1775_v62  ;;  %2221 = vmatmul.bf16.gmra.mxu3 %v8583_v38  ;;  %2310 = vmatmul.bf16.gmra.mxu0 %v8583_v38  ;;  %v2530_v44 = vmax.f32 %v2272_v51, 0.0 }
 0x289   :  { %2399 = vmatmul.bf16.gmra.mxu1 %v8583_v38  ;;  %v2531_v26 = vmax.f32 %v2361_v29, 0.0 }
 0x28a   :  { %2488 = vmatmul.bf16.gmra.mxu2 %v8583_v38  ;;  %v1953_v16 = vadd.f32 %v1952_v0, %v1864_v18 }
 0x28b   :  { %v2182_v8 = vpop.f32.mrf.mxu3 }
 0x28c   :  { %v8643_v25 = vpack.c.bf16 %v1953_v16, %v1951_v15  ;;  %v2183_v20 = vadd.f32 %v2182_v8, %v8647_v33 }
 0x28d   :  { %v2449_v28 = vpop.f32.mrf.mxu2  ;;  %v2273_v61 = vpop.f32.mrf.mxu0 }
 0x28e   :  { %v2274_v17 = vadd.f32 %v2273_v61, %v8635_v22  ;;  %v2362_v57 = vpop.f32.mrf.mxu1  ;;  %v2450_v34 = vadd.f32 %v2449_v28, %v8650_v53  ;;  %v2529_v59 = vmax.f32 %v2183_v20, 0.0  ;;  %v7789_v61 = vld [vmem:[#allocation10 + $0x8] sm:$0xff] }
 0x28f   :  { %v2363_v38 = vadd.f32 %v2362_v57, %v8639_v46  ;;  %2983 = vmatpush.bf16.msrb.mxu3 %v7789_v61 }
 0x290   :  { %v2534_v50 = vmax.f32 %v2274_v17, 0.0  ;;  %v2532_v3 = vmax.f32 %v2450_v34, 0.0 }
 0x291   :  { %v2535_v49 = vmax.f32 %v2363_v38, 0.0 }
 0x292   :  { %v8654_v54 = vpack.c.bf16 %v2534_v50, %v2530_v44 }
 0x293   :  { %v8657_v52 = vpack.c.bf16 %v2535_v49, %v2531_v26  ;;  %v2184_v58 = vpop.f32.mrf.mxu3 }
 0x294   :  { %v2185_v35 = vadd.f32 %v2184_v58, %v8647_v33  ;;  %v7813_v58 = vld [vmem:[#allocation10 + $0xc8] sm:$0xff] }
 0x295   :  { %v2451_v48 = vpop.f32.mrf.mxu2  ;;  %v2276_v1 = vpop.f32.mrf.mxu0  ;;  %3250 = vmatpush.bf16.msrb.mxu2 %v7813_v58 }
 0x296   :  { %v2452_v42 = vadd.f32 %v2451_v48, %v8650_v53  ;;  %v2533_v45 = vmax.f32 %v2185_v35, 0.0  ;;  %v2365_v56 = vpop.f32.mrf.mxu1  ;;  %v2277_v37 = vadd.f32 %v2276_v1, %v8635_v22  ;;  %v7797_v35 = vld [vmem:[#allocation10 + $0x48] sm:$0xff] }
 0x297   :  { %v2366_v31 = vadd.f32 %v2365_v56, %v8639_v46  ;;  %v7805_v48 = vld [vmem:[#allocation10 + $0x88] sm:$0xff]  ;;  %3072 = vmatpush.bf16.msrb.mxu0 %v7797_v35 }
 0x298   :  { %v2536_v7 = vmax.f32 %v2452_v42, 0.0  ;;  %v8661_v43 = vpack.c.bf16 %v2533_v45, %v2529_v59  ;;  %2226 = vmatmul.bf16.gmra.mxu3 %v8591_v23  ;;  %2315 = vmatmul.bf16.gmra.mxu0 %v8591_v23  ;;  %v2538_v13 = vmax.f32 %v2277_v37, 0.0 }
 0x299   :  { %2404 = vmatmul.bf16.gmra.mxu1 %v8591_v23  ;;  %v2539_v4 = vmax.f32 %v2366_v31, 0.0 }
 0x29a   :  { %v8665_v27 = vpack.c.bf16 %v2536_v7, %v2532_v3  ;;  %2493 = vmatmul.bf16.gmra.mxu2 %v8591_v23  ;;  %3161 = vmatpush.bf16.msrb.mxu1 %v7805_v48 }
 0x29b   :  { %v2187_v47 = vpop.f32.mrf.mxu3 }
 0x29c   :  { %v2188_v19 = vadd.f32 %v2187_v47, %v8647_v33 }
 0x29d   :  { %v2454_v6 = vpop.f32.mrf.mxu2  ;;  %v2278_v5 = vpop.f32.mrf.mxu0 }
 0x29e   :  { %v2279_v32 = vadd.f32 %v2278_v5, %v8635_v22  ;;  %v2367_v10 = vpop.f32.mrf.mxu1  ;;  %v2455_v23 = vadd.f32 %v2454_v6, %v8650_v53  ;;  %v2537_v2 = vmax.f32 %v2188_v19, 0.0 }
 0x29f   :  { %v2368_v36 = vadd.f32 %v2367_v10, %v8639_v46 }
 0x2a0   :  { %v2542_v60 = vmax.f32 %v2279_v32, 0.0  ;;  %v2540_v51 = vmax.f32 %v2455_v23, 0.0 }
 0x2a1   :  { %v2543_v15 = vmax.f32 %v2368_v36, 0.0 }
 0x2a2   :  { %v8674_v63 = vpack.c.bf16 %v2542_v60, %v2538_v13 }
 0x2a3   :  { %v2189_v0 = vpop.f32.mrf.mxu3  ;;  %v8677_v9 = vpack.c.bf16 %v2543_v15, %v2539_v4 }
 0x2a4   :  { %v2190_v40 = vadd.f32 %v2189_v0, %v8647_v33 }
 0x2a5   :  { %v2456_v62 = vpop.f32.mrf.mxu2  ;;  %v2281_v18 = vpop.f32.mrf.mxu0 }
 0x2a6   :  { %v2457_v11 = vadd.f32 %v2456_v62, %v8650_v53  ;;  %v2541_v16 = vmax.f32 %v2190_v40, 0.0  ;;  %v2370_v8 = vpop.f32.mrf.mxu1  ;;  %v2282_v38 = vadd.f32 %v2281_v18, %v8635_v22 }
 0x2a7   :  { %v2371_v50 = vadd.f32 %v2370_v8, %v8639_v46 }
 0x2a8   :  { %v2544_v28 = vmax.f32 %v2457_v11, 0.0  ;;  %2231 = vmatmul.bf16.gmra.mxu3 %v8599_v55  ;;  %2320 = vmatmul.bf16.gmra.mxu0 %v8599_v55  ;;  %v8683_v29 = vpack.c.bf16 %v2541_v16, %v2537_v2  ;;  %v2546_v12 = vmax.f32 %v2282_v38, 0.0 }
 0x2a9   :  { %2409 = vmatmul.bf16.gmra.mxu1 %v8599_v55  ;;  %v2547_v34 = vmax.f32 %v2371_v50, 0.0 }
 0x2aa   :  { %2498 = vmatmul.bf16.gmra.mxu2 %v8599_v55  ;;  %v8687_v17 = vpack.c.bf16 %v2544_v28, %v2540_v51 }
 0x2ab   :  { %v2192_v57 = vpop.f32.mrf.mxu3 }
 0x2ac   :  { %v2193_v42 = vadd.f32 %v2192_v57, %v8647_v33 }
 0x2ad   :  { %v2459_v44 = vpop.f32.mrf.mxu2  ;;  %v2283_v26 = vpop.f32.mrf.mxu0 }
 0x2ae   :  { %v2284_v49 = vadd.f32 %v2283_v26, %v8635_v22  ;;  %v2372_v24 = vpop.f32.mrf.mxu1  ;;  %v2460_v59 = vadd.f32 %v2459_v44, %v8650_v53  ;;  %v2545_v6 = vmax.f32 %v2193_v42, 0.0 }
 0x2af   :  { %v2373_v30 = vadd.f32 %v2372_v24, %v8639_v46 }
 0x2b0   :  { %v2550_v20 = vmax.f32 %v2284_v49, 0.0  ;;  %v2548_v32 = vmax.f32 %v2460_v59, 0.0 }
 0x2b1   :  { %v2551_v55 = vmax.f32 %v2373_v30, 0.0 }
 0x2b2   :  { %v8694_v1 = vpack.c.bf16 %v2550_v20, %v2546_v12 }
 0x2b3   :  { %v2194_v45 = vpop.f32.mrf.mxu3  ;;  %v8697_v56 = vpack.c.bf16 %v2551_v55, %v2547_v34  ;;  %v7788_v34 = vld [vmem:[#allocation10] sm:$0xff] }
 0x2b4   :  { %v2195_v3 = vadd.f32 %v2194_v45, %v8647_v33  ;;  %2984 = vmatpush.bf16.msrb.mxu3 %v7788_v34 }
 0x2b5   :  { %v2461_v7 = vpop.f32.mrf.mxu2  ;;  %v2286_v37 = vpop.f32.mrf.mxu0 }
 0x2b6   :  { %v2462_v47 = vadd.f32 %v2461_v7, %v8650_v53  ;;  %v2549_v31 = vmax.f32 %v2195_v3, 0.0  ;;  %v2375_v5 = vpop.f32.mrf.mxu1  ;;  %v2287_v4 = vadd.f32 %v2286_v37, %v8635_v22 }
 0x2b7   :  { %v2376_v19 = vadd.f32 %v2375_v5, %v8639_v46  ;;  %v7796_v5 = vld [vmem:[#allocation10 + $0x40] sm:$0xff] }
 0x2b8   :  { %v2552_v10 = vmax.f32 %v2462_v47, 0.0  ;;  %2236 = vmatmul.bf16.gmra.mxu3 %v8607_v21  ;;  %2325 = vmatmul.bf16.gmra.mxu0 %v8607_v21  ;;  %v8703_v36 = vpack.c.bf16 %v2549_v31, %v2545_v6  ;;  %v2554_v11 = vmax.f32 %v2287_v4, 0.0  ;;  %v7812_v31 = vld [vmem:[#allocation10 + $0xc0] sm:$0xff] }
 0x2b9   :  { %2414 = vmatmul.bf16.gmra.mxu1 %v8607_v21  ;;  %v2555_v2 = vmax.f32 %v2376_v19, 0.0  ;;  %3251 = vmatpush.bf16.msrb.mxu2 %v7812_v31 }
 0x2ba   :  { %2503 = vmatmul.bf16.gmra.mxu2 %v8607_v21  ;;  %v8707_v13 = vpack.c.bf16 %v2552_v10, %v2548_v32  ;;  %v7804_v32 = vld [vmem:[#allocation10 + $0x80] sm:$0xff]  ;;  %3073 = vmatpush.bf16.msrb.mxu0 %v7796_v5 }
 0x2bb   :  { %v2197_v60 = vpop.f32.mrf.mxu3  ;;  %3162 = vmatpush.bf16.msrb.mxu1 %v7804_v32 }
 0x2bc   :  { %v2198_v21 = vadd.f32 %v2197_v60, %v8647_v33 }
 0x2bd   :  { %v2464_v15 = vpop.f32.mrf.mxu2  ;;  %v2288_v23 = vpop.f32.mrf.mxu0 }
 0x2be   :  { %v2289_v0 = vadd.f32 %v2288_v23, %v8635_v22  ;;  %v2377_v40 = vpop.f32.mrf.mxu1  ;;  %v2465_v51 = vadd.f32 %v2464_v15, %v8650_v53  ;;  %v2553_v26 = vmax.f32 %v2198_v21, 0.0 }
 0x2bf   :  { %v2378_v62 = vadd.f32 %v2377_v40, %v8639_v46 }
 0x2c0   :  { %v2558_v18 = vmax.f32 %v2289_v0, 0.0  ;;  %v2556_v30 = vmax.f32 %v2465_v51, 0.0 }
 0x2c1   :  { %v2559_v16 = vmax.f32 %v2378_v62, 0.0 }
 0x2c2   :  { %v8714_v8 = vpack.c.bf16 %v2558_v18, %v2554_v11 }
 0x2c3   :  { %v2199_v28 = vpop.f32.mrf.mxu3  ;;  %v8717_v61 = vpack.c.bf16 %v2559_v16, %v2555_v2 }
 0x2c4   :  { %v2200_v57 = vadd.f32 %v2199_v28, %v8647_v33 }
 0x2c5   :  { %v2466_v38 = vpop.f32.mrf.mxu2  ;;  %v2291_v50 = vpop.f32.mrf.mxu0 }
 0x2c6   :  { %v2467_v44 = vadd.f32 %v2466_v38, %v8650_v53  ;;  %v2557_v49 = vmax.f32 %v2200_v57, 0.0  ;;  %v2380_v24 = vpop.f32.mrf.mxu1  ;;  %v2292_v35 = vadd.f32 %v2291_v50, %v8635_v22 }
 0x2c7   :  { %v2381_v42 = vadd.f32 %v2380_v24, %v8639_v46 }
 0x2c8   :  { %v2560_v12 = vmax.f32 %v2467_v44, 0.0  ;;  %2241 = vmatmul.bf16.gmra.mxu3 %v8615_v41  ;;  %2330 = vmatmul.bf16.gmra.mxu0 %v8615_v41  ;;  %v8723_v20 = vpack.c.bf16 %v2557_v49, %v2553_v26  ;;  %v2562_v47 = vmax.f32 %v2292_v35, 0.0 }
 0x2c9   :  { %2419 = vmatmul.bf16.gmra.mxu1 %v8615_v41  ;;  %v2563_v6 = vmax.f32 %v2381_v42, 0.0 }
 0x2ca   :  { %2508 = vmatmul.bf16.gmra.mxu2 %v8615_v41  ;;  %v8727_v55 = vpack.c.bf16 %v2560_v12, %v2556_v30 }
 0x2cb   :  { %v2202_v58 = vpop.f32.mrf.mxu3 }
 0x2cc   :  { %v2203_v10 = vadd.f32 %v2202_v58, %v8647_v33 }
 0x2cd   :  { %v2469_v48 = vpop.f32.mrf.mxu2  ;;  %v2293_v59 = vpop.f32.mrf.mxu0 }
 0x2ce   :  { %v2294_v45 = vadd.f32 %v2293_v59, %v8635_v22  ;;  %v2382_v3 = vpop.f32.mrf.mxu1  ;;  %v2470_v4 = vadd.f32 %v2469_v48, %v8650_v53  ;;  %v2561_v11 = vmax.f32 %v2203_v10, 0.0 }
 0x2cf   :  { %v2383_v7 = vadd.f32 %v2382_v3, %v8639_v46 }
 0x2d0   :  { %v2566_v37 = vmax.f32 %v2294_v45, 0.0  ;;  %v2564_v16 = vmax.f32 %v2470_v4, 0.0  ;;  %v7190_v4 = vld [vmem:[#allocation11 + $0xe0] sm:$0xf] }
 0x2d1   :  { %v2567_v41 = vmax.f32 %v2383_v7, 0.0 }
 0x2d2   :  { %v8734_v60 = vpack.c.bf16 %v2566_v37, %v2562_v47 }
 0x2d3   :  { %v2204_v15 = vpop.f32.mrf.mxu3  ;;  %v8737_v19 = vpack.c.bf16 %v2567_v41, %v2563_v6 }
 0x2d4   :  { %v2205_v23 = vadd.f32 %v2204_v15, %v8647_v33  ;;  %v7850_v15 = vld [vmem:[#allocation11 + $0xec] sm:$0xf0] }
 0x2d5   :  { %v2471_v0 = vpop.f32.mrf.mxu2  ;;  %v2296_v62 = vpop.f32.mrf.mxu0 }
 0x2d6   :  { %v2472_v40 = vadd.f32 %v2471_v0, %v8650_v53  ;;  %v2565_v18 = vmax.f32 %v2205_v23, 0.0  ;;  %v2385_v2 = vpop.f32.mrf.mxu1  ;;  %v2297_v38 = vadd.f32 %v2296_v62, %v8635_v22  ;;  %v7191_v0 = vor.u32 %v7850_v15, %v7190_v4 }
 0x2d7   :  { %v2386_v50 = vadd.f32 %v2385_v2, %v8639_v46 }
 0x2d8   :  { %v2568_v21 = vmax.f32 %v2472_v40, 0.0  ;;  %2246 = vmatmul.bf16.gmra.mxu3 %v8623_v39  ;;  %2335 = vmatmul.bf16.gmra.mxu0 %v8623_v39  ;;  %v8743_v51 = vpack.c.bf16 %v2565_v18, %v2561_v11  ;;  %v2570_v12 = vmax.f32 %v2297_v38, 0.0 }
 0x2d9   :  { %2424 = vmatmul.bf16.gmra.mxu1 %v8623_v39  ;;  %v2571_v58 = vmax.f32 %v2386_v50, 0.0  ;;  %3551 = vmatpush.bf16.msra.mxu3 %v7191_v0 }
 0x2da   :  { %2513 = vmatmul.bf16.gmra.mxu2 %v8623_v39  ;;  %v8747_v28 = vpack.c.bf16 %v2568_v21, %v2564_v16 }
 0x2db   :  { %v2207_v57 = vpop.f32.mrf.mxu3 }
 0x2dc   :  { %v2208_v39 = vadd.f32 %v2207_v57, %v8647_v33 }
 0x2dd   :  { %v2474_v44 = vpop.f32.mrf.mxu2  ;;  %v2298_v26 = vpop.f32.mrf.mxu0 }
 0x2de   :  { %v2299_v49 = vadd.f32 %v2298_v26, %v8635_v22  ;;  %v2387_v24 = vpop.f32.mrf.mxu1  ;;  %v2475_v42 = vadd.f32 %v2474_v44, %v8650_v53  ;;  %v2569_v6 = vmax.f32 %v2208_v39, 0.0  ;;  %v7849_v26 = vld [vmem:[#allocation11 + $0xec] sm:$0xf] }
 0x2df   :  { %v2388_v30 = vadd.f32 %v2387_v24, %v8639_v46 }
 0x2e0   :  { %v2574_v34 = vmax.f32 %v2299_v49, 0.0  ;;  %v2572_v5 = vmax.f32 %v2475_v42, 0.0  ;;  %v7200_v49 = vld [vmem:[#allocation11 + $0xf8] sm:$0xf0] }
 0x2e1   :  { %v2575_v35 = vmax.f32 %v2388_v30, 0.0  ;;  %v7203_v30 = vor.u32 %v7849_v26, %v7200_v49 }
 0x2e2   :  { %v8754_v48 = vpack.c.bf16 %v2574_v34, %v2570_v12  ;;  %v7848_v12 = vld [vmem:[#allocation11 + $0xe4] sm:$0xf]  ;;  %v7192_v34 = vld [vmem:[#allocation11 + $0xf0] sm:$0xf0] }
 0x2e3   :  { %v2209_v59 = vpop.f32.mrf.mxu3  ;;  %v8757_v45 = vpack.c.bf16 %v2575_v35, %v2571_v58  ;;  %v7198_v58 = vld [vmem:[#allocation11 + $0xe8] sm:$0xf]  ;;  %3818 = vmatpush.bf16.msra.mxu2 %v7203_v30 }
 0x2e4   :  { %v2210_v3 = vadd.f32 %v2209_v59, %v8647_v33  ;;  %v7195_v59 = vor.u32 %v7848_v12, %v7192_v34 }
 0x2e5   :  { %v2476_v7 = vpop.f32.mrf.mxu2  ;;  %v2301_v37 = vpop.f32.mrf.mxu0 }
 0x2e6   :  { %v2477_v47 = vadd.f32 %v2476_v7, %v8650_v53  ;;  %v2573_v41 = vmax.f32 %v2210_v3, 0.0  ;;  %v2390_v31 = vpop.f32.mrf.mxu1  ;;  %v2302_v62 = vadd.f32 %v2301_v37, %v8635_v22  ;;  %v7851_v3 = vld [vmem:[#allocation11 + $0xf4] sm:$0xf0]  ;;  %3640 = vmatpush.bf16.msra.mxu0 %v7195_v59 }
 0x2e7   :  { %v2391_v18 = vadd.f32 %v2390_v31, %v8639_v46 }
 0x2e8   :  { %v2576_v32 = vmax.f32 %v2477_v47, 0.0  ;;  %2251 = vmatmul.bf16.gmra.mxu3 %v8631_v14  ;;  %2340 = vmatmul.bf16.gmra.mxu0 %v8631_v14  ;;  %v8763_v10 = vpack.c.bf16 %v2573_v41, %v2569_v6  ;;  %v2578_v38 = vmax.f32 %v2302_v62, 0.0  ;;  %v7199_v6 = vor.u32 %v7851_v3, %v7198_v58 }
 0x2e9   :  { %2429 = vmatmul.bf16.gmra.mxu1 %v8631_v14  ;;  %v2579_v44 = vmax.f32 %v2391_v18, 0.0 }
 0x2ea   :  { %2518 = vmatmul.bf16.gmra.mxu2 %v8631_v14  ;;  %v8767_v23 = vpack.c.bf16 %v2576_v32, %v2572_v5  ;;  %3729 = vmatpush.bf16.msra.mxu1 %v7199_v6 }
 0x2eb   :  { %v2212_v40 = vpop.f32.mrf.mxu3 }
 0x2ec   :  { %v2213_v24 = vadd.f32 %v2212_v40, %v8647_v33 }
 0x2ed   :  { %v2479_v11 = vpop.f32.mrf.mxu2  ;;  %v2303_v2 = vpop.f32.mrf.mxu0 }
 0x2ee   :  { %v2304_v16 = vadd.f32 %v2303_v2, %v8635_v22  ;;  %v2392_v21 = vpop.f32.mrf.mxu1  ;;  %v2480_v39 = vadd.f32 %v2479_v11, %v8650_v53  ;;  %v2577_v5 = vmax.f32 %v2213_v24, 0.0 }
 0x2ef   :  { %v2393_v57 = vadd.f32 %v2392_v21, %v8639_v46 }
 0x2f0   :  { %v2582_v14 = vmax.f32 %v2304_v16, 0.0  ;;  %v2580_v15 = vmax.f32 %v2480_v39, 0.0 }
 0x2f1   :  { %v2583_v50 = vmax.f32 %v2393_v57, 0.0 }
 0x2f2   :  { %v8774_v35 = vpack.c.bf16 %v2582_v14, %v2578_v38 }
 0x2f3   :  { %v2214_v42 = vpop.f32.mrf.mxu3  ;;  %v8777_v7 = vpack.c.bf16 %v2583_v50, %v2579_v44 }
 0x2f4   :  { %v2215_v47 = vadd.f32 %v2214_v42, %v8647_v33 }
 0x2f5   :  { %v2481_v37 = vpop.f32.mrf.mxu2  ;;  %v2306_v31 = vpop.f32.mrf.mxu0 }
 0x2f6   :  { %v2482_v41 = vadd.f32 %v2481_v37, %v8650_v53  ;;  %v2581_v32 = vmax.f32 %v2215_v47, 0.0  ;;  %v2395_v4 = vpop.f32.mrf.mxu1  ;;  %v2307_v18 = vadd.f32 %v2306_v31, %v8635_v22 }
 0x2f7   :  { %v2396_v16 = vadd.f32 %v2395_v4, %v8639_v46 }
 0x2f8   :  { %v2584_v0 = vmax.f32 %v2482_v41, 0.0  ;;  %2256 = vmatmul.bf16.gmra.mxu3 %v8643_v25  ;;  %2345 = vmatmul.bf16.gmra.mxu0 %v8643_v25  ;;  %v8783_v40 = vpack.c.bf16 %v2581_v32, %v2577_v5  ;;  %v2586_v44 = vmax.f32 %v2307_v18, 0.0  ;;  %v7174_v5 = vld [vmem:[#allocation11 + $0xc0] sm:$0xf]  ;;  %v7846_v32 = vld [vmem:[#allocation11 + $0xcc] sm:$0xf0] }
 0x2f9   :  { %2434 = vmatmul.bf16.gmra.mxu1 %v8643_v25  ;;  %v2587_v26 = vmax.f32 %v2396_v16, 0.0 }
 0x2fa   :  { %2523 = vmatmul.bf16.gmra.mxu2 %v8643_v25  ;;  %v8787_v62 = vpack.c.bf16 %v2584_v0, %v2580_v15  ;;  %v7175_v15 = vor.u32 %v7846_v32, %v7174_v5 }
 0x2fb   :  { %v2217_v11 = vpop.f32.mrf.mxu3 }
 0x2fc   :  { %v2218_v25 = vadd.f32 %v2217_v11, %v8647_v33  ;;  %3552 = vmatpush.bf16.msra.mxu3 %v7175_v15 }
 0x2fd   :  { %v2484_v2 = vpop.f32.mrf.mxu2  ;;  %v2308_v21 = vpop.f32.mrf.mxu0 }
 0x2fe   :  { %v2309_v57 = vadd.f32 %v2308_v21, %v8635_v22  ;;  %v2397_v38 = vpop.f32.mrf.mxu1  ;;  %v2485_v30 = vadd.f32 %v2484_v2, %v8650_v53  ;;  %v2585_v3 = vmax.f32 %v2218_v25, 0.0  ;;  %v7176_v25 = vld [vmem:[#allocation11 + $0xd0] sm:$0xf0] }
 0x2ff   :  { %v2398_v14 = vadd.f32 %v2397_v38, %v8639_v46 }
 0x300   :  { %v2590_v50 = vmax.f32 %v2309_v57, 0.0  ;;  %v2588_v6 = vmax.f32 %v2485_v30, 0.0  ;;  %v7182_v30 = vld [vmem:[#allocation11 + $0xc8] sm:$0xf] }
 0x301   :  { %v2591_v49 = vmax.f32 %v2398_v14, 0.0  ;;  %v7845_v14 = vld [vmem:[#allocation11 + $0xcc] sm:$0xf] }
 0x302   :  { %v8794_v24 = vpack.c.bf16 %v2590_v50, %v2586_v44  ;;  %v7184_v44 = vld [vmem:[#allocation11 + $0xd8] sm:$0xf0] }
 0x303   :  { %v2219_v12 = vpop.f32.mrf.mxu3  ;;  %v8797_v34 = vpack.c.bf16 %v2591_v49, %v2587_v26  ;;  %v7187_v26 = vor.u32 %v7845_v14, %v7184_v44  ;;  %v7844_v49 = vld [vmem:[#allocation11 + $0xc4] sm:$0xf] }
 0x304   :  { %v2220_v58 = vadd.f32 %v2219_v12, %v8647_v33 }
 0x305   :  { %v2486_v39 = vpop.f32.mrf.mxu2  ;;  %v2311_v59 = vpop.f32.mrf.mxu0  ;;  %3819 = vmatpush.bf16.msra.mxu2 %v7187_v26 }
 0x306   :  { %v2487_v42 = vadd.f32 %v2486_v39, %v8650_v53  ;;  %v2589_v47 = vmax.f32 %v2220_v58, 0.0  ;;  %v2400_v37 = vpop.f32.mrf.mxu1  ;;  %v2312_v11 = vadd.f32 %v2311_v59, %v8635_v22  ;;  %v7847_v59 = vld [vmem:[#allocation11 + $0xd4] sm:$0xf0] }
 0x308   :  { %v2592_v41 = vmax.f32 %v2487_v42, 0.0  ;;  %2985 = vmatmul.bf16.vlgmr.msrb.gmra.mxu3 %v8661_v43  ;;  %3074 = vmatmul.bf16.vlgmr.msrb.gmra.mxu0 %v8654_v54  ;;  %v8803_v31 = vpack.c.bf16 %v2589_v47, %v2585_v3  ;;  %v2401_v43 = vadd.f32 %v2400_v37, %v8639_v46  ;;  %v2594_v21 = vmax.f32 %v2312_v11, 0.0 }
 0x309   :  { %3163 = vmatmul.bf16.vlgmr.msrb.gmra.mxu1 %v8657_v52  ;;  %v7179_v42 = vor.u32 %v7844_v49, %v7176_v25 }
 0x30a   :  { %3252 = vmatmul.bf16.vlgmr.msrb.gmra.mxu2 %v8665_v27  ;;  %v8807_v4 = vpack.c.bf16 %v2592_v41, %v2588_v6  ;;  %v2595_v57 = vmax.f32 %v2401_v43, 0.0  ;;  %v7183_v6 = vor.u32 %v7847_v59, %v7182_v30 }
 0x30b   :  { %v2222_v0 = vpop.f32.mrf.mxu3  ;;  %3641 = vmatpush.bf16.msra.mxu0 %v7179_v42 }
 0x30c   :  { %v2223_v50 = vadd.f32 %v2222_v0, %v8647_v33  ;;  %3730 = vmatpush.bf16.msra.mxu1 %v7183_v6 }
 0x30d   :  { %v2489_v18 = vpop.f32.mrf.mxu2  ;;  %v2313_v2 = vpop.f32.mrf.mxu0 }
 0x30e   :  { %v2314_v54 = vadd.f32 %v2313_v2, %v8635_v22  ;;  %v2402_v16 = vpop.f32.mrf.mxu1  ;;  %v2490_v58 = vadd.f32 %v2489_v18, %v8650_v53  ;;  %v2593_v32 = vmax.f32 %v2223_v50, 0.0 }
 0x30f   :  { %v2403_v52 = vadd.f32 %v2402_v16, %v8639_v46 }
 0x310   :  { %v2598_v27 = vmax.f32 %v2314_v54, 0.0  ;;  %v2596_v11 = vmax.f32 %v2490_v58, 0.0 }
 0x311   :  { %v2599_v38 = vmax.f32 %v2403_v52, 0.0 }
 0x312   :  { %v8814_v12 = vpack.c.bf16 %v2598_v27, %v2594_v21 }
 0x313   :  { %v2224_v39 = vpop.f32.mrf.mxu3  ;;  %v8817_v3 = vpack.c.bf16 %v2599_v38, %v2595_v57 }
 0x314   :  { %v2225_v47 = vadd.f32 %v2224_v39, %v8647_v33 }
 0x315   :  { %v2491_v37 = vpop.f32.mrf.mxu2  ;;  %v2316_v5 = vpop.f32.mrf.mxu0 }
 0x316   :  { %v2492_v41 = vadd.f32 %v2491_v37, %v8650_v53  ;;  %v2597_v15 = vmax.f32 %v2225_v47, 0.0  ;;  %v2405_v0 = vpop.f32.mrf.mxu1  ;;  %v2317_v16 = vadd.f32 %v2316_v5, %v8635_v22 }
 0x317   :  { %v2406_v21 = vadd.f32 %v2405_v0, %v8639_v46 }
 0x318   :  { %v2600_v18 = vmax.f32 %v2492_v41, 0.0  ;;  %2990 = vmatmul.bf16.gmra.mxu3 %v8683_v29  ;;  %3079 = vmatmul.bf16.gmra.mxu0 %v8674_v63  ;;  %v8823_v43 = vpack.c.bf16 %v2597_v15, %v2593_v32  ;;  %v2602_v38 = vmax.f32 %v2317_v16, 0.0  ;;  %v7158_v32 = vld [vmem:[#allocation11 + $0xa0] sm:$0xf]  ;;  %v7842_v15 = vld [vmem:[#allocation11 + $0xac] sm:$0xf0] }
 0x319   :  { %3168 = vmatmul.bf16.gmra.mxu1 %v8677_v9  ;;  %v2603_v44 = vmax.f32 %v2406_v21, 0.0 }
 0x31a   :  { %3257 = vmatmul.bf16.gmra.mxu2 %v8687_v17  ;;  %v8827_v2 = vpack.c.bf16 %v2600_v18, %v2596_v11  ;;  %v7159_v11 = vor.u32 %v7842_v15, %v7158_v32 }
 0x31b   :  { %v2227_v54 = vpop.f32.mrf.mxu3 }
 0x31c   :  { %v2228_v17 = vadd.f32 %v2227_v54, %v8647_v33  ;;  %3553 = vmatpush.bf16.msra.mxu3 %v7159_v11 }
 0x31d   :  { %v2494_v52 = vpop.f32.mrf.mxu2  ;;  %v2318_v27 = vpop.f32.mrf.mxu0 }
 0x31e   :  { %v2319_v57 = vadd.f32 %v2318_v27, %v8635_v22  ;;  %v2407_v29 = vpop.f32.mrf.mxu1  ;;  %v2495_v26 = vadd.f32 %v2494_v52, %v8650_v53  ;;  %v2601_v59 = vmax.f32 %v2228_v17, 0.0  ;;  %v7160_v17 = vld [vmem:[#allocation11 + $0xb0] sm:$0xf0] }
 0x31f   :  { %v2408_v63 = vadd.f32 %v2407_v29, %v8639_v46 }
 0x320   :  { %v2606_v14 = vmax.f32 %v2319_v57, 0.0  ;;  %v2604_v6 = vmax.f32 %v2495_v26, 0.0  ;;  %v7166_v26 = vld [vmem:[#allocation11 + $0xa8] sm:$0xf] }
 0x321   :  { %v2607_v9 = vmax.f32 %v2408_v63, 0.0  ;;  %v7841_v63 = vld [vmem:[#allocation11 + $0xac] sm:$0xf] }
 0x322   :  { %v8834_v50 = vpack.c.bf16 %v2606_v14, %v2602_v38  ;;  %v7168_v38 = vld [vmem:[#allocation11 + $0xb8] sm:$0xf0] }
 0x323   :  { %v2229_v49 = vpop.f32.mrf.mxu3  ;;  %v8837_v25 = vpack.c.bf16 %v2607_v9, %v2603_v44  ;;  %v7171_v44 = vor.u32 %v7841_v63, %v7168_v38  ;;  %v7840_v9 = vld [vmem:[#allocation11 + $0xa4] sm:$0xf] }
 0x324   :  { %v2230_v30 = vadd.f32 %v2229_v49, %v8647_v33 }
 0x325   :  { %v2496_v58 = vpop.f32.mrf.mxu2  ;;  %v2321_v42 = vpop.f32.mrf.mxu0  ;;  %3820 = vmatpush.bf16.msra.mxu2 %v7171_v44 }
 0x326   :  { %v2497_v39 = vadd.f32 %v2496_v58, %v8650_v53  ;;  %v2605_v47 = vmax.f32 %v2230_v30, 0.0  ;;  %v2410_v37 = vpop.f32.mrf.mxu1  ;;  %v2322_v54 = vadd.f32 %v2321_v42, %v8635_v22  ;;  %v7843_v42 = vld [vmem:[#allocation11 + $0xb4] sm:$0xf0] }
 0x328   :  { %v2608_v41 = vmax.f32 %v2497_v39, 0.0  ;;  %2995 = vmatmul.bf16.gmra.mxu3 %v8703_v36  ;;  %3084 = vmatmul.bf16.gmra.mxu0 %v8694_v1  ;;  %v8843_v5 = vpack.c.bf16 %v2605_v47, %v2601_v59  ;;  %v2411_v36 = vadd.f32 %v2410_v37, %v8639_v46  ;;  %v2610_v27 = vmax.f32 %v2322_v54, 0.0 }
 0x329   :  { %3173 = vmatmul.bf16.gmra.mxu1 %v8697_v56  ;;  %v7163_v39 = vor.u32 %v7840_v9, %v7160_v17 }
 0x32a   :  { %3262 = vmatmul.bf16.gmra.mxu2 %v8707_v13  ;;  %v8847_v0 = vpack.c.bf16 %v2608_v41, %v2604_v6  ;;  %v2611_v57 = vmax.f32 %v2411_v36, 0.0  ;;  %v7167_v6 = vor.u32 %v7843_v42, %v7166_v26 }
 0x32b   :  { %v2232_v18 = vpop.f32.mrf.mxu3  ;;  %3642 = vmatpush.bf16.msra.mxu0 %v7163_v39 }
 0x32c   :  { %v2233_v14 = vadd.f32 %v2232_v18, %v8647_v33  ;;  %3731 = vmatpush.bf16.msra.mxu1 %v7167_v6 }
 0x32d   :  { %v2499_v16 = vpop.f32.mrf.mxu2  ;;  %v2323_v52 = vpop.f32.mrf.mxu0 }
 0x32e   :  { %v2324_v1 = vadd.f32 %v2323_v52, %v8635_v22  ;;  %v2412_v21 = vpop.f32.mrf.mxu1  ;;  %v2500_v30 = vadd.f32 %v2499_v16, %v8650_v53  ;;  %v2609_v15 = vmax.f32 %v2233_v14, 0.0 }
 0x32f   :  { %v2413_v56 = vadd.f32 %v2412_v21, %v8639_v46 }
 0x330   :  { %v2614_v13 = vmax.f32 %v2324_v1, 0.0  ;;  %v2612_v54 = vmax.f32 %v2500_v30, 0.0 }
 0x331   :  { %v2615_v29 = vmax.f32 %v2413_v56, 0.0 }
 0x332   :  { %v8854_v49 = vpack.c.bf16 %v2614_v13, %v2610_v27 }
 0x333   :  { %v2234_v58 = vpop.f32.mrf.mxu3  ;;  %v8857_v59 = vpack.c.bf16 %v2615_v29, %v2611_v57 }
 0x334   :  { %v2235_v47 = vadd.f32 %v2234_v58, %v8647_v33 }
 0x335   :  { %v2501_v37 = vpop.f32.mrf.mxu2  ;;  %v2326_v32 = vpop.f32.mrf.mxu0 }
 0x336   :  { %v2502_v41 = vadd.f32 %v2501_v37, %v8650_v53  ;;  %v2613_v11 = vmax.f32 %v2235_v47, 0.0  ;;  %v2415_v18 = vpop.f32.mrf.mxu1  ;;  %v2327_v21 = vadd.f32 %v2326_v32, %v8635_v22 }
 0x337   :  { %v2416_v27 = vadd.f32 %v2415_v18, %v8639_v46 }
 0x338   :  { %v2616_v16 = vmax.f32 %v2502_v41, 0.0  ;;  %3000 = vmatmul.bf16.gmra.mxu3 %v8723_v20  ;;  %3089 = vmatmul.bf16.gmra.mxu0 %v8714_v8  ;;  %v8863_v36 = vpack.c.bf16 %v2613_v11, %v2609_v15  ;;  %v2618_v29 = vmax.f32 %v2327_v21, 0.0  ;;  %v7142_v15 = vld [vmem:[#allocation11 + $0x80] sm:$0xf]  ;;  %v7838_v11 = vld [vmem:[#allocation11 + $0x8c] sm:$0xf0] }
 0x339   :  { %3178 = vmatmul.bf16.gmra.mxu1 %v8717_v61  ;;  %v2619_v38 = vmax.f32 %v2416_v27, 0.0 }
 0x33a   :  { %3267 = vmatmul.bf16.gmra.mxu2 %v8727_v55  ;;  %v8867_v52 = vpack.c.bf16 %v2616_v16, %v2612_v54  ;;  %v7143_v54 = vor.u32 %v7838_v11, %v7142_v15 }
 0x33b   :  { %v2237_v1 = vpop.f32.mrf.mxu3 }
 0x33c   :  { %v2238_v55 = vadd.f32 %v2237_v1, %v8647_v33  ;;  %3554 = vmatpush.bf16.msra.mxu3 %v7143_v54 }
 0x33d   :  { %v2504_v56 = vpop.f32.mrf.mxu2  ;;  %v2328_v13 = vpop.f32.mrf.mxu0 }
 0x33e   :  { %v2329_v57 = vadd.f32 %v2328_v13, %v8635_v22  ;;  %v2417_v20 = vpop.f32.mrf.mxu1  ;;  %v2505_v44 = vadd.f32 %v2504_v56, %v8650_v53  ;;  %v2617_v42 = vmax.f32 %v2238_v55, 0.0  ;;  %v7144_v55 = vld [vmem:[#allocation11 + $0x90] sm:$0xf0] }
 0x33f   :  { %v2418_v8 = vadd.f32 %v2417_v20, %v8639_v46 }
 0x340   :  { %v2622_v63 = vmax.f32 %v2329_v57, 0.0  ;;  %v2620_v6 = vmax.f32 %v2505_v44, 0.0  ;;  %v7150_v44 = vld [vmem:[#allocation11 + $0x88] sm:$0xf] }
 0x341   :  { %v2623_v61 = vmax.f32 %v2418_v8, 0.0  ;;  %v7837_v8 = vld [vmem:[#allocation11 + $0x8c] sm:$0xf] }
 0x342   :  { %v8874_v14 = vpack.c.bf16 %v2622_v63, %v2618_v29  ;;  %v7152_v29 = vld [vmem:[#allocation11 + $0x98] sm:$0xf0] }
 0x343   :  { %v2239_v9 = vpop.f32.mrf.mxu3  ;;  %v8877_v17 = vpack.c.bf16 %v2623_v61, %v2619_v38  ;;  %v7155_v38 = vor.u32 %v7837_v8, %v7152_v29  ;;  %v7836_v61 = vld [vmem:[#allocation11 + $0x84] sm:$0xf] }
 0x344   :  { %v2240_v26 = vadd.f32 %v2239_v9, %v8647_v33 }
 0x345   :  { %v2506_v30 = vpop.f32.mrf.mxu2  ;;  %v2331_v39 = vpop.f32.mrf.mxu0  ;;  %3821 = vmatpush.bf16.msra.mxu2 %v7155_v38 }
 0x346   :  { %v2507_v58 = vadd.f32 %v2506_v30, %v8650_v53  ;;  %v2621_v47 = vmax.f32 %v2240_v26, 0.0  ;;  %v2420_v37 = vpop.f32.mrf.mxu1  ;;  %v2332_v1 = vadd.f32 %v2331_v39, %v8635_v22  ;;  %v7839_v39 = vld [vmem:[#allocation11 + $0x94] sm:$0xf0] }
 0x348   :  { %v2624_v41 = vmax.f32 %v2507_v58, 0.0  ;;  %3005 = vmatmul.bf16.gmra.mxu3 %v8743_v51  ;;  %3094 = vmatmul.bf16.gmra.mxu0 %v8734_v60  ;;  %v8883_v32 = vpack.c.bf16 %v2621_v47, %v2617_v42  ;;  %v2421_v51 = vadd.f32 %v2420_v37, %v8639_v46  ;;  %v2626_v13 = vmax.f32 %v2332_v1, 0.0 }
 0x349   :  { %3183 = vmatmul.bf16.gmra.mxu1 %v8737_v19  ;;  %v7147_v58 = vor.u32 %v7836_v61, %v7144_v55 }
 0x34a   :  { %3272 = vmatmul.bf16.gmra.mxu2 %v8747_v28  ;;  %v8887_v18 = vpack.c.bf16 %v2624_v41, %v2620_v6  ;;  %v2627_v57 = vmax.f32 %v2421_v51, 0.0  ;;  %v7151_v6 = vor.u32 %v7839_v39, %v7150_v44 }
 0x34b   :  { %v2242_v16 = vpop.f32.mrf.mxu3  ;;  %3643 = vmatpush.bf16.msra.mxu0 %v7147_v58 }
 0x34c   :  { %v2243_v63 = vadd.f32 %v2242_v16, %v8647_v33  ;;  %3732 = vmatpush.bf16.msra.mxu1 %v7151_v6 }
 0x34d   :  { %v2509_v21 = vpop.f32.mrf.mxu2  ;;  %v2333_v56 = vpop.f32.mrf.mxu0 }
 0x34e   :  { %v2334_v60 = vadd.f32 %v2333_v56, %v8635_v22  ;;  %v2422_v27 = vpop.f32.mrf.mxu1  ;;  %v2510_v26 = vadd.f32 %v2509_v21, %v8650_v53  ;;  %v2625_v11 = vmax.f32 %v2243_v63, 0.0 }
 0x34f   :  { %v2423_v19 = vadd.f32 %v2422_v27, %v8639_v46 }
 0x350   :  { %v2630_v28 = vmax.f32 %v2334_v60, 0.0  ;;  %v2628_v1 = vmax.f32 %v2510_v26, 0.0 }
 0x351   :  { %v2631_v20 = vmax.f32 %v2423_v19, 0.0 }
 0x352   :  { %v8894_v9 = vpack.c.bf16 %v2630_v28, %v2626_v13 }
 0x353   :  { %v2244_v30 = vpop.f32.mrf.mxu3  ;;  %v8897_v42 = vpack.c.bf16 %v2631_v20, %v2627_v57 }
 0x354   :  { %v2245_v47 = vadd.f32 %v2244_v30, %v8647_v33 }
 0x355   :  { %v2511_v37 = vpop.f32.mrf.mxu2  ;;  %v2336_v15 = vpop.f32.mrf.mxu0 }
 0x356   :  { %v2512_v41 = vadd.f32 %v2511_v37, %v8650_v53  ;;  %v2629_v54 = vmax.f32 %v2245_v47, 0.0  ;;  %v2425_v16 = vpop.f32.mrf.mxu1  ;;  %v2337_v27 = vadd.f32 %v2336_v15, %v8635_v22 }
 0x357   :  { %v2426_v13 = vadd.f32 %v2425_v16, %v8639_v46 }
 0x358   :  { %v2632_v21 = vmax.f32 %v2512_v41, 0.0  ;;  %3010 = vmatmul.bf16.gmra.mxu3 %v8763_v10  ;;  %3099 = vmatmul.bf16.gmra.mxu0 %v8754_v48  ;;  %v8903_v51 = vpack.c.bf16 %v2629_v54, %v2625_v11  ;;  %v2634_v20 = vmax.f32 %v2337_v27, 0.0  ;;  %v7126_v11 = vld [vmem:[#allocation11 + $0x60] sm:$0xf]  ;;  %v7834_v54 = vld [vmem:[#allocation11 + $0x6c] sm:$0xf0] }
 0x359   :  { %3188 = vmatmul.bf16.gmra.mxu1 %v8757_v45  ;;  %v2635_v29 = vmax.f32 %v2426_v13, 0.0 }
 0x35a   :  { %3277 = vmatmul.bf16.gmra.mxu2 %v8767_v23  ;;  %v8907_v56 = vpack.c.bf16 %v2632_v21, %v2628_v1  ;;  %v7127_v1 = vor.u32 %v7834_v54, %v7126_v11 }
 0x35b   :  { %v2247_v60 = vpop.f32.mrf.mxu3 }
 0x35c   :  { %v2248_v23 = vadd.f32 %v2247_v60, %v8647_v33  ;;  %3555 = vmatpush.bf16.msra.mxu3 %v7127_v1 }
 0x35d   :  { %v2514_v19 = vpop.f32.mrf.mxu2  ;;  %v2338_v28 = vpop.f32.mrf.mxu0 }
 0x35e   :  { %v2339_v57 = vadd.f32 %v2338_v28, %v8635_v22  ;;  %v2427_v10 = vpop.f32.mrf.mxu1  ;;  %v2515_v38 = vadd.f32 %v2514_v19, %v8650_v53  ;;  %v2633_v39 = vmax.f32 %v2248_v23, 0.0 }
 0x35f   :  { %v2428_v48 = vadd.f32 %v2427_v10, %v8639_v46  ;;  %v7136_v10 = vld [vmem:[#allocation11 + $0x78] sm:$0xf0] }
 0x360   :  { %v2638_v8 = vmax.f32 %v2339_v57, 0.0  ;;  %v2636_v6 = vmax.f32 %v2515_v38, 0.0  ;;  %v7833_v57 = vld [vmem:[#allocation11 + $0x6c] sm:$0xf] }
 0x361   :  { %v2639_v45 = vmax.f32 %v2428_v48, 0.0 }
 0x362   :  { %v8914_v63 = vpack.c.bf16 %v2638_v8, %v2634_v20  ;;  %v7139_v8 = vor.u32 %v7833_v57, %v7136_v10 }
 0x363   :  { %v2249_v61 = vpop.f32.mrf.mxu3  ;;  %v8917_v55 = vpack.c.bf16 %v2639_v45, %v2635_v29  ;;  %v7832_v29 = vld [vmem:[#allocation11 + $0x64] sm:$0xf]  ;;  %v7128_v45 = vld [vmem:[#allocation11 + $0x70] sm:$0xf0] }
 0x364   :  { %v2250_v44 = vadd.f32 %v2249_v61, %v8647_v33  ;;  %v7131_v38 = vor.u32 %v7832_v29, %v7128_v45  ;;  %v7134_v61 = vld [vmem:[#allocation11 + $0x68] sm:$0xf]  ;;  %3822 = vmatpush.bf16.msra.mxu2 %v7139_v8 }
 0x365   :  { %v2516_v26 = vpop.f32.mrf.mxu2  ;;  %v2341_v58 = vpop.f32.mrf.mxu0 }
 0x366   :  { %v2517_v30 = vadd.f32 %v2516_v26, %v8650_v53  ;;  %v2637_v47 = vmax.f32 %v2250_v44, 0.0  ;;  %v2430_v37 = vpop.f32.mrf.mxu1  ;;  %v2342_v60 = vadd.f32 %v2341_v58, %v8635_v22  ;;  %v7835_v44 = vld [vmem:[#allocation11 + $0x74] sm:$0xf0]  ;;  %3644 = vmatpush.bf16.msra.mxu0 %v7131_v38 }
 0x368   :  { %v2640_v41 = vmax.f32 %v2517_v30, 0.0  ;;  %3015 = vmatmul.bf16.gmra.mxu3 %v8783_v40  ;;  %3104 = vmatmul.bf16.gmra.mxu0 %v8774_v35  ;;  %v8923_v15 = vpack.c.bf16 %v2637_v47, %v2633_v39  ;;  %v2431_v40 = vadd.f32 %v2430_v37, %v8639_v46  ;;  %v2642_v28 = vmax.f32 %v2342_v60, 0.0 }
 0x369   :  { %3193 = vmatmul.bf16.gmra.mxu1 %v8777_v7  ;;  %v7135_v39 = vor.u32 %v7835_v44, %v7134_v61 }
 0x36a   :  { %3282 = vmatmul.bf16.gmra.mxu2 %v8787_v62  ;;  %v8927_v16 = vpack.c.bf16 %v2640_v41, %v2636_v6  ;;  %v2643_v48 = vmax.f32 %v2431_v40, 0.0 }
 0x36b   :  { %v2252_v21 = vpop.f32.mrf.mxu3  ;;  %3733 = vmatpush.bf16.msra.mxu1 %v7135_v39 }
 0x36c   :  { %v2253_v23 = vadd.f32 %v2252_v21, %v8647_v33 }
 0x36d   :  { %v2519_v27 = vpop.f32.mrf.mxu2  ;;  %v2343_v19 = vpop.f32.mrf.mxu0 }
 0x36e   :  { %v2344_v35 = vadd.f32 %v2343_v19, %v8635_v22  ;;  %v2432_v13 = vpop.f32.mrf.mxu1  ;;  %v2520_v30 = vadd.f32 %v2519_v27, %v8650_v53  ;;  %v2641_v54 = vmax.f32 %v2253_v23, 0.0 }
 0x36f   :  { %v2433_v7 = vadd.f32 %v2432_v13, %v8639_v46 }
 0x370   :  { %v2646_v62 = vmax.f32 %v2344_v35, 0.0  ;;  %v2644_v60 = vmax.f32 %v2520_v30, 0.0 }
 0x371   :  { %v2647_v20 = vmax.f32 %v2433_v7, 0.0 }
 0x372   :  { %v8934_v26 = vpack.c.bf16 %v2646_v62, %v2642_v28 }
 0x373   :  { %v2254_v58 = vpop.f32.mrf.mxu3  ;;  %v8937_v47 = vpack.c.bf16 %v2647_v20, %v2643_v48 }
 0x374   :  { %v2255_v37 = vadd.f32 %v2254_v58, %v8647_v33 }
 0x375   :  { %v2521_v6 = vpop.f32.mrf.mxu2  ;;  %v2346_v11 = vpop.f32.mrf.mxu0 }
 0x376   :  { %v2522_v41 = vadd.f32 %v2521_v6, %v8650_v53  ;;  %v2645_v1 = vmax.f32 %v2255_v37, 0.0  ;;  %v2435_v21 = vpop.f32.mrf.mxu1  ;;  %v2347_v13 = vadd.f32 %v2346_v11, %v8635_v22 }
 0x377   :  { %v2436_v28 = vadd.f32 %v2435_v21, %v8639_v46 }
 0x378   :  { %v2648_v40 = vmax.f32 %v2522_v41, 0.0  ;;  %3020 = vmatmul.bf16.gmra.mxu3 %v8803_v31  ;;  %3109 = vmatmul.bf16.gmra.mxu0 %v8794_v24  ;;  %v8943_v27 = vpack.c.bf16 %v2645_v1, %v2641_v54  ;;  %v2650_v10 = vmax.f32 %v2347_v13, 0.0  ;;  %v7110_v41 = vld [vmem:[#allocation11 + $0x40] sm:$0xf]  ;;  %v7120_v13 = vld [vmem:[#allocation11 + $0x58] sm:$0xf0] }
 0x379   :  { %3198 = vmatmul.bf16.gmra.mxu1 %v8797_v34  ;;  %v2651_v20 = vmax.f32 %v2436_v28, 0.0 }
 0x37a   :  { %3287 = vmatmul.bf16.gmra.mxu2 %v8807_v4  ;;  %v8947_v19 = vpack.c.bf16 %v2648_v40, %v2644_v60 }
 0x37b   :  { %v2257_v35 = vpop.f32.mrf.mxu3 }
 0x37c   :  { %v2258_v4 = vadd.f32 %v2257_v35, %v8647_v33 }
 0x37d   :  { %v2524_v7 = vpop.f32.mrf.mxu2  ;;  %v2348_v62 = vpop.f32.mrf.mxu0 }
 0x37e   :  { %v2349_v57 = vadd.f32 %v2348_v62, %v8635_v22  ;;  %v2437_v31 = vpop.f32.mrf.mxu1  ;;  %v2525_v29 = vadd.f32 %v2524_v7, %v8650_v53  ;;  %v7828_v7 = vld [vmem:[#allocation11 + $0x44] sm:$0xf]  ;;  %v7118_v62 = vld [vmem:[#allocation11 + $0x48] sm:$0xf] }
 0x37f   :  { %v2438_v24 = vadd.f32 %v2437_v31, %v8639_v46  ;;  %v2649_v46 = vmax.f32 %v2258_v4, 0.0 }
 0x380   :  { %v2654_v48 = vmax.f32 %v2349_v57, 0.0  ;;  %v2652_v39 = vmax.f32 %v2525_v29, 0.0 }
 0x381   :  { %v2655_v34 = vmax.f32 %v2438_v24, 0.0 }
 0x382   :  { %v8954_v8 = vpack.c.bf16 %v2654_v48, %v2650_v10 }
 0x383   :  { %v2259_v45 = vpop.f32.mrf.mxu3  ;;  %v8957_v23 = vpack.c.bf16 %v2655_v34, %v2651_v20 }
 0x384   :  { %v2260_v38 = vadd.f32 %v2259_v45, %v8647_v33 }
 0x385   :  { %v2526_v61 = vpop.f32.mrf.mxu2  ;;  %v3075_v44 = vpop.f32.mrf.mxu0 }
 0x386   :  { %v2527_v22 = vadd.f32 %v2526_v61, %v8650_v53  ;;  %v2653_v30 = vmax.f32 %v2260_v38, 0.0  ;;  %v3164_v58 = vpop.f32.mrf.mxu1  ;;  %v7830_v53 = vld [vmem:[#allocation11 + $0x4c] sm:$0xf0] }
 0x387   :  { %v7111_v54 = vor.u32 %v7830_v53, %v7110_v41 }
 0x388   :  { %v2656_v37 = vmax.f32 %v2527_v22, 0.0  ;;  %3025 = vmatmul.bf16.gmra.mxu3 %v8823_v43  ;;  %3114 = vmatmul.bf16.gmra.mxu0 %v8814_v12  ;;  %v8963_v6 = vpack.c.bf16 %v2653_v30, %v2649_v46  ;;  %v7829_v12 = vld [vmem:[#allocation11 + $0x4c] sm:$0xf] }
 0x389   :  { %3203 = vmatmul.bf16.gmra.mxu1 %v8817_v3  ;;  %3556 = vmatpush.bf16.msra.mxu3 %v7111_v54  ;;  %v7123_v28 = vor.u32 %v7829_v12, %v7120_v13  ;;  %v7112_v3 = vld [vmem:[#allocation11 + $0x50] sm:$0xf0]  ;;  %v7826_v54 = vld [vmem:[#allocation11 + $0x2c] sm:$0xf0] }
 0x38a   :  { %3292 = vmatmul.bf16.gmra.mxu2 %v8827_v2  ;;  %v8967_v33 = vpack.c.bf16 %v2656_v37, %v2652_v39  ;;  %v7831_v2 = vld [vmem:[#allocation11 + $0x54] sm:$0xf0]  ;;  %v7115_v57 = vor.u32 %v7828_v7, %v7112_v3  ;;  %v7104_v7 = vld [vmem:[#allocation11 + $0x38] sm:$0xf0]  ;;  %v7102_v3 = vld [vmem:[#allocation11 + $0x28] sm:$0xf] }
 0x38b   :  { %v2986_v11 = vpop.f32.mrf.mxu3  ;;  %v7119_v31 = vor.u32 %v7831_v2, %v7118_v62  ;;  %3823 = vmatpush.bf16.msra.mxu2 %v7123_v28 }
 0x38c   :  { %v3076_v1 = vadd.f32 %v3075_v44, %v2986_v11  ;;  %3645 = vmatpush.bf16.msra.mxu0 %v7115_v57 }
 0x38d   :  { %v3253_v21 = vpop.f32.mrf.mxu2  ;;  %v3077_v60 = vpop.f32.mrf.mxu0  ;;  %3734 = vmatpush.bf16.msra.mxu1 %v7119_v31 }
 0x38e   :  { %v3165_v40 = vadd.f32 %v3164_v58, %v3076_v1  ;;  %v3166_v43 = vpop.f32.mrf.mxu1 }
 0x390   :  { %v3254_v35 = vadd.f32 %v3253_v21, %v3165_v40 }
 0x393   :  { %v2988_v24 = vpop.f32.mrf.mxu3 }
 0x394   :  { %v3078_v10 = vadd.f32 %v3077_v60, %v2988_v24 }
 0x395   :  { %v3255_v48 = vpop.f32.mrf.mxu2  ;;  %v3080_v20 = vpop.f32.mrf.mxu0 }
 0x396   :  { %v3167_v34 = vadd.f32 %v3166_v43, %v3078_v10  ;;  %v3169_v4 = vpop.f32.mrf.mxu1 }
 0x398   :  { %v3256_v29 = vadd.f32 %v3255_v48, %v3167_v34  ;;  %3030 = vmatmul.bf16.gmra.mxu3 %v8843_v5  ;;  %3119 = vmatmul.bf16.gmra.mxu0 %v8834_v50 }
 0x399   :  { %3208 = vmatmul.bf16.gmra.mxu1 %v8837_v25 }
 0x39a   :  { %3297 = vmatmul.bf16.gmra.mxu2 %v8847_v0  ;;  %v8973_v45 = vpack.c.bf16 %v3256_v29, %v3254_v35  ;;  %v7094_v0 = vld [vmem:[#allocation11 + $0x20] sm:$0xf] }
 0x39b   :  { %v2991_v38 = vpop.f32.mrf.mxu3  ;;  %v7095_v21 = vor.u32 %v7826_v54, %v7094_v0 }
 0x39c   :  { %v3081_v61 = vadd.f32 %v3080_v20, %v2991_v38 }
 0x39d   :  { %v3258_v22 = vpop.f32.mrf.mxu2  ;;  %v3082_v44 = vpop.f32.mrf.mxu0  ;;  %3557 = vmatpush.bf16.msra.mxu3 %v7095_v21 }
 0x39e   :  { %v3170_v46 = vadd.f32 %v3169_v4, %v3081_v61  ;;  %v3171_v30 = vpop.f32.mrf.mxu1 }
 0x3a0   :  { %v3259_v58 = vadd.f32 %v3258_v22, %v3170_v46 }
 0x3a3   :  { %v2993_v39 = vpop.f32.mrf.mxu3 }
 0x3a4   :  { %v3083_v37 = vadd.f32 %v3082_v44, %v2993_v39 }
 0x3a5   :  { %v3260_v41 = vpop.f32.mrf.mxu2  ;;  %v3085_v53 = vpop.f32.mrf.mxu0 }
 0x3a6   :  { %v3172_v5 = vadd.f32 %v3171_v30, %v3083_v37  ;;  %v3174_v11 = vpop.f32.mrf.mxu1 }
 0x3a8   :  { %v3261_v50 = vadd.f32 %v3260_v41, %v3172_v5  ;;  %3035 = vmatmul.bf16.gmra.mxu3 %v8863_v36  ;;  %3124 = vmatmul.bf16.gmra.mxu0 %v8854_v49  ;;  %v7825_v36 = vld [vmem:[#allocation11 + $0x2c] sm:$0xf]  ;;  %v7824_v49 = vld [vmem:[#allocation11 + $0x24] sm:$0xf]  ;;  %v7822_v5 = vld [vmem:[#allocation11 + $0xc] sm:$0xf0] }
 0x3a9   :  { %3213 = vmatmul.bf16.gmra.mxu1 %v8857_v59  ;;  %v7107_v28 = vor.u32 %v7825_v36, %v7104_v7  ;;  %v7096_v59 = vld [vmem:[#allocation11 + $0x30] sm:$0xf0] }
 0x3aa   :  { %3302 = vmatmul.bf16.gmra.mxu2 %v8867_v52  ;;  %v8979_v25 = vpack.c.bf16 %v3261_v50, %v3259_v58  ;;  %v7827_v52 = vld [vmem:[#allocation11 + $0x34] sm:$0xf0]  ;;  %v7099_v62 = vor.u32 %v7824_v49, %v7096_v59 }
 0x3ab   :  { %v2996_v1 = vpop.f32.mrf.mxu3  ;;  %v7103_v2 = vor.u32 %v7827_v52, %v7102_v3  ;;  %3824 = vmatpush.bf16.msra.mxu2 %v7107_v28 }
 0x3ac   :  { %v3086_v60 = vadd.f32 %v3085_v53, %v2996_v1  ;;  %3646 = vmatpush.bf16.msra.mxu0 %v7099_v62 }
 0x3ad   :  { %v3263_v40 = vpop.f32.mrf.mxu2  ;;  %v3087_v43 = vpop.f32.mrf.mxu0  ;;  %3735 = vmatpush.bf16.msra.mxu1 %v7103_v2 }
 0x3ae   :  { %v3175_v35 = vadd.f32 %v3174_v11, %v3086_v60  ;;  %v3176_v12 = vpop.f32.mrf.mxu1 }
 0x3b0   :  { %v3264_v13 = vadd.f32 %v3263_v40, %v3175_v35 }
 0x3b3   :  { %v2998_v57 = vpop.f32.mrf.mxu3 }
 0x3b4   :  { %v3088_v31 = vadd.f32 %v3087_v43, %v2998_v57  ;;  %v7088_v43 = vld [vmem:[#allocation11 + $0x18] sm:$0xf0] }
 0x3b5   :  { %v3265_v24 = vpop.f32.mrf.mxu2  ;;  %v3090_v10 = vpop.f32.mrf.mxu0 }
 0x3b6   :  { %v3177_v48 = vadd.f32 %v3176_v12, %v3088_v31  ;;  %v3179_v20 = vpop.f32.mrf.mxu1  ;;  %v7086_v12 = vld [vmem:[#allocation11 + $0x8] sm:$0xf] }
 0x3b8   :  { %v3266_v34 = vadd.f32 %v3265_v24, %v3177_v48  ;;  %3040 = vmatmul.bf16.gmra.mxu3 %v8883_v32  ;;  %3129 = vmatmul.bf16.gmra.mxu0 %v8874_v14 }
 0x3b9   :  { %3218 = vmatmul.bf16.gmra.mxu1 %v8877_v17 }
 0x3ba   :  { %3307 = vmatmul.bf16.gmra.mxu2 %v8887_v18  ;;  %v8985_v4 = vpack.c.bf16 %v3266_v34, %v3264_v13  ;;  %v7078_v18 = vld [vmem:[#allocation11] sm:$0xf] }
 0x3bb   :  { %v3001_v29 = vpop.f32.mrf.mxu3  ;;  %v7079_v50 = vor.u32 %v7822_v5, %v7078_v18 }
 0x3bc   :  { %v3091_v38 = vadd.f32 %v3090_v10, %v3001_v29 }
 0x3bd   :  { %v3268_v61 = vpop.f32.mrf.mxu2  ;;  %v3092_v22 = vpop.f32.mrf.mxu0  ;;  %3558 = vmatpush.bf16.msra.mxu3 %v7079_v50 }
 0x3be   :  { %v3180_v44 = vadd.f32 %v3179_v20, %v3091_v38  ;;  %v3181_v46 = vpop.f32.mrf.mxu1 }
 0x3c0   :  { %v3269_v30 = vadd.f32 %v3268_v61, %v3180_v44 }
 0x3c3   :  { %v3003_v58 = vpop.f32.mrf.mxu3 }
 0x3c4   :  { %v3093_v39 = vadd.f32 %v3092_v22, %v3003_v58 }
 0x3c5   :  { %v3270_v37 = vpop.f32.mrf.mxu2  ;;  %v3095_v41 = vpop.f32.mrf.mxu0 }
 0x3c6   :  { %v3182_v32 = vadd.f32 %v3181_v46, %v3093_v39  ;;  %v3184_v53 = vpop.f32.mrf.mxu1 }
 0x3c8   :  { %v3271_v14 = vadd.f32 %v3270_v37, %v3182_v32  ;;  %3045 = vmatmul.bf16.gmra.mxu3 %v8903_v51  ;;  %3134 = vmatmul.bf16.gmra.mxu0 %v8894_v9  ;;  %v7821_v51 = vld [vmem:[#allocation11 + $0xc] sm:$0xf]  ;;  %v7820_v9 = vld [vmem:[#allocation11 + $0x4] sm:$0xf] }
 0x3c9   :  { %3223 = vmatmul.bf16.gmra.mxu1 %v8897_v42  ;;  %v7091_v35 = vor.u32 %v7821_v51, %v7088_v43  ;;  %v7080_v42 = vld [vmem:[#allocation11 + $0x10] sm:$0xf0] }
 0x3ca   :  { %3312 = vmatmul.bf16.gmra.mxu2 %v8907_v56  ;;  %v8991_v17 = vpack.c.bf16 %v3271_v14, %v3269_v30  ;;  %v7823_v56 = vld [vmem:[#allocation11 + $0x14] sm:$0xf0]  ;;  %v7083_v13 = vor.u32 %v7820_v9, %v7080_v42 }
 0x3cb   :  { %v3006_v11 = vpop.f32.mrf.mxu3  ;;  %v7087_v36 = vor.u32 %v7823_v56, %v7086_v12  ;;  %3825 = vmatpush.bf16.msra.mxu2 %v7091_v35  ;;  %v7867_v14 = vld [vmem:[#allocation13 + $0x78] sm:$0xff] }
 0x3cc   :  { %v3096_v0 = vadd.f32 %v3095_v41, %v3006_v11  ;;  %3647 = vmatpush.bf16.msra.mxu0 %v7083_v13 }
 0x3cd   :  { %v3273_v54 = vpop.f32.mrf.mxu2  ;;  %v3097_v1 = vpop.f32.mrf.mxu0  ;;  %3736 = vmatpush.bf16.msra.mxu1 %v7087_v36 }
 0x3ce   :  { %v3185_v21 = vadd.f32 %v3184_v53, %v3096_v0  ;;  %v3186_v60 = vpop.f32.mrf.mxu1  ;;  %v7883_v53 = vld [vmem:[#allocation13 + $0xf8] sm:$0xff] }
 0x3cf   :  { %4622 = vmatpush.bf16.msrb.mxu2 %v7883_v53  ;;  %v7857_v53 = vld [vmem:[#allocation13 + $0x28] sm:$0xff] }
 0x3d0   :  { %v3274_v40 = vadd.f32 %v3273_v54, %v3185_v21  ;;  %4444 = vmatpush.bf16.msrb.mxu0 %v7867_v14 }
 0x3d3   :  { %v3008_v7 = vpop.f32.mrf.mxu3 }
 0x3d4   :  { %v3098_v49 = vadd.f32 %v3097_v1, %v3008_v7 }
 0x3d5   :  { %v3275_v28 = vpop.f32.mrf.mxu2  ;;  %v3100_v59 = vpop.f32.mrf.mxu0 }
 0x3d6   :  { %v3187_v3 = vadd.f32 %v3186_v60, %v3098_v49  ;;  %v3189_v52 = vpop.f32.mrf.mxu1 }
 0x3d8   :  { %v3276_v62 = vadd.f32 %v3275_v28, %v3187_v3  ;;  %3050 = vmatmul.bf16.gmra.mxu3 %v8923_v15  ;;  %3139 = vmatmul.bf16.gmra.mxu0 %v8914_v63 }
 0x3d9   :  { %3228 = vmatmul.bf16.gmra.mxu1 %v8917_v55 }
 0x3da   :  { %3317 = vmatmul.bf16.gmra.mxu2 %v8927_v16  ;;  %v8997_v2 = vpack.c.bf16 %v3276_v62, %v3274_v40  ;;  %v7859_v16 = vld [vmem:[#allocation13 + $0x38] sm:$0xff]  ;;  %v7866_v62 = vld [vmem:[#allocation13 + $0x70] sm:$0xff] }
 0x3db   :  { %v3011_v57 = vpop.f32.mrf.mxu3  ;;  %4355 = vmatpush.bf16.msrb.mxu3 %v7859_v16  ;;  %4445 = vmatpush.bf16.msrb.mxu0 %v7866_v62 }
 0x3dc   :  { %v3101_v31 = vadd.f32 %v3100_v59, %v3011_v57  ;;  %v7874_v57 = vld [vmem:[#allocation13 + $0xb0] sm:$0xff] }
 0x3dd   :  { %v3278_v24 = vpop.f32.mrf.mxu2  ;;  %v3102_v10 = vpop.f32.mrf.mxu0 }
 0x3de   :  { %v3190_v48 = vadd.f32 %v3189_v52, %v3101_v31  ;;  %v3191_v20 = vpop.f32.mrf.mxu1  ;;  %v7882_v52 = vld [vmem:[#allocation13 + $0xf0] sm:$0xff] }
 0x3df   :  { %4623 = vmatpush.bf16.msrb.mxu2 %v7882_v52  ;;  %v7856_v52 = vld [vmem:[#allocation13 + $0x20] sm:$0xff] }
 0x3e0   :  { %v3279_v34 = vadd.f32 %v3278_v24, %v3190_v48 }
 0x3e3   :  { %v3013_v29 = vpop.f32.mrf.mxu3 }
 0x3e4   :  { %v3103_v38 = vadd.f32 %v3102_v10, %v3013_v29 }
 0x3e5   :  { %v3280_v61 = vpop.f32.mrf.mxu2  ;;  %v3105_v22 = vpop.f32.mrf.mxu0 }
 0x3e6   :  { %v3192_v15 = vadd.f32 %v3191_v20, %v3103_v38  ;;  %v3194_v44 = vpop.f32.mrf.mxu1 }
 0x3e8   :  { %v3281_v63 = vadd.f32 %v3280_v61, %v3192_v15  ;;  %3055 = vmatmul.bf16.gmra.mxu3 %v8943_v27  ;;  %3144 = vmatmul.bf16.gmra.mxu0 %v8934_v26  ;;  %v7875_v27 = vld [vmem:[#allocation13 + $0xb8] sm:$0xff] }
 0x3e9   :  { %3233 = vmatmul.bf16.gmra.mxu1 %v8937_v47 }
 0x3ea   :  { %3322 = vmatmul.bf16.gmra.mxu2 %v8947_v19  ;;  %v9003_v55 = vpack.c.bf16 %v3281_v63, %v3279_v34  ;;  %4533 = vmatpush.bf16.msrb.mxu1 %v7875_v27 }
 0x3eb   :  { %v3016_v46 = vpop.f32.mrf.mxu3 }
 0x3ec   :  { %v3106_v30 = vadd.f32 %v3105_v22, %v3016_v46 }
 0x3ed   :  { %v3283_v58 = vpop.f32.mrf.mxu2  ;;  %v3107_v39 = vpop.f32.mrf.mxu0 }
 0x3ee   :  { %v3195_v37 = vadd.f32 %v3194_v44, %v3106_v30  ;;  %v3196_v41 = vpop.f32.mrf.mxu1  ;;  %4534 = vmatpush.bf16.msrb.mxu1 %v7874_v57 }
 0x3f0   :  { %v3284_v32 = vadd.f32 %v3283_v58, %v3195_v37 }
 0x3f3   :  { %v3018_v26 = vpop.f32.mrf.mxu3 }
 0x3f4   :  { %v3108_v47 = vadd.f32 %v3107_v39, %v3018_v26 }
 0x3f5   :  { %v3285_v19 = vpop.f32.mrf.mxu2  ;;  %v3110_v18 = vpop.f32.mrf.mxu0 }
 0x3f6   :  { %v3197_v5 = vadd.f32 %v3196_v41, %v3108_v47  ;;  %v3199_v11 = vpop.f32.mrf.mxu1 }
 0x3f8   :  { %v3286_v50 = vadd.f32 %v3285_v19, %v3197_v5  ;;  %3060 = vmatmul.bf16.gmra.mxu3 %v8963_v6  ;;  %3149 = vmatmul.bf16.gmra.mxu0 %v8954_v8 }
 0x3f9   :  { %3238 = vmatmul.bf16.gmra.mxu1 %v8957_v23 }
 0x3fa   :  { %3327 = vmatmul.bf16.gmra.mxu2 %v8967_v33  ;;  %v9009_v0 = vpack.c.bf16 %v3286_v50, %v3284_v32  ;;  %v7858_v33 = vld [vmem:[#allocation13 + $0x30] sm:$0xff]  ;;  %v7865_v50 = vld [vmem:[#allocation13 + $0x68] sm:$0xff] }
 0x3fb   :  { %v3021_v54 = vpop.f32.mrf.mxu3  ;;  %4356 = vmatpush.bf16.msrb.mxu3 %v7858_v33  ;;  %4446 = vmatpush.bf16.msrb.mxu0 %v7865_v50 }
 0x3fc   :  { %v3111_v1 = vadd.f32 %v3110_v18, %v3021_v54  ;;  %v7873_v54 = vld [vmem:[#allocation13 + $0xa8] sm:$0xff] }
 0x3fd   :  { %v3288_v21 = vpop.f32.mrf.mxu2  ;;  %v3112_v60 = vpop.f32.mrf.mxu0  ;;  %4535 = vmatpush.bf16.msrb.mxu1 %v7873_v54 }
 0x3fe   :  { %v3200_v40 = vadd.f32 %v3199_v11, %v3111_v1  ;;  %v3201_v51 = vpop.f32.mrf.mxu1  ;;  %v7881_v11 = vld [vmem:[#allocation13 + $0xe8] sm:$0xff] }
 0x3ff   :  { %4357 = vmatpush.bf16.msrb.mxu3 %v7857_v53  ;;  %4624 = vmatpush.bf16.msrb.mxu2 %v7881_v11  ;;  %v7855_v11 = vld [vmem:[#allocation13 + $0x18] sm:$0xff] }
 0x400   :  { %v3289_v43 = vadd.f32 %v3288_v21, %v3200_v40 }
 0x403   :  { %v3023_v9 = vpop.f32.mrf.mxu3  ;;  %4358 = vmatpush.bf16.msrb.mxu3 %v7856_v52 }
 0x404   :  { %v3113_v35 = vadd.f32 %v3112_v60, %v3023_v9 }
 0x405   :  { %v3290_v42 = vpop.f32.mrf.mxu2  ;;  %v3115_v12 = vpop.f32.mrf.mxu0 }
 0x406   :  { %v3202_v6 = vadd.f32 %v3201_v51, %v3113_v35  ;;  %v3204_v56 = vpop.f32.mrf.mxu1 }
 0x407   :  { %4359 = vmatpush.bf16.msrb.mxu3 %v7855_v11 }
 0x408   :  { %v3291_v8 = vadd.f32 %v3290_v42, %v3202_v6  ;;  %3559 = vmatmul.bf16.vlgmr.msra.gmra.mxu3 %v8973_v45  ;;  %3648 = vmatmul.bf16.vlgmr.msra.gmra.mxu0 %v8973_v45 }
 0x409   :  { %3737 = vmatmul.bf16.vlgmr.msra.gmra.mxu1 %v8973_v45 }
 0x40a   :  { %3826 = vmatmul.bf16.vlgmr.msra.gmra.mxu2 %v8973_v45  ;;  %v9015_v23 = vpack.c.bf16 %v3291_v8, %v3289_v43 }
 0x40b   :  { %v3026_v13 = vpop.f32.mrf.mxu3 }
 0x40c   :  { %v3116_v36 = vadd.f32 %v3115_v12, %v3026_v13 }
 0x40d   :  { %v3293_v7 = vpop.f32.mrf.mxu2  ;;  %v3117_v49 = vpop.f32.mrf.mxu0 }
 0x40e   :  { %v3205_v28 = vadd.f32 %v3204_v56, %v3116_v36  ;;  %v3206_v59 = vpop.f32.mrf.mxu1 }
 0x410   :  { %v3294_v3 = vadd.f32 %v3293_v7, %v3205_v28 }
 0x413   :  { %v3028_v31 = vpop.f32.mrf.mxu3 }
 0x414   :  { %v3118_v24 = vadd.f32 %v3117_v49, %v3028_v31 }
 0x415   :  { %v3295_v45 = vpop.f32.mrf.mxu2  ;;  %v3120_v10 = vpop.f32.mrf.mxu0 }
 0x416   :  { %v3207_v48 = vadd.f32 %v3206_v59, %v3118_v24  ;;  %v3209_v20 = vpop.f32.mrf.mxu1 }
 0x418   :  { %v3296_v34 = vadd.f32 %v3295_v45, %v3207_v48  ;;  %3564 = vmatmul.bf16.gmra.mxu3 %v8979_v25  ;;  %3653 = vmatmul.bf16.gmra.mxu0 %v8979_v25 }
 0x419   :  { %3742 = vmatmul.bf16.gmra.mxu1 %v8979_v25 }
 0x41a   :  { %3831 = vmatmul.bf16.gmra.mxu2 %v8979_v25  ;;  %v9021_v29 = vpack.c.bf16 %v3296_v34, %v3294_v3  ;;  %v7864_v34 = vld [vmem:[#allocation13 + $0x60] sm:$0xff] }
 0x41b   :  { %v3031_v38 = vpop.f32.mrf.mxu3  ;;  %4447 = vmatpush.bf16.msrb.mxu0 %v7864_v34 }
 0x41c   :  { %v3121_v61 = vadd.f32 %v3120_v10, %v3031_v38  ;;  %v7872_v38 = vld [vmem:[#allocation13 + $0xa0] sm:$0xff] }
 0x41d   :  { %v3298_v22 = vpop.f32.mrf.mxu2  ;;  %v3122_v15 = vpop.f32.mrf.mxu0  ;;  %4536 = vmatpush.bf16.msrb.mxu1 %v7872_v38  ;;  %v7854_v38 = vld [vmem:[#allocation13 + $0x10] sm:$0xff] }
 0x41e   :  { %v3210_v44 = vadd.f32 %v3209_v20, %v3121_v61  ;;  %v3211_v63 = vpop.f32.mrf.mxu1  ;;  %v7880_v20 = vld [vmem:[#allocation13 + $0xe0] sm:$0xff]  ;;  %4360 = vmatpush.bf16.msrb.mxu3 %v7854_v38 }
 0x41f   :  { %4625 = vmatpush.bf16.msrb.mxu2 %v7880_v20 }
 0x420   :  { %v3299_v16 = vadd.f32 %v3298_v22, %v3210_v44 }
 0x423   :  { %v3033_v46 = vpop.f32.mrf.mxu3 }
 0x424   :  { %v3123_v30 = vadd.f32 %v3122_v15, %v3033_v46 }
 0x425   :  { %v3300_v58 = vpop.f32.mrf.mxu2  ;;  %v3125_v39 = vpop.f32.mrf.mxu0 }
 0x426   :  { %v3212_v37 = vadd.f32 %v3211_v63, %v3123_v30  ;;  %v3214_v41 = vpop.f32.mrf.mxu1 }
 0x428   :  { %v3301_v32 = vadd.f32 %v3300_v58, %v3212_v37  ;;  %3569 = vmatmul.bf16.gmra.mxu3 %v8985_v4  ;;  %3658 = vmatmul.bf16.gmra.mxu0 %v8985_v4 }
 0x429   :  { %3747 = vmatmul.bf16.gmra.mxu1 %v8985_v4 }
 0x42a   :  { %3836 = vmatmul.bf16.gmra.mxu2 %v8985_v4  ;;  %v9027_v25 = vpack.c.bf16 %v3301_v32, %v3299_v16 }
 0x42b   :  { %v3036_v14 = vpop.f32.mrf.mxu3 }
 0x42c   :  { %v3126_v27 = vadd.f32 %v3125_v39, %v3036_v14 }
 0x42d   :  { %v3303_v26 = vpop.f32.mrf.mxu2  ;;  %v3127_v47 = vpop.f32.mrf.mxu0 }
 0x42e   :  { %v3215_v19 = vadd.f32 %v3214_v41, %v3126_v27  ;;  %v3216_v18 = vpop.f32.mrf.mxu1 }
 0x430   :  { %v3304_v5 = vadd.f32 %v3303_v26, %v3215_v19 }
 0x433   :  { %v3038_v1 = vpop.f32.mrf.mxu3 }
 0x434   :  { %v3128_v21 = vadd.f32 %v3127_v47, %v3038_v1 }
 0x435   :  { %v3305_v4 = vpop.f32.mrf.mxu2  ;;  %v3130_v60 = vpop.f32.mrf.mxu0 }
 0x436   :  { %v3217_v40 = vadd.f32 %v3216_v18, %v3128_v21  ;;  %v3219_v51 = vpop.f32.mrf.mxu1 }
 0x438   :  { %v3306_v43 = vadd.f32 %v3305_v4, %v3217_v40  ;;  %3574 = vmatmul.bf16.gmra.mxu3 %v8991_v17  ;;  %3663 = vmatmul.bf16.gmra.mxu0 %v8991_v17 }
 0x439   :  { %3752 = vmatmul.bf16.gmra.mxu1 %v8991_v17 }
 0x43a   :  { %3841 = vmatmul.bf16.gmra.mxu2 %v8991_v17  ;;  %v9033_v9 = vpack.c.bf16 %v3306_v43, %v3304_v5  ;;  %v7879_v43 = vld [vmem:[#allocation13 + $0xd8] sm:$0xff] }
 0x43b   :  { %v3041_v35 = vpop.f32.mrf.mxu3  ;;  %4626 = vmatpush.bf16.msrb.mxu2 %v7879_v43 }
 0x43c   :  { %v3131_v42 = vadd.f32 %v3130_v60, %v3041_v35  ;;  %v7863_v35 = vld [vmem:[#allocation13 + $0x58] sm:$0xff] }
 0x43d   :  { %v3308_v12 = vpop.f32.mrf.mxu2  ;;  %v3132_v6 = vpop.f32.mrf.mxu0  ;;  %4448 = vmatpush.bf16.msrb.mxu0 %v7863_v35 }
 0x43e   :  { %v3220_v56 = vadd.f32 %v3219_v51, %v3131_v42  ;;  %v3221_v8 = vpop.f32.mrf.mxu1  ;;  %v7871_v42 = vld [vmem:[#allocation13 + $0x98] sm:$0xff] }
 0x43f   :  { %4537 = vmatpush.bf16.msrb.mxu1 %v7871_v42 }
 0x440   :  { %v3309_v33 = vadd.f32 %v3308_v12, %v3220_v56 }
 0x443   :  { %v3043_v13 = vpop.f32.mrf.mxu3 }
 0x444   :  { %v3133_v36 = vadd.f32 %v3132_v6, %v3043_v13 }
 0x445   :  { %v3310_v7 = vpop.f32.mrf.mxu2  ;;  %v3135_v49 = vpop.f32.mrf.mxu0 }
 0x446   :  { %v3222_v28 = vadd.f32 %v3221_v8, %v3133_v36  ;;  %v3224_v59 = vpop.f32.mrf.mxu1 }
 0x448   :  { %v3311_v3 = vadd.f32 %v3310_v7, %v3222_v28  ;;  %3579 = vmatmul.bf16.gmra.mxu3 %v8997_v2  ;;  %3668 = vmatmul.bf16.gmra.mxu0 %v8997_v2 }
 0x449   :  { %3757 = vmatmul.bf16.gmra.mxu1 %v8997_v2 }
 0x44a   :  { %3846 = vmatmul.bf16.gmra.mxu2 %v8997_v2  ;;  %v9039_v17 = vpack.c.bf16 %v3311_v3, %v3309_v33 }
 0x44b   :  { %v3046_v62 = vpop.f32.mrf.mxu3 }
 0x44c   :  { %v3136_v57 = vadd.f32 %v3135_v49, %v3046_v62 }
 0x44d   :  { %v3313_v31 = vpop.f32.mrf.mxu2  ;;  %v3137_v24 = vpop.f32.mrf.mxu0 }
 0x44e   :  { %v3225_v45 = vadd.f32 %v3224_v59, %v3136_v57  ;;  %v3226_v10 = vpop.f32.mrf.mxu1 }
 0x450   :  { %v3314_v48 = vadd.f32 %v3313_v31, %v3225_v45 }
 0x453   :  { %v3048_v61 = vpop.f32.mrf.mxu3 }
 0x454   :  { %v3138_v22 = vadd.f32 %v3137_v24, %v3048_v61  ;;  %v3381_v24 = vld [vmem:[%s9897_s6] sm:$0xf] }
 0x455   :  { %v3315_v2 = vpop.f32.mrf.mxu2  ;;  %v3140_v15 = vpop.f32.mrf.mxu0  ;;  %v9062_v20 = vperm.slane %v3381_v24, 1  ;;  %v9066_v34 = vperm.slane %v3381_v24, 2 }
 0x456   :  { %v3227_v44 = vadd.f32 %v3226_v10, %v3138_v22  ;;  %v3229_v63 = vpop.f32.mrf.mxu1 }
 0x458   :  { %v3316_v16 = vadd.f32 %v3315_v2, %v3227_v44  ;;  %3584 = vmatmul.bf16.gmra.mxu3 %v9003_v55  ;;  %3673 = vmatmul.bf16.gmra.mxu0 %v9003_v55 }
 0x459   :  { %3762 = vmatmul.bf16.gmra.mxu1 %v9003_v55 }
 0x45a   :  { %3851 = vmatmul.bf16.gmra.mxu2 %v9003_v55  ;;  %v9045_v46 = vpack.c.bf16 %v3316_v16, %v3314_v48  ;;  %v9074_v16 = vperm.slane %v3381_v24, 0 }
 0x45b   :  { %v3051_v30 = vpop.f32.mrf.mxu3 }
 0x45c   :  { %v3141_v58 = vadd.f32 %v3140_v15, %v3051_v30 }
 0x45d   :  { %v3318_v39 = vpop.f32.mrf.mxu2  ;;  %v3142_v37 = vpop.f32.mrf.mxu0 }
 0x45e   :  { %v3230_v41 = vadd.f32 %v3229_v63, %v3141_v58  ;;  %v3231_v32 = vpop.f32.mrf.mxu1 }
 0x460   :  { %v3319_v53 = vadd.f32 %v3318_v39, %v3230_v41  ;;  %v9077_v39 = vperm.slane %v3381_v24, 3 }
 0x463   :  { %v3053_v14 = vpop.f32.mrf.mxu3 }
 0x464   :  { %v3143_v27 = vadd.f32 %v3142_v37, %v3053_v14  ;;  %v7878_v14 = vld [vmem:[#allocation13 + $0xd0] sm:$0xff] }
 0x465   :  { %v3320_v26 = vpop.f32.mrf.mxu2  ;;  %v3145_v47 = vpop.f32.mrf.mxu0  ;;  %4627 = vmatpush.bf16.msrb.mxu2 %v7878_v14 }
 0x466   :  { %v3232_v19 = vadd.f32 %v3231_v32, %v3143_v27  ;;  %v3234_v18 = vpop.f32.mrf.mxu1  ;;  %v7862_v27 = vld [vmem:[#allocation13 + $0x50] sm:$0xff] }
 0x467   :  { %4449 = vmatpush.bf16.msrb.mxu0 %v7862_v27 }
 0x468   :  { %v3321_v5 = vadd.f32 %v3320_v26, %v3232_v19  ;;  %3589 = vmatmul.bf16.gmra.mxu3 %v9009_v0  ;;  %3678 = vmatmul.bf16.gmra.mxu0 %v9009_v0  ;;  %v7870_v26 = vld [vmem:[#allocation13 + $0x90] sm:$0xff] }
 0x469   :  { %3767 = vmatmul.bf16.gmra.mxu1 %v9009_v0 }
 0x46a   :  { %3856 = vmatmul.bf16.gmra.mxu2 %v9009_v0  ;;  %v9051_v55 = vpack.c.bf16 %v3321_v5, %v3319_v53  ;;  %4538 = vmatpush.bf16.msrb.mxu1 %v7870_v26 }
 0x46b   :  { %v3056_v50 = vpop.f32.mrf.mxu3 }
 0x46c   :  { %v3146_v54 = vadd.f32 %v3145_v47, %v3056_v50 }
 0x46d   :  { %v3323_v1 = vpop.f32.mrf.mxu2  ;;  %v3147_v21 = vpop.f32.mrf.mxu0 }
 0x46e   :  { %v3235_v4 = vadd.f32 %v3234_v18, %v3146_v54  ;;  %v3236_v60 = vpop.f32.mrf.mxu1 }
 0x470   :  { %v3324_v40 = vadd.f32 %v3323_v1, %v3235_v4 }
 0x473   :  { %v3058_v51 = vpop.f32.mrf.mxu3 }
 0x474   :  { %v3148_v12 = vadd.f32 %v3147_v21, %v3058_v51 }
 0x475   :  { %v3325_v6 = vpop.f32.mrf.mxu2  ;;  %v3150_v56 = vpop.f32.mrf.mxu0 }
 0x476   :  { %v3237_v0 = vadd.f32 %v3236_v60, %v3148_v12  ;;  %v3239_v8 = vpop.f32.mrf.mxu1 }
 0x478   :  { %v3326_v33 = vadd.f32 %v3325_v6, %v3237_v0  ;;  %3594 = vmatmul.bf16.gmra.mxu3 %v9015_v23  ;;  %3683 = vmatmul.bf16.gmra.mxu0 %v9015_v23 }
 0x479   :  { %3772 = vmatmul.bf16.gmra.mxu1 %v9015_v23 }
 0x47a   :  { %3861 = vmatmul.bf16.gmra.mxu2 %v9015_v23  ;;  %v9057_v13 = vpack.c.bf16 %v3326_v33, %v3324_v40 }
 0x47b   :  { %v3061_v36 = vpop.f32.mrf.mxu3 }
 0x47c   :  { %v3151_v7 = vadd.f32 %v3150_v56, %v3061_v36 }
 0x47d   :  { %v3328_v49 = vpop.f32.mrf.mxu2  ;;  %v3152_v28 = vpop.f32.mrf.mxu0 }
 0x47e   :  { %v3240_v59 = vadd.f32 %v3239_v8, %v3151_v7  ;;  %v3241_v3 = vpop.f32.mrf.mxu1 }
 0x480   :  { %v3329_v52 = vadd.f32 %v3328_v49, %v3240_v59 }
 0x483   :  { %v3063_v62 = vpop.f32.mrf.mxu3 }
 0x484   :  { %v3153_v57 = vadd.f32 %v3152_v28, %v3063_v62 }
 0x485   :  { %v3330_v31 = vpop.f32.mrf.mxu2  ;;  %v3649_v45 = vpop.f32.mrf.mxu0 }
 0x486   :  { %v3242_v10 = vadd.f32 %v3241_v3, %v3153_v57  ;;  %v3738_v48 = vpop.f32.mrf.mxu1  ;;  %v3650_v2 = vadd.f32 %v3649_v45, %v9062_v20 }
 0x487   :  { %v3739_v44 = vadd.f32 %v3738_v48, %v9066_v34 }
 0x488   :  { %v3331_v23 = vadd.f32 %v3330_v31, %v3242_v10  ;;  %3599 = vmatmul.bf16.gmra.mxu3 %v9021_v29  ;;  %3688 = vmatmul.bf16.gmra.mxu0 %v9021_v29  ;;  %v3908_v37 = vmax.f32 %v3650_v2, 0.0 }
 0x489   :  { %3777 = vmatmul.bf16.gmra.mxu1 %v9021_v29  ;;  %v3909_v32 = vmax.f32 %v3739_v44, 0.0 }
 0x48a   :  { %3866 = vmatmul.bf16.gmra.mxu2 %v9021_v29  ;;  %v9070_v61 = vpack.c.bf16 %v3331_v23, %v3329_v52 }
 0x48b   :  { %v3560_v22 = vpop.f32.mrf.mxu3 }
 0x48c   :  { %v3561_v47 = vadd.f32 %v3560_v22, %v9074_v16 }
 0x48d   :  { %v3827_v15 = vpop.f32.mrf.mxu2  ;;  %v3651_v63 = vpop.f32.mrf.mxu0 }
 0x48e   :  { %v3652_v30 = vadd.f32 %v3651_v63, %v9062_v20  ;;  %v3740_v58 = vpop.f32.mrf.mxu1  ;;  %v3828_v18 = vadd.f32 %v3827_v15, %v9077_v39  ;;  %v3907_v4 = vmax.f32 %v3561_v47, 0.0  ;;  %v7853_v63 = vld [vmem:[#allocation13 + $0x8] sm:$0xff] }
 0x48f   :  { %v3741_v29 = vadd.f32 %v3740_v58, %v9066_v34  ;;  %4361 = vmatpush.bf16.msrb.mxu3 %v7853_v63 }
 0x490   :  { %v3912_v41 = vmax.f32 %v3652_v30, 0.0  ;;  %v3910_v51 = vmax.f32 %v3828_v18, 0.0 }
 0x491   :  { %v3913_v53 = vmax.f32 %v3741_v29, 0.0 }
 0x492   :  { %v9081_v19 = vpack.c.bf16 %v3912_v41, %v3908_v37 }
 0x493   :  { %v9084_v5 = vpack.c.bf16 %v3913_v53, %v3909_v32  ;;  %v3562_v11 = vpop.f32.mrf.mxu3 }
 0x494   :  { %v3563_v50 = vadd.f32 %v3562_v11, %v9074_v16  ;;  %v7877_v11 = vld [vmem:[#allocation13 + $0xc8] sm:$0xff] }
 0x495   :  { %v3829_v54 = vpop.f32.mrf.mxu2  ;;  %v3654_v21 = vpop.f32.mrf.mxu0  ;;  %4628 = vmatpush.bf16.msrb.mxu2 %v7877_v11 }
 0x496   :  { %v3830_v1 = vadd.f32 %v3829_v54, %v9077_v39  ;;  %v3911_v60 = vmax.f32 %v3563_v50, 0.0  ;;  %v3743_v40 = vpop.f32.mrf.mxu1  ;;  %v3655_v6 = vadd.f32 %v3654_v21, %v9062_v20  ;;  %v7861_v50 = vld [vmem:[#allocation13 + $0x48] sm:$0xff] }
 0x497   :  { %v3744_v0 = vadd.f32 %v3743_v40, %v9066_v34  ;;  %v7869_v54 = vld [vmem:[#allocation13 + $0x88] sm:$0xff]  ;;  %4450 = vmatpush.bf16.msrb.mxu0 %v7861_v50 }
 0x498   :  { %v3914_v43 = vmax.f32 %v3830_v1, 0.0  ;;  %v9088_v35 = vpack.c.bf16 %v3911_v60, %v3907_v4  ;;  %3604 = vmatmul.bf16.gmra.mxu3 %v9027_v25  ;;  %3693 = vmatmul.bf16.gmra.mxu0 %v9027_v25  ;;  %v3916_v49 = vmax.f32 %v3655_v6, 0.0 }
 0x499   :  { %3782 = vmatmul.bf16.gmra.mxu1 %v9027_v25  ;;  %v3917_v59 = vmax.f32 %v3744_v0, 0.0 }
 0x49a   :  { %v9092_v42 = vpack.c.bf16 %v3914_v43, %v3910_v51  ;;  %3871 = vmatmul.bf16.gmra.mxu2 %v9027_v25  ;;  %4539 = vmatpush.bf16.msrb.mxu1 %v7869_v54 }
 0x49b   :  { %v3565_v12 = vpop.f32.mrf.mxu3 }
 0x49c   :  { %v3566_v52 = vadd.f32 %v3565_v12, %v9074_v16 }
 0x49d   :  { %v3832_v56 = vpop.f32.mrf.mxu2  ;;  %v3656_v8 = vpop.f32.mrf.mxu0 }
 0x49e   :  { %v3657_v33 = vadd.f32 %v3656_v8, %v9062_v20  ;;  %v3745_v36 = vpop.f32.mrf.mxu1  ;;  %v3833_v25 = vadd.f32 %v3832_v56, %v9077_v39  ;;  %v3915_v23 = vmax.f32 %v3566_v52, 0.0 }
 0x49f   :  { %v3746_v7 = vadd.f32 %v3745_v36, %v9066_v34 }
 0x4a0   :  { %v3920_v28 = vmax.f32 %v3657_v33, 0.0  ;;  %v3918_v2 = vmax.f32 %v3833_v25, 0.0 }
 0x4a1   :  { %v3921_v3 = vmax.f32 %v3746_v7, 0.0 }
 0x4a2   :  { %v9101_v62 = vpack.c.bf16 %v3920_v28, %v3916_v49 }
 0x4a3   :  { %v3567_v57 = vpop.f32.mrf.mxu3  ;;  %v9104_v31 = vpack.c.bf16 %v3921_v3, %v3917_v59 }
 0x4a4   :  { %v3568_v24 = vadd.f32 %v3567_v57, %v9074_v16 }
 0x4a5   :  { %v3834_v45 = vpop.f32.mrf.mxu2  ;;  %v3659_v48 = vpop.f32.mrf.mxu0 }
 0x4a6   :  { %v3835_v10 = vadd.f32 %v3834_v45, %v9077_v39  ;;  %v3919_v38 = vmax.f32 %v3568_v24, 0.0  ;;  %v3748_v22 = vpop.f32.mrf.mxu1  ;;  %v3660_v29 = vadd.f32 %v3659_v48, %v9062_v20 }
 0x4a7   :  { %v3749_v41 = vadd.f32 %v3748_v22, %v9066_v34 }
 0x4a8   :  { %v3922_v15 = vmax.f32 %v3835_v10, 0.0  ;;  %3609 = vmatmul.bf16.gmra.mxu3 %v9033_v9  ;;  %3698 = vmatmul.bf16.gmra.mxu0 %v9033_v9  ;;  %v9110_v44 = vpack.c.bf16 %v3919_v38, %v3915_v23  ;;  %v3924_v26 = vmax.f32 %v3660_v29, 0.0 }
 0x4a9   :  { %3787 = vmatmul.bf16.gmra.mxu1 %v9033_v9  ;;  %v3925_v18 = vmax.f32 %v3749_v41, 0.0 }
 0x4aa   :  { %3876 = vmatmul.bf16.gmra.mxu2 %v9033_v9  ;;  %v9114_v30 = vpack.c.bf16 %v3922_v15, %v3918_v2 }
 0x4ab   :  { %v3570_v58 = vpop.f32.mrf.mxu3 }
 0x4ac   :  { %v3571_v1 = vadd.f32 %v3570_v58, %v9074_v16 }
 0x4ad   :  { %v3837_v37 = vpop.f32.mrf.mxu2  ;;  %v3661_v32 = vpop.f32.mrf.mxu0 }
 0x4ae   :  { %v3662_v53 = vadd.f32 %v3661_v32, %v9062_v20  ;;  %v3750_v14 = vpop.f32.mrf.mxu1  ;;  %v3838_v4 = vadd.f32 %v3837_v37, %v9077_v39  ;;  %v3923_v56 = vmax.f32 %v3571_v1, 0.0 }
 0x4af   :  { %v3751_v27 = vadd.f32 %v3750_v14, %v9066_v34 }
 0x4b0   :  { %v3928_v47 = vmax.f32 %v3662_v53, 0.0  ;;  %v3926_v33 = vmax.f32 %v3838_v4, 0.0 }
 0x4b1   :  { %v3929_v9 = vmax.f32 %v3751_v27, 0.0 }
 0x4b2   :  { %v9121_v21 = vpack.c.bf16 %v3928_v47, %v3924_v26 }
 0x4b3   :  { %v3572_v60 = vpop.f32.mrf.mxu3  ;;  %v9124_v40 = vpack.c.bf16 %v3929_v9, %v3925_v18  ;;  %v7852_v18 = vld [vmem:[#allocation13] sm:$0xff] }
 0x4b4   :  { %v3573_v51 = vadd.f32 %v3572_v60, %v9074_v16  ;;  %4362 = vmatpush.bf16.msrb.mxu3 %v7852_v18 }
 0x4b5   :  { %v3839_v43 = vpop.f32.mrf.mxu2  ;;  %v3664_v6 = vpop.f32.mrf.mxu0 }
 0x4b6   :  { %v3840_v12 = vadd.f32 %v3839_v43, %v9077_v39  ;;  %v3927_v0 = vmax.f32 %v3573_v51, 0.0  ;;  %v3753_v8 = vpop.f32.mrf.mxu1  ;;  %v3665_v59 = vadd.f32 %v3664_v6, %v9062_v20 }
 0x4b7   :  { %v3754_v52 = vadd.f32 %v3753_v8, %v9066_v34  ;;  %v7860_v8 = vld [vmem:[#allocation13 + $0x40] sm:$0xff] }
 0x4b8   :  { %v3930_v36 = vmax.f32 %v3840_v12, 0.0  ;;  %3614 = vmatmul.bf16.gmra.mxu3 %v9039_v17  ;;  %3703 = vmatmul.bf16.gmra.mxu0 %v9039_v17  ;;  %v9130_v7 = vpack.c.bf16 %v3927_v0, %v3923_v56  ;;  %v3932_v10 = vmax.f32 %v3665_v59, 0.0  ;;  %v7876_v0 = vld [vmem:[#allocation13 + $0xc0] sm:$0xff] }
 0x4b9   :  { %3792 = vmatmul.bf16.gmra.mxu1 %v9039_v17  ;;  %v3933_v23 = vmax.f32 %v3754_v52, 0.0  ;;  %4629 = vmatpush.bf16.msrb.mxu2 %v7876_v0 }
 0x4ba   :  { %3881 = vmatmul.bf16.gmra.mxu2 %v9039_v17  ;;  %v9134_v49 = vpack.c.bf16 %v3930_v36, %v3926_v33  ;;  %v7868_v33 = vld [vmem:[#allocation13 + $0x80] sm:$0xff]  ;;  %4451 = vmatpush.bf16.msrb.mxu0 %v7860_v8 }
 0x4bb   :  { %v3575_v28 = vpop.f32.mrf.mxu3  ;;  %4540 = vmatpush.bf16.msrb.mxu1 %v7868_v33 }
 0x4bc   :  { %v3576_v17 = vadd.f32 %v3575_v28, %v9074_v16 }
 0x4bd   :  { %v3842_v3 = vpop.f32.mrf.mxu2  ;;  %v3666_v25 = vpop.f32.mrf.mxu0 }
 0x4be   :  { %v3667_v57 = vadd.f32 %v3666_v25, %v9062_v20  ;;  %v3755_v24 = vpop.f32.mrf.mxu1  ;;  %v3843_v2 = vadd.f32 %v3842_v3, %v9077_v39  ;;  %v3931_v32 = vmax.f32 %v3576_v17, 0.0 }
 0x4bf   :  { %v3756_v45 = vadd.f32 %v3755_v24, %v9066_v34 }
 0x4c0   :  { %v3936_v48 = vmax.f32 %v3667_v57, 0.0  ;;  %v3934_v27 = vmax.f32 %v3843_v2, 0.0 }
 0x4c1   :  { %v3937_v38 = vmax.f32 %v3756_v45, 0.0 }
 0x4c2   :  { %v9141_v22 = vpack.c.bf16 %v3936_v48, %v3932_v10 }
 0x4c3   :  { %v3577_v15 = vpop.f32.mrf.mxu3  ;;  %v9144_v63 = vpack.c.bf16 %v3937_v38, %v3933_v23 }
 0x4c4   :  { %v3578_v58 = vadd.f32 %v3577_v15, %v9074_v16 }
 0x4c5   :  { %v3844_v29 = vpop.f32.mrf.mxu2  ;;  %v3669_v41 = vpop.f32.mrf.mxu0 }
 0x4c6   :  { %v3845_v37 = vadd.f32 %v3844_v29, %v9077_v39  ;;  %v3935_v53 = vmax.f32 %v3578_v58, 0.0  ;;  %v3758_v14 = vpop.f32.mrf.mxu1  ;;  %v3670_v50 = vadd.f32 %v3669_v41, %v9062_v20 }
 0x4c7   :  { %v3759_v1 = vadd.f32 %v3758_v14, %v9066_v34 }
 0x4c8   :  { %v3938_v26 = vmax.f32 %v3845_v37, 0.0  ;;  %3619 = vmatmul.bf16.gmra.mxu3 %v9045_v46  ;;  %3708 = vmatmul.bf16.gmra.mxu0 %v9045_v46  ;;  %v9150_v47 = vpack.c.bf16 %v3935_v53, %v3931_v32  ;;  %v3940_v12 = vmax.f32 %v3670_v50, 0.0 }
 0x4c9   :  { %3797 = vmatmul.bf16.gmra.mxu1 %v9045_v46  ;;  %v3941_v56 = vmax.f32 %v3759_v1, 0.0 }
 0x4ca   :  { %3886 = vmatmul.bf16.gmra.mxu2 %v9045_v46  ;;  %v9154_v9 = vpack.c.bf16 %v3938_v26, %v3934_v27 }
 0x4cb   :  { %v3580_v11 = vpop.f32.mrf.mxu3 }
 0x4cc   :  { %v3581_v36 = vadd.f32 %v3580_v11, %v9074_v16 }
 0x4cd   :  { %v3847_v54 = vpop.f32.mrf.mxu2  ;;  %v3671_v4 = vpop.f32.mrf.mxu0 }
 0x4ce   :  { %v3672_v60 = vadd.f32 %v3671_v4, %v9062_v20  ;;  %v3760_v51 = vpop.f32.mrf.mxu1  ;;  %v3848_v59 = vadd.f32 %v3847_v54, %v9077_v39  ;;  %v3939_v10 = vmax.f32 %v3581_v36, 0.0 }
 0x4cf   :  { %v3761_v43 = vadd.f32 %v3760_v51, %v9066_v34 }
 0x4d0   :  { %v3944_v6 = vmax.f32 %v3672_v60, 0.0  ;;  %v3942_v38 = vmax.f32 %v3848_v59, 0.0  ;;  %v7446_v59 = vld [vmem:[#allocation14 + $0xe0] sm:$0xf] }
 0x4d1   :  { %v3945_v46 = vmax.f32 %v3761_v43, 0.0 }
 0x4d2   :  { %v9161_v28 = vpack.c.bf16 %v3944_v6, %v3940_v12 }
 0x4d3   :  { %v3582_v3 = vpop.f32.mrf.mxu3  ;;  %v9164_v52 = vpack.c.bf16 %v3945_v46, %v3941_v56 }
 0x4d4   :  { %v3583_v25 = vadd.f32 %v3582_v3, %v9074_v16  ;;  %v7914_v3 = vld [vmem:[#allocation14 + $0xec] sm:$0xf0] }
 0x4d5   :  { %v3849_v57 = vpop.f32.mrf.mxu2  ;;  %v3674_v45 = vpop.f32.mrf.mxu0 }
 0x4d6   :  { %v3850_v24 = vadd.f32 %v3849_v57, %v9077_v39  ;;  %v3943_v48 = vmax.f32 %v3583_v25, 0.0  ;;  %v3763_v23 = vpop.f32.mrf.mxu1  ;;  %v3675_v29 = vadd.f32 %v3674_v45, %v9062_v20  ;;  %v7447_v57 = vor.u32 %v7914_v3, %v7446_v59 }
 0x4d7   :  { %v3764_v41 = vadd.f32 %v3763_v23, %v9066_v34 }
 0x4d8   :  { %v3946_v17 = vmax.f32 %v3850_v24, 0.0  ;;  %3624 = vmatmul.bf16.gmra.mxu3 %v9051_v55  ;;  %3713 = vmatmul.bf16.gmra.mxu0 %v9051_v55  ;;  %v9170_v2 = vpack.c.bf16 %v3943_v48, %v3939_v10  ;;  %v3948_v26 = vmax.f32 %v3675_v29, 0.0 }
 0x4d9   :  { %3802 = vmatmul.bf16.gmra.mxu1 %v9051_v55  ;;  %v3949_v11 = vmax.f32 %v3764_v41, 0.0  ;;  %4929 = vmatpush.bf16.msra.mxu3 %v7447_v57 }
 0x4da   :  { %3891 = vmatmul.bf16.gmra.mxu2 %v9051_v55  ;;  %v9174_v15 = vpack.c.bf16 %v3946_v17, %v3942_v38 }
 0x4db   :  { %v3585_v58 = vpop.f32.mrf.mxu3 }
 0x4dc   :  { %v3586_v55 = vadd.f32 %v3585_v58, %v9074_v16 }
 0x4dd   :  { %v3852_v37 = vpop.f32.mrf.mxu2  ;;  %v3676_v32 = vpop.f32.mrf.mxu0 }
 0x4de   :  { %v3677_v53 = vadd.f32 %v3676_v32, %v9062_v20  ;;  %v3765_v14 = vpop.f32.mrf.mxu1  ;;  %v3853_v1 = vadd.f32 %v3852_v37, %v9077_v39  ;;  %v3947_v56 = vmax.f32 %v3586_v55, 0.0  ;;  %v7913_v32 = vld [vmem:[#allocation14 + $0xec] sm:$0xf] }
 0x4df   :  { %v3766_v27 = vadd.f32 %v3765_v14, %v9066_v34 }
 0x4e0   :  { %v3952_v18 = vmax.f32 %v3677_v53, 0.0  ;;  %v3950_v8 = vmax.f32 %v3853_v1, 0.0  ;;  %v7456_v53 = vld [vmem:[#allocation14 + $0xf8] sm:$0xf0] }
 0x4e1   :  { %v3953_v50 = vmax.f32 %v3766_v27, 0.0  ;;  %v7459_v27 = vor.u32 %v7913_v32, %v7456_v53 }
 0x4e2   :  { %v9181_v54 = vpack.c.bf16 %v3952_v18, %v3948_v26  ;;  %v7912_v26 = vld [vmem:[#allocation14 + $0xe4] sm:$0xf]  ;;  %v7448_v18 = vld [vmem:[#allocation14 + $0xf0] sm:$0xf0] }
 0x4e3   :  { %v3587_v4 = vpop.f32.mrf.mxu3  ;;  %v9184_v60 = vpack.c.bf16 %v3953_v50, %v3949_v11  ;;  %v7454_v11 = vld [vmem:[#allocation14 + $0xe8] sm:$0xf]  ;;  %5196 = vmatpush.bf16.msra.mxu2 %v7459_v27 }
 0x4e4   :  { %v3588_v51 = vadd.f32 %v3587_v4, %v9074_v16  ;;  %v7451_v4 = vor.u32 %v7912_v26, %v7448_v18 }
 0x4e5   :  { %v3854_v43 = vpop.f32.mrf.mxu2  ;;  %v3679_v6 = vpop.f32.mrf.mxu0 }
 0x4e6   :  { %v3855_v12 = vadd.f32 %v3854_v43, %v9077_v39  ;;  %v3951_v46 = vmax.f32 %v3588_v51, 0.0  ;;  %v3768_v0 = vpop.f32.mrf.mxu1  ;;  %v3680_v45 = vadd.f32 %v3679_v6, %v9062_v20  ;;  %v7915_v51 = vld [vmem:[#allocation14 + $0xf4] sm:$0xf0]  ;;  %5018 = vmatpush.bf16.msra.mxu0 %v7451_v4 }
 0x4e7   :  { %v3769_v48 = vadd.f32 %v3768_v0, %v9066_v34 }
 0x4e8   :  { %v3954_v33 = vmax.f32 %v3855_v12, 0.0  ;;  %3629 = vmatmul.bf16.gmra.mxu3 %v9057_v13  ;;  %3718 = vmatmul.bf16.gmra.mxu0 %v9057_v13  ;;  %v9190_v36 = vpack.c.bf16 %v3951_v46, %v3947_v56  ;;  %v3956_v29 = vmax.f32 %v3680_v45, 0.0  ;;  %v7455_v56 = vor.u32 %v7915_v51, %v7454_v11 }
 0x4e9   :  { %3807 = vmatmul.bf16.gmra.mxu1 %v9057_v13  ;;  %v3957_v37 = vmax.f32 %v3769_v48, 0.0 }
 0x4ea   :  { %3896 = vmatmul.bf16.gmra.mxu2 %v9057_v13  ;;  %v9194_v25 = vpack.c.bf16 %v3954_v33, %v3950_v8  ;;  %5107 = vmatpush.bf16.msra.mxu1 %v7455_v56 }
 0x4eb   :  { %v3590_v24 = vpop.f32.mrf.mxu3 }
 0x4ec   :  { %v3591_v14 = vadd.f32 %v3590_v24, %v9074_v16 }
 0x4ed   :  { %v3857_v10 = vpop.f32.mrf.mxu2  ;;  %v3681_v23 = vpop.f32.mrf.mxu0 }
 0x4ee   :  { %v3682_v38 = vadd.f32 %v3681_v23, %v9062_v20  ;;  %v3770_v17 = vpop.f32.mrf.mxu1  ;;  %v3858_v55 = vadd.f32 %v3857_v10, %v9077_v39  ;;  %v3955_v8 = vmax.f32 %v3591_v14, 0.0 }
 0x4ef   :  { %v3771_v58 = vadd.f32 %v3770_v17, %v9066_v34 }
 0x4f0   :  { %v3960_v13 = vmax.f32 %v3682_v38, 0.0  ;;  %v3958_v3 = vmax.f32 %v3858_v55, 0.0 }
 0x4f1   :  { %v3961_v41 = vmax.f32 %v3771_v58, 0.0 }
 0x4f2   :  { %v9201_v50 = vpack.c.bf16 %v3960_v13, %v3956_v29 }
 0x4f3   :  { %v3592_v1 = vpop.f32.mrf.mxu3  ;;  %v9204_v43 = vpack.c.bf16 %v3961_v41, %v3957_v37 }
 0x4f4   :  { %v3593_v12 = vadd.f32 %v3592_v1, %v9074_v16 }
 0x4f5   :  { %v3859_v6 = vpop.f32.mrf.mxu2  ;;  %v3684_v0 = vpop.f32.mrf.mxu0 }
 0x4f6   :  { %v3860_v46 = vadd.f32 %v3859_v6, %v9077_v39  ;;  %v3959_v33 = vmax.f32 %v3593_v12, 0.0  ;;  %v3773_v59 = vpop.f32.mrf.mxu1  ;;  %v3685_v48 = vadd.f32 %v3684_v0, %v9062_v20 }
 0x4f7   :  { %v3774_v38 = vadd.f32 %v3773_v59, %v9066_v34 }
 0x4f8   :  { %v3962_v57 = vmax.f32 %v3860_v46, 0.0  ;;  %3634 = vmatmul.bf16.gmra.mxu3 %v9070_v61  ;;  %3723 = vmatmul.bf16.gmra.mxu0 %v9070_v61  ;;  %v9210_v24 = vpack.c.bf16 %v3959_v33, %v3955_v8  ;;  %v3964_v37 = vmax.f32 %v3685_v48, 0.0  ;;  %v7430_v8 = vld [vmem:[#allocation14 + $0xc0] sm:$0xf]  ;;  %v7910_v33 = vld [vmem:[#allocation14 + $0xcc] sm:$0xf0] }
 0x4f9   :  { %3812 = vmatmul.bf16.gmra.mxu1 %v9070_v61  ;;  %v3965_v32 = vmax.f32 %v3774_v38, 0.0 }
 0x4fa   :  { %3901 = vmatmul.bf16.gmra.mxu2 %v9070_v61  ;;  %v9214_v45 = vpack.c.bf16 %v3962_v57, %v3958_v3  ;;  %v7431_v3 = vor.u32 %v7910_v33, %v7430_v8 }
 0x4fb   :  { %v3595_v10 = vpop.f32.mrf.mxu3 }
 0x4fc   :  { %v3596_v61 = vadd.f32 %v3595_v10, %v9074_v16  ;;  %4930 = vmatpush.bf16.msra.mxu3 %v7431_v3 }
 0x4fd   :  { %v3862_v23 = vpop.f32.mrf.mxu2  ;;  %v3686_v17 = vpop.f32.mrf.mxu0 }
 0x4fe   :  { %v3687_v58 = vadd.f32 %v3686_v17, %v9062_v20  ;;  %v3775_v29 = vpop.f32.mrf.mxu1  ;;  %v3863_v27 = vadd.f32 %v3862_v23, %v9077_v39  ;;  %v3963_v51 = vmax.f32 %v3596_v61, 0.0  ;;  %v7432_v61 = vld [vmem:[#allocation14 + $0xd0] sm:$0xf0] }
 0x4ff   :  { %v3776_v13 = vadd.f32 %v3775_v29, %v9066_v34 }
 0x500   :  { %v3968_v41 = vmax.f32 %v3687_v58, 0.0  ;;  %v3966_v56 = vmax.f32 %v3863_v27, 0.0  ;;  %v7438_v27 = vld [vmem:[#allocation14 + $0xc8] sm:$0xf] }
 0x501   :  { %v3969_v53 = vmax.f32 %v3776_v13, 0.0  ;;  %v7909_v13 = vld [vmem:[#allocation14 + $0xcc] sm:$0xf] }
 0x502   :  { %v9221_v14 = vpack.c.bf16 %v3968_v41, %v3964_v37  ;;  %v7440_v37 = vld [vmem:[#allocation14 + $0xd8] sm:$0xf0] }
 0x503   :  { %v3597_v26 = vpop.f32.mrf.mxu3  ;;  %v9224_v18 = vpack.c.bf16 %v3969_v53, %v3965_v32  ;;  %v7443_v32 = vor.u32 %v7909_v13, %v7440_v37  ;;  %v7908_v53 = vld [vmem:[#allocation14 + $0xc4] sm:$0xf] }
 0x504   :  { %v3598_v11 = vadd.f32 %v3597_v26, %v9074_v16 }
 0x505   :  { %v3864_v55 = vpop.f32.mrf.mxu2  ;;  %v3689_v4 = vpop.f32.mrf.mxu0  ;;  %5197 = vmatpush.bf16.msra.mxu2 %v7443_v32 }
 0x506   :  { %v3865_v1 = vadd.f32 %v3864_v55, %v9077_v39  ;;  %v3967_v12 = vmax.f32 %v3598_v11, 0.0  ;;  %v3778_v6 = vpop.f32.mrf.mxu1  ;;  %v3690_v10 = vadd.f32 %v3689_v4, %v9062_v20  ;;  %v7911_v4 = vld [vmem:[#allocation14 + $0xd4] sm:$0xf0] }
 0x508   :  { %v3970_v46 = vmax.f32 %v3865_v1, 0.0  ;;  %4363 = vmatmul.bf16.vlgmr.msrb.gmra.mxu3 %v9088_v35  ;;  %4452 = vmatmul.bf16.vlgmr.msrb.gmra.mxu0 %v9081_v19  ;;  %v9230_v0 = vpack.c.bf16 %v3967_v12, %v3963_v51  ;;  %v3779_v35 = vadd.f32 %v3778_v6, %v9066_v34  ;;  %v3972_v17 = vmax.f32 %v3690_v10, 0.0 }
 0x509   :  { %4541 = vmatmul.bf16.vlgmr.msrb.gmra.mxu1 %v9084_v5  ;;  %v7435_v1 = vor.u32 %v7908_v53, %v7432_v61 }
 0x50a   :  { %4630 = vmatmul.bf16.vlgmr.msrb.gmra.mxu2 %v9092_v42  ;;  %v9234_v59 = vpack.c.bf16 %v3970_v46, %v3966_v56  ;;  %v3973_v58 = vmax.f32 %v3779_v35, 0.0  ;;  %v7439_v56 = vor.u32 %v7911_v4, %v7438_v27 }
 0x50b   :  { %v3600_v57 = vpop.f32.mrf.mxu3  ;;  %5019 = vmatpush.bf16.msra.mxu0 %v7435_v1 }
 0x50c   :  { %v3601_v41 = vadd.f32 %v3600_v57, %v9074_v16  ;;  %5108 = vmatpush.bf16.msra.mxu1 %v7439_v56 }
 0x50d   :  { %v3867_v48 = vpop.f32.mrf.mxu2  ;;  %v3691_v23 = vpop.f32.mrf.mxu0 }
 0x50e   :  { %v3692_v19 = vadd.f32 %v3691_v23, %v9062_v20  ;;  %v3780_v38 = vpop.f32.mrf.mxu1  ;;  %v3868_v11 = vadd.f32 %v3867_v48, %v9077_v39  ;;  %v3971_v33 = vmax.f32 %v3601_v41, 0.0 }
 0x50f   :  { %v3781_v5 = vadd.f32 %v3780_v38, %v9066_v34 }
 0x510   :  { %v3976_v42 = vmax.f32 %v3692_v19, 0.0  ;;  %v3974_v10 = vmax.f32 %v3868_v11, 0.0 }
 0x511   :  { %v3977_v29 = vmax.f32 %v3781_v5, 0.0 }
 0x512   :  { %v9241_v26 = vpack.c.bf16 %v3976_v42, %v3972_v17 }
 0x513   :  { %v3602_v55 = vpop.f32.mrf.mxu3  ;;  %v9244_v51 = vpack.c.bf16 %v3977_v29, %v3973_v58 }
 0x514   :  { %v3603_v12 = vadd.f32 %v3602_v55, %v9074_v16 }
 0x515   :  { %v3869_v6 = vpop.f32.mrf.mxu2  ;;  %v3694_v8 = vpop.f32.mrf.mxu0 }
 0x516   :  { %v3870_v46 = vadd.f32 %v3869_v6, %v9077_v39  ;;  %v3975_v3 = vmax.f32 %v3603_v12, 0.0  ;;  %v3783_v57 = vpop.f32.mrf.mxu1  ;;  %v3695_v38 = vadd.f32 %v3694_v8, %v9062_v20 }
 0x517   :  { %v3784_v17 = vadd.f32 %v3783_v57, %v9066_v34 }
 0x518   :  { %v3978_v48 = vmax.f32 %v3870_v46, 0.0  ;;  %4368 = vmatmul.bf16.gmra.mxu3 %v9110_v44  ;;  %4457 = vmatmul.bf16.gmra.mxu0 %v9101_v62  ;;  %v9250_v35 = vpack.c.bf16 %v3975_v3, %v3971_v33  ;;  %v3980_v29 = vmax.f32 %v3695_v38, 0.0  ;;  %v7414_v33 = vld [vmem:[#allocation14 + $0xa0] sm:$0xf]  ;;  %v7906_v3 = vld [vmem:[#allocation14 + $0xac] sm:$0xf0] }
 0x519   :  { %4546 = vmatmul.bf16.gmra.mxu1 %v9104_v31  ;;  %v3981_v37 = vmax.f32 %v3784_v17, 0.0 }
 0x51a   :  { %4635 = vmatmul.bf16.gmra.mxu2 %v9114_v30  ;;  %v9254_v23 = vpack.c.bf16 %v3978_v48, %v3974_v10  ;;  %v7415_v10 = vor.u32 %v7906_v3, %v7414_v33 }
 0x51b   :  { %v3605_v19 = vpop.f32.mrf.mxu3 }
 0x51c   :  { %v3606_v30 = vadd.f32 %v3605_v19, %v9074_v16  ;;  %4931 = vmatpush.bf16.msra.mxu3 %v7415_v10 }
 0x51d   :  { %v3872_v5 = vpop.f32.mrf.mxu2  ;;  %v3696_v42 = vpop.f32.mrf.mxu0 }
 0x51e   :  { %v3697_v58 = vadd.f32 %v3696_v42, %v9062_v20  ;;  %v3785_v44 = vpop.f32.mrf.mxu1  ;;  %v3873_v32 = vadd.f32 %v3872_v5, %v9077_v39  ;;  %v3979_v4 = vmax.f32 %v3606_v30, 0.0  ;;  %v7416_v30 = vld [vmem:[#allocation14 + $0xb0] sm:$0xf0] }
 0x51f   :  { %v3786_v62 = vadd.f32 %v3785_v44, %v9066_v34 }
 0x520   :  { %v3984_v13 = vmax.f32 %v3697_v58, 0.0  ;;  %v3982_v56 = vmax.f32 %v3873_v32, 0.0  ;;  %v7422_v32 = vld [vmem:[#allocation14 + $0xa8] sm:$0xf] }
 0x521   :  { %v3985_v31 = vmax.f32 %v3786_v62, 0.0  ;;  %v7905_v62 = vld [vmem:[#allocation14 + $0xac] sm:$0xf] }
 0x522   :  { %v9261_v41 = vpack.c.bf16 %v3984_v13, %v3980_v29  ;;  %v7424_v29 = vld [vmem:[#allocation14 + $0xb8] sm:$0xf0] }
 0x523   :  { %v3607_v53 = vpop.f32.mrf.mxu3  ;;  %v9264_v61 = vpack.c.bf16 %v3985_v31, %v3981_v37  ;;  %v7427_v37 = vor.u32 %v7905_v62, %v7424_v29  ;;  %v7904_v31 = vld [vmem:[#allocation14 + $0xa4] sm:$0xf] }
 0x524   :  { %v3608_v27 = vadd.f32 %v3607_v53, %v9074_v16 }
 0x525   :  { %v3874_v11 = vpop.f32.mrf.mxu2  ;;  %v3699_v1 = vpop.f32.mrf.mxu0  ;;  %5198 = vmatpush.bf16.msra.mxu2 %v7427_v37 }
 0x526   :  { %v3875_v55 = vadd.f32 %v3874_v11, %v9077_v39  ;;  %v3983_v12 = vmax.f32 %v3608_v27, 0.0  ;;  %v3788_v6 = vpop.f32.mrf.mxu1  ;;  %v3700_v19 = vadd.f32 %v3699_v1, %v9062_v20  ;;  %v7907_v1 = vld [vmem:[#allocation14 + $0xb4] sm:$0xf0] }
 0x528   :  { %v3986_v46 = vmax.f32 %v3875_v55, 0.0  ;;  %4373 = vmatmul.bf16.gmra.mxu3 %v9130_v7  ;;  %4462 = vmatmul.bf16.gmra.mxu0 %v9121_v21  ;;  %v9270_v8 = vpack.c.bf16 %v3983_v12, %v3979_v4  ;;  %v3789_v7 = vadd.f32 %v3788_v6, %v9066_v34  ;;  %v3988_v42 = vmax.f32 %v3700_v19, 0.0 }
 0x529   :  { %4551 = vmatmul.bf16.gmra.mxu1 %v9124_v40  ;;  %v7419_v55 = vor.u32 %v7904_v31, %v7416_v30 }
 0x52a   :  { %4640 = vmatmul.bf16.gmra.mxu2 %v9134_v49  ;;  %v9274_v57 = vpack.c.bf16 %v3986_v46, %v3982_v56  ;;  %v3989_v58 = vmax.f32 %v3789_v7, 0.0  ;;  %v7423_v56 = vor.u32 %v7907_v1, %v7422_v32 }
 0x52b   :  { %v3610_v48 = vpop.f32.mrf.mxu3  ;;  %5020 = vmatpush.bf16.msra.mxu0 %v7419_v55 }
 0x52c   :  { %v3611_v13 = vadd.f32 %v3610_v48, %v9074_v16  ;;  %5109 = vmatpush.bf16.msra.mxu1 %v7423_v56 }
 0x52d   :  { %v3877_v38 = vpop.f32.mrf.mxu2  ;;  %v3701_v5 = vpop.f32.mrf.mxu0 }
 0x52e   :  { %v3702_v21 = vadd.f32 %v3701_v5, %v9062_v20  ;;  %v3790_v17 = vpop.f32.mrf.mxu1  ;;  %v3878_v27 = vadd.f32 %v3877_v38, %v9077_v39  ;;  %v3987_v3 = vmax.f32 %v3611_v13, 0.0 }
 0x52f   :  { %v3791_v40 = vadd.f32 %v3790_v17, %v9066_v34 }
 0x530   :  { %v3992_v49 = vmax.f32 %v3702_v21, 0.0  ;;  %v3990_v19 = vmax.f32 %v3878_v27, 0.0 }
 0x531   :  { %v3993_v44 = vmax.f32 %v3791_v40, 0.0 }
 0x532   :  { %v9281_v53 = vpack.c.bf16 %v3992_v49, %v3988_v42 }
 0x533   :  { %v3612_v11 = vpop.f32.mrf.mxu3  ;;  %v9284_v4 = vpack.c.bf16 %v3993_v44, %v3989_v58 }
 0x534   :  { %v3613_v12 = vadd.f32 %v3612_v11, %v9074_v16 }
 0x535   :  { %v3879_v6 = vpop.f32.mrf.mxu2  ;;  %v3704_v33 = vpop.f32.mrf.mxu0 }
 0x536   :  { %v3880_v46 = vadd.f32 %v3879_v6, %v9077_v39  ;;  %v3991_v10 = vmax.f32 %v3613_v12, 0.0  ;;  %v3793_v48 = vpop.f32.mrf.mxu1  ;;  %v3705_v17 = vadd.f32 %v3704_v33, %v9062_v20 }
 0x537   :  { %v3794_v42 = vadd.f32 %v3793_v48, %v9066_v34 }
 0x538   :  { %v3994_v38 = vmax.f32 %v3880_v46, 0.0  ;;  %4378 = vmatmul.bf16.gmra.mxu3 %v9150_v47  ;;  %4467 = vmatmul.bf16.gmra.mxu0 %v9141_v22  ;;  %v9290_v7 = vpack.c.bf16 %v3991_v10, %v3987_v3  ;;  %v3996_v44 = vmax.f32 %v3705_v17, 0.0  ;;  %v7398_v3 = vld [vmem:[#allocation14 + $0x80] sm:$0xf]  ;;  %v7902_v10 = vld [vmem:[#allocation14 + $0x8c] sm:$0xf0] }
 0x539   :  { %4556 = vmatmul.bf16.gmra.mxu1 %v9144_v63  ;;  %v3997_v29 = vmax.f32 %v3794_v42, 0.0 }
 0x53a   :  { %4645 = vmatmul.bf16.gmra.mxu2 %v9154_v9  ;;  %v9294_v5 = vpack.c.bf16 %v3994_v38, %v3990_v19  ;;  %v7399_v19 = vor.u32 %v7902_v10, %v7398_v3 }
 0x53b   :  { %v3615_v21 = vpop.f32.mrf.mxu3 }
 0x53c   :  { %v3616_v9 = vadd.f32 %v3615_v21, %v9074_v16  ;;  %4932 = vmatpush.bf16.msra.mxu3 %v7399_v19 }
 0x53d   :  { %v3882_v40 = vpop.f32.mrf.mxu2  ;;  %v3706_v49 = vpop.f32.mrf.mxu0 }
 0x53e   :  { %v3707_v58 = vadd.f32 %v3706_v49, %v9062_v20  ;;  %v3795_v47 = vpop.f32.mrf.mxu1  ;;  %v3883_v37 = vadd.f32 %v3882_v40, %v9077_v39  ;;  %v3995_v1 = vmax.f32 %v3616_v9, 0.0  ;;  %v7400_v9 = vld [vmem:[#allocation14 + $0x90] sm:$0xf0] }
 0x53f   :  { %v3796_v22 = vadd.f32 %v3795_v47, %v9066_v34 }
 0x540   :  { %v4000_v62 = vmax.f32 %v3707_v58, 0.0  ;;  %v3998_v56 = vmax.f32 %v3883_v37, 0.0  ;;  %v7406_v37 = vld [vmem:[#allocation14 + $0x88] sm:$0xf] }
 0x541   :  { %v4001_v63 = vmax.f32 %v3796_v22, 0.0  ;;  %v7901_v22 = vld [vmem:[#allocation14 + $0x8c] sm:$0xf] }
 0x542   :  { %v9301_v13 = vpack.c.bf16 %v4000_v62, %v3996_v44  ;;  %v7408_v44 = vld [vmem:[#allocation14 + $0x98] sm:$0xf0] }
 0x543   :  { %v3617_v31 = vpop.f32.mrf.mxu3  ;;  %v9304_v30 = vpack.c.bf16 %v4001_v63, %v3997_v29  ;;  %v7411_v29 = vor.u32 %v7901_v22, %v7408_v44  ;;  %v7900_v63 = vld [vmem:[#allocation14 + $0x84] sm:$0xf] }
 0x544   :  { %v3618_v32 = vadd.f32 %v3617_v31, %v9074_v16 }
 0x545   :  { %v3884_v27 = vpop.f32.mrf.mxu2  ;;  %v3709_v55 = vpop.f32.mrf.mxu0  ;;  %5199 = vmatpush.bf16.msra.mxu2 %v7411_v29 }
 0x546   :  { %v3885_v11 = vadd.f32 %v3884_v27, %v9077_v39  ;;  %v3999_v12 = vmax.f32 %v3618_v32, 0.0  ;;  %v3798_v6 = vpop.f32.mrf.mxu1  ;;  %v3710_v21 = vadd.f32 %v3709_v55, %v9062_v20  ;;  %v7903_v55 = vld [vmem:[#allocation14 + $0x94] sm:$0xf0] }
 0x548   :  { %v4002_v46 = vmax.f32 %v3885_v11, 0.0  ;;  %4383 = vmatmul.bf16.gmra.mxu3 %v9170_v2  ;;  %4472 = vmatmul.bf16.gmra.mxu0 %v9161_v28  ;;  %v9310_v33 = vpack.c.bf16 %v3999_v12, %v3995_v1  ;;  %v3799_v2 = vadd.f32 %v3798_v6, %v9066_v34  ;;  %v4004_v49 = vmax.f32 %v3710_v21, 0.0 }
 0x549   :  { %4561 = vmatmul.bf16.gmra.mxu1 %v9164_v52  ;;  %v7403_v11 = vor.u32 %v7900_v63, %v7400_v9 }
 0x54a   :  { %4650 = vmatmul.bf16.gmra.mxu2 %v9174_v15  ;;  %v9314_v48 = vpack.c.bf16 %v4002_v46, %v3998_v56  ;;  %v4005_v58 = vmax.f32 %v3799_v2, 0.0  ;;  %v7407_v56 = vor.u32 %v7903_v55, %v7406_v37 }
 0x54b   :  { %v3620_v38 = vpop.f32.mrf.mxu3  ;;  %5021 = vmatpush.bf16.msra.mxu0 %v7403_v11 }
 0x54c   :  { %v3621_v62 = vadd.f32 %v3620_v38, %v9074_v16  ;;  %5110 = vmatpush.bf16.msra.mxu1 %v7407_v56 }
 0x54d   :  { %v3887_v17 = vpop.f32.mrf.mxu2  ;;  %v3711_v40 = vpop.f32.mrf.mxu0 }
 0x54e   :  { %v3712_v28 = vadd.f32 %v3711_v40, %v9062_v20  ;;  %v3800_v42 = vpop.f32.mrf.mxu1  ;;  %v3888_v32 = vadd.f32 %v3887_v17, %v9077_v39  ;;  %v4003_v10 = vmax.f32 %v3621_v62, 0.0 }
 0x54f   :  { %v3801_v52 = vadd.f32 %v3800_v42, %v9066_v34 }
 0x550   :  { %v4008_v15 = vmax.f32 %v3712_v28, 0.0  ;;  %v4006_v21 = vmax.f32 %v3888_v32, 0.0 }
 0x551   :  { %v4009_v47 = vmax.f32 %v3801_v52, 0.0 }
 0x552   :  { %v9321_v31 = vpack.c.bf16 %v4008_v15, %v4004_v49 }
 0x553   :  { %v3622_v27 = vpop.f32.mrf.mxu3  ;;  %v9324_v1 = vpack.c.bf16 %v4009_v47, %v4005_v58 }
 0x554   :  { %v3623_v12 = vadd.f32 %v3622_v27, %v9074_v16 }
 0x555   :  { %v3889_v6 = vpop.f32.mrf.mxu2  ;;  %v3714_v3 = vpop.f32.mrf.mxu0 }
 0x556   :  { %v3890_v46 = vadd.f32 %v3889_v6, %v9077_v39  ;;  %v4007_v19 = vmax.f32 %v3623_v12, 0.0  ;;  %v3803_v38 = vpop.f32.mrf.mxu1  ;;  %v3715_v42 = vadd.f32 %v3714_v3, %v9062_v20 }
 0x557   :  { %v3804_v49 = vadd.f32 %v3803_v38, %v9066_v34 }
 0x558   :  { %v4010_v17 = vmax.f32 %v3890_v46, 0.0  ;;  %4388 = vmatmul.bf16.gmra.mxu3 %v9190_v36  ;;  %4477 = vmatmul.bf16.gmra.mxu0 %v9181_v54  ;;  %v9330_v2 = vpack.c.bf16 %v4007_v19, %v4003_v10  ;;  %v4012_v47 = vmax.f32 %v3715_v42, 0.0  ;;  %v7382_v10 = vld [vmem:[#allocation14 + $0x60] sm:$0xf]  ;;  %v7898_v19 = vld [vmem:[#allocation14 + $0x6c] sm:$0xf0] }
 0x559   :  { %4566 = vmatmul.bf16.gmra.mxu1 %v9184_v60  ;;  %v4013_v44 = vmax.f32 %v3804_v49, 0.0 }
 0x55a   :  { %4655 = vmatmul.bf16.gmra.mxu2 %v9194_v25  ;;  %v9334_v40 = vpack.c.bf16 %v4010_v17, %v4006_v21  ;;  %v7383_v21 = vor.u32 %v7898_v19, %v7382_v10 }
 0x55b   :  { %v3625_v28 = vpop.f32.mrf.mxu3 }
 0x55c   :  { %v3626_v25 = vadd.f32 %v3625_v28, %v9074_v16  ;;  %4933 = vmatpush.bf16.msra.mxu3 %v7383_v21 }
 0x55d   :  { %v3892_v52 = vpop.f32.mrf.mxu2  ;;  %v3716_v15 = vpop.f32.mrf.mxu0 }
 0x55e   :  { %v3717_v58 = vadd.f32 %v3716_v15, %v9062_v20  ;;  %v3805_v36 = vpop.f32.mrf.mxu1  ;;  %v3893_v29 = vadd.f32 %v3892_v52, %v9077_v39  ;;  %v4011_v55 = vmax.f32 %v3626_v25, 0.0 }
 0x55f   :  { %v3806_v54 = vadd.f32 %v3805_v36, %v9066_v34  ;;  %v7392_v36 = vld [vmem:[#allocation14 + $0x78] sm:$0xf0] }
 0x560   :  { %v4016_v22 = vmax.f32 %v3717_v58, 0.0  ;;  %v4014_v56 = vmax.f32 %v3893_v29, 0.0  ;;  %v7897_v58 = vld [vmem:[#allocation14 + $0x6c] sm:$0xf] }
 0x561   :  { %v4017_v60 = vmax.f32 %v3806_v54, 0.0 }
 0x562   :  { %v9341_v62 = vpack.c.bf16 %v4016_v22, %v4012_v47  ;;  %v7395_v22 = vor.u32 %v7897_v58, %v7392_v36 }
 0x563   :  { %v3627_v63 = vpop.f32.mrf.mxu3  ;;  %v9344_v9 = vpack.c.bf16 %v4017_v60, %v4013_v44  ;;  %v7896_v44 = vld [vmem:[#allocation14 + $0x64] sm:$0xf]  ;;  %v7384_v60 = vld [vmem:[#allocation14 + $0x70] sm:$0xf0] }
 0x564   :  { %v3628_v37 = vadd.f32 %v3627_v63, %v9074_v16  ;;  %v7387_v29 = vor.u32 %v7896_v44, %v7384_v60  ;;  %v7390_v63 = vld [vmem:[#allocation14 + $0x68] sm:$0xf]  ;;  %5200 = vmatpush.bf16.msra.mxu2 %v7395_v22 }
 0x565   :  { %v3894_v32 = vpop.f32.mrf.mxu2  ;;  %v3719_v11 = vpop.f32.mrf.mxu0 }
 0x566   :  { %v3895_v27 = vadd.f32 %v3894_v32, %v9077_v39  ;;  %v4015_v12 = vmax.f32 %v3628_v37, 0.0  ;;  %v3808_v6 = vpop.f32.mrf.mxu1  ;;  %v3720_v28 = vadd.f32 %v3719_v11, %v9062_v20  ;;  %v7899_v37 = vld [vmem:[#allocation14 + $0x74] sm:$0xf0]  ;;  %5022 = vmatpush.bf16.msra.mxu0 %v7387_v29 }
 0x568   :  { %v4018_v46 = vmax.f32 %v3895_v27, 0.0  ;;  %4393 = vmatmul.bf16.gmra.mxu3 %v9210_v24  ;;  %4482 = vmatmul.bf16.gmra.mxu0 %v9201_v50  ;;  %v9350_v3 = vpack.c.bf16 %v4015_v12, %v4011_v55  ;;  %v3809_v24 = vadd.f32 %v3808_v6, %v9066_v34  ;;  %v4020_v15 = vmax.f32 %v3720_v28, 0.0 }
 0x569   :  { %4571 = vmatmul.bf16.gmra.mxu1 %v9204_v43  ;;  %v7391_v55 = vor.u32 %v7899_v37, %v7390_v63 }
 0x56a   :  { %4660 = vmatmul.bf16.gmra.mxu2 %v9214_v45  ;;  %v9354_v38 = vpack.c.bf16 %v4018_v46, %v4014_v56  ;;  %v4021_v54 = vmax.f32 %v3809_v24, 0.0 }
 0x56b   :  { %v3630_v17 = vpop.f32.mrf.mxu3  ;;  %5111 = vmatpush.bf16.msra.mxu1 %v7391_v55 }
 0x56c   :  { %v3631_v25 = vadd.f32 %v3630_v17, %v9074_v16 }
 0x56d   :  { %v3897_v42 = vpop.f32.mrf.mxu2  ;;  %v3721_v52 = vpop.f32.mrf.mxu0 }
 0x56e   :  { %v3722_v50 = vadd.f32 %v3721_v52, %v9062_v20  ;;  %v3810_v49 = vpop.f32.mrf.mxu1  ;;  %v3898_v27 = vadd.f32 %v3897_v42, %v9077_v39  ;;  %v4019_v19 = vmax.f32 %v3631_v25, 0.0 }
 0x56f   :  { %v3811_v43 = vadd.f32 %v3810_v49, %v9066_v34 }
 0x570   :  { %v4024_v45 = vmax.f32 %v3722_v50, 0.0  ;;  %v4022_v28 = vmax.f32 %v3898_v27, 0.0 }
 0x571   :  { %v4025_v47 = vmax.f32 %v3811_v43, 0.0 }
 0x572   :  { %v9361_v32 = vpack.c.bf16 %v4024_v45, %v4020_v15 }
 0x573   :  { %v3632_v11 = vpop.f32.mrf.mxu3  ;;  %v9364_v12 = vpack.c.bf16 %v4025_v47, %v4021_v54 }
 0x574   :  { %v3633_v6 = vadd.f32 %v3632_v11, %v9074_v16 }
 0x575   :  { %v3899_v56 = vpop.f32.mrf.mxu2  ;;  %v3724_v10 = vpop.f32.mrf.mxu0 }
 0x576   :  { %v3900_v46 = vadd.f32 %v3899_v56, %v9077_v39  ;;  %v4023_v21 = vmax.f32 %v3633_v6, 0.0  ;;  %v3813_v17 = vpop.f32.mrf.mxu1  ;;  %v3725_v49 = vadd.f32 %v3724_v10, %v9062_v20 }
 0x577   :  { %v3814_v15 = vadd.f32 %v3813_v17, %v9066_v34 }
 0x578   :  { %v4026_v24 = vmax.f32 %v3900_v46, 0.0  ;;  %4398 = vmatmul.bf16.gmra.mxu3 %v9230_v0  ;;  %4487 = vmatmul.bf16.gmra.mxu0 %v9221_v14  ;;  %v9370_v42 = vpack.c.bf16 %v4023_v21, %v4019_v19  ;;  %v4028_v36 = vmax.f32 %v3725_v49, 0.0  ;;  %v7366_v46 = vld [vmem:[#allocation14 + $0x40] sm:$0xf]  ;;  %v7376_v49 = vld [vmem:[#allocation14 + $0x58] sm:$0xf0] }
 0x579   :  { %4576 = vmatmul.bf16.gmra.mxu1 %v9224_v18  ;;  %v4029_v47 = vmax.f32 %v3814_v15, 0.0 }
 0x57a   :  { %4665 = vmatmul.bf16.gmra.mxu2 %v9234_v59  ;;  %v9374_v52 = vpack.c.bf16 %v4026_v24, %v4022_v28 }
 0x57b   :  { %v3635_v50 = vpop.f32.mrf.mxu3 }
 0x57c   :  { %v3636_v59 = vadd.f32 %v3635_v50, %v9074_v16 }
 0x57d   :  { %v3902_v43 = vpop.f32.mrf.mxu2  ;;  %v3726_v45 = vpop.f32.mrf.mxu0 }
 0x57e   :  { %v3727_v58 = vadd.f32 %v3726_v45, %v9062_v20  ;;  %v3815_v0 = vpop.f32.mrf.mxu1  ;;  %v3903_v44 = vadd.f32 %v3902_v43, %v9077_v39  ;;  %v7892_v43 = vld [vmem:[#allocation14 + $0x44] sm:$0xf]  ;;  %v7374_v45 = vld [vmem:[#allocation14 + $0x48] sm:$0xf] }
 0x57f   :  { %v3816_v14 = vadd.f32 %v3815_v0, %v9066_v34  ;;  %v4027_v34 = vmax.f32 %v3636_v59, 0.0 }
 0x580   :  { %v4032_v54 = vmax.f32 %v3727_v58, 0.0  ;;  %v4030_v55 = vmax.f32 %v3903_v44, 0.0 }
 0x581   :  { %v4033_v18 = vmax.f32 %v3816_v14, 0.0 }
 0x582   :  { %v9381_v22 = vpack.c.bf16 %v4032_v54, %v4028_v36 }
 0x583   :  { %v3637_v60 = vpop.f32.mrf.mxu3  ;;  %v9384_v25 = vpack.c.bf16 %v4033_v18, %v4029_v47 }
 0x584   :  { %v3638_v29 = vadd.f32 %v3637_v60, %v9074_v16 }
 0x585   :  { %v3904_v63 = vpop.f32.mrf.mxu2  ;;  %v4453_v37 = vpop.f32.mrf.mxu0 }
 0x586   :  { %v3905_v20 = vadd.f32 %v3904_v63, %v9077_v39  ;;  %v4031_v27 = vmax.f32 %v3638_v29, 0.0  ;;  %v4542_v11 = vpop.f32.mrf.mxu1  ;;  %v7894_v39 = vld [vmem:[#allocation14 + $0x4c] sm:$0xf0] }
 0x587   :  { %v7367_v19 = vor.u32 %v7894_v39, %v7366_v46 }
 0x588   :  { %v4034_v6 = vmax.f32 %v3905_v20, 0.0  ;;  %4403 = vmatmul.bf16.gmra.mxu3 %v9250_v35  ;;  %4492 = vmatmul.bf16.gmra.mxu0 %v9241_v26  ;;  %v9390_v56 = vpack.c.bf16 %v4031_v27, %v4027_v34  ;;  %v7893_v26 = vld [vmem:[#allocation14 + $0x4c] sm:$0xf] }
 0x589   :  { %4581 = vmatmul.bf16.gmra.mxu1 %v9244_v51  ;;  %4934 = vmatpush.bf16.msra.mxu3 %v7367_v19  ;;  %v7379_v15 = vor.u32 %v7893_v26, %v7376_v49  ;;  %v7368_v51 = vld [vmem:[#allocation14 + $0x50] sm:$0xf0]  ;;  %v7890_v19 = vld [vmem:[#allocation14 + $0x2c] sm:$0xf0] }
 0x58a   :  { %4670 = vmatmul.bf16.gmra.mxu2 %v9254_v23  ;;  %v9394_v16 = vpack.c.bf16 %v4034_v6, %v4030_v55  ;;  %v7895_v23 = vld [vmem:[#allocation14 + $0x54] sm:$0xf0]  ;;  %v7371_v58 = vor.u32 %v7892_v43, %v7368_v51  ;;  %v7360_v43 = vld [vmem:[#allocation14 + $0x38] sm:$0xf0]  ;;  %v7358_v51 = vld [vmem:[#allocation14 + $0x28] sm:$0xf] }
 0x58b   :  { %v4364_v10 = vpop.f32.mrf.mxu3  ;;  %v7375_v0 = vor.u32 %v7895_v23, %v7374_v45  ;;  %5201 = vmatpush.bf16.msra.mxu2 %v7379_v15 }
 0x58c   :  { %v4454_v21 = vadd.f32 %v4453_v37, %v4364_v10  ;;  %5023 = vmatpush.bf16.msra.mxu0 %v7371_v58 }
 0x58d   :  { %v4631_v17 = vpop.f32.mrf.mxu2  ;;  %v4455_v28 = vpop.f32.mrf.mxu0  ;;  %5112 = vmatpush.bf16.msra.mxu1 %v7375_v0 }
 0x58e   :  { %v4543_v24 = vadd.f32 %v4542_v11, %v4454_v21  ;;  %v4544_v35 = vpop.f32.mrf.mxu1 }
 0x590   :  { %v4632_v50 = vadd.f32 %v4631_v17, %v4543_v24 }
 0x593   :  { %v4366_v14 = vpop.f32.mrf.mxu3 }
 0x594   :  { %v4456_v36 = vadd.f32 %v4455_v28, %v4366_v14 }
 0x595   :  { %v4633_v54 = vpop.f32.mrf.mxu2  ;;  %v4458_v47 = vpop.f32.mrf.mxu0 }
 0x596   :  { %v4545_v18 = vadd.f32 %v4544_v35, %v4456_v36  ;;  %v4547_v59 = vpop.f32.mrf.mxu1 }
 0x598   :  { %v4634_v44 = vadd.f32 %v4633_v54, %v4545_v18  ;;  %4408 = vmatmul.bf16.gmra.mxu3 %v9270_v8  ;;  %4497 = vmatmul.bf16.gmra.mxu0 %v9261_v41 }
 0x599   :  { %4586 = vmatmul.bf16.gmra.mxu1 %v9264_v61 }
 0x59a   :  { %4675 = vmatmul.bf16.gmra.mxu2 %v9274_v57  ;;  %v9400_v60 = vpack.c.bf16 %v4634_v44, %v4632_v50  ;;  %v7350_v57 = vld [vmem:[#allocation14 + $0x20] sm:$0xf] }
 0x59b   :  { %v4369_v29 = vpop.f32.mrf.mxu3  ;;  %v7351_v17 = vor.u32 %v7890_v19, %v7350_v57 }
 0x59c   :  { %v4459_v63 = vadd.f32 %v4458_v47, %v4369_v29 }
 0x59d   :  { %v4636_v20 = vpop.f32.mrf.mxu2  ;;  %v4460_v37 = vpop.f32.mrf.mxu0  ;;  %4935 = vmatpush.bf16.msra.mxu3 %v7351_v17 }
 0x59e   :  { %v4548_v34 = vadd.f32 %v4547_v59, %v4459_v63  ;;  %v4549_v27 = vpop.f32.mrf.mxu1 }
 0x5a0   :  { %v4637_v11 = vadd.f32 %v4636_v20, %v4548_v34 }
 0x5a3   :  { %v4371_v55 = vpop.f32.mrf.mxu3 }
 0x5a4   :  { %v4461_v6 = vadd.f32 %v4460_v37, %v4371_v55 }
 0x5a5   :  { %v4638_v46 = vpop.f32.mrf.mxu2  ;;  %v4463_v39 = vpop.f32.mrf.mxu0 }
 0x5a6   :  { %v4550_v8 = vadd.f32 %v4549_v27, %v4461_v6  ;;  %v4552_v10 = vpop.f32.mrf.mxu1 }
 0x5a8   :  { %v4639_v41 = vadd.f32 %v4638_v46, %v4550_v8  ;;  %4413 = vmatmul.bf16.gmra.mxu3 %v9290_v7  ;;  %4502 = vmatmul.bf16.gmra.mxu0 %v9281_v53  ;;  %v7889_v7 = vld [vmem:[#allocation14 + $0x2c] sm:$0xf]  ;;  %v7888_v53 = vld [vmem:[#allocation14 + $0x24] sm:$0xf]  ;;  %v7886_v8 = vld [vmem:[#allocation14 + $0xc] sm:$0xf0] }
 0x5a9   :  { %4591 = vmatmul.bf16.gmra.mxu1 %v9284_v4  ;;  %v7363_v15 = vor.u32 %v7889_v7, %v7360_v43  ;;  %v7352_v4 = vld [vmem:[#allocation14 + $0x30] sm:$0xf0] }
 0x5aa   :  { %4680 = vmatmul.bf16.gmra.mxu2 %v9294_v5  ;;  %v9406_v61 = vpack.c.bf16 %v4639_v41, %v4637_v11  ;;  %v7891_v5 = vld [vmem:[#allocation14 + $0x34] sm:$0xf0]  ;;  %v7355_v45 = vor.u32 %v7888_v53, %v7352_v4 }
 0x5ab   :  { %v4374_v21 = vpop.f32.mrf.mxu3  ;;  %v7359_v23 = vor.u32 %v7891_v5, %v7358_v51  ;;  %5202 = vmatpush.bf16.msra.mxu2 %v7363_v15 }
 0x5ac   :  { %v4464_v28 = vadd.f32 %v4463_v39, %v4374_v21  ;;  %5024 = vmatpush.bf16.msra.mxu0 %v7355_v45 }
 0x5ad   :  { %v4641_v24 = vpop.f32.mrf.mxu2  ;;  %v4465_v35 = vpop.f32.mrf.mxu0  ;;  %5113 = vmatpush.bf16.msra.mxu1 %v7359_v23 }
 0x5ae   :  { %v4553_v50 = vadd.f32 %v4552_v10, %v4464_v28  ;;  %v4554_v26 = vpop.f32.mrf.mxu1 }
 0x5b0   :  { %v4642_v49 = vadd.f32 %v4641_v24, %v4553_v50 }
 0x5b3   :  { %v4376_v58 = vpop.f32.mrf.mxu3 }
 0x5b4   :  { %v4466_v0 = vadd.f32 %v4465_v35, %v4376_v58  ;;  %v7344_v35 = vld [vmem:[#allocation14 + $0x18] sm:$0xf0] }
 0x5b5   :  { %v4643_v14 = vpop.f32.mrf.mxu2  ;;  %v4468_v36 = vpop.f32.mrf.mxu0 }
 0x5b6   :  { %v4555_v54 = vadd.f32 %v4554_v26, %v4466_v0  ;;  %v4557_v47 = vpop.f32.mrf.mxu1  ;;  %v7342_v26 = vld [vmem:[#allocation14 + $0x8] sm:$0xf] }
 0x5b8   :  { %v4644_v18 = vadd.f32 %v4643_v14, %v4555_v54  ;;  %4418 = vmatmul.bf16.gmra.mxu3 %v9310_v33  ;;  %4507 = vmatmul.bf16.gmra.mxu0 %v9301_v13 }
 0x5b9   :  { %4596 = vmatmul.bf16.gmra.mxu1 %v9304_v30 }
 0x5ba   :  { %4685 = vmatmul.bf16.gmra.mxu2 %v9314_v48  ;;  %v9412_v59 = vpack.c.bf16 %v4644_v18, %v4642_v49  ;;  %v7334_v48 = vld [vmem:[#allocation14] sm:$0xf] }
 0x5bb   :  { %v4379_v44 = vpop.f32.mrf.mxu3  ;;  %v7335_v41 = vor.u32 %v7886_v8, %v7334_v48 }
 0x5bc   :  { %v4469_v29 = vadd.f32 %v4468_v36, %v4379_v44 }
 0x5bd   :  { %v4646_v63 = vpop.f32.mrf.mxu2  ;;  %v4470_v20 = vpop.f32.mrf.mxu0  ;;  %4936 = vmatpush.bf16.msra.mxu3 %v7335_v41 }
 0x5be   :  { %v4558_v37 = vadd.f32 %v4557_v47, %v4469_v29  ;;  %v4559_v34 = vpop.f32.mrf.mxu1 }
 0x5c0   :  { %v4647_v27 = vadd.f32 %v4646_v63, %v4558_v37 }
 0x5c3   :  { %v4381_v11 = vpop.f32.mrf.mxu3 }
 0x5c4   :  { %v4471_v55 = vadd.f32 %v4470_v20, %v4381_v11 }
 0x5c5   :  { %v4648_v6 = vpop.f32.mrf.mxu2  ;;  %v4473_v46 = vpop.f32.mrf.mxu0 }
 0x5c6   :  { %v4560_v33 = vadd.f32 %v4559_v34, %v4471_v55  ;;  %v4562_v39 = vpop.f32.mrf.mxu1 }
 0x5c8   :  { %v4649_v13 = vadd.f32 %v4648_v6, %v4560_v33  ;;  %4423 = vmatmul.bf16.gmra.mxu3 %v9330_v2  ;;  %4512 = vmatmul.bf16.gmra.mxu0 %v9321_v31  ;;  %v7885_v2 = vld [vmem:[#allocation14 + $0xc] sm:$0xf]  ;;  %v7884_v31 = vld [vmem:[#allocation14 + $0x4] sm:$0xf] }
 0x5c9   :  { %4601 = vmatmul.bf16.gmra.mxu1 %v9324_v1  ;;  %v7347_v50 = vor.u32 %v7885_v2, %v7344_v35  ;;  %v7336_v1 = vld [vmem:[#allocation14 + $0x10] sm:$0xf0] }
 0x5ca   :  { %4690 = vmatmul.bf16.gmra.mxu2 %v9334_v40  ;;  %v9418_v30 = vpack.c.bf16 %v4649_v13, %v4647_v27  ;;  %v7887_v40 = vld [vmem:[#allocation14 + $0x14] sm:$0xf0]  ;;  %v7339_v49 = vor.u32 %v7884_v31, %v7336_v1 }
 0x5cb   :  { %v4384_v10 = vpop.f32.mrf.mxu3  ;;  %v7343_v7 = vor.u32 %v7887_v40, %v7342_v26  ;;  %5203 = vmatpush.bf16.msra.mxu2 %v7347_v50  ;;  %v7931_v13 = vld [vmem:[#allocation16 + $0x78] sm:$0xff] }
 0x5cc   :  { %v4474_v57 = vadd.f32 %v4473_v46, %v4384_v10  ;;  %5025 = vmatpush.bf16.msra.mxu0 %v7339_v49 }
 0x5cd   :  { %v4651_v19 = vpop.f32.mrf.mxu2  ;;  %v4475_v21 = vpop.f32.mrf.mxu0  ;;  %5114 = vmatpush.bf16.msra.mxu1 %v7343_v7 }
 0x5ce   :  { %v4563_v17 = vadd.f32 %v4562_v39, %v4474_v57  ;;  %v4564_v28 = vpop.f32.mrf.mxu1  ;;  %v7947_v39 = vld [vmem:[#allocation16 + $0xf8] sm:$0xff] }
 0x5cf   :  { %6004 = vmatpush.bf16.msrb.mxu2 %v7947_v39  ;;  %v7921_v39 = vld [vmem:[#allocation16 + $0x28] sm:$0xff] }
 0x5d0   :  { %v4652_v24 = vadd.f32 %v4651_v19, %v4563_v17  ;;  %5826 = vmatpush.bf16.msrb.mxu0 %v7931_v13 }
 0x5d3   :  { %v4386_v43 = vpop.f32.mrf.mxu3 }
 0x5d4   :  { %v4476_v53 = vadd.f32 %v4475_v21, %v4386_v43 }
 0x5d5   :  { %v4653_v15 = vpop.f32.mrf.mxu2  ;;  %v4478_v4 = vpop.f32.mrf.mxu0 }
 0x5d6   :  { %v4565_v51 = vadd.f32 %v4564_v28, %v4476_v53  ;;  %v4567_v5 = vpop.f32.mrf.mxu1 }
 0x5d8   :  { %v4654_v45 = vadd.f32 %v4653_v15, %v4565_v51  ;;  %4428 = vmatmul.bf16.gmra.mxu3 %v9350_v3  ;;  %4517 = vmatmul.bf16.gmra.mxu0 %v9341_v62 }
 0x5d9   :  { %4606 = vmatmul.bf16.gmra.mxu1 %v9344_v9 }
 0x5da   :  { %4695 = vmatmul.bf16.gmra.mxu2 %v9354_v38  ;;  %v9424_v23 = vpack.c.bf16 %v4654_v45, %v4652_v24  ;;  %v7923_v38 = vld [vmem:[#allocation16 + $0x38] sm:$0xff]  ;;  %v7930_v45 = vld [vmem:[#allocation16 + $0x70] sm:$0xff] }
 0x5db   :  { %v4389_v58 = vpop.f32.mrf.mxu3  ;;  %5737 = vmatpush.bf16.msrb.mxu3 %v7923_v38  ;;  %5827 = vmatpush.bf16.msrb.mxu0 %v7930_v45 }
 0x5dc   :  { %v4479_v0 = vadd.f32 %v4478_v4, %v4389_v58  ;;  %v7938_v58 = vld [vmem:[#allocation16 + $0xb0] sm:$0xff] }
 0x5dd   :  { %v4656_v14 = vpop.f32.mrf.mxu2  ;;  %v4480_v36 = vpop.f32.mrf.mxu0 }
 0x5de   :  { %v4568_v54 = vadd.f32 %v4567_v5, %v4479_v0  ;;  %v4569_v47 = vpop.f32.mrf.mxu1  ;;  %v7946_v5 = vld [vmem:[#allocation16 + $0xf0] sm:$0xff] }
 0x5df   :  { %6005 = vmatpush.bf16.msrb.mxu2 %v7946_v5  ;;  %v7920_v5 = vld [vmem:[#allocation16 + $0x20] sm:$0xff] }
 0x5e0   :  { %v4657_v18 = vadd.f32 %v4656_v14, %v4568_v54 }
 0x5e3   :  { %v4391_v44 = vpop.f32.mrf.mxu3 }
 0x5e4   :  { %v4481_v29 = vadd.f32 %v4480_v36, %v4391_v44 }
 0x5e5   :  { %v4658_v63 = vpop.f32.mrf.mxu2  ;;  %v4483_v20 = vpop.f32.mrf.mxu0 }
 0x5e6   :  { %v4570_v3 = vadd.f32 %v4569_v47, %v4481_v29  ;;  %v4572_v37 = vpop.f32.mrf.mxu1 }
 0x5e8   :  { %v4659_v62 = vadd.f32 %v4658_v63, %v4570_v3  ;;  %4433 = vmatmul.bf16.gmra.mxu3 %v9370_v42  ;;  %4522 = vmatmul.bf16.gmra.mxu0 %v9361_v32  ;;  %v7939_v42 = vld [vmem:[#allocation16 + $0xb8] sm:$0xff] }
 0x5e9   :  { %4611 = vmatmul.bf16.gmra.mxu1 %v9364_v12 }
 0x5ea   :  { %4700 = vmatmul.bf16.gmra.mxu2 %v9374_v52  ;;  %v9430_v9 = vpack.c.bf16 %v4659_v62, %v4657_v18  ;;  %5915 = vmatpush.bf16.msrb.mxu1 %v7939_v42 }
 0x5eb   :  { %v4394_v34 = vpop.f32.mrf.mxu3 }
 0x5ec   :  { %v4484_v27 = vadd.f32 %v4483_v20, %v4394_v34 }
 0x5ed   :  { %v4661_v11 = vpop.f32.mrf.mxu2  ;;  %v4485_v55 = vpop.f32.mrf.mxu0 }
 0x5ee   :  { %v4573_v6 = vadd.f32 %v4572_v37, %v4484_v27  ;;  %v4574_v46 = vpop.f32.mrf.mxu1  ;;  %5916 = vmatpush.bf16.msrb.mxu1 %v7938_v58 }
 0x5f0   :  { %v4662_v33 = vadd.f32 %v4661_v11, %v4573_v6 }
 0x5f3   :  { %v4396_v32 = vpop.f32.mrf.mxu3 }
 0x5f4   :  { %v4486_v12 = vadd.f32 %v4485_v55, %v4396_v32 }
 0x5f5   :  { %v4663_v52 = vpop.f32.mrf.mxu2  ;;  %v4488_v48 = vpop.f32.mrf.mxu0 }
 0x5f6   :  { %v4575_v8 = vadd.f32 %v4574_v46, %v4486_v12  ;;  %v4577_v10 = vpop.f32.mrf.mxu1 }
 0x5f8   :  { %v4664_v41 = vadd.f32 %v4663_v52, %v4575_v8  ;;  %4438 = vmatmul.bf16.gmra.mxu3 %v9390_v56  ;;  %4527 = vmatmul.bf16.gmra.mxu0 %v9381_v22 }
 0x5f9   :  { %4616 = vmatmul.bf16.gmra.mxu1 %v9384_v25 }
 0x5fa   :  { %4705 = vmatmul.bf16.gmra.mxu2 %v9394_v16  ;;  %v9436_v57 = vpack.c.bf16 %v4664_v41, %v4662_v33  ;;  %v7922_v16 = vld [vmem:[#allocation16 + $0x30] sm:$0xff]  ;;  %v7929_v41 = vld [vmem:[#allocation16 + $0x68] sm:$0xff] }
 0x5fb   :  { %v4399_v19 = vpop.f32.mrf.mxu3  ;;  %5738 = vmatpush.bf16.msrb.mxu3 %v7922_v16  ;;  %5828 = vmatpush.bf16.msrb.mxu0 %v7929_v41 }
 0x5fc   :  { %v4489_v21 = vadd.f32 %v4488_v48, %v4399_v19  ;;  %v7937_v19 = vld [vmem:[#allocation16 + $0xa8] sm:$0xff] }
 0x5fd   :  { %v4666_v17 = vpop.f32.mrf.mxu2  ;;  %v4490_v28 = vpop.f32.mrf.mxu0  ;;  %5917 = vmatpush.bf16.msrb.mxu1 %v7937_v19 }
 0x5fe   :  { %v4578_v24 = vadd.f32 %v4577_v10, %v4489_v21  ;;  %v4579_v2 = vpop.f32.mrf.mxu1  ;;  %v7945_v10 = vld [vmem:[#allocation16 + $0xe8] sm:$0xff] }
 0x5ff   :  { %5739 = vmatpush.bf16.msrb.mxu3 %v7921_v39  ;;  %6006 = vmatpush.bf16.msrb.mxu2 %v7945_v10  ;;  %v7919_v10 = vld [vmem:[#allocation16 + $0x18] sm:$0xff] }
 0x600   :  { %v4667_v35 = vadd.f32 %v4666_v17, %v4578_v24 }
 0x603   :  { %v4401_v31 = vpop.f32.mrf.mxu3  ;;  %5740 = vmatpush.bf16.msrb.mxu3 %v7920_v5 }
 0x604   :  { %v4491_v50 = vadd.f32 %v4490_v28, %v4401_v31 }
 0x605   :  { %v4668_v1 = vpop.f32.mrf.mxu2  ;;  %v4493_v26 = vpop.f32.mrf.mxu0 }
 0x606   :  { %v4580_v56 = vadd.f32 %v4579_v2, %v4491_v50  ;;  %v4582_v40 = vpop.f32.mrf.mxu1 }
 0x607   :  { %5741 = vmatpush.bf16.msrb.mxu3 %v7919_v10 }
 0x608   :  { %v4669_v22 = vadd.f32 %v4668_v1, %v4580_v56  ;;  %4937 = vmatmul.bf16.vlgmr.msra.gmra.mxu3 %v9400_v60  ;;  %5026 = vmatmul.bf16.vlgmr.msra.gmra.mxu0 %v9400_v60 }
 0x609   :  { %5115 = vmatmul.bf16.vlgmr.msra.gmra.mxu1 %v9400_v60 }
 0x60a   :  { %5204 = vmatmul.bf16.vlgmr.msra.gmra.mxu2 %v9400_v60  ;;  %v9442_v25 = vpack.c.bf16 %v4669_v22, %v4667_v35 }
 0x60b   :  { %v4404_v49 = vpop.f32.mrf.mxu3 }
 0x60c   :  { %v4494_v7 = vadd.f32 %v4493_v26, %v4404_v49 }
 0x60d   :  { %v4671_v43 = vpop.f32.mrf.mxu2  ;;  %v4495_v53 = vpop.f32.mrf.mxu0 }
 0x60e   :  { %v4583_v15 = vadd.f32 %v4582_v40, %v4494_v7  ;;  %v4584_v4 = vpop.f32.mrf.mxu1 }
 0x610   :  { %v4672_v51 = vadd.f32 %v4671_v43, %v4583_v15 }
 0x613   :  { %v4406_v0 = vpop.f32.mrf.mxu3 }
 0x614   :  { %v4496_v14 = vadd.f32 %v4495_v53, %v4406_v0 }
 0x615   :  { %v4673_v60 = vpop.f32.mrf.mxu2  ;;  %v4498_v36 = vpop.f32.mrf.mxu0 }
 0x616   :  { %v4585_v54 = vadd.f32 %v4584_v4, %v4496_v14  ;;  %v4587_v47 = vpop.f32.mrf.mxu1 }
 0x618   :  { %v4674_v18 = vadd.f32 %v4673_v60, %v4585_v54  ;;  %4942 = vmatmul.bf16.gmra.mxu3 %v9406_v61  ;;  %5031 = vmatmul.bf16.gmra.mxu0 %v9406_v61 }
 0x619   :  { %5120 = vmatmul.bf16.gmra.mxu1 %v9406_v61 }
 0x61a   :  { %5209 = vmatmul.bf16.gmra.mxu2 %v9406_v61  ;;  %v9448_v44 = vpack.c.bf16 %v4674_v18, %v4672_v51  ;;  %v7928_v18 = vld [vmem:[#allocation16 + $0x60] sm:$0xff] }
 0x61b   :  { %v4409_v29 = vpop.f32.mrf.mxu3  ;;  %5829 = vmatpush.bf16.msrb.mxu0 %v7928_v18 }
 0x61c   :  { %v4499_v63 = vadd.f32 %v4498_v36, %v4409_v29  ;;  %v7936_v29 = vld [vmem:[#allocation16 + $0xa0] sm:$0xff] }
 0x61d   :  { %v4676_v20 = vpop.f32.mrf.mxu2  ;;  %v4500_v3 = vpop.f32.mrf.mxu0  ;;  %5918 = vmatpush.bf16.msrb.mxu1 %v7936_v29  ;;  %v7918_v29 = vld [vmem:[#allocation16 + $0x10] sm:$0xff] }
 0x61e   :  { %v4588_v37 = vadd.f32 %v4587_v47, %v4499_v63  ;;  %v4589_v62 = vpop.f32.mrf.mxu1  ;;  %v7944_v47 = vld [vmem:[#allocation16 + $0xe0] sm:$0xff]  ;;  %5742 = vmatpush.bf16.msrb.mxu3 %v7918_v29 }
 0x61f   :  { %6007 = vmatpush.bf16.msrb.mxu2 %v7944_v47 }
 0x620   :  { %v4677_v38 = vadd.f32 %v4676_v20, %v4588_v37 }
 0x623   :  { %v4411_v34 = vpop.f32.mrf.mxu3 }
 0x624   :  { %v4501_v27 = vadd.f32 %v4500_v3, %v4411_v34 }
 0x625   :  { %v4678_v11 = vpop.f32.mrf.mxu2  ;;  %v4503_v55 = vpop.f32.mrf.mxu0 }
 0x626   :  { %v4590_v6 = vadd.f32 %v4589_v62, %v4501_v27  ;;  %v4592_v46 = vpop.f32.mrf.mxu1 }
 0x628   :  { %v4679_v33 = vadd.f32 %v4678_v11, %v4590_v6  ;;  %4947 = vmatmul.bf16.gmra.mxu3 %v9412_v59  ;;  %5036 = vmatmul.bf16.gmra.mxu0 %v9412_v59 }
 0x629   :  { %5125 = vmatmul.bf16.gmra.mxu1 %v9412_v59 }
 0x62a   :  { %5214 = vmatmul.bf16.gmra.mxu2 %v9412_v59  ;;  %v9454_v61 = vpack.c.bf16 %v4679_v33, %v4677_v38 }
 0x62b   :  { %v4414_v13 = vpop.f32.mrf.mxu3 }
 0x62c   :  { %v4504_v42 = vadd.f32 %v4503_v55, %v4414_v13 }
 0x62d   :  { %v4681_v32 = vpop.f32.mrf.mxu2  ;;  %v4505_v12 = vpop.f32.mrf.mxu0 }
 0x62e   :  { %v4593_v52 = vadd.f32 %v4592_v46, %v4504_v42  ;;  %v4594_v48 = vpop.f32.mrf.mxu1 }
 0x630   :  { %v4682_v8 = vadd.f32 %v4681_v32, %v4593_v52 }
 0x633   :  { %v4416_v21 = vpop.f32.mrf.mxu3 }
 0x634   :  { %v4506_v17 = vadd.f32 %v4505_v12, %v4416_v21 }
 0x635   :  { %v4683_v59 = vpop.f32.mrf.mxu2  ;;  %v4508_v28 = vpop.f32.mrf.mxu0 }
 0x636   :  { %v4595_v24 = vadd.f32 %v4594_v48, %v4506_v17  ;;  %v4597_v2 = vpop.f32.mrf.mxu1 }
 0x638   :  { %v4684_v35 = vadd.f32 %v4683_v59, %v4595_v24  ;;  %4952 = vmatmul.bf16.gmra.mxu3 %v9418_v30  ;;  %5041 = vmatmul.bf16.gmra.mxu0 %v9418_v30 }
 0x639   :  { %5130 = vmatmul.bf16.gmra.mxu1 %v9418_v30 }
 0x63a   :  { %5219 = vmatmul.bf16.gmra.mxu2 %v9418_v30  ;;  %v9460_v31 = vpack.c.bf16 %v4684_v35, %v4682_v8  ;;  %v7943_v35 = vld [vmem:[#allocation16 + $0xd8] sm:$0xff] }
 0x63b   :  { %v4419_v50 = vpop.f32.mrf.mxu3  ;;  %6008 = vmatpush.bf16.msrb.mxu2 %v7943_v35 }
 0x63c   :  { %v4509_v1 = vadd.f32 %v4508_v28, %v4419_v50  ;;  %v7927_v50 = vld [vmem:[#allocation16 + $0x58] sm:$0xff] }
 0x63d   :  { %v4686_v26 = vpop.f32.mrf.mxu2  ;;  %v4510_v56 = vpop.f32.mrf.mxu0  ;;  %5830 = vmatpush.bf16.msrb.mxu0 %v7927_v50 }
 0x63e   :  { %v4598_v40 = vadd.f32 %v4597_v2, %v4509_v1  ;;  %v4599_v22 = vpop.f32.mrf.mxu1  ;;  %v7935_v1 = vld [vmem:[#allocation16 + $0x98] sm:$0xff] }
 0x63f   :  { %5919 = vmatpush.bf16.msrb.mxu1 %v7935_v1 }
 0x640   :  { %v4687_v16 = vadd.f32 %v4686_v26, %v4598_v40 }
 0x643   :  { %v4421_v49 = vpop.f32.mrf.mxu3 }
 0x644   :  { %v4511_v7 = vadd.f32 %v4510_v56, %v4421_v49 }
 0x645   :  { %v4688_v43 = vpop.f32.mrf.mxu2  ;;  %v4513_v53 = vpop.f32.mrf.mxu0 }
 0x646   :  { %v4600_v15 = vadd.f32 %v4599_v22, %v4511_v7  ;;  %v4602_v4 = vpop.f32.mrf.mxu1 }
 0x648   :  { %v4689_v51 = vadd.f32 %v4688_v43, %v4600_v15  ;;  %4957 = vmatmul.bf16.gmra.mxu3 %v9424_v23  ;;  %5046 = vmatmul.bf16.gmra.mxu0 %v9424_v23 }
 0x649   :  { %5135 = vmatmul.bf16.gmra.mxu1 %v9424_v23 }
 0x64a   :  { %5224 = vmatmul.bf16.gmra.mxu2 %v9424_v23  ;;  %v9466_v30 = vpack.c.bf16 %v4689_v51, %v4687_v16 }
 0x64b   :  { %v4424_v45 = vpop.f32.mrf.mxu3 }
 0x64c   :  { %v4514_v58 = vadd.f32 %v4513_v53, %v4424_v45 }
 0x64d   :  { %v4691_v0 = vpop.f32.mrf.mxu2  ;;  %v4515_v14 = vpop.f32.mrf.mxu0 }
 0x64e   :  { %v4603_v60 = vadd.f32 %v4602_v4, %v4514_v58  ;;  %v4604_v36 = vpop.f32.mrf.mxu1 }
 0x650   :  { %v4692_v54 = vadd.f32 %v4691_v0, %v4603_v60 }
 0x653   :  { %v4426_v63 = vpop.f32.mrf.mxu3 }
 0x654   :  { %v4516_v20 = vadd.f32 %v4515_v14, %v4426_v63  ;;  %v4759_v14 = vld [vmem:[%s9900_s9] sm:$0xf] }
 0x655   :  { %v4693_v23 = vpop.f32.mrf.mxu2  ;;  %v4518_v3 = vpop.f32.mrf.mxu0  ;;  %v9489_v47 = vperm.slane %v4759_v14, 1  ;;  %v9493_v18 = vperm.slane %v4759_v14, 2 }
 0x656   :  { %v4605_v37 = vadd.f32 %v4604_v36, %v4516_v20  ;;  %v4607_v62 = vpop.f32.mrf.mxu1 }
 0x658   :  { %v4694_v38 = vadd.f32 %v4693_v23, %v4605_v37  ;;  %4962 = vmatmul.bf16.gmra.mxu3 %v9430_v9  ;;  %5051 = vmatmul.bf16.gmra.mxu0 %v9430_v9 }
 0x659   :  { %5140 = vmatmul.bf16.gmra.mxu1 %v9430_v9 }
 0x65a   :  { %5229 = vmatmul.bf16.gmra.mxu2 %v9430_v9  ;;  %v9472_v34 = vpack.c.bf16 %v4694_v38, %v4692_v54  ;;  %v9501_v38 = vperm.slane %v4759_v14, 0 }
 0x65b   :  { %v4429_v27 = vpop.f32.mrf.mxu3 }
 0x65c   :  { %v4519_v11 = vadd.f32 %v4518_v3, %v4429_v27 }
 0x65d   :  { %v4696_v55 = vpop.f32.mrf.mxu2  ;;  %v4520_v6 = vpop.f32.mrf.mxu0 }
 0x65e   :  { %v4608_v46 = vadd.f32 %v4607_v62, %v4519_v11  ;;  %v4609_v33 = vpop.f32.mrf.mxu1 }
 0x660   :  { %v4697_v39 = vadd.f32 %v4696_v55, %v4608_v46  ;;  %v9504_v55 = vperm.slane %v4759_v14, 3 }
 0x663   :  { %v4431_v13 = vpop.f32.mrf.mxu3 }
 0x664   :  { %v4521_v42 = vadd.f32 %v4520_v6, %v4431_v13  ;;  %v7942_v13 = vld [vmem:[#allocation16 + $0xd0] sm:$0xff] }
 0x665   :  { %v4698_v32 = vpop.f32.mrf.mxu2  ;;  %v4523_v12 = vpop.f32.mrf.mxu0  ;;  %6009 = vmatpush.bf16.msrb.mxu2 %v7942_v13 }
 0x666   :  { %v4610_v52 = vadd.f32 %v4609_v33, %v4521_v42  ;;  %v4612_v48 = vpop.f32.mrf.mxu1  ;;  %v7926_v42 = vld [vmem:[#allocation16 + $0x50] sm:$0xff] }
 0x667   :  { %5831 = vmatpush.bf16.msrb.mxu0 %v7926_v42 }
 0x668   :  { %v4699_v8 = vadd.f32 %v4698_v32, %v4610_v52  ;;  %4967 = vmatmul.bf16.gmra.mxu3 %v9436_v57  ;;  %5056 = vmatmul.bf16.gmra.mxu0 %v9436_v57  ;;  %v7934_v32 = vld [vmem:[#allocation16 + $0x90] sm:$0xff] }
 0x669   :  { %5145 = vmatmul.bf16.gmra.mxu1 %v9436_v57 }
 0x66a   :  { %5234 = vmatmul.bf16.gmra.mxu2 %v9436_v57  ;;  %v9478_v9 = vpack.c.bf16 %v4699_v8, %v4697_v39  ;;  %5920 = vmatpush.bf16.msrb.mxu1 %v7934_v32 }
 0x66b   :  { %v4434_v41 = vpop.f32.mrf.mxu3 }
 0x66c   :  { %v4524_v19 = vadd.f32 %v4523_v12, %v4434_v41 }
 0x66d   :  { %v4701_v21 = vpop.f32.mrf.mxu2  ;;  %v4525_v17 = vpop.f32.mrf.mxu0 }
 0x66e   :  { %v4613_v59 = vadd.f32 %v4612_v48, %v4524_v19  ;;  %v4614_v28 = vpop.f32.mrf.mxu1 }
 0x670   :  { %v4702_v24 = vadd.f32 %v4701_v21, %v4613_v59 }
 0x673   :  { %v4436_v2 = vpop.f32.mrf.mxu3 }
 0x674   :  { %v4526_v26 = vadd.f32 %v4525_v17, %v4436_v2 }
 0x675   :  { %v4703_v56 = vpop.f32.mrf.mxu2  ;;  %v4528_v40 = vpop.f32.mrf.mxu0 }
 0x676   :  { %v4615_v57 = vadd.f32 %v4614_v28, %v4526_v26  ;;  %v4617_v22 = vpop.f32.mrf.mxu1 }
 0x678   :  { %v4704_v16 = vadd.f32 %v4703_v56, %v4615_v57  ;;  %4972 = vmatmul.bf16.gmra.mxu3 %v9442_v25  ;;  %5061 = vmatmul.bf16.gmra.mxu0 %v9442_v25 }
 0x679   :  { %5150 = vmatmul.bf16.gmra.mxu1 %v9442_v25 }
 0x67a   :  { %5239 = vmatmul.bf16.gmra.mxu2 %v9442_v25  ;;  %v9484_v49 = vpack.c.bf16 %v4704_v16, %v4702_v24 }
 0x67b   :  { %v4439_v7 = vpop.f32.mrf.mxu3 }
 0x67c   :  { %v4529_v43 = vadd.f32 %v4528_v40, %v4439_v7 }
 0x67d   :  { %v4706_v53 = vpop.f32.mrf.mxu2  ;;  %v4530_v15 = vpop.f32.mrf.mxu0 }
 0x67e   :  { %v4618_v4 = vadd.f32 %v4617_v22, %v4529_v43  ;;  %v4619_v51 = vpop.f32.mrf.mxu1 }
 0x680   :  { %v4707_v5 = vadd.f32 %v4706_v53, %v4618_v4 }
 0x683   :  { %v4441_v45 = vpop.f32.mrf.mxu3 }
 0x684   :  { %v4531_v58 = vadd.f32 %v4530_v15, %v4441_v45 }
 0x685   :  { %v4708_v0 = vpop.f32.mrf.mxu2  ;;  %v5027_v60 = vpop.f32.mrf.mxu0 }
 0x686   :  { %v4620_v36 = vadd.f32 %v4619_v51, %v4531_v58  ;;  %v5116_v54 = vpop.f32.mrf.mxu1  ;;  %v5028_v23 = vadd.f32 %v5027_v60, %v9489_v47 }
 0x687   :  { %v5117_v37 = vadd.f32 %v5116_v54, %v9493_v18 }
 0x688   :  { %v4709_v25 = vadd.f32 %v4708_v0, %v4620_v36  ;;  %4977 = vmatmul.bf16.gmra.mxu3 %v9448_v44  ;;  %5066 = vmatmul.bf16.gmra.mxu0 %v9448_v44  ;;  %v5286_v6 = vmax.f32 %v5028_v23, 0.0 }
 0x689   :  { %5155 = vmatmul.bf16.gmra.mxu1 %v9448_v44  ;;  %v5287_v33 = vmax.f32 %v5117_v37, 0.0 }
 0x68a   :  { %5244 = vmatmul.bf16.gmra.mxu2 %v9448_v44  ;;  %v9497_v63 = vpack.c.bf16 %v4709_v25, %v4707_v5 }
 0x68b   :  { %v4938_v20 = vpop.f32.mrf.mxu3 }
 0x68c   :  { %v4939_v12 = vadd.f32 %v4938_v20, %v9501_v38 }
 0x68d   :  { %v5205_v3 = vpop.f32.mrf.mxu2  ;;  %v5029_v62 = vpop.f32.mrf.mxu0 }
 0x68e   :  { %v5030_v27 = vadd.f32 %v5029_v62, %v9489_v47  ;;  %v5118_v11 = vpop.f32.mrf.mxu1  ;;  %v5206_v48 = vadd.f32 %v5205_v3, %v9504_v55  ;;  %v5285_v59 = vmax.f32 %v4939_v12, 0.0  ;;  %v7917_v62 = vld [vmem:[#allocation16 + $0x8] sm:$0xff] }
 0x68f   :  { %v5119_v44 = vadd.f32 %v5118_v11, %v9493_v18  ;;  %5743 = vmatpush.bf16.msrb.mxu3 %v7917_v62 }
 0x690   :  { %v5290_v46 = vmax.f32 %v5030_v27, 0.0  ;;  %v5288_v2 = vmax.f32 %v5206_v48, 0.0 }
 0x691   :  { %v5291_v39 = vmax.f32 %v5119_v44, 0.0 }
 0x692   :  { %v9508_v52 = vpack.c.bf16 %v5290_v46, %v5286_v6 }
 0x693   :  { %v9511_v8 = vpack.c.bf16 %v5291_v39, %v5287_v33  ;;  %v4940_v10 = vpop.f32.mrf.mxu3 }
 0x694   :  { %v4941_v41 = vadd.f32 %v4940_v10, %v9501_v38  ;;  %v7941_v10 = vld [vmem:[#allocation16 + $0xc8] sm:$0xff] }
 0x695   :  { %v5207_v19 = vpop.f32.mrf.mxu2  ;;  %v5032_v17 = vpop.f32.mrf.mxu0  ;;  %6010 = vmatpush.bf16.msrb.mxu2 %v7941_v10 }
 0x696   :  { %v5208_v21 = vadd.f32 %v5207_v19, %v9504_v55  ;;  %v5289_v28 = vmax.f32 %v4941_v41, 0.0  ;;  %v5121_v24 = vpop.f32.mrf.mxu1  ;;  %v5033_v56 = vadd.f32 %v5032_v17, %v9489_v47  ;;  %v7925_v41 = vld [vmem:[#allocation16 + $0x48] sm:$0xff] }
 0x697   :  { %v5122_v57 = vadd.f32 %v5121_v24, %v9493_v18  ;;  %v7933_v19 = vld [vmem:[#allocation16 + $0x88] sm:$0xff]  ;;  %5832 = vmatpush.bf16.msrb.mxu0 %v7925_v41 }
 0x698   :  { %v5292_v35 = vmax.f32 %v5208_v21, 0.0  ;;  %v9515_v50 = vpack.c.bf16 %v5289_v28, %v5285_v59  ;;  %4982 = vmatmul.bf16.gmra.mxu3 %v9454_v61  ;;  %5071 = vmatmul.bf16.gmra.mxu0 %v9454_v61  ;;  %v5294_v53 = vmax.f32 %v5033_v56, 0.0 }
 0x699   :  { %5160 = vmatmul.bf16.gmra.mxu1 %v9454_v61  ;;  %v5295_v4 = vmax.f32 %v5122_v57, 0.0 }
 0x69a   :  { %v9519_v1 = vpack.c.bf16 %v5292_v35, %v5288_v2  ;;  %5249 = vmatmul.bf16.gmra.mxu2 %v9454_v61  ;;  %5921 = vmatpush.bf16.msrb.mxu1 %v7933_v19 }
 0x69b   :  { %v4943_v26 = vpop.f32.mrf.mxu3 }
 0x69c   :  { %v4944_v5 = vadd.f32 %v4943_v26, %v9501_v38 }
 0x69d   :  { %v5210_v40 = vpop.f32.mrf.mxu2  ;;  %v5034_v22 = vpop.f32.mrf.mxu0 }
 0x69e   :  { %v5035_v16 = vadd.f32 %v5034_v22, %v9489_v47  ;;  %v5123_v7 = vpop.f32.mrf.mxu1  ;;  %v5211_v61 = vadd.f32 %v5210_v40, %v9504_v55  ;;  %v5293_v25 = vmax.f32 %v4944_v5, 0.0 }
 0x69f   :  { %v5124_v43 = vadd.f32 %v5123_v7, %v9493_v18 }
 0x6a0   :  { %v5298_v15 = vmax.f32 %v5035_v16, 0.0  ;;  %v5296_v23 = vmax.f32 %v5211_v61, 0.0 }
 0x6a1   :  { %v5299_v51 = vmax.f32 %v5124_v43, 0.0 }
 0x6a2   :  { %v9528_v45 = vpack.c.bf16 %v5298_v15, %v5294_v53 }
 0x6a3   :  { %v4945_v58 = vpop.f32.mrf.mxu3  ;;  %v9531_v0 = vpack.c.bf16 %v5299_v51, %v5295_v4 }
 0x6a4   :  { %v4946_v14 = vadd.f32 %v4945_v58, %v9501_v38 }
 0x6a5   :  { %v5212_v60 = vpop.f32.mrf.mxu2  ;;  %v5037_v54 = vpop.f32.mrf.mxu0 }
 0x6a6   :  { %v5213_v36 = vadd.f32 %v5212_v60, %v9504_v55  ;;  %v5297_v29 = vmax.f32 %v4946_v14, 0.0  ;;  %v5126_v20 = vpop.f32.mrf.mxu1  ;;  %v5038_v44 = vadd.f32 %v5037_v54, %v9489_v47 }
 0x6a7   :  { %v5127_v46 = vadd.f32 %v5126_v20, %v9493_v18 }
 0x6a8   :  { %v5300_v3 = vmax.f32 %v5213_v36, 0.0  ;;  %4987 = vmatmul.bf16.gmra.mxu3 %v9460_v31  ;;  %5076 = vmatmul.bf16.gmra.mxu0 %v9460_v31  ;;  %v9537_v37 = vpack.c.bf16 %v5297_v29, %v5293_v25  ;;  %v5302_v32 = vmax.f32 %v5038_v44, 0.0 }
 0x6a9   :  { %5165 = vmatmul.bf16.gmra.mxu1 %v9460_v31  ;;  %v5303_v48 = vmax.f32 %v5127_v46, 0.0 }
 0x6aa   :  { %5254 = vmatmul.bf16.gmra.mxu2 %v9460_v31  ;;  %v9541_v27 = vpack.c.bf16 %v5300_v3, %v5296_v23 }
 0x6ab   :  { %v4948_v11 = vpop.f32.mrf.mxu3 }
 0x6ac   :  { %v4949_v21 = vadd.f32 %v4948_v11, %v9501_v38 }
 0x6ad   :  { %v5215_v6 = vpop.f32.mrf.mxu2  ;;  %v5039_v33 = vpop.f32.mrf.mxu0 }
 0x6ae   :  { %v5040_v39 = vadd.f32 %v5039_v33, %v9489_v47  ;;  %v5128_v13 = vpop.f32.mrf.mxu1  ;;  %v5216_v59 = vadd.f32 %v5215_v6, %v9504_v55  ;;  %v5301_v40 = vmax.f32 %v4949_v21, 0.0 }
 0x6af   :  { %v5129_v42 = vadd.f32 %v5128_v13, %v9493_v18 }
 0x6b0   :  { %v5306_v12 = vmax.f32 %v5040_v39, 0.0  ;;  %v5304_v16 = vmax.f32 %v5216_v59, 0.0 }
 0x6b1   :  { %v5307_v31 = vmax.f32 %v5129_v42, 0.0 }
 0x6b2   :  { %v9548_v17 = vpack.c.bf16 %v5306_v12, %v5302_v32 }
 0x6b3   :  { %v4950_v28 = vpop.f32.mrf.mxu3  ;;  %v9551_v24 = vpack.c.bf16 %v5307_v31, %v5303_v48  ;;  %v7916_v48 = vld [vmem:[#allocation16] sm:$0xff] }
 0x6b4   :  { %v4951_v2 = vadd.f32 %v4950_v28, %v9501_v38  ;;  %5744 = vmatpush.bf16.msrb.mxu3 %v7916_v48 }
 0x6b5   :  { %v5217_v35 = vpop.f32.mrf.mxu2  ;;  %v5042_v56 = vpop.f32.mrf.mxu0 }
 0x6b6   :  { %v5218_v26 = vadd.f32 %v5217_v35, %v9504_v55  ;;  %v5305_v57 = vmax.f32 %v4951_v2, 0.0  ;;  %v5131_v22 = vpop.f32.mrf.mxu1  ;;  %v5043_v4 = vadd.f32 %v5042_v56, %v9489_v47 }
 0x6b7   :  { %v5132_v5 = vadd.f32 %v5131_v22, %v9493_v18  ;;  %v7924_v22 = vld [vmem:[#allocation16 + $0x40] sm:$0xff] }
 0x6b8   :  { %v5308_v7 = vmax.f32 %v5218_v26, 0.0  ;;  %4992 = vmatmul.bf16.gmra.mxu3 %v9466_v30  ;;  %5081 = vmatmul.bf16.gmra.mxu0 %v9466_v30  ;;  %v9557_v43 = vpack.c.bf16 %v5305_v57, %v5301_v40  ;;  %v5310_v36 = vmax.f32 %v5043_v4, 0.0  ;;  %v7940_v57 = vld [vmem:[#allocation16 + $0xc0] sm:$0xff] }
 0x6b9   :  { %5170 = vmatmul.bf16.gmra.mxu1 %v9466_v30  ;;  %v5311_v25 = vmax.f32 %v5132_v5, 0.0  ;;  %6011 = vmatpush.bf16.msrb.mxu2 %v7940_v57 }
 0x6ba   :  { %5259 = vmatmul.bf16.gmra.mxu2 %v9466_v30  ;;  %v9561_v53 = vpack.c.bf16 %v5308_v7, %v5304_v16  ;;  %v7932_v16 = vld [vmem:[#allocation16 + $0x80] sm:$0xff]  ;;  %5833 = vmatpush.bf16.msrb.mxu0 %v7924_v22 }
 0x6bb   :  { %v4953_v15 = vpop.f32.mrf.mxu3  ;;  %5922 = vmatpush.bf16.msrb.mxu1 %v7932_v16 }
 0x6bc   :  { %v4954_v30 = vadd.f32 %v4953_v15, %v9501_v38 }
 0x6bd   :  { %v5220_v51 = vpop.f32.mrf.mxu2  ;;  %v5044_v61 = vpop.f32.mrf.mxu0 }
 0x6be   :  { %v5045_v58 = vadd.f32 %v5044_v61, %v9489_v47  ;;  %v5133_v14 = vpop.f32.mrf.mxu1  ;;  %v5221_v23 = vadd.f32 %v5220_v51, %v9504_v55  ;;  %v5309_v33 = vmax.f32 %v4954_v30, 0.0 }
 0x6bf   :  { %v5134_v60 = vadd.f32 %v5133_v14, %v9493_v18 }
 0x6c0   :  { %v5314_v54 = vmax.f32 %v5045_v58, 0.0  ;;  %v5312_v42 = vmax.f32 %v5221_v23, 0.0 }
 0x6c1   :  { %v5315_v29 = vmax.f32 %v5134_v60, 0.0 }
 0x6c2   :  { %v9568_v20 = vpack.c.bf16 %v5314_v54, %v5310_v36 }
 0x6c3   :  { %v4955_v3 = vpop.f32.mrf.mxu3  ;;  %v9571_v62 = vpack.c.bf16 %v5315_v29, %v5311_v25 }
 0x6c4   :  { %v4956_v11 = vadd.f32 %v4955_v3, %v9501_v38 }
 0x6c5   :  { %v5222_v44 = vpop.f32.mrf.mxu2  ;;  %v5047_v46 = vpop.f32.mrf.mxu0 }
 0x6c6   :  { %v5223_v6 = vadd.f32 %v5222_v44, %v9504_v55  ;;  %v5313_v39 = vmax.f32 %v4956_v11, 0.0  ;;  %v5136_v13 = vpop.f32.mrf.mxu1  ;;  %v5048_v41 = vadd.f32 %v5047_v46, %v9489_v47 }
 0x6c7   :  { %v5137_v21 = vadd.f32 %v5136_v13, %v9493_v18 }
 0x6c8   :  { %v5316_v32 = vmax.f32 %v5223_v6, 0.0  ;;  %4997 = vmatmul.bf16.gmra.mxu3 %v9472_v34  ;;  %5086 = vmatmul.bf16.gmra.mxu0 %v9472_v34  ;;  %v9577_v12 = vpack.c.bf16 %v5313_v39, %v5309_v33  ;;  %v5318_v26 = vmax.f32 %v5048_v41, 0.0 }
 0x6c9   :  { %5175 = vmatmul.bf16.gmra.mxu1 %v9472_v34  ;;  %v5319_v40 = vmax.f32 %v5137_v21, 0.0 }
 0x6ca   :  { %5264 = vmatmul.bf16.gmra.mxu2 %v9472_v34  ;;  %v9581_v31 = vpack.c.bf16 %v5316_v32, %v5312_v42 }
 0x6cb   :  { %v4958_v10 = vpop.f32.mrf.mxu3 }
 0x6cc   :  { %v4959_v7 = vadd.f32 %v4958_v10, %v9501_v38 }
 0x6cd   :  { %v5225_v19 = vpop.f32.mrf.mxu2  ;;  %v5049_v59 = vpop.f32.mrf.mxu0 }
 0x6ce   :  { %v5050_v28 = vadd.f32 %v5049_v59, %v9489_v47  ;;  %v5138_v2 = vpop.f32.mrf.mxu1  ;;  %v5226_v4 = vadd.f32 %v5225_v19, %v9504_v55  ;;  %v5317_v36 = vmax.f32 %v4959_v7, 0.0 }
 0x6cf   :  { %v5139_v35 = vadd.f32 %v5138_v2, %v9493_v18 }
 0x6d0   :  { %v5322_v56 = vmax.f32 %v5050_v28, 0.0  ;;  %v5320_v29 = vmax.f32 %v5226_v4, 0.0 }
 0x6d1   :  { %v5323_v34 = vmax.f32 %v5139_v35, 0.0 }
 0x6d2   :  { %v9588_v15 = vpack.c.bf16 %v5322_v56, %v5318_v26 }
 0x6d3   :  { %v4960_v51 = vpop.f32.mrf.mxu3  ;;  %v9591_v5 = vpack.c.bf16 %v5323_v34, %v5319_v40 }
 0x6d4   :  { %v4961_v61 = vadd.f32 %v4960_v51, %v9501_v38 }
 0x6d5   :  { %v5227_v58 = vpop.f32.mrf.mxu2  ;;  %v5052_v60 = vpop.f32.mrf.mxu0 }
 0x6d6   :  { %v5228_v14 = vadd.f32 %v5227_v58, %v9504_v55  ;;  %v5321_v54 = vmax.f32 %v4961_v61, 0.0  ;;  %v5141_v25 = vpop.f32.mrf.mxu1  ;;  %v5053_v44 = vadd.f32 %v5052_v60, %v9489_v47 }
 0x6d7   :  { %v5142_v46 = vadd.f32 %v5141_v25, %v9493_v18 }
 0x6d8   :  { %v5324_v30 = vmax.f32 %v5228_v14, 0.0  ;;  %5002 = vmatmul.bf16.gmra.mxu3 %v9478_v9  ;;  %5091 = vmatmul.bf16.gmra.mxu0 %v9478_v9  ;;  %v9597_v23 = vpack.c.bf16 %v5321_v54, %v5317_v36  ;;  %v5326_v32 = vmax.f32 %v5053_v44, 0.0 }
 0x6d9   :  { %5180 = vmatmul.bf16.gmra.mxu1 %v9478_v9  ;;  %v5327_v10 = vmax.f32 %v5142_v46, 0.0 }
 0x6da   :  { %5269 = vmatmul.bf16.gmra.mxu2 %v9478_v9  ;;  %v9601_v3 = vpack.c.bf16 %v5324_v30, %v5320_v29 }
 0x6db   :  { %v4963_v11 = vpop.f32.mrf.mxu3 }
 0x6dc   :  { %v4964_v9 = vadd.f32 %v4963_v11, %v9501_v38 }
 0x6dd   :  { %v5230_v6 = vpop.f32.mrf.mxu2  ;;  %v5054_v33 = vpop.f32.mrf.mxu0 }
 0x6de   :  { %v5055_v39 = vadd.f32 %v5054_v33, %v9489_v47  ;;  %v5143_v13 = vpop.f32.mrf.mxu1  ;;  %v5231_v21 = vadd.f32 %v5230_v6, %v9504_v55  ;;  %v5325_v40 = vmax.f32 %v4964_v9, 0.0 }
 0x6df   :  { %v5144_v42 = vadd.f32 %v5143_v13, %v9493_v18 }
 0x6e0   :  { %v5330_v48 = vmax.f32 %v5055_v39, 0.0  ;;  %v5328_v22 = vmax.f32 %v5231_v21, 0.0 }
 0x6e1   :  { %v5331_v41 = vmax.f32 %v5144_v42, 0.0 }
 0x6e2   :  { %v9608_v19 = vpack.c.bf16 %v5330_v48, %v5326_v32 }
 0x6e3   :  { %v4965_v59 = vpop.f32.mrf.mxu3  ;;  %v9611_v28 = vpack.c.bf16 %v5331_v41, %v5327_v10 }
 0x6e4   :  { %v4966_v2 = vadd.f32 %v4965_v59, %v9501_v38 }
 0x6e5   :  { %v5232_v35 = vpop.f32.mrf.mxu2  ;;  %v5057_v56 = vpop.f32.mrf.mxu0 }
 0x6e6   :  { %v5233_v26 = vadd.f32 %v5232_v35, %v9504_v55  ;;  %v5329_v34 = vmax.f32 %v4966_v2, 0.0  ;;  %v5146_v57 = vpop.f32.mrf.mxu1  ;;  %v5058_v61 = vadd.f32 %v5057_v56, %v9489_v47 }
 0x6e7   :  { %v5147_v14 = vadd.f32 %v5146_v57, %v9493_v18 }
 0x6e8   :  { %v5332_v16 = vmax.f32 %v5233_v26, 0.0  ;;  %5007 = vmatmul.bf16.gmra.mxu3 %v9484_v49  ;;  %5096 = vmatmul.bf16.gmra.mxu0 %v9484_v49  ;;  %v9617_v7 = vpack.c.bf16 %v5329_v34, %v5325_v40  ;;  %v5334_v29 = vmax.f32 %v5058_v61, 0.0 }
 0x6e9   :  { %5185 = vmatmul.bf16.gmra.mxu1 %v9484_v49  ;;  %v5335_v11 = vmax.f32 %v5147_v14, 0.0 }
 0x6ea   :  { %5274 = vmatmul.bf16.gmra.mxu2 %v9484_v49  ;;  %v9621_v4 = vpack.c.bf16 %v5332_v16, %v5328_v22 }
 0x6eb   :  { %v4968_v51 = vpop.f32.mrf.mxu3 }
 0x6ec   :  { %v4969_v49 = vadd.f32 %v4968_v51, %v9501_v38 }
 0x6ed   :  { %v5235_v58 = vpop.f32.mrf.mxu2  ;;  %v5059_v60 = vpop.f32.mrf.mxu0 }
 0x6ee   :  { %v5060_v36 = vadd.f32 %v5059_v60, %v9489_v47  ;;  %v5148_v54 = vpop.f32.mrf.mxu1  ;;  %v5236_v46 = vadd.f32 %v5235_v58, %v9504_v55  ;;  %v5333_v10 = vmax.f32 %v4969_v49, 0.0 }
 0x6ef   :  { %v5149_v25 = vadd.f32 %v5148_v54, %v9493_v18 }
 0x6f0   :  { %v5338_v30 = vmax.f32 %v5060_v36, 0.0  ;;  %v5336_v21 = vmax.f32 %v5236_v46, 0.0 }
 0x6f1   :  { %v5339_v44 = vmax.f32 %v5149_v25, 0.0 }
 0x6f2   :  { %v9628_v6 = vpack.c.bf16 %v5338_v30, %v5334_v29 }
 0x6f3   :  { %v4970_v33 = vpop.f32.mrf.mxu3  ;;  %v9631_v39 = vpack.c.bf16 %v5339_v44, %v5335_v11 }
 0x6f4   :  { %v4971_v13 = vadd.f32 %v4970_v33, %v9501_v38 }
 0x6f5   :  { %v5237_v42 = vpop.f32.mrf.mxu2  ;;  %v5062_v48 = vpop.f32.mrf.mxu0 }
 0x6f6   :  { %v5238_v32 = vadd.f32 %v5237_v42, %v9504_v55  ;;  %v5337_v41 = vmax.f32 %v4971_v13, 0.0  ;;  %v5151_v9 = vpop.f32.mrf.mxu1  ;;  %v5063_v56 = vadd.f32 %v5062_v48, %v9489_v47 }
 0x6f7   :  { %v5152_v34 = vadd.f32 %v5151_v9, %v9493_v18 }
 0x6f8   :  { %v5340_v59 = vmax.f32 %v5238_v32, 0.0  ;;  %5012 = vmatmul.bf16.gmra.mxu3 %v9497_v63  ;;  %5101 = vmatmul.bf16.gmra.mxu0 %v9497_v63  ;;  %v9637_v2 = vpack.c.bf16 %v5337_v41, %v5333_v10  ;;  %v5342_v61 = vmax.f32 %v5063_v56, 0.0 }
 0x6f9   :  { %5190 = vmatmul.bf16.gmra.mxu1 %v9497_v63  ;;  %v5343_v14 = vmax.f32 %v5152_v34, 0.0 }
 0x6fa   :  { %5279 = vmatmul.bf16.gmra.mxu2 %v9497_v63  ;;  %v9641_v35 = vpack.c.bf16 %v5340_v59, %v5336_v21 }
 0x6fb   :  { %v4973_v26 = vpop.f32.mrf.mxu3 }
 0x6fc   :  { %v4974_v63 = vadd.f32 %v4973_v26, %v9501_v38 }
 0x6fd   :  { %v5240_v40 = vpop.f32.mrf.mxu2  ;;  %v5064_v57 = vpop.f32.mrf.mxu0 }
 0x6fe   :  { %v5065_v22 = vadd.f32 %v5064_v57, %v9489_v47  ;;  %v5153_v16 = vpop.f32.mrf.mxu1  ;;  %v5241_v54 = vadd.f32 %v5240_v40, %v9504_v55  ;;  %v5341_v46 = vmax.f32 %v4974_v63, 0.0 }
 0x6ff   :  { %v5154_v51 = vadd.f32 %v5153_v16, %v9493_v18 }
 0x700   :  { %v5346_v58 = vmax.f32 %v5065_v22, 0.0  ;;  %v5344_v42 = vmax.f32 %v5241_v54, 0.0 }
 0x701   :  { %v5347_v60 = vmax.f32 %v5154_v51, 0.0 }
 0x702   :  { %v9648_v36 = vpack.c.bf16 %v5346_v58, %v5342_v61 }
 0x703   :  { %v4975_v25 = vpop.f32.mrf.mxu3  ;;  %v9651_v29 = vpack.c.bf16 %v5347_v60, %v5343_v14 }
 0x704   :  { %v4976_v30 = vadd.f32 %v4975_v25, %v9501_v38 }
 0x705   :  { %v5242_v11 = vpop.f32.mrf.mxu2  ;;  %v5067_v49 = vpop.f32.mrf.mxu0 }
 0x706   :  { %v5243_v44 = vadd.f32 %v5242_v11, %v9504_v55  ;;  %v5345_v33 = vmax.f32 %v4976_v30, 0.0  ;;  %v5156_v13 = vpop.f32.mrf.mxu1  ;;  %v5068_v9 = vadd.f32 %v5067_v49, %v9489_v47 }
 0x707   :  { %v5157_v59 = vadd.f32 %v5156_v13, %v9493_v18 }
 0x708   :  { %v5348_v32 = vmax.f32 %v5243_v44, 0.0  ;;  %5745 = vmatmul.bf16.vlgmr.msrb.gmra.mxu3 %v9515_v50  ;;  %5834 = vmatmul.bf16.vlgmr.msrb.gmra.mxu0 %v9508_v52  ;;  %v9657_v48 = vpack.c.bf16 %v5345_v33, %v5341_v46  ;;  %v5350_v40 = vmax.f32 %v5068_v9, 0.0 }
 0x709   :  { %5923 = vmatmul.bf16.vlgmr.msrb.gmra.mxu1 %v9511_v8  ;;  %v5351_v57 = vmax.f32 %v5157_v59, 0.0 }
 0x70a   :  { %6012 = vmatmul.bf16.vlgmr.msrb.gmra.mxu2 %v9519_v1  ;;  %v9661_v10 = vpack.c.bf16 %v5348_v32, %v5344_v42 }
 0x70b   :  { %v4978_v41 = vpop.f32.mrf.mxu3 }
 0x70c   :  { %v4979_v1 = vadd.f32 %v4978_v41, %v9501_v38 }
 0x70d   :  { %v5245_v21 = vpop.f32.mrf.mxu2  ;;  %v5069_v26 = vpop.f32.mrf.mxu0 }
 0x70e   :  { %v5070_v56 = vadd.f32 %v5069_v26, %v9489_v47  ;;  %v5158_v50 = vpop.f32.mrf.mxu1  ;;  %v5246_v16 = vadd.f32 %v5245_v21, %v9504_v55  ;;  %v5349_v54 = vmax.f32 %v4979_v1, 0.0 }
 0x70f   :  { %v5159_v52 = vadd.f32 %v5158_v50, %v9493_v18 }
 0x710   :  { %v5354_v34 = vmax.f32 %v5070_v56, 0.0  ;;  %v5352_v11 = vmax.f32 %v5246_v16, 0.0 }
 0x711   :  { %v5355_v8 = vmax.f32 %v5159_v52, 0.0 }
 0x712   :  { %v9668_v22 = vpack.c.bf16 %v5354_v34, %v5350_v40 }
 0x713   :  { %v4980_v51 = vpop.f32.mrf.mxu3  ;;  %v9671_v61 = vpack.c.bf16 %v5355_v8, %v5351_v57 }
 0x714   :  { %v4981_v58 = vadd.f32 %v4980_v51, %v9501_v38 }
 0x715   :  { %v5247_v14 = vpop.f32.mrf.mxu2  ;;  %v5072_v63 = vpop.f32.mrf.mxu0 }
 0x716   :  { %v5248_v60 = vadd.f32 %v5247_v14, %v9504_v55  ;;  %v5353_v25 = vmax.f32 %v4981_v58, 0.0  ;;  %v5161_v30 = vpop.f32.mrf.mxu1  ;;  %v5073_v13 = vadd.f32 %v5072_v63, %v9489_v47 }
 0x717   :  { %v5162_v32 = vadd.f32 %v5161_v30, %v9493_v18 }
 0x718   :  { %v5356_v44 = vmax.f32 %v5248_v60, 0.0  ;;  %5750 = vmatmul.bf16.gmra.mxu3 %v9537_v37  ;;  %5839 = vmatmul.bf16.gmra.mxu0 %v9528_v45  ;;  %v9677_v49 = vpack.c.bf16 %v5353_v25, %v5349_v54  ;;  %v5358_v21 = vmax.f32 %v5073_v13, 0.0 }
 0x719   :  { %5928 = vmatmul.bf16.gmra.mxu1 %v9531_v0  ;;  %v5359_v26 = vmax.f32 %v5162_v32, 0.0 }
 0x71a   :  { %6017 = vmatmul.bf16.gmra.mxu2 %v9541_v27  ;;  %v9681_v46 = vpack.c.bf16 %v5356_v44, %v5352_v11 }
 0x71b   :  { %v4983_v33 = vpop.f32.mrf.mxu3 }
 0x71c   :  { %v4984_v27 = vadd.f32 %v4983_v33, %v9501_v38 }
 0x71d   :  { %v5250_v42 = vpop.f32.mrf.mxu2  ;;  %v5074_v41 = vpop.f32.mrf.mxu0 }
 0x71e   :  { %v5075_v9 = vadd.f32 %v5074_v41, %v9489_v47  ;;  %v5163_v37 = vpop.f32.mrf.mxu1  ;;  %v5251_v50 = vadd.f32 %v5250_v42, %v9504_v55  ;;  %v5357_v16 = vmax.f32 %v4984_v27, 0.0 }
 0x71f   :  { %v5164_v45 = vadd.f32 %v5163_v37, %v9493_v18 }
 0x720   :  { %v5362_v59 = vmax.f32 %v5075_v9, 0.0  ;;  %v5360_v14 = vmax.f32 %v5251_v50, 0.0 }
 0x721   :  { %v5363_v0 = vmax.f32 %v5164_v45, 0.0 }
 0x722   :  { %v9688_v56 = vpack.c.bf16 %v5362_v59, %v5358_v21 }
 0x723   :  { %v4985_v52 = vpop.f32.mrf.mxu3  ;;  %v9691_v40 = vpack.c.bf16 %v5363_v0, %v5359_v26 }
 0x724   :  { %v4986_v34 = vadd.f32 %v4985_v52, %v9501_v38 }
 0x725   :  { %v5252_v57 = vpop.f32.mrf.mxu2  ;;  %v5077_v1 = vpop.f32.mrf.mxu0 }
 0x726   :  { %v5253_v8 = vadd.f32 %v5252_v57, %v9504_v55  ;;  %v5361_v51 = vmax.f32 %v4986_v34, 0.0  ;;  %v5166_v58 = vpop.f32.mrf.mxu1  ;;  %v5078_v30 = vadd.f32 %v5077_v1, %v9489_v47 }
 0x727   :  { %v5167_v44 = vadd.f32 %v5166_v58, %v9493_v18 }
 0x728   :  { %v5364_v60 = vmax.f32 %v5253_v8, 0.0  ;;  %5755 = vmatmul.bf16.gmra.mxu3 %v9557_v43  ;;  %5844 = vmatmul.bf16.gmra.mxu0 %v9548_v17  ;;  %v9697_v63 = vpack.c.bf16 %v5361_v51, %v5357_v16  ;;  %v5366_v42 = vmax.f32 %v5078_v30, 0.0 }
 0x729   :  { %5933 = vmatmul.bf16.gmra.mxu1 %v9551_v24  ;;  %v5367_v41 = vmax.f32 %v5167_v44, 0.0 }
 0x72a   :  { %6022 = vmatmul.bf16.gmra.mxu2 %v9561_v53  ;;  %v9701_v54 = vpack.c.bf16 %v5364_v60, %v5360_v14 }
 0x72b   :  { %v4988_v25 = vpop.f32.mrf.mxu3 }
 0x72c   :  { %v4989_v53 = vadd.f32 %v4988_v25, %v9501_v38 }
 0x72d   :  { %v5255_v11 = vpop.f32.mrf.mxu2  ;;  %v5079_v33 = vpop.f32.mrf.mxu0 }
 0x72e   :  { %v5080_v13 = vadd.f32 %v5079_v33, %v9489_v47  ;;  %v5168_v43 = vpop.f32.mrf.mxu1  ;;  %v5256_v37 = vadd.f32 %v5255_v11, %v9504_v55  ;;  %v5365_v50 = vmax.f32 %v4989_v53, 0.0 }
 0x72f   :  { %v5169_v17 = vadd.f32 %v5168_v43, %v9493_v18 }
 0x730   :  { %v5370_v32 = vmax.f32 %v5080_v13, 0.0  ;;  %v5368_v57 = vmax.f32 %v5256_v37, 0.0 }
 0x731   :  { %v5371_v24 = vmax.f32 %v5169_v17, 0.0 }
 0x732   :  { %v9708_v9 = vpack.c.bf16 %v5370_v32, %v5366_v42 }
 0x733   :  { %v4990_v45 = vpop.f32.mrf.mxu3  ;;  %v9711_v21 = vpack.c.bf16 %v5371_v24, %v5367_v41 }
 0x734   :  { %v4991_v59 = vadd.f32 %v4990_v45, %v9501_v38 }
 0x735   :  { %v5257_v26 = vpop.f32.mrf.mxu2  ;;  %v5082_v27 = vpop.f32.mrf.mxu0 }
 0x736   :  { %v5258_v0 = vadd.f32 %v5257_v26, %v9504_v55  ;;  %v5369_v52 = vmax.f32 %v4991_v59, 0.0  ;;  %v5171_v34 = vpop.f32.mrf.mxu1  ;;  %v5083_v58 = vadd.f32 %v5082_v27, %v9489_v47 }
 0x737   :  { %v5172_v60 = vadd.f32 %v5171_v34, %v9493_v18 }
 0x738   :  { %v5372_v8 = vmax.f32 %v5258_v0, 0.0  ;;  %5760 = vmatmul.bf16.gmra.mxu3 %v9577_v12  ;;  %5849 = vmatmul.bf16.gmra.mxu0 %v9568_v20  ;;  %v9717_v1 = vpack.c.bf16 %v5369_v52, %v5365_v50  ;;  %v5374_v11 = vmax.f32 %v5083_v58, 0.0 }
 0x739   :  { %5938 = vmatmul.bf16.gmra.mxu1 %v9571_v62  ;;  %v5375_v33 = vmax.f32 %v5172_v60, 0.0 }
 0x73a   :  { %6027 = vmatmul.bf16.gmra.mxu2 %v9581_v31  ;;  %v9721_v16 = vpack.c.bf16 %v5372_v8, %v5368_v57 }
 0x73b   :  { %v4993_v51 = vpop.f32.mrf.mxu3 }
 0x73c   :  { %v4994_v31 = vadd.f32 %v4993_v51, %v9501_v38 }
 0x73d   :  { %v5260_v14 = vpop.f32.mrf.mxu2  ;;  %v5084_v25 = vpop.f32.mrf.mxu0 }
 0x73e   :  { %v5085_v30 = vadd.f32 %v5084_v25, %v9489_v47  ;;  %v5173_v12 = vpop.f32.mrf.mxu1  ;;  %v5261_v43 = vadd.f32 %v5260_v14, %v9504_v55  ;;  %v5373_v37 = vmax.f32 %v4994_v31, 0.0 }
 0x73f   :  { %v5174_v20 = vadd.f32 %v5173_v12, %v9493_v18 }
 0x740   :  { %v5378_v44 = vmax.f32 %v5085_v30, 0.0  ;;  %v5376_v26 = vmax.f32 %v5261_v43, 0.0 }
 0x741   :  { %v5379_v62 = vmax.f32 %v5174_v20, 0.0 }
 0x742   :  { %v9728_v13 = vpack.c.bf16 %v5378_v44, %v5374_v11 }
 0x743   :  { %v4995_v17 = vpop.f32.mrf.mxu3  ;;  %v9731_v42 = vpack.c.bf16 %v5379_v62, %v5375_v33 }
 0x744   :  { %v4996_v32 = vadd.f32 %v4995_v17, %v9501_v38 }
 0x745   :  { %v5262_v41 = vpop.f32.mrf.mxu2  ;;  %v5087_v53 = vpop.f32.mrf.mxu0 }
 0x746   :  { %v5263_v24 = vadd.f32 %v5262_v41, %v9504_v55  ;;  %v5377_v45 = vmax.f32 %v4996_v32, 0.0  ;;  %v5176_v59 = vpop.f32.mrf.mxu1  ;;  %v5088_v34 = vadd.f32 %v5087_v53, %v9489_v47 }
 0x747   :  { %v5177_v8 = vadd.f32 %v5176_v59, %v9493_v18 }
 0x748   :  { %v5380_v0 = vmax.f32 %v5263_v24, 0.0  ;;  %5765 = vmatmul.bf16.gmra.mxu3 %v9597_v23  ;;  %5854 = vmatmul.bf16.gmra.mxu0 %v9588_v15  ;;  %v9737_v27 = vpack.c.bf16 %v5377_v45, %v5373_v37  ;;  %v5382_v14 = vmax.f32 %v5088_v34, 0.0 }
 0x749   :  { %5943 = vmatmul.bf16.gmra.mxu1 %v9591_v5  ;;  %v5383_v25 = vmax.f32 %v5177_v8, 0.0 }
 0x74a   :  { %6032 = vmatmul.bf16.gmra.mxu2 %v9601_v3  ;;  %v9741_v50 = vpack.c.bf16 %v5380_v0, %v5376_v26 }
 0x74b   :  { %v4998_v52 = vpop.f32.mrf.mxu3 }
 0x74c   :  { %v4999_v3 = vadd.f32 %v4998_v52, %v9501_v38 }
 0x74d   :  { %v5265_v57 = vpop.f32.mrf.mxu2  ;;  %v5089_v51 = vpop.f32.mrf.mxu0 }
 0x74e   :  { %v5090_v58 = vadd.f32 %v5089_v51, %v9489_v47  ;;  %v5178_v23 = vpop.f32.mrf.mxu1  ;;  %v5266_v12 = vadd.f32 %v5265_v57, %v9504_v55  ;;  %v5381_v43 = vmax.f32 %v4999_v3, 0.0 }
 0x74f   :  { %v5179_v15 = vadd.f32 %v5178_v23, %v9493_v18 }
 0x750   :  { %v5386_v60 = vmax.f32 %v5090_v58, 0.0  ;;  %v5384_v41 = vmax.f32 %v5266_v12, 0.0 }
 0x751   :  { %v5387_v5 = vmax.f32 %v5179_v15, 0.0 }
 0x752   :  { %v9748_v30 = vpack.c.bf16 %v5386_v60, %v5382_v14 }
 0x753   :  { %v5000_v20 = vpop.f32.mrf.mxu3  ;;  %v9751_v11 = vpack.c.bf16 %v5387_v5, %v5383_v25 }
 0x754   :  { %v5001_v44 = vadd.f32 %v5000_v20, %v9501_v38 }
 0x755   :  { %v5267_v33 = vpop.f32.mrf.mxu2  ;;  %v5092_v31 = vpop.f32.mrf.mxu0 }
 0x756   :  { %v5268_v62 = vadd.f32 %v5267_v33, %v9504_v55  ;;  %v5385_v17 = vmax.f32 %v5001_v44, 0.0  ;;  %v5181_v32 = vpop.f32.mrf.mxu1  ;;  %v5093_v59 = vadd.f32 %v5092_v31, %v9489_v47 }
 0x757   :  { %v5182_v0 = vadd.f32 %v5181_v32, %v9493_v18 }
 0x758   :  { %v5388_v24 = vmax.f32 %v5268_v62, 0.0  ;;  %5770 = vmatmul.bf16.gmra.mxu3 %v9617_v7  ;;  %5859 = vmatmul.bf16.gmra.mxu0 %v9608_v19  ;;  %v9757_v53 = vpack.c.bf16 %v5385_v17, %v5381_v43  ;;  %v5390_v57 = vmax.f32 %v5093_v59, 0.0 }
 0x759   :  { %5948 = vmatmul.bf16.gmra.mxu1 %v9611_v28  ;;  %v5391_v51 = vmax.f32 %v5182_v0, 0.0 }
 0x75a   :  { %6037 = vmatmul.bf16.gmra.mxu2 %v9621_v4  ;;  %v9761_v37 = vpack.c.bf16 %v5388_v24, %v5384_v41 }
 0x75b   :  { %v5003_v45 = vpop.f32.mrf.mxu3 }
 0x75c   :  { %v5004_v4 = vadd.f32 %v5003_v45, %v9501_v38 }
 0x75d   :  { %v5270_v26 = vpop.f32.mrf.mxu2  ;;  %v5094_v52 = vpop.f32.mrf.mxu0 }
 0x75e   :  { %v5095_v34 = vadd.f32 %v5094_v52, %v9489_v47  ;;  %v5183_v7 = vpop.f32.mrf.mxu1  ;;  %v5271_v23 = vadd.f32 %v5270_v26, %v9504_v55  ;;  %v5389_v12 = vmax.f32 %v5004_v4, 0.0 }
 0x75f   :  { %v5184_v19 = vadd.f32 %v5183_v7, %v9493_v18 }
 0x760   :  { %v5394_v8 = vmax.f32 %v5095_v34, 0.0  ;;  %v5392_v33 = vmax.f32 %v5271_v23, 0.0 }
 0x761   :  { %v5395_v28 = vmax.f32 %v5184_v19, 0.0 }
 0x762   :  { %v9768_v58 = vpack.c.bf16 %v5394_v8, %v5390_v57 }
 0x763   :  { %v5005_v15 = vpop.f32.mrf.mxu3  ;;  %v9771_v14 = vpack.c.bf16 %v5395_v28, %v5391_v51 }
 0x764   :  { %v5006_v60 = vadd.f32 %v5005_v15, %v9501_v38 }
 0x765   :  { %v5272_v25 = vpop.f32.mrf.mxu2  ;;  %v5097_v3 = vpop.f32.mrf.mxu0 }
 0x766   :  { %v5273_v5 = vadd.f32 %v5272_v25, %v9504_v55  ;;  %v5393_v20 = vmax.f32 %v5006_v60, 0.0  ;;  %v5186_v44 = vpop.f32.mrf.mxu1  ;;  %v5098_v32 = vadd.f32 %v5097_v3, %v9489_v47 }
 0x767   :  { %v5187_v24 = vadd.f32 %v5186_v44, %v9493_v18 }
 0x768   :  { %v5396_v62 = vmax.f32 %v5273_v5, 0.0  ;;  %5775 = vmatmul.bf16.gmra.mxu3 %v9637_v2  ;;  %5864 = vmatmul.bf16.gmra.mxu0 %v9628_v6  ;;  %v9777_v31 = vpack.c.bf16 %v5393_v20, %v5389_v12  ;;  %v5398_v26 = vmax.f32 %v5098_v32, 0.0 }
 0x769   :  { %5953 = vmatmul.bf16.gmra.mxu1 %v9631_v39  ;;  %v5399_v52 = vmax.f32 %v5187_v24, 0.0 }
 0x76a   :  { %6042 = vmatmul.bf16.gmra.mxu2 %v9641_v35  ;;  %v9781_v43 = vpack.c.bf16 %v5396_v62, %v5392_v33 }
 0x76b   :  { %v5008_v17 = vpop.f32.mrf.mxu3 }
 0x76c   :  { %v5009_v35 = vadd.f32 %v5008_v17, %v9501_v38 }
 0x76d   :  { %v5275_v41 = vpop.f32.mrf.mxu2  ;;  %v5099_v45 = vpop.f32.mrf.mxu0 }
 0x76e   :  { %v5100_v59 = vadd.f32 %v5099_v45, %v9489_v47  ;;  %v5188_v2 = vpop.f32.mrf.mxu1  ;;  %v5276_v7 = vadd.f32 %v5275_v41, %v9504_v55  ;;  %v5397_v23 = vmax.f32 %v5009_v35, 0.0 }
 0x76f   :  { %v5189_v6 = vadd.f32 %v5188_v2, %v9493_v18 }
 0x770   :  { %v5402_v0 = vmax.f32 %v5100_v59, 0.0  ;;  %v5400_v25 = vmax.f32 %v5276_v7, 0.0 }
 0x771   :  { %v5403_v39 = vmax.f32 %v5189_v6, 0.0 }
 0x772   :  { %v9788_v34 = vpack.c.bf16 %v5402_v0, %v5398_v26 }
 0x773   :  { %v5010_v19 = vpop.f32.mrf.mxu3  ;;  %v9791_v57 = vpack.c.bf16 %v5403_v39, %v5399_v52 }
 0x774   :  { %v5011_v8 = vadd.f32 %v5010_v19, %v9501_v38 }
 0x775   :  { %v5277_v51 = vpop.f32.mrf.mxu2  ;;  %v5102_v4 = vpop.f32.mrf.mxu0 }
 0x776   :  { %v5278_v28 = vadd.f32 %v5277_v51, %v9504_v55  ;;  %v5401_v15 = vmax.f32 %v5011_v8, 0.0  ;;  %v5191_v60 = vpop.f32.mrf.mxu1  ;;  %v5103_v44 = vadd.f32 %v5102_v4, %v9489_v47  ;;  %v9820_v51 = vld [vmem:[%s9902_s11] ss:$0 sm:$0xff]  ;;  %s8258_s11 = smov [#allocation17]  }
 0x777   :  { %v5192_v62 = vadd.f32 %v5191_v60, %v9493_v18  ;;  %s6129_s28 = sshll.u32 %s8258_s11, 4  ;;  %s6130_s28 = int_to_ptr.vmem [resolvable:$true] %s6129_s28 }
 0x778   :  { %v5404_v5 = vmax.f32 %v5278_v28, 0.0  ;;  %5780 = vmatmul.bf16.gmra.mxu3 %v9657_v48  ;;  %5869 = vmatmul.bf16.gmra.mxu0 %v9648_v36  ;;  %v9797_v3 = vpack.c.bf16 %v5401_v15, %v5397_v23  ;;  %v5406_v41 = vmax.f32 %v5103_v44, 0.0 }
 0x779   :  { %5958 = vmatmul.bf16.gmra.mxu1 %v9651_v29  ;;  %v5407_v45 = vmax.f32 %v5192_v62, 0.0 }
 0x77a   :  { %6047 = vmatmul.bf16.gmra.mxu2 %v9661_v10  ;;  %v9801_v12 = vpack.c.bf16 %v5404_v5, %v5400_v25 }
 0x77b   :  { %v5013_v20 = vpop.f32.mrf.mxu3 }
 0x77c   :  { %v5014_v10 = vadd.f32 %v5013_v20, %v9501_v38 }
 0x77d   :  { %v5280_v33 = vpop.f32.mrf.mxu2  ;;  %v5104_v17 = vpop.f32.mrf.mxu0 }
 0x77e   :  { %v5105_v32 = vadd.f32 %v5104_v17, %v9489_v47  ;;  %v5193_v48 = vpop.f32.mrf.mxu1  ;;  %v5281_v2 = vadd.f32 %v5280_v33, %v9504_v55 }
 0x77f   :  { %v5194_v36 = vadd.f32 %v5193_v48, %v9493_v18  ;;  %v5405_v18 = vmax.f32 %v5014_v10, 0.0 }
 0x780   :  { %v5410_v24 = vmax.f32 %v5105_v32, 0.0  ;;  %v5408_v19 = vmax.f32 %v5281_v2, 0.0 }
 0x781   :  { %v5411_v29 = vmax.f32 %v5194_v36, 0.0 }
 0x782   :  { %v9808_v59 = vpack.c.bf16 %v5410_v24, %v5406_v41 }
 0x783   :  { %v5015_v6 = vpop.f32.mrf.mxu3  ;;  %v9811_v26 = vpack.c.bf16 %v5411_v29, %v5407_v45 }
 0x784   :  { %v5016_v0 = vadd.f32 %v5015_v6, %v9501_v38 }
 0x785   :  { %v5282_v52 = vpop.f32.mrf.mxu2  ;;  %v5835_v39 = vpop.f32.mrf.mxu0 }
 0x786   :  { %v5283_v47 = vadd.f32 %v5282_v52, %v9504_v55  ;;  %v5409_v35 = vmax.f32 %v5016_v0, 0.0  ;;  %v5924_v7 = vpop.f32.mrf.mxu1 }
 0x788   :  { %v5412_v8 = vmax.f32 %v5283_v47, 0.0  ;;  %5785 = vmatmul.bf16.gmra.mxu3 %v9677_v49  ;;  %5874 = vmatmul.bf16.gmra.mxu0 %v9668_v22  ;;  %v9822_v28 = vpack.c.bf16 %v5409_v35, %v5405_v18 }
 0x789   :  { %5963 = vmatmul.bf16.gmra.mxu1 %v9671_v61 }
 0x78a   :  { %6052 = vmatmul.bf16.gmra.mxu2 %v9681_v46  ;;  %v9826_v38 = vpack.c.bf16 %v5412_v8, %v5408_v19 }
 0x78b   :  { %v5746_v55 = vpop.f32.mrf.mxu3 }
 0x78c   :  { %v5747_v4 = vadd.f32 %v9820_v51, %v5746_v55 }
 0x78d   :  { %v6013_v23 = vpop.f32.mrf.mxu2  ;;  %v5837_v49 = vpop.f32.mrf.mxu0 }
 0x78e   :  { %v5836_v15 = vadd.f32 %v5835_v39, %v5747_v4  ;;  %v5926_v22 = vpop.f32.mrf.mxu1 }
 0x790   :  { %v5925_v60 = vadd.f32 %v5924_v7, %v5836_v15 }
 0x792   :  { %v6014_v25 = vadd.f32 %v6013_v23, %v5925_v60 }
 0x793   :  { %v5748_v5 = vpop.f32.mrf.mxu3 }
 0x794   :  { %6093 = vst [vmem:[#allocation17] sm:$0xff] %v6014_v25  ;;  %v5749_v20 = vadd.f32 %v9820_v51, %v5748_v5 }
 0x795   :  { %v6015_v44 = vpop.f32.mrf.mxu2  ;;  %v5840_v33 = vpop.f32.mrf.mxu0 }
 0x796   :  { %v5838_v61 = vadd.f32 %v5837_v49, %v5749_v20  ;;  %v5929_v62 = vpop.f32.mrf.mxu1 }
 0x798   :  { %v5927_v46 = vadd.f32 %v5926_v22, %v5838_v61  ;;  %5790 = vmatmul.bf16.gmra.mxu3 %v9697_v63  ;;  %5879 = vmatmul.bf16.gmra.mxu0 %v9688_v56 }
 0x799   :  { %5968 = vmatmul.bf16.gmra.mxu1 %v9691_v40 }
 0x79a   :  { %6057 = vmatmul.bf16.gmra.mxu2 %v9701_v54  ;;  %v6016_v17 = vadd.f32 %v6015_v44, %v5927_v46 }
 0x79b   :  { %v5751_v32 = vpop.f32.mrf.mxu3 }
 0x79c   :  { %6094 = vst [vmem:[#allocation17 + $0x8] sm:$0xff] %v6016_v17  ;;  %v5752_v48 = vadd.f32 %v9820_v51, %v5751_v32 }
 0x79d   :  { %v6018_v36 = vpop.f32.mrf.mxu2  ;;  %v5842_v41 = vpop.f32.mrf.mxu0 }
 0x79e   :  { %v5841_v24 = vadd.f32 %v5840_v33, %v5752_v48  ;;  %v5931_v45 = vpop.f32.mrf.mxu1 }
 0x7a0   :  { %v5930_v29 = vadd.f32 %v5929_v62, %v5841_v24 }
 0x7a2   :  { %v6019_v10 = vadd.f32 %v6018_v36, %v5930_v29 }
 0x7a3   :  { %v5753_v2 = vpop.f32.mrf.mxu3 }
 0x7a4   :  { %6095 = vst [vmem:[#allocation17 + $0x10] sm:$0xff] %v6019_v10  ;;  %v5754_v63 = vadd.f32 %v9820_v51, %v5753_v2 }
 0x7a5   :  { %v6020_v56 = vpop.f32.mrf.mxu2  ;;  %v5845_v6 = vpop.f32.mrf.mxu0 }
 0x7a6   :  { %v5843_v40 = vadd.f32 %v5842_v41, %v5754_v63  ;;  %v5934_v0 = vpop.f32.mrf.mxu1 }
 0x7a8   :  { %v5932_v54 = vadd.f32 %v5931_v45, %v5843_v40  ;;  %5795 = vmatmul.bf16.gmra.mxu3 %v9717_v1  ;;  %5884 = vmatmul.bf16.gmra.mxu0 %v9708_v9 }
 0x7a9   :  { %5973 = vmatmul.bf16.gmra.mxu1 %v9711_v21 }
 0x7aa   :  { %6062 = vmatmul.bf16.gmra.mxu2 %v9721_v16  ;;  %v6021_v52 = vadd.f32 %v6020_v56, %v5932_v54 }
 0x7ab   :  { %v5756_v47 = vpop.f32.mrf.mxu3 }
 0x7ac   :  { %6096 = vst [vmem:[#allocation17 + $0x18] sm:$0xff] %v6021_v52  ;;  %v5757_v39 = vadd.f32 %v9820_v51, %v5756_v47 }
 0x7ad   :  { %v6023_v18 = vpop.f32.mrf.mxu2  ;;  %v5847_v35 = vpop.f32.mrf.mxu0 }
 0x7ae   :  { %v5846_v7 = vadd.f32 %v5845_v6, %v5757_v39  ;;  %v5936_v19 = vpop.f32.mrf.mxu1 }
 0x7b0   :  { %v5935_v8 = vadd.f32 %v5934_v0, %v5846_v7 }
 0x7b2   :  { %v6024_v55 = vadd.f32 %v6023_v18, %v5935_v8 }
 0x7b3   :  { %v5758_v4 = vpop.f32.mrf.mxu3 }
 0x7b4   :  { %6097 = vst [vmem:[#allocation17 + $0x20] sm:$0xff] %v6024_v55  ;;  %v5759_v1 = vadd.f32 %v9820_v51, %v5758_v4 }
 0x7b5   :  { %v6025_v9 = vpop.f32.mrf.mxu2  ;;  %v5850_v23 = vpop.f32.mrf.mxu0 }
 0x7b6   :  { %v5848_v21 = vadd.f32 %v5847_v35, %v5759_v1  ;;  %v5939_v49 = vpop.f32.mrf.mxu1 }
 0x7b8   :  { %v5937_v16 = vadd.f32 %v5936_v19, %v5848_v21  ;;  %5800 = vmatmul.bf16.gmra.mxu3 %v9737_v27  ;;  %5889 = vmatmul.bf16.gmra.mxu0 %v9728_v13 }
 0x7b9   :  { %5978 = vmatmul.bf16.gmra.mxu1 %v9731_v42 }
 0x7ba   :  { %6067 = vmatmul.bf16.gmra.mxu2 %v9741_v50  ;;  %v6026_v15 = vadd.f32 %v6025_v9, %v5937_v16 }
 0x7bb   :  { %v5761_v22 = vpop.f32.mrf.mxu3 }
 0x7bc   :  { %6098 = vst [vmem:[#allocation17 + $0x28] sm:$0xff] %v6026_v15  ;;  %v5762_v60 = vadd.f32 %v9820_v51, %v5761_v22 }
 0x7bd   :  { %v6028_v25 = vpop.f32.mrf.mxu2  ;;  %v5852_v5 = vpop.f32.mrf.mxu0 }
 0x7be   :  { %v5851_v20 = vadd.f32 %v5850_v23, %v5762_v60  ;;  %v5941_v44 = vpop.f32.mrf.mxu1 }
 0x7c0   :  { %v5940_v33 = vadd.f32 %v5939_v49, %v5851_v20 }
 0x7c2   :  { %v6029_v61 = vadd.f32 %v6028_v25, %v5940_v33 }
 0x7c3   :  { %v5763_v62 = vpop.f32.mrf.mxu3 }
 0x7c4   :  { %6099 = vst [vmem:[#allocation17 + $0x30] sm:$0xff] %v6029_v61  ;;  %v5764_v27 = vadd.f32 %v9820_v51, %v5763_v62 }
 0x7c5   :  { %v6030_v13 = vpop.f32.mrf.mxu2  ;;  %v5855_v46 = vpop.f32.mrf.mxu0 }
 0x7c6   :  { %v5853_v42 = vadd.f32 %v5852_v5, %v5764_v27  ;;  %v5944_v17 = vpop.f32.mrf.mxu1 }
 0x7c8   :  { %v5942_v50 = vadd.f32 %v5941_v44, %v5853_v42  ;;  %5805 = vmatmul.bf16.gmra.mxu3 %v9757_v53  ;;  %5894 = vmatmul.bf16.gmra.mxu0 %v9748_v30 }
 0x7c9   :  { %5983 = vmatmul.bf16.gmra.mxu1 %v9751_v11 }
 0x7ca   :  { %6072 = vmatmul.bf16.gmra.mxu2 %v9761_v37  ;;  %v6031_v32 = vadd.f32 %v6030_v13, %v5942_v50 }
 0x7cb   :  { %v5766_v48 = vpop.f32.mrf.mxu3 }
 0x7cc   :  { %6100 = vst [vmem:[#allocation17 + $0x38] sm:$0xff] %v6031_v32  ;;  %v5767_v36 = vadd.f32 %v9820_v51, %v5766_v48 }
 0x7cd   :  { %v6033_v41 = vpop.f32.mrf.mxu2  ;;  %v5857_v24 = vpop.f32.mrf.mxu0 }
 0x7ce   :  { %v5856_v45 = vadd.f32 %v5855_v46, %v5767_v36  ;;  %v5946_v29 = vpop.f32.mrf.mxu1 }
 0x7d0   :  { %v5945_v10 = vadd.f32 %v5944_v17, %v5856_v45 }
 0x7d2   :  { %v6034_v2 = vadd.f32 %v6033_v41, %v5945_v10 }
 0x7d3   :  { %v5768_v63 = vpop.f32.mrf.mxu3 }
 0x7d4   :  { %6101 = vst [vmem:[#allocation17 + $0x40] sm:$0xff] %v6034_v2  ;;  %v5769_v53 = vadd.f32 %v9820_v51, %v5768_v63 }
 0x7d5   :  { %v6035_v30 = vpop.f32.mrf.mxu2  ;;  %v5860_v56 = vpop.f32.mrf.mxu0 }
 0x7d6   :  { %v5858_v11 = vadd.f32 %v5857_v24, %v5769_v53  ;;  %v5949_v6 = vpop.f32.mrf.mxu1 }
 0x7d8   :  { %v5947_v37 = vadd.f32 %v5946_v29, %v5858_v11  ;;  %5810 = vmatmul.bf16.gmra.mxu3 %v9777_v31  ;;  %5899 = vmatmul.bf16.gmra.mxu0 %v9768_v58 }
 0x7d9   :  { %5988 = vmatmul.bf16.gmra.mxu1 %v9771_v14 }
 0x7da   :  { %6077 = vmatmul.bf16.gmra.mxu2 %v9781_v43  ;;  %v6036_v40 = vadd.f32 %v6035_v30, %v5947_v37 }
 0x7db   :  { %v5771_v0 = vpop.f32.mrf.mxu3 }
 0x7dc   :  { %6102 = vst [vmem:[#allocation17 + $0x48] sm:$0xff] %v6036_v40  ;;  %v5772_v54 = vadd.f32 %v9820_v51, %v5771_v0 }
 0x7dd   :  { %v6038_v52 = vpop.f32.mrf.mxu2  ;;  %v5862_v47 = vpop.f32.mrf.mxu0 }
 0x7de   :  { %v5861_v39 = vadd.f32 %v5860_v56, %v5772_v54  ;;  %v5951_v18 = vpop.f32.mrf.mxu1 }
 0x7e0   :  { %v5950_v35 = vadd.f32 %v5949_v6, %v5861_v39 }
 0x7e2   :  { %v6039_v7 = vadd.f32 %v6038_v52, %v5950_v35 }
 0x7e3   :  { %v5773_v19 = vpop.f32.mrf.mxu3 }
 0x7e4   :  { %6103 = vst [vmem:[#allocation17 + $0x50] sm:$0xff] %v6039_v7  ;;  %v5774_v31 = vadd.f32 %v9820_v51, %v5773_v19 }
 0x7e5   :  { %v6040_v58 = vpop.f32.mrf.mxu2  ;;  %v5865_v8 = vpop.f32.mrf.mxu0 }
 0x7e6   :  { %v5863_v14 = vadd.f32 %v5862_v47, %v5774_v31  ;;  %v5954_v55 = vpop.f32.mrf.mxu1 }
 0x7e8   :  { %v5952_v43 = vadd.f32 %v5951_v18, %v5863_v14  ;;  %5815 = vmatmul.bf16.gmra.mxu3 %v9797_v3  ;;  %5904 = vmatmul.bf16.gmra.mxu0 %v9788_v34 }
 0x7e9   :  { %5993 = vmatmul.bf16.gmra.mxu1 %v9791_v57 }
 0x7ea   :  { %6082 = vmatmul.bf16.gmra.mxu2 %v9801_v12  ;;  %v6041_v4 = vadd.f32 %v6040_v58, %v5952_v43 }
 0x7eb   :  { %v5776_v1 = vpop.f32.mrf.mxu3 }
 0x7ec   :  { %6104 = vst [vmem:[#allocation17 + $0x58] sm:$0xff] %v6041_v4  ;;  %v5777_v9 = vadd.f32 %v9820_v51, %v5776_v1 }
 0x7ed   :  { %v6043_v23 = vpop.f32.mrf.mxu2  ;;  %v5867_v21 = vpop.f32.mrf.mxu0 }
 0x7ee   :  { %v5866_v49 = vadd.f32 %v5865_v8, %v5777_v9  ;;  %v5956_v16 = vpop.f32.mrf.mxu1 }
 0x7f0   :  { %v5955_v15 = vadd.f32 %v5954_v55, %v5866_v49 }
 0x7f2   :  { %v6044_v22 = vadd.f32 %v6043_v23, %v5955_v15 }
 0x7f3   :  { %v5778_v60 = vpop.f32.mrf.mxu3 }
 0x7f4   :  { %6105 = vst [vmem:[#allocation17 + $0x60] sm:$0xff] %v6044_v22  ;;  %v5779_v3 = vadd.f32 %v9820_v51, %v5778_v60 }
 0x7f5   :  { %v6045_v34 = vpop.f32.mrf.mxu2  ;;  %v5870_v25 = vpop.f32.mrf.mxu0 }
 0x7f6   :  { %v5868_v57 = vadd.f32 %v5867_v21, %v5779_v3  ;;  %v5959_v5 = vpop.f32.mrf.mxu1 }
 0x7f8   :  { %v5957_v12 = vadd.f32 %v5956_v16, %v5868_v57  ;;  %5820 = vmatmul.bf16.gmra.mxu3 %v9822_v28  ;;  %5909 = vmatmul.bf16.gmra.mxu0 %v9808_v59 }
 0x7f9   :  { %5998 = vmatmul.bf16.gmra.mxu1 %v9811_v26 }
 0x7fa   :  { %6087 = vmatmul.bf16.gmra.mxu2 %v9826_v38  ;;  %v6046_v20 = vadd.f32 %v6045_v34, %v5957_v12 }
 0x7fb   :  { %v5781_v44 = vpop.f32.mrf.mxu3 }
 0x7fc   :  { %6106 = vst [vmem:[#allocation17 + $0x68] sm:$0xff] %v6046_v20  ;;  %v5782_v33 = vadd.f32 %v9820_v51, %v5781_v44 }
 0x7fd   :  { %v6048_v61 = vpop.f32.mrf.mxu2  ;;  %v5872_v62 = vpop.f32.mrf.mxu0 }
 0x7fe   :  { %v5871_v27 = vadd.f32 %v5870_v25, %v5782_v33  ;;  %v5961_v13 = vpop.f32.mrf.mxu1 }
 0x800   :  { %v5960_v46 = vadd.f32 %v5959_v5, %v5871_v27 }
 0x802   :  { %v6049_v42 = vadd.f32 %v6048_v61, %v5960_v46 }
 0x803   :  { %v5783_v17 = vpop.f32.mrf.mxu3 }
 0x804   :  { %6107 = vst [vmem:[#allocation17 + $0x70] sm:$0xff] %v6049_v42  ;;  %v5784_v28 = vadd.f32 %v9820_v51, %v5783_v17 }
 0x805   :  { %v6050_v59 = vpop.f32.mrf.mxu2  ;;  %v5875_v50 = vpop.f32.mrf.mxu0 }
 0x806   :  { %v5873_v26 = vadd.f32 %v5872_v62, %v5784_v28  ;;  %v5964_v32 = vpop.f32.mrf.mxu1 }
 0x808   :  { %v5962_v38 = vadd.f32 %v5961_v13, %v5873_v26 }
 0x80a   :  { %v6051_v48 = vadd.f32 %v6050_v59, %v5962_v38 }
 0x80b   :  { %v5786_v36 = vpop.f32.mrf.mxu3 }
 0x80c   :  { %6108 = vst [vmem:[#allocation17 + $0x78] sm:$0xff] %v6051_v48  ;;  %v5787_v41 = vadd.f32 %v9820_v51, %v5786_v36 }
 0x80d   :  { %v6053_v24 = vpop.f32.mrf.mxu2  ;;  %v5877_v45 = vpop.f32.mrf.mxu0 }
 0x80e   :  { %v5876_v29 = vadd.f32 %v5875_v50, %v5787_v41  ;;  %v5966_v10 = vpop.f32.mrf.mxu1 }
 0x810   :  { %v5965_v2 = vadd.f32 %v5964_v32, %v5876_v29 }
 0x812   :  { %v6054_v63 = vadd.f32 %v6053_v24, %v5965_v2 }
 0x813   :  { %v5788_v53 = vpop.f32.mrf.mxu3 }
 0x814   :  { %6109 = vst [vmem:[#allocation17 + $0x80] sm:$0xff] %v6054_v63  ;;  %v5789_v30 = vadd.f32 %v9820_v51, %v5788_v53 }
 0x815   :  { %v6055_v56 = vpop.f32.mrf.mxu2  ;;  %v5880_v11 = vpop.f32.mrf.mxu0 }
 0x816   :  { %v5878_v6 = vadd.f32 %v5877_v45, %v5789_v30  ;;  %v5969_v37 = vpop.f32.mrf.mxu1 }
 0x818   :  { %v5967_v40 = vadd.f32 %v5966_v10, %v5878_v6 }
 0x81a   :  { %v6056_v0 = vadd.f32 %v6055_v56, %v5967_v40 }
 0x81b   :  { %v5791_v54 = vpop.f32.mrf.mxu3 }
 0x81c   :  { %6110 = vst [vmem:[#allocation17 + $0x88] sm:$0xff] %v6056_v0  ;;  %v5792_v52 = vadd.f32 %v9820_v51, %v5791_v54 }
 0x81d   :  { %v6058_v47 = vpop.f32.mrf.mxu2  ;;  %v5882_v39 = vpop.f32.mrf.mxu0 }
 0x81e   :  { %v5881_v18 = vadd.f32 %v5880_v11, %v5792_v52  ;;  %v5971_v35 = vpop.f32.mrf.mxu1 }
 0x820   :  { %v5970_v7 = vadd.f32 %v5969_v37, %v5881_v18 }
 0x822   :  { %v6059_v19 = vadd.f32 %v6058_v47, %v5970_v7 }
 0x823   :  { %v5793_v31 = vpop.f32.mrf.mxu3 }
 0x824   :  { %6111 = vst [vmem:[#allocation17 + $0x90] sm:$0xff] %v6059_v19  ;;  %v5794_v58 = vadd.f32 %v9820_v51, %v5793_v31 }
 0x825   :  { %v6060_v8 = vpop.f32.mrf.mxu2  ;;  %v5885_v14 = vpop.f32.mrf.mxu0 }
 0x826   :  { %v5883_v55 = vadd.f32 %v5882_v39, %v5794_v58  ;;  %v5974_v43 = vpop.f32.mrf.mxu1 }
 0x828   :  { %v5972_v4 = vadd.f32 %v5971_v35, %v5883_v55 }
 0x82a   :  { %v6061_v1 = vadd.f32 %v6060_v8, %v5972_v4 }
 0x82b   :  { %v5796_v9 = vpop.f32.mrf.mxu3 }
 0x82c   :  { %6112 = vst [vmem:[#allocation17 + $0x98] sm:$0xff] %v6061_v1  ;;  %v5797_v23 = vadd.f32 %v9820_v51, %v5796_v9 }
 0x82d   :  { %v6063_v21 = vpop.f32.mrf.mxu2  ;;  %v5887_v49 = vpop.f32.mrf.mxu0 }
 0x82e   :  { %v5886_v16 = vadd.f32 %v5885_v14, %v5797_v23  ;;  %v5976_v15 = vpop.f32.mrf.mxu1 }
 0x830   :  { %v5975_v22 = vadd.f32 %v5974_v43, %v5886_v16 }
 0x832   :  { %v6064_v60 = vadd.f32 %v6063_v21, %v5975_v22 }
 0x833   :  { %v5798_v3 = vpop.f32.mrf.mxu3 }
 0x834   :  { %6113 = vst [vmem:[#allocation17 + $0xa0] sm:$0xff] %v6064_v60  ;;  %v5799_v34 = vadd.f32 %v9820_v51, %v5798_v3 }
 0x835   :  { %v6065_v25 = vpop.f32.mrf.mxu2  ;;  %v5890_v57 = vpop.f32.mrf.mxu0 }
 0x836   :  { %v5888_v5 = vadd.f32 %v5887_v49, %v5799_v34  ;;  %v5979_v12 = vpop.f32.mrf.mxu1 }
 0x838   :  { %v5977_v20 = vadd.f32 %v5976_v15, %v5888_v5 }
 0x83a   :  { %v6066_v44 = vadd.f32 %v6065_v25, %v5977_v20 }
 0x83b   :  { %v5801_v33 = vpop.f32.mrf.mxu3 }
 0x83c   :  { %6114 = vst [vmem:[#allocation17 + $0xa8] sm:$0xff] %v6066_v44  ;;  %v5802_v61 = vadd.f32 %v9820_v51, %v5801_v33 }
 0x83d   :  { %v6068_v62 = vpop.f32.mrf.mxu2  ;;  %v5892_v27 = vpop.f32.mrf.mxu0 }
 0x83e   :  { %v5891_v13 = vadd.f32 %v5890_v57, %v5802_v61  ;;  %v5981_v46 = vpop.f32.mrf.mxu1 }
 0x840   :  { %v5980_v42 = vadd.f32 %v5979_v12, %v5891_v13 }
 0x842   :  { %v6069_v17 = vadd.f32 %v6068_v62, %v5980_v42 }
 0x843   :  { %v5803_v28 = vpop.f32.mrf.mxu3 }
 0x844   :  { %6115 = vst [vmem:[#allocation17 + $0xb0] sm:$0xff] %v6069_v17  ;;  %v5804_v59 = vadd.f32 %v9820_v51, %v5803_v28 }
 0x845   :  { %v6070_v50 = vpop.f32.mrf.mxu2  ;;  %v5895_v26 = vpop.f32.mrf.mxu0 }
 0x846   :  { %v5893_v32 = vadd.f32 %v5892_v27, %v5804_v59  ;;  %v5984_v38 = vpop.f32.mrf.mxu1 }
 0x848   :  { %v5982_v48 = vadd.f32 %v5981_v46, %v5893_v32 }
 0x84a   :  { %v6071_v36 = vadd.f32 %v6070_v50, %v5982_v48 }
 0x84b   :  { %v5806_v41 = vpop.f32.mrf.mxu3 }
 0x84c   :  { %6116 = vst [vmem:[#allocation17 + $0xb8] sm:$0xff] %v6071_v36  ;;  %v5807_v24 = vadd.f32 %v9820_v51, %v5806_v41 }
 0x84d   :  { %v6073_v45 = vpop.f32.mrf.mxu2  ;;  %v5897_v29 = vpop.f32.mrf.mxu0 }
 0x84e   :  { %v5896_v10 = vadd.f32 %v5895_v26, %v5807_v24  ;;  %v5986_v2 = vpop.f32.mrf.mxu1 }
 0x850   :  { %v5985_v63 = vadd.f32 %v5984_v38, %v5896_v10 }
 0x852   :  { %v6074_v53 = vadd.f32 %v6073_v45, %v5985_v63 }
 0x853   :  { %v5808_v30 = vpop.f32.mrf.mxu3 }
 0x854   :  { %6117 = vst [vmem:[#allocation17 + $0xc0] sm:$0xff] %v6074_v53  ;;  %v5809_v56 = vadd.f32 %v9820_v51, %v5808_v30 }
 0x855   :  { %v6075_v11 = vpop.f32.mrf.mxu2  ;;  %v5900_v6 = vpop.f32.mrf.mxu0 }
 0x856   :  { %v5898_v37 = vadd.f32 %v5897_v29, %v5809_v56  ;;  %v5989_v40 = vpop.f32.mrf.mxu1 }
 0x858   :  { %v5987_v0 = vadd.f32 %v5986_v2, %v5898_v37 }
 0x85a   :  { %v6076_v54 = vadd.f32 %v6075_v11, %v5987_v0 }
 0x85b   :  { %v5811_v52 = vpop.f32.mrf.mxu3 }
 0x85c   :  { %6118 = vst [vmem:[#allocation17 + $0xc8] sm:$0xff] %v6076_v54  ;;  %v5812_v47 = vadd.f32 %v9820_v51, %v5811_v52 }
 0x85d   :  { %v6078_v39 = vpop.f32.mrf.mxu2  ;;  %v5902_v18 = vpop.f32.mrf.mxu0 }
 0x85e   :  { %v5901_v35 = vadd.f32 %v5900_v6, %v5812_v47  ;;  %v5991_v7 = vpop.f32.mrf.mxu1 }
 0x860   :  { %v5990_v19 = vadd.f32 %v5989_v40, %v5901_v35 }
 0x862   :  { %v6079_v31 = vadd.f32 %v6078_v39, %v5990_v19 }
 0x863   :  { %v5813_v58 = vpop.f32.mrf.mxu3 }
 0x864   :  { %6119 = vst [vmem:[#allocation17 + $0xd0] sm:$0xff] %v6079_v31  ;;  %v5814_v8 = vadd.f32 %v9820_v51, %v5813_v58 }
 0x865   :  { %v6080_v14 = vpop.f32.mrf.mxu2  ;;  %v5905_v43 = vpop.f32.mrf.mxu0 }
 0x866   :  { %v5903_v55 = vadd.f32 %v5902_v18, %v5814_v8  ;;  %v5994_v1 = vpop.f32.mrf.mxu1 }
 0x868   :  { %v5992_v4 = vadd.f32 %v5991_v7, %v5903_v55 }
 0x86a   :  { %v6081_v9 = vadd.f32 %v6080_v14, %v5992_v4 }
 0x86b   :  { %v5816_v23 = vpop.f32.mrf.mxu3 }
 0x86c   :  { %6120 = vst [vmem:[#allocation17 + $0xd8] sm:$0xff] %v6081_v9  ;;  %v5817_v21 = vadd.f32 %v9820_v51, %v5816_v23 }
 0x86d   :  { %v6083_v49 = vpop.f32.mrf.mxu2  ;;  %v5907_v22 = vpop.f32.mrf.mxu0 }
 0x86e   :  { %v5906_v16 = vadd.f32 %v5905_v43, %v5817_v21  ;;  %v5996_v3 = vpop.f32.mrf.mxu1 }
 0x870   :  { %v5995_v15 = vadd.f32 %v5994_v1, %v5906_v16 }
 0x872   :  { %v6084_v60 = vadd.f32 %v6083_v49, %v5995_v15 }
 0x873   :  { %v5818_v34 = vpop.f32.mrf.mxu3 }
 0x874   :  { %6121 = vst [vmem:[#allocation17 + $0xe0] sm:$0xff] %v6084_v60  ;;  %v5819_v25 = vadd.f32 %v9820_v51, %v5818_v34 }
 0x875   :  { %v6085_v57 = vpop.f32.mrf.mxu2  ;;  %v5910_v44 = vpop.f32.mrf.mxu0 }
 0x876   :  { %v5908_v5 = vadd.f32 %v5907_v22, %v5819_v25  ;;  %v5999_v62 = vpop.f32.mrf.mxu1 }
 0x878   :  { %v5997_v12 = vadd.f32 %v5996_v3, %v5908_v5 }
 0x87a   :  { %v6086_v20 = vadd.f32 %v6085_v57, %v5997_v12 }
 0x87b   :  { %v5821_v33 = vpop.f32.mrf.mxu3 }
 0x87c   :  { %6122 = vst [vmem:[#allocation17 + $0xe8] sm:$0xff] %v6086_v20  ;;  %v5822_v61 = vadd.f32 %v9820_v51, %v5821_v33 }
 0x87d   :  { %v6088_v13 = vpop.f32.mrf.mxu2  ;;  %v5912_v59 = vpop.f32.mrf.mxu0 }
 0x87e   :  { %v5911_v27 = vadd.f32 %v5910_v44, %v5822_v61  ;;  %v6001_v26 = vpop.f32.mrf.mxu1 }
 0x880   :  { %v6000_v46 = vadd.f32 %v5999_v62, %v5911_v27 }
 0x882   :  { %v6089_v42 = vadd.f32 %v6088_v13, %v6000_v46 }
 0x883   :  { %v5823_v17 = vpop.f32.mrf.mxu3 }
 0x884   :  { %6123 = vst [vmem:[#allocation17 + $0xf0] sm:$0xff] %v6089_v42  ;;  %v5824_v28 = vadd.f32 %v9820_v51, %v5823_v17 }
 0x885   :  { %v6090_v38 = vpop.f32.mrf.mxu2 }
 0x886   :  { %v5913_v50 = vadd.f32 %v5912_v59, %v5824_v28 }
 0x888   :  { %v6002_v32 = vadd.f32 %v6001_v26, %v5913_v50 }
 0x88a   :  { %v6091_v48 = vadd.f32 %v6090_v38, %v6002_v32 }
 0x88c   :  { %6124 = vst [vmem:[#allocation17 + $0xf8] sm:$0xff] %v6091_v48 }
 0x88d   :  { %6137 = dma.vmem_to_hbm [thread:$0]  %s6130_s28, 4096, %s6132_s8, [#allocation4], %s8259_s1, %s8259_s1, %s8260_s15  }
 0x88e   :  { %8241 = dma.done.wait [#allocation4], 4096  }
 0x88f   :  { %8242 = vsyncadd [#allocation4], 4294963200 }
 0x890   :  { %6142 = vsyncpa [#allocation3], 1 }
 0x891   :  { %6143 = vsyncpa [#allocation6], 1 }
 0x892   :  { %6144 = vsyncpa [#allocation9], 1 }
 0x893   :  { %6145 = vsyncpa [#allocation12], 1 }
 0x894   :  { %6146 = vsyncpa [#allocation15], 1 }
 0x895   :  { %6147 = vsyncpa [#allocation4], 1 }

</bundles_post_ra>
